<compile_context>
chip_gen: v7x
topology: tpu7x:2x2x1
jax: 0.10.0
libtpu: 0.0.40
codegen_flags: <defaults>
</compile_context>

<pallas_src>
import functools

import jax
import jax.numpy as jnp
from jax.experimental import pallas as pl
from jax.experimental.pallas import tpu as pltpu


def _round_up(x, m):
    return (x + m - 1) // m * m


# ---------------------------------------------------------------------------
# In-kernel helpers
# ---------------------------------------------------------------------------
def _batchnorm(acc, mask, gamma, beta, inv_count, eps):
    """Training-mode BatchNorm over the masked (valid) output positions."""
    mean = jnp.sum(acc * mask, axis=1, keepdims=True) * inv_count
    cen = acc - mean
    var = jnp.sum(cen * cen * mask, axis=1, keepdims=True) * inv_count
    return cen * jax.lax.rsqrt(var + eps) * gamma + beta


def _folded_conv(reads, k_ref, w_ref):
    """Assemble the shifted tap reads into one (taps*Cin, A) VMEM operand and
    issue a single MXU matmul against the (Cout, taps*Cin) folded weight."""
    rows = reads[0].shape[0]
    for t, piece in enumerate(reads):
        k_ref[t * rows:(t + 1) * rows, :] = piece.astype(jnp.float32)
    return jnp.dot(w_ref[...], k_ref[...], preferred_element_type=jnp.float32)


# ---------------------------------------------------------------------------
# Pallas kernels
# ---------------------------------------------------------------------------
def _stem_kernel(x_ref, w_ref, g_ref, b_ref, m_ref, o_ref, k_ref, *,
                 taps, A, front, eps, inv_count):
    """conv3x3(stride1,pad1) + BN + ReLU, wide zero-bordered bf16 output."""
    mask = m_ref[...]                                             # (1, A) f32
    reads = [x_ref[:, pl.ds(s, A)] for s in taps]                 # 9 x (1, A)
    acc = _folded_conv(reads, k_ref, w_ref)                       # (C, A) f32
    y = jnp.maximum(_batchnorm(acc, mask, g_ref[...], b_ref[...],
                               inv_count, eps), 0.0) * mask
    cout, length = o_ref.shape
    o_ref[:, :front] = jnp.zeros((cout, front), o_ref.dtype)
    o_ref[:, front:front + A] = y.astype(o_ref.dtype)
    o_ref[:, front + A:] = jnp.zeros((cout, length - front - A), o_ref.dtype)


def _block_kernel(*refs, taps1, wg1, A, eps, inv_count, sc_mode, sc_phase,
                  sc_shift, front_mid, front_out, n_pool, pool_inv_count):
    """Whole fused BasicBlock (+ optional fused statistics pooling)."""
    it = iter(refs)
    x_ref = next(it)
    w1_ref, g1_ref, b1_ref = next(it), next(it), next(it)
    w2_ref, g2_ref, b2_ref = next(it), next(it), next(it)
    m_ref = next(it)
    if sc_mode == "conv":
        wsc_ref, gsc_ref, bsc_ref = next(it), next(it), next(it)
    if n_pool:
        pm_ref = next(it)
    o_ref = next(it)
    mid_ref = next(it)
    k1_ref = next(it)
    k2_ref = next(it)

    mask = m_ref[...]                                             # (1, A) f32
    cout = mid_ref.shape[0]

    # ---- conv1 (folded taps -> one MXU matmul) + BN1 + ReLU ---------------
    reads1 = [x_ref[p, :, pl.ds(s, A)] for (p, s) in taps1]
    acc1 = _folded_conv(reads1, k1_ref, w1_ref)
    y1 = jnp.maximum(_batchnorm(acc1, mask, g1_ref[...], b1_ref[...],
                                inv_count, eps), 0.0) * mask

    # ---- stash conv1 result in a zero-bordered VMEM wide scratch ----------
    lm = mid_ref.shape[1]
    mid_ref[:, :front_mid] = jnp.zeros((cout, front_mid), mid_ref.dtype)
    mid_ref[:, front_mid:front_mid + A] = y1.astype(mid_ref.dtype)
    mid_ref[:, front_mid + A:] = jnp.zeros(
        (cout, lm - front_mid - A), mid_ref.dtype)

    # ---- conv2 (stride 1, same wide grid) + BN2 ---------------------------
    base2 = front_mid - wg1 - 1
    reads2 = [mid_ref[:, pl.ds(base2 + di * wg1 + dj, A)]
              for di in range(3) for dj in range(3)]
    acc2 = _folded_conv(reads2, k2_ref, w2_ref)
    y2 = _batchnorm(acc2, mask, g2_ref[...], b2_ref[...], inv_count, eps)

    # ---- shortcut ----------------------------------------------------------
    if sc_mode == "conv":
        xs = x_ref[sc_phase, :, pl.ds(sc_shift, A)].astype(jnp.float32)
        accs = jnp.dot(wsc_ref[...], xs, preferred_element_type=jnp.float32)
        short = _batchnorm(accs, mask, gsc_ref[...], bsc_ref[...],
                           inv_count, eps)
    else:  # identity
        short = x_ref[0, :, pl.ds(sc_shift, A)].astype(jnp.float32)

    out = jnp.maximum(y2 + short, 0.0) * mask                     # (Cout, A)

    if n_pool:
        # ---- fused statistics pooling over overlapping time windows -------
        cols = []
        for i in range(n_pool):
            pm = pm_ref[i:i + 1, :]                               # (1, A)
            mean = jnp.sum(out * pm, axis=1, keepdims=True) * pool_inv_count
            cen = (out - mean) * pm
            var = jnp.sum(cen * cen, axis=1, keepdims=True) * pool_inv_count
            std = jnp.sqrt(jnp.maximum(var, 1e-10))
            cols.append(mean)
            cols.append(std)
        o_ref[...] = jnp.concatenate(cols, axis=1)                # (Cout, 2*n_pool)
    else:
        length = o_ref.shape[1]
        o_ref[:, :front_out] = jnp.zeros((cout, front_out), o_ref.dtype)
        o_ref[:, front_out:front_out + A] = out.astype(o_ref.dtype)
        o_ref[:, front_out + A:] = jnp.zeros(
            (cout, length - front_out - A), o_ref.dtype)


# ---------------------------------------------------------------------------
# Wrapper-side helpers (small, 1x-volume XLA glue)
# ---------------------------------------------------------------------------
def _make_mask(N, Hg, Wg, Hv, Wv):
    m = jnp.zeros((Hg, Wg), jnp.float32).at[:Hv, :Wv].set(1.0)
    return jnp.broadcast_to(m[None], (N, Hg, Wg)).reshape(1, N * Hg * Wg)


def _fold_w3x3(w):
    cout, cin = w.shape[0], w.shape[1]
    return jnp.transpose(w, (0, 2, 3, 1)).reshape(cout, 9 * cin).astype(jnp.float32)


def _col(v):
    return v.reshape(-1, 1).astype(jnp.float32)


def _prep_stride2_input(x_wide, geom):
    """Extract the valid region of a wide activation, pad by 1 and split into
    the 4 stride-2 phases (tiny glue, once per stride-2 block)."""
    C = x_wide.shape[0]
    N, Hg, Wg = geom["N"], geom["Hg"], geom["Wg"]
    Hv, Wv, front = geom["Hv"], geom["Wv"], geom["front"]
    x = x_wide[:, front:front + N * Hg * Wg].reshape(C, N, Hg, Wg)[:, :, :Hv, :Wv]
    xp = jnp.pad(x, ((0, 0), (0, 0), (1, 1), (1, 1)))
    Hp, Wp = Hv + 2, Wv + 2
    if Hp % 2:
        xp = jnp.pad(xp, ((0, 0), (0, 0), (0, 1), (0, 0)))
        Hp += 1
    if Wp % 2:
        xp = jnp.pad(xp, ((0, 0), (0, 0), (0, 0), (0, 1)))
        Wp += 1
    Hr, Wr = Hp // 2, Wp // 2
    phases = jnp.stack([xp[:, :, pi::2, pj::2] for pi in (0, 1) for pj in (0, 1)],
                       axis=0)                                    # (4, C, N, Hr, Wr)
    A = N * Hr * Wr
    phases = phases.reshape(4, C, A)
    phases = jnp.pad(phases, ((0, 0), (0, 0), (0, Wr + 1)))       # tail for tap shifts
    taps = tuple(((di % 2) * 2 + (dj % 2), (di // 2) * Wr + (dj // 2))
                 for di in range(3) for dj in range(3))
    Ho = (Hv - 1) // 2 + 1
    Wo = (Wv - 1) // 2 + 1
    return phases, taps, (Hr, Wr, Ho, Wo, A)


# ---------------------------------------------------------------------------
# Fused stages
# ---------------------------------------------------------------------------
def stem_conv(x_bft, w, gamma, beta):
    """conv3x3(1->C) + BN + ReLU on x:(B, F, T); returns wide bf16 activation."""
    B, F, T = x_bft.shape
    Hg, Wg = F + 1, T + 1                       # >=1 zero row/col margin
    front = _round_up(Wg + 1, 128)
    back = front
    A = B * Hg * Wg
    xw = jnp.pad(x_bft.astype(jnp.bfloat16), ((0, 0), (0, 1), (0, 1)))
    xw = jnp.pad(xw.reshape(1, A), ((0, 0), (front, back)))
    base = front - Wg - 1
    taps = tuple(base + di * Wg + dj for di in range(3) for dj in range(3))
    mask = _make_mask(B, Hg, Wg, F, T)
    cout = w.shape[0]
    kern = functools.partial(_stem_kernel, taps=taps, A=A, front=front,
                             eps=1e-5, inv_count=1.0 / float(B * F * T))
    out = pl.pallas_call(
        kern,
        out_shape=jax.ShapeDtypeStruct((cout, front + A + back), jnp.bfloat16),
        scratch_shapes=[pltpu.VMEM((9, A), jnp.float32)],
    )(xw, _fold_w3x3(w), _col(gamma), _col(beta), mask)
    geom = dict(N=B, Hg=Hg, Wg=Wg, Hv=F, Wv=T, front=front)
    return out, geom


def basic_block(x_wide, geom, p, pool_cfg=None):
    """One fused BasicBlock (optionally with fused statistics pooling)."""
    N = geom["N"]
    stride = p["stride"]
    cin = x_wide.shape[0]
    cout = p["conv1_w"].shape[0]

    if stride == 1:
        Hg, Wg = geom["Hg"], geom["Wg"]
        Hv, Wv = geom["Hv"], geom["Wv"]
        front_in = geom["front"]
        A = N * Hg * Wg
        xin = x_wide[None]                                        # (1, Cin, LEN)
        base = front_in - Wg - 1
        taps1 = tuple((0, base + di * Wg + dj)
                      for di in range(3) for dj in range(3))
        Hgo, Wgo, Ho, Wo = Hg, Wg, Hv, Wv
        if "sc_conv_w" in p:
            sc_mode, sc_phase, sc_shift = "conv", 0, front_in
        else:
            sc_mode, sc_phase, sc_shift = "identity", 0, front_in
    else:
        xin, taps1, (Hgo, Wgo, Ho, Wo, A) = _prep_stride2_input(x_wide, geom)
        sc_mode, sc_phase, sc_shift = "conv", 3, 0

    mask = _make_mask(N, Hgo, Wgo, Ho, Wo)
    inv_count = 1.0 / float(N * Ho * Wo)

    args = [xin.astype(jnp.bfloat16),
            _fold_w3x3(p["conv1_w"]), _col(p["bn1_g"]), _col(p["bn1_b"]),
            _fold_w3x3(p["conv2_w"]), _col(p["bn2_g"]), _col(p["bn2_b"]),
            mask]
    if sc_mode == "conv":
        wsc = p["sc_conv_w"].reshape(cout, cin).astype(jnp.float32)
        args += [wsc, _col(p["sc_bn_g"]), _col(p["sc_bn_b"])]

    n_pool = 0
    pool_inv_count = 1.0
    if pool_cfg is not None:
        nT_len, nT_shift = pool_cfg
        starts = [s for s in range(0, Wo, nT_shift) if s + nT_len <= Wo]
        assert starts, "no pooling window fits"
        Wn = len(starts)
        n_pool = N * Wn
        pool_inv_count = 1.0 / float(Ho * nT_len)
        wm = jnp.stack([jnp.zeros((Hgo, Wgo), jnp.float32)
                        .at[:Ho, s:s + nT_len].set(1.0) for s in starts])
        pmask = (jnp.eye(N, dtype=jnp.float32)[:, None, :, None, None]
                 * wm[None, :, None, :, :]).reshape(n_pool, N * Hgo * Wgo)
        args.append(pmask)
        out_shape = jax.ShapeDtypeStruct((cout, 2 * n_pool), jnp.float32)
        front_out = 0
    else:
        front_out = _round_up(Wgo + 1, 128)
        out_shape = jax.ShapeDtypeStruct(
            (cout, front_out + A + front_out), jnp.bfloat16)

    front_mid = _round_up(Wgo + 1, 128)
    kern = functools.partial(
        _block_kernel, taps1=taps1, wg1=Wgo, A=A, eps=1e-5, inv_count=inv_count,
        sc_mode=sc_mode, sc_phase=sc_phase, sc_shift=sc_shift,
        front_mid=front_mid, front_out=front_out,
        n_pool=n_pool, pool_inv_count=pool_inv_count)

    out = pl.pallas_call(
        kern, out_shape=out_shape,
        scratch_shapes=[
            pltpu.VMEM((cout, front_mid + A + Wgo + 1), jnp.bfloat16),  # conv1 out
            pltpu.VMEM((9 * cin, A), jnp.float32),                       # conv1 operand
            pltpu.VMEM((9 * cout, A), jnp.float32),                      # conv2 operand
        ],
    )(*args)

    if pool_cfg is not None:
        Wn = n_pool // N
        return out.T.reshape(N, Wn, 2 * cout)
    geom_out = dict(N=N, Hg=Hgo, Wg=Wgo, Hv=Ho, Wv=Wo, front=front_out)
    return out, geom_out


# ---------------------------------------------------------------------------
# Model definition (BasicBlock ResNet_SSP), deterministic synthetic init
# ---------------------------------------------------------------------------
def _conv_init(key, cout, cin, kh, kw):
    fan_in = cin * kh * kw
    bound = 1.0 / (fan_in ** 0.5)
    return jax.random.uniform(key, (cout, cin, kh, kw), jnp.float32, -bound, bound)


def make_basic_block_params(key, in_planes, planes, stride):
    k1, k2, k3 = jax.random.split(key, 3)
    p = dict(
        stride=stride,
        conv1_w=_conv_init(k1, planes, in_planes, 3, 3),
        bn1_g=jnp.ones((planes,), jnp.float32),
        bn1_b=jnp.zeros((planes,), jnp.float32),
        conv2_w=_conv_init(k2, planes, planes, 3, 3),
        bn2_g=jnp.ones((planes,), jnp.float32),
        bn2_b=jnp.zeros((planes,), jnp.float32),
    )
    if stride != 1 or in_planes != planes:   # BasicBlock.expansion == 1
        p["sc_conv_w"] = _conv_init(k3, planes, in_planes, 1, 1)
        p["sc_bn_g"] = jnp.ones((planes,), jnp.float32)
        p["sc_bn_b"] = jnp.zeros((planes,), jnp.float32)
    return p


def make_resnet_ssp_params(key, m_channels=4, num_blocks=(1, 1, 1, 1)):
    keys = jax.random.split(key, 1 + sum(num_blocks))
    params = {
        "conv1_w": _conv_init(keys[0], m_channels, 1, 3, 3),
        "bn1_g": jnp.ones((m_channels,), jnp.float32),
        "bn1_b": jnp.zeros((m_channels,), jnp.float32),
    }
    in_planes = m_channels
    planes_list = [m_channels, m_channels * 2, m_channels * 4, m_channels * 8]
    first_strides = [1, 2, 2, 2]
    ki = 1
    for li, (planes, nb, s0) in enumerate(zip(planes_list, num_blocks, first_strides), 1):
        blocks = []
        for s in [s0] + [1] * (nb - 1):
            blocks.append(make_basic_block_params(keys[ki], in_planes, planes, s))
            ki += 1
            in_planes = planes
        params[f"layer{li}"] = blocks
    return params


def resnet_ssp_forward(x, params, nT_len=10, nT_shift=5):
    # x: (B, feat_dim, T).  PyTorch does x.unsqueeze_(1) -> (B, 1, F, T) NCHW.
    h, geom = stem_conv(x, params["conv1_w"], params["bn1_g"], params["bn1_b"])
    blocks = []
    for li in range(1, 5):
        blocks.extend(params[f"layer{li}"])
    for p in blocks[:-1]:
        h, geom = basic_block(h, geom, p)
    # last block: statistics pooling fused into the same kernel
    return basic_block(h, geom, blocks[-1], pool_cfg=(nT_len, nT_shift))


# ---------------------------------------------------------------------------
if __name__ == "__main__":
    key = jax.random.PRNGKey(0)
    pkey, xkey = jax.random.split(key)

    B, feat_dim, T = 2, 16, 32
    m_channels = 4
    params = make_resnet_ssp_params(pkey, m_channels=m_channels,
                                    num_blocks=(1, 1, 1, 1))
    x = jax.random.normal(xkey, (B, feat_dim, T), jnp.float32)

    # After strides 1,2,2,2: freq 16->2, time 32->4.  Window len 2 / shift 1 -> 3 windows.
    fwd = jax.jit(lambda inp: resnet_ssp_forward(inp, params, nT_len=2, nT_shift=1))
    out = jax.block_until_ready(fwd(x))

    C_final = m_channels * 8     # BasicBlock.expansion == 1
    assert out.shape == (B, 3, 2 * C_final), out.shape
    assert bool(jnp.all(jnp.isfinite(out)))
    print("KERNEL_OK")
</pallas_src>

<mosaic_0001>
module attributes {stable_mosaic.version = 11 : i64} {
  func.func @_stem_kernel(%arg0: memref<1x1378xbf16, #tpu.memory_space<vmem>>, %arg1: memref<4x9xf32, #tpu.memory_space<vmem>>, %arg2: memref<4x1xf32, #tpu.memory_space<vmem>>, %arg3: memref<4x1xf32, #tpu.memory_space<vmem>>, %arg4: memref<1x1122xf32, #tpu.memory_space<vmem>>, %arg5: memref<4x1378xbf16, #tpu.memory_space<vmem>>, %arg6: memref<9x1122xf32, #tpu.memory_space<vmem>>) attributes {dimension_semantics = [], scalar_prefetch = 0 : i64, scratch_operands = 1 : i64, tpu.core_type = #tpu.core_type<tc>} {
    %c0 = arith.constant 0 : index
    %c0_0 = arith.constant 0 : index
    %0 = vector.load %arg4[%c0, %c0_0] : memref<1x1122xf32, #tpu.memory_space<vmem>>, vector<1x1122xf32>
    %c0_1 = arith.constant 0 : index
    %c94 = arith.constant 94 : index
    %1 = vector.load %arg0[%c0_1, %c94] : memref<1x1378xbf16, #tpu.memory_space<vmem>>, vector<1x1122xbf16>
    %c0_2 = arith.constant 0 : index
    %c95 = arith.constant 95 : index
    %2 = vector.load %arg0[%c0_2, %c95] : memref<1x1378xbf16, #tpu.memory_space<vmem>>, vector<1x1122xbf16>
    %c0_3 = arith.constant 0 : index
    %c96 = arith.constant 96 : index
    %3 = vector.load %arg0[%c0_3, %c96] : memref<1x1378xbf16, #tpu.memory_space<vmem>>, vector<1x1122xbf16>
    %c0_4 = arith.constant 0 : index
    %c127 = arith.constant 127 : index
    %4 = vector.load %arg0[%c0_4, %c127] : memref<1x1378xbf16, #tpu.memory_space<vmem>>, vector<1x1122xbf16>
    %c0_5 = arith.constant 0 : index
    %c128 = arith.constant 128 : index
    %5 = vector.load %arg0[%c0_5, %c128] : memref<1x1378xbf16, #tpu.memory_space<vmem>>, vector<1x1122xbf16>
    %c0_6 = arith.constant 0 : index
    %c129 = arith.constant 129 : index
    %6 = vector.load %arg0[%c0_6, %c129] : memref<1x1378xbf16, #tpu.memory_space<vmem>>, vector<1x1122xbf16>
    %c0_7 = arith.constant 0 : index
    %c160 = arith.constant 160 : index
    %7 = vector.load %arg0[%c0_7, %c160] : memref<1x1378xbf16, #tpu.memory_space<vmem>>, vector<1x1122xbf16>
    %c0_8 = arith.constant 0 : index
    %c161 = arith.constant 161 : index
    %8 = vector.load %arg0[%c0_8, %c161] : memref<1x1378xbf16, #tpu.memory_space<vmem>>, vector<1x1122xbf16>
    %c0_9 = arith.constant 0 : index
    %c162 = arith.constant 162 : index
    %9 = vector.load %arg0[%c0_9, %c162] : memref<1x1378xbf16, #tpu.memory_space<vmem>>, vector<1x1122xbf16>
    %10 = arith.extf %1 : vector<1x1122xbf16> to vector<1x1122xf32>
    %c0_10 = arith.constant 0 : index
    %c0_11 = arith.constant 0 : index
    %11 = vector.load %arg6[%c0_10, %c0_11] : memref<9x1122xf32, #tpu.memory_space<vmem>>, vector<1x1122xf32>
    tpu.vector_store %arg6[%c0_10, %c0_11], %10 {strides = array<i32>} : memref<9x1122xf32, #tpu.memory_space<vmem>>, vector<1x1122xf32>,
    %12 = arith.extf %2 : vector<1x1122xbf16> to vector<1x1122xf32>
    %c1 = arith.constant 1 : index
    %c0_12 = arith.constant 0 : index
    %13 = vector.load %arg6[%c1, %c0_12] : memref<9x1122xf32, #tpu.memory_space<vmem>>, vector<1x1122xf32>
    tpu.vector_store %arg6[%c1, %c0_12], %12 {strides = array<i32>} : memref<9x1122xf32, #tpu.memory_space<vmem>>, vector<1x1122xf32>,
    %14 = arith.extf %3 : vector<1x1122xbf16> to vector<1x1122xf32>
    %c2 = arith.constant 2 : index
    %c0_13 = arith.constant 0 : index
    %15 = vector.load %arg6[%c2, %c0_13] : memref<9x1122xf32, #tpu.memory_space<vmem>>, vector<1x1122xf32>
    tpu.vector_store %arg6[%c2, %c0_13], %14 {strides = array<i32>} : memref<9x1122xf32, #tpu.memory_space<vmem>>, vector<1x1122xf32>,
    %16 = arith.extf %4 : vector<1x1122xbf16> to vector<1x1122xf32>
    %c3 = arith.constant 3 : index
    %c0_14 = arith.constant 0 : index
    %17 = vector.load %arg6[%c3, %c0_14] : memref<9x1122xf32, #tpu.memory_space<vmem>>, vector<1x1122xf32>
    tpu.vector_store %arg6[%c3, %c0_14], %16 {strides = array<i32>} : memref<9x1122xf32, #tpu.memory_space<vmem>>, vector<1x1122xf32>,
    %18 = arith.extf %5 : vector<1x1122xbf16> to vector<1x1122xf32>
    %c4 = arith.constant 4 : index
    %c0_15 = arith.constant 0 : index
    %19 = vector.load %arg6[%c4, %c0_15] : memref<9x1122xf32, #tpu.memory_space<vmem>>, vector<1x1122xf32>
    tpu.vector_store %arg6[%c4, %c0_15], %18 {strides = array<i32>} : memref<9x1122xf32, #tpu.memory_space<vmem>>, vector<1x1122xf32>,
    %20 = arith.extf %6 : vector<1x1122xbf16> to vector<1x1122xf32>
    %c5 = arith.constant 5 : index
    %c0_16 = arith.constant 0 : index
    %21 = vector.load %arg6[%c5, %c0_16] : memref<9x1122xf32, #tpu.memory_space<vmem>>, vector<1x1122xf32>
    tpu.vector_store %arg6[%c5, %c0_16], %20 {strides = array<i32>} : memref<9x1122xf32, #tpu.memory_space<vmem>>, vector<1x1122xf32>,
    %22 = arith.extf %7 : vector<1x1122xbf16> to vector<1x1122xf32>
    %c6 = arith.constant 6 : index
    %c0_17 = arith.constant 0 : index
    %23 = vector.load %arg6[%c6, %c0_17] : memref<9x1122xf32, #tpu.memory_space<vmem>>, vector<1x1122xf32>
    tpu.vector_store %arg6[%c6, %c0_17], %22 {strides = array<i32>} : memref<9x1122xf32, #tpu.memory_space<vmem>>, vector<1x1122xf32>,
    %24 = arith.extf %8 : vector<1x1122xbf16> to vector<1x1122xf32>
    %c7 = arith.constant 7 : index
    %c0_18 = arith.constant 0 : index
    %25 = vector.load %arg6[%c7, %c0_18] : memref<9x1122xf32, #tpu.memory_space<vmem>>, vector<1x1122xf32>
    tpu.vector_store %arg6[%c7, %c0_18], %24 {strides = array<i32>} : memref<9x1122xf32, #tpu.memory_space<vmem>>, vector<1x1122xf32>,
    %26 = arith.extf %9 : vector<1x1122xbf16> to vector<1x1122xf32>
    %c8 = arith.constant 8 : index
    %c0_19 = arith.constant 0 : index
    %27 = vector.load %arg6[%c8, %c0_19] : memref<9x1122xf32, #tpu.memory_space<vmem>>, vector<1x1122xf32>
    tpu.vector_store %arg6[%c8, %c0_19], %26 {strides = array<i32>} : memref<9x1122xf32, #tpu.memory_space<vmem>>, vector<1x1122xf32>,
    %c0_20 = arith.constant 0 : index
    %c0_21 = arith.constant 0 : index
    %28 = vector.load %arg1[%c0_20, %c0_21] : memref<4x9xf32, #tpu.memory_space<vmem>>, vector<4x9xf32>
    %c0_22 = arith.constant 0 : index
    %c0_23 = arith.constant 0 : index
    %29 = vector.load %arg6[%c0_22, %c0_23] : memref<9x1122xf32, #tpu.memory_space<vmem>>, vector<9x1122xf32>
    %cst = arith.constant dense<0.000000e+00> : vector<4x1122xf32>
    %30 = tpu.matmul %28, %29, %cst {dimension_numbers = #tpu.dot_dimension_numbers<[1], [0], [0], [1], [0, 0, 1, 1], [], []>} : vector<4x9xf32>, vector<9x1122xf32>, vector<4x1122xf32> -> vector<4x1122xf32>
    %c0_24 = arith.constant 0 : index
    %c0_25 = arith.constant 0 : index
    %31 = vector.load %arg2[%c0_24, %c0_25] : memref<4x1xf32, #tpu.memory_space<vmem>>, vector<4x1xf32>
    %c0_26 = arith.constant 0 : index
    %c0_27 = arith.constant 0 : index
    %32 = vector.load %arg3[%c0_26, %c0_27] : memref<4x1xf32, #tpu.memory_space<vmem>>, vector<4x1xf32>
    %33 = vector.broadcast %0 : vector<1x1122xf32> to vector<4x1122xf32>
    %34 = arith.mulf %30, %33 : vector<4x1122xf32>
    %cst_28 = arith.constant dense<0.000000e+00> : vector<4xf32>
    %35 = vector.multi_reduction <add>, %34, %cst_28 [1] : vector<4x1122xf32> to vector<4xf32>
    %36 = vector.shape_cast %35 : vector<4xf32> to vector<4x1xf32>
    %cst_29 = arith.constant 9.765625E-4 : f32
    %37 = vector.broadcast %cst_29 : f32 to vector<4x1xf32>
    %38 = arith.mulf %36, %37 : vector<4x1xf32>
    %39 = vector.broadcast %38 : vector<4x1xf32> to vector<4x1122xf32>
    %40 = arith.subf %30, %39 : vector<4x1122xf32>
    %41 = arith.mulf %40, %40 : vector<4x1122xf32>
    %42 = vector.broadcast %0 : vector<1x1122xf32> to vector<4x1122xf32>
    %43 = arith.mulf %41, %42 : vector<4x1122xf32>
    %cst_30 = arith.constant dense<0.000000e+00> : vector<4xf32>
    %44 = vector.multi_reduction <add>, %43, %cst_30 [1] : vector<4x1122xf32> to vector<4xf32>
    %45 = vector.shape_cast %44 : vector<4xf32> to vector<4x1xf32>
    %cst_31 = arith.constant 9.765625E-4 : f32
    %46 = vector.broadcast %cst_31 : f32 to vector<4x1xf32>
    %47 = arith.mulf %45, %46 : vector<4x1xf32>
    %cst_32 = arith.constant 9.99999974E-6 : f32
    %48 = vector.broadcast %cst_32 : f32 to vector<4x1xf32>
    %49 = arith.addf %47, %48 : vector<4x1xf32>
    %50 = math.rsqrt %49 : vector<4x1xf32>
    %51 = vector.broadcast %50 : vector<4x1xf32> to vector<4x1122xf32>
    %52 = arith.mulf %40, %51 : vector<4x1122xf32>
    %53 = vector.broadcast %31 : vector<4x1xf32> to vector<4x1122xf32>
    %54 = arith.mulf %52, %53 : vector<4x1122xf32>
    %55 = vector.broadcast %32 : vector<4x1xf32> to vector<4x1122xf32>
    %56 = arith.addf %54, %55 : vector<4x1122xf32>
    %cst_33 = arith.constant 0.000000e+00 : f32
    %57 = vector.broadcast %cst_33 : f32 to vector<4x1122xf32>
    %58 = arith.maximumf %56, %57 : vector<4x1122xf32>
    %59 = vector.broadcast %0 : vector<1x1122xf32> to vector<4x1122xf32>
    %60 = arith.mulf %58, %59 : vector<4x1122xf32>
    %cst_34 = arith.constant 0.000000e+00 : bf16
    %61 = vector.broadcast %cst_34 : bf16 to vector<4x128xbf16>
    %c0_35 = arith.constant 0 : index
    %c0_36 = arith.constant 0 : index
    %62 = vector.load %arg5[%c0_35, %c0_36] : memref<4x1378xbf16, #tpu.memory_space<vmem>>, vector<4x128xbf16>
    tpu.vector_store %arg5[%c0_35, %c0_36], %61 {strides = array<i32>} : memref<4x1378xbf16, #tpu.memory_space<vmem>>, vector<4x128xbf16>,
    %63 = arith.truncf %60 : vector<4x1122xf32> to vector<4x1122xbf16>
    %c0_37 = arith.constant 0 : index
    %c128_38 = arith.constant 128 : index
    %64 = vector.load %arg5[%c0_37, %c128_38] : memref<4x1378xbf16, #tpu.memory_space<vmem>>, vector<4x1122xbf16>
    tpu.vector_store %arg5[%c0_37, %c128_38], %63 {strides = array<i32>} : memref<4x1378xbf16, #tpu.memory_space<vmem>>, vector<4x1122xbf16>,
    %cst_39 = arith.constant 0.000000e+00 : bf16
    %65 = vector.broadcast %cst_39 : bf16 to vector<4x128xbf16>
    %c0_40 = arith.constant 0 : index
    %c1250 = arith.constant 1250 : index
    %66 = vector.load %arg5[%c0_40, %c1250] : memref<4x1378xbf16, #tpu.memory_space<vmem>>, vector<4x128xbf16>
    tpu.vector_store %arg5[%c0_40, %c1250], %65 {strides = array<i32>} : memref<4x1378xbf16, #tpu.memory_space<vmem>>, vector<4x128xbf16>,
    return
  }
}

module attributes {stable_mosaic.version = 11 : i64} {
  func.func @_block_kernel(%arg0: memref<1x4x1378xbf16, #tpu.memory_space<vmem>>, %arg1: memref<4x36xf32, #tpu.memory_space<vmem>>, %arg2: memref<4x1xf32, #tpu.memory_space<vmem>>, %arg3: memref<4x1xf32, #tpu.memory_space<vmem>>, %arg4: memref<4x36xf32, #tpu.memory_space<vmem>>, %arg5: memref<4x1xf32, #tpu.memory_space<vmem>>, %arg6: memref<4x1xf32, #tpu.memory_space<vmem>>, %arg7: memref<1x1122xf32, #tpu.memory_space<vmem>>, %arg8: memref<4x1378xbf16, #tpu.memory_space<vmem>>, %arg9: memref<4x1284xbf16, #tpu.memory_space<vmem>>, %arg10: memref<36x1122xf32, #tpu.memory_space<vmem>>, %arg11: memref<36x1122xf32, #tpu.memory_space<vmem>>) attributes {dimension_semantics = [], scalar_prefetch = 0 : i64, scratch_operands = 3 : i64, tpu.core_type = #tpu.core_type<tc>} {
    %c0 = arith.constant 0 : index
    %c0_0 = arith.constant 0 : index
    %0 = vector.load %arg7[%c0, %c0_0] : memref<1x1122xf32, #tpu.memory_space<vmem>>, vector<1x1122xf32>
    %c0_1 = arith.constant 0 : index
    %c0_2 = arith.constant 0 : index
    %c94 = arith.constant 94 : index
    %1 = vector.load %arg0[%c0_1, %c0_2, %c94] : memref<1x4x1378xbf16, #tpu.memory_space<vmem>>, vector<1x4x1122xbf16>
    %2 = vector.shape_cast %1 : vector<1x4x1122xbf16> to vector<4x1122xbf16>
    %c0_3 = arith.constant 0 : index
    %c0_4 = arith.constant 0 : index
    %c95 = arith.constant 95 : index
    %3 = vector.load %arg0[%c0_3, %c0_4, %c95] : memref<1x4x1378xbf16, #tpu.memory_space<vmem>>, vector<1x4x1122xbf16>
    %4 = vector.shape_cast %3 : vector<1x4x1122xbf16> to vector<4x1122xbf16>
    %c0_5 = arith.constant 0 : index
    %c0_6 = arith.constant 0 : index
    %c96 = arith.constant 96 : index
    %5 = vector.load %arg0[%c0_5, %c0_6, %c96] : memref<1x4x1378xbf16, #tpu.memory_space<vmem>>, vector<1x4x1122xbf16>
    %6 = vector.shape_cast %5 : vector<1x4x1122xbf16> to vector<4x1122xbf16>
    %c0_7 = arith.constant 0 : index
    %c0_8 = arith.constant 0 : index
    %c127 = arith.constant 127 : index
    %7 = vector.load %arg0[%c0_7, %c0_8, %c127] : memref<1x4x1378xbf16, #tpu.memory_space<vmem>>, vector<1x4x1122xbf16>
    %8 = vector.shape_cast %7 : vector<1x4x1122xbf16> to vector<4x1122xbf16>
    %c0_9 = arith.constant 0 : index
    %c0_10 = arith.constant 0 : index
    %c128 = arith.constant 128 : index
    %9 = vector.load %arg0[%c0_9, %c0_10, %c128] : memref<1x4x1378xbf16, #tpu.memory_space<vmem>>, vector<1x4x1122xbf16>
    %10 = vector.shape_cast %9 : vector<1x4x1122xbf16> to vector<4x1122xbf16>
    %c0_11 = arith.constant 0 : index
    %c0_12 = arith.constant 0 : index
    %c129 = arith.constant 129 : index
    %11 = vector.load %arg0[%c0_11, %c0_12, %c129] : memref<1x4x1378xbf16, #tpu.memory_space<vmem>>, vector<1x4x1122xbf16>
    %12 = vector.shape_cast %11 : vector<1x4x1122xbf16> to vector<4x1122xbf16>
    %c0_13 = arith.constant 0 : index
    %c0_14 = arith.constant 0 : index
    %c160 = arith.constant 160 : index
    %13 = vector.load %arg0[%c0_13, %c0_14, %c160] : memref<1x4x1378xbf16, #tpu.memory_space<vmem>>, vector<1x4x1122xbf16>
    %14 = vector.shape_cast %13 : vector<1x4x1122xbf16> to vector<4x1122xbf16>
    %c0_15 = arith.constant 0 : index
    %c0_16 = arith.constant 0 : index
    %c161 = arith.constant 161 : index
    %15 = vector.load %arg0[%c0_15, %c0_16, %c161] : memref<1x4x1378xbf16, #tpu.memory_space<vmem>>, vector<1x4x1122xbf16>
    %16 = vector.shape_cast %15 : vector<1x4x1122xbf16> to vector<4x1122xbf16>
    %c0_17 = arith.constant 0 : index
    %c0_18 = arith.constant 0 : index
    %c162 = arith.constant 162 : index
    %17 = vector.load %arg0[%c0_17, %c0_18, %c162] : memref<1x4x1378xbf16, #tpu.memory_space<vmem>>, vector<1x4x1122xbf16>
    %18 = vector.shape_cast %17 : vector<1x4x1122xbf16> to vector<4x1122xbf16>
    %19 = arith.extf %2 : vector<4x1122xbf16> to vector<4x1122xf32>
    %c0_19 = arith.constant 0 : index
    %c0_20 = arith.constant 0 : index
    %20 = vector.load %arg10[%c0_19, %c0_20] : memref<36x1122xf32, #tpu.memory_space<vmem>>, vector<4x1122xf32>
    tpu.vector_store %arg10[%c0_19, %c0_20], %19 {strides = array<i32>} : memref<36x1122xf32, #tpu.memory_space<vmem>>, vector<4x1122xf32>,
    %21 = arith.extf %4 : vector<4x1122xbf16> to vector<4x1122xf32>
    %c4 = arith.constant 4 : index
    %c0_21 = arith.constant 0 : index
    %22 = vector.load %arg10[%c4, %c0_21] : memref<36x1122xf32, #tpu.memory_space<vmem>>, vector<4x1122xf32>
    tpu.vector_store %arg10[%c4, %c0_21], %21 {strides = array<i32>} : memref<36x1122xf32, #tpu.memory_space<vmem>>, vector<4x1122xf32>,
    %23 = arith.extf %6 : vector<4x1122xbf16> to vector<4x1122xf32>
    %c8 = arith.constant 8 : index
    %c0_22 = arith.constant 0 : index
    %24 = vector.load %arg10[%c8, %c0_22] : memref<36x1122xf32, #tpu.memory_space<vmem>>, vector<4x1122xf32>
    tpu.vector_store %arg10[%c8, %c0_22], %23 {strides = array<i32>} : memref<36x1122xf32, #tpu.memory_space<vmem>>, vector<4x1122xf32>,
    %25 = arith.extf %8 : vector<4x1122xbf16> to vector<4x1122xf32>
    %c12 = arith.constant 12 : index
    %c0_23 = arith.constant 0 : index
    %26 = vector.load %arg10[%c12, %c0_23] : memref<36x1122xf32, #tpu.memory_space<vmem>>, vector<4x1122xf32>
    tpu.vector_store %arg10[%c12, %c0_23], %25 {strides = array<i32>} : memref<36x1122xf32, #tpu.memory_space<vmem>>, vector<4x1122xf32>,
    %27 = arith.extf %10 : vector<4x1122xbf16> to vector<4x1122xf32>
    %c16 = arith.constant 16 : index
    %c0_24 = arith.constant 0 : index
    %28 = vector.load %arg10[%c16, %c0_24] : memref<36x1122xf32, #tpu.memory_space<vmem>>, vector<4x1122xf32>
    tpu.vector_store %arg10[%c16, %c0_24], %27 {strides = array<i32>} : memref<36x1122xf32, #tpu.memory_space<vmem>>, vector<4x1122xf32>,
    %29 = arith.extf %12 : vector<4x1122xbf16> to vector<4x1122xf32>
    %c20 = arith.constant 20 : index
    %c0_25 = arith.constant 0 : index
    %30 = vector.load %arg10[%c20, %c0_25] : memref<36x1122xf32, #tpu.memory_space<vmem>>, vector<4x1122xf32>
    tpu.vector_store %arg10[%c20, %c0_25], %29 {strides = array<i32>} : memref<36x1122xf32, #tpu.memory_space<vmem>>, vector<4x1122xf32>,
    %31 = arith.extf %14 : vector<4x1122xbf16> to vector<4x1122xf32>
    %c24 = arith.constant 24 : index
    %c0_26 = arith.constant 0 : index
    %32 = vector.load %arg10[%c24, %c0_26] : memref<36x1122xf32, #tpu.memory_space<vmem>>, vector<4x1122xf32>
    tpu.vector_store %arg10[%c24, %c0_26], %31 {strides = array<i32>} : memref<36x1122xf32, #tpu.memory_space<vmem>>, vector<4x1122xf32>,
    %33 = arith.extf %16 : vector<4x1122xbf16> to vector<4x1122xf32>
    %c28 = arith.constant 28 : index
    %c0_27 = arith.constant 0 : index
    %34 = vector.load %arg10[%c28, %c0_27] : memref<36x1122xf32, #tpu.memory_space<vmem>>, vector<4x1122xf32>
    tpu.vector_store %arg10[%c28, %c0_27], %33 {strides = array<i32>} : memref<36x1122xf32, #tpu.memory_space<vmem>>, vector<4x1122xf32>,
    %35 = arith.extf %18 : vector<4x1122xbf16> to vector<4x1122xf32>
    %c32 = arith.constant 32 : index
    %c0_28 = arith.constant 0 : index
    %36 = vector.load %arg10[%c32, %c0_28] : memref<36x1122xf32, #tpu.memory_space<vmem>>, vector<4x1122xf32>
    tpu.vector_store %arg10[%c32, %c0_28], %35 {strides = array<i32>} : memref<36x1122xf32, #tpu.memory_space<vmem>>, vector<4x1122xf32>,
    %c0_29 = arith.constant 0 : index
    %c0_30 = arith.constant 0 : index
    %37 = vector.load %arg1[%c0_29, %c0_30] : memref<4x36xf32, #tpu.memory_space<vmem>>, vector<4x36xf32>
    %c0_31 = arith.constant 0 : index
    %c0_32 = arith.constant 0 : index
    %38 = vector.load %arg10[%c0_31, %c0_32] : memref<36x1122xf32, #tpu.memory_space<vmem>>, vector<36x1122xf32>
    %cst = arith.constant dense<0.000000e+00> : vector<4x1122xf32>
    %39 = tpu.matmul %37, %38, %cst {dimension_numbers = #tpu.dot_dimension_numbers<[1], [0], [0], [1], [0, 0, 1, 1], [], []>} : vector<4x36xf32>, vector<36x1122xf32>, vector<4x1122xf32> -> vector<4x1122xf32>
    %c0_33 = arith.constant 0 : index
    %c0_34 = arith.constant 0 : index
    %40 = vector.load %arg2[%c0_33, %c0_34] : memref<4x1xf32, #tpu.memory_space<vmem>>, vector<4x1xf32>
    %c0_35 = arith.constant 0 : index
    %c0_36 = arith.constant 0 : index
    %41 = vector.load %arg3[%c0_35, %c0_36] : memref<4x1xf32, #tpu.memory_space<vmem>>, vector<4x1xf32>
    %42 = vector.broadcast %0 : vector<1x1122xf32> to vector<4x1122xf32>
    %43 = arith.mulf %39, %42 : vector<4x1122xf32>
    %cst_37 = arith.constant dense<0.000000e+00> : vector<4xf32>
    %44 = vector.multi_reduction <add>, %43, %cst_37 [1] : vector<4x1122xf32> to vector<4xf32>
    %45 = vector.shape_cast %44 : vector<4xf32> to vector<4x1xf32>
    %cst_38 = arith.constant 9.765625E-4 : f32
    %46 = vector.broadcast %cst_38 : f32 to vector<4x1xf32>
    %47 = arith.mulf %45, %46 : vector<4x1xf32>
    %48 = vector.broadcast %47 : vector<4x1xf32> to vector<4x1122xf32>
    %49 = arith.subf %39, %48 : vector<4x1122xf32>
    %50 = arith.mulf %49, %49 : vector<4x1122xf32>
    %51 = vector.broadcast %0 : vector<1x1122xf32> to vector<4x1122xf32>
    %52 = arith.mulf %50, %51 : vector<4x1122xf32>
    %cst_39 = arith.constant dense<0.000000e+00> : vector<4xf32>
    %53 = vector.multi_reduction <add>, %52, %cst_39 [1] : vector<4x1122xf32> to vector<4xf32>
    %54 = vector.shape_cast %53 : vector<4xf32> to vector<4x1xf32>
    %cst_40 = arith.constant 9.765625E-4 : f32
    %55 = vector.broadcast %cst_40 : f32 to vector<4x1xf32>
    %56 = arith.mulf %54, %55 : vector<4x1xf32>
    %cst_41 = arith.constant 9.99999974E-6 : f32
    %57 = vector.broadcast %cst_41 : f32 to vector<4x1xf32>
    %58 = arith.addf %56, %57 : vector<4x1xf32>
    %59 = math.rsqrt %58 : vector<4x1xf32>
    %60 = vector.broadcast %59 : vector<4x1xf32> to vector<4x1122xf32>
    %61 = arith.mulf %49, %60 : vector<4x1122xf32>
    %62 = vector.broadcast %40 : vector<4x1xf32> to vector<4x1122xf32>
    %63 = arith.mulf %61, %62 : vector<4x1122xf32>
    %64 = vector.broadcast %41 : vector<4x1xf32> to vector<4x1122xf32>
    %65 = arith.addf %63, %64 : vector<4x1122xf32>
    %cst_42 = arith.constant 0.000000e+00 : f32
    %66 = vector.broadcast %cst_42 : f32 to vector<4x1122xf32>
    %67 = arith.maximumf %65, %66 : vector<4x1122xf32>
    %68 = vector.broadcast %0 : vector<1x1122xf32> to vector<4x1122xf32>
    %69 = arith.mulf %67, %68 : vector<4x1122xf32>
    %cst_43 = arith.constant 0.000000e+00 : bf16
    %70 = vector.broadcast %cst_43 : bf16 to vector<4x128xbf16>
    %c0_44 = arith.constant 0 : index
    %c0_45 = arith.constant 0 : index
    %71 = vector.load %arg9[%c0_44, %c0_45] : memref<4x1284xbf16, #tpu.memory_space<vmem>>, vector<4x128xbf16>
    tpu.vector_store %arg9[%c0_44, %c0_45], %70 {strides = array<i32>} : memref<4x1284xbf16, #tpu.memory_space<vmem>>, vector<4x128xbf16>,
    %72 = arith.truncf %69 : vector<4x1122xf32> to vector<4x1122xbf16>
    %c0_46 = arith.constant 0 : index
    %c128_47 = arith.constant 128 : index
    %73 = vector.load %arg9[%c0_46, %c128_47] : memref<4x1284xbf16, #tpu.memory_space<vmem>>, vector<4x1122xbf16>
    tpu.vector_store %arg9[%c0_46, %c128_47], %72 {strides = array<i32>} : memref<4x1284xbf16, #tpu.memory_space<vmem>>, vector<4x1122xbf16>,
    %cst_48 = arith.constant 0.000000e+00 : bf16
    %74 = vector.broadcast %cst_48 : bf16 to vector<4x34xbf16>
    %c0_49 = arith.constant 0 : index
    %c1250 = arith.constant 1250 : index
    %75 = vector.load %arg9[%c0_49, %c1250] : memref<4x1284xbf16, #tpu.memory_space<vmem>>, vector<4x34xbf16>
    tpu.vector_store %arg9[%c0_49, %c1250], %74 {strides = array<i32>} : memref<4x1284xbf16, #tpu.memory_space<vmem>>, vector<4x34xbf16>,
    %c0_50 = arith.constant 0 : index
    %c94_51 = arith.constant 94 : index
    %76 = vector.load %arg9[%c0_50, %c94_51] : memref<4x1284xbf16, #tpu.memory_space<vmem>>, vector<4x1122xbf16>
    %c0_52 = arith.constant 0 : index
    %c95_53 = arith.constant 95 : index
    %77 = vector.load %arg9[%c0_52, %c95_53] : memref<4x1284xbf16, #tpu.memory_space<vmem>>, vector<4x1122xbf16>
    %c0_54 = arith.constant 0 : index
    %c96_55 = arith.constant 96 : index
    %78 = vector.load %arg9[%c0_54, %c96_55] : memref<4x1284xbf16, #tpu.memory_space<vmem>>, vector<4x1122xbf16>
    %c0_56 = arith.constant 0 : index
    %c127_57 = arith.constant 127 : index
    %79 = vector.load %arg9[%c0_56, %c127_57] : memref<4x1284xbf16, #tpu.memory_space<vmem>>, vector<4x1122xbf16>
    %c0_58 = arith.constant 0 : index
    %c128_59 = arith.constant 128 : index
    %80 = vector.load %arg9[%c0_58, %c128_59] : memref<4x1284xbf16, #tpu.memory_space<vmem>>, vector<4x1122xbf16>
    %c0_60 = arith.constant 0 : index
    %c129_61 = arith.constant 129 : index
    %81 = vector.load %arg9[%c0_60, %c129_61] : memref<4x1284xbf16, #tpu.memory_space<vmem>>, vector<4x1122xbf16>
    %c0_62 = arith.constant 0 : index
    %c160_63 = arith.constant 160 : index
    %82 = vector.load %arg9[%c0_62, %c160_63] : memref<4x1284xbf16, #tpu.memory_space<vmem>>, vector<4x1122xbf16>
    %c0_64 = arith.constant 0 : index
    %c161_65 = arith.constant 161 : index
    %83 = vector.load %arg9[%c0_64, %c161_65] : memref<4x1284xbf16, #tpu.memory_space<vmem>>, vector<4x1122xbf16>
    %c0_66 = arith.constant 0 : index
    %c162_67 = arith.constant 162 : index
    %84 = vector.load %arg9[%c0_66, %c162_67] : memref<4x1284xbf16, #tpu.memory_space<vmem>>, vector<4x1122xbf16>
    %85 = arith.extf %76 : vector<4x1122xbf16> to vector<4x1122xf32>
    %c0_68 = arith.constant 0 : index
    %c0_69 = arith.constant 0 : index
    %86 = vector.load %arg11[%c0_68, %c0_69] : memref<36x1122xf32, #tpu.memory_space<vmem>>, vector<4x1122xf32>
    tpu.vector_store %arg11[%c0_68, %c0_69], %85 {strides = array<i32>} : memref<36x1122xf32, #tpu.memory_space<vmem>>, vector<4x1122xf32>,
    %87 = arith.extf %77 : vector<4x1122xbf16> to vector<4x1122xf32>
    %c4_70 = arith.constant 4 : index
    %c0_71 = arith.constant 0 : index
    %88 = vector.load %arg11[%c4_70, %c0_71] : memref<36x1122xf32, #tpu.memory_space<vmem>>, vector<4x1122xf32>
    tpu.vector_store %arg11[%c4_70, %c0_71], %87 {strides = array<i32>} : memref<36x1122xf32, #tpu.memory_space<vmem>>, vector<4x1122xf32>,
    %89 = arith.extf %78 : vector<4x1122xbf16> to vector<4x1122xf32>
    %c8_72 = arith.constant 8 : index
    %c0_73 = arith.constant 0 : index
    %90 = vector.load %arg11[%c8_72, %c0_73] : memref<36x1122xf32, #tpu.memory_space<vmem>>, vector<4x1122xf32>
    tpu.vector_store %arg11[%c8_72, %c0_73], %89 {strides = array<i32>} : memref<36x1122xf32, #tpu.memory_space<vmem>>, vector<4x1122xf32>,
    %91 = arith.extf %79 : vector<4x1122xbf16> to vector<4x1122xf32>
    %c12_74 = arith.constant 12 : index
    %c0_75 = arith.constant 0 : index
    %92 = vector.load %arg11[%c12_74, %c0_75] : memref<36x1122xf32, #tpu.memory_space<vmem>>, vector<4x1122xf32>
    tpu.vector_store %arg11[%c12_74, %c0_75], %91 {strides = array<i32>} : memref<36x1122xf32, #tpu.memory_space<vmem>>, vector<4x1122xf32>,
    %93 = arith.extf %80 : vector<4x1122xbf16> to vector<4x1122xf32>
    %c16_76 = arith.constant 16 : index
    %c0_77 = arith.constant 0 : index
    %94 = vector.load %arg11[%c16_76, %c0_77] : memref<36x1122xf32, #tpu.memory_space<vmem>>, vector<4x1122xf32>
    tpu.vector_store %arg11[%c16_76, %c0_77], %93 {strides = array<i32>} : memref<36x1122xf32, #tpu.memory_space<vmem>>, vector<4x1122xf32>,
    %95 = arith.extf %81 : vector<4x1122xbf16> to vector<4x1122xf32>
    %c20_78 = arith.constant 20 : index
    %c0_79 = arith.constant 0 : index
    %96 = vector.load %arg11[%c20_78, %c0_79] : memref<36x1122xf32, #tpu.memory_space<vmem>>, vector<4x1122xf32>
    tpu.vector_store %arg11[%c20_78, %c0_79], %95 {strides = array<i32>} : memref<36x1122xf32, #tpu.memory_space<vmem>>, vector<4x1122xf32>,
    %97 = arith.extf %82 : vector<4x1122xbf16> to vector<4x1122xf32>
    %c24_80 = arith.constant 24 : index
    %c0_81 = arith.constant 0 : index
    %98 = vector.load %arg11[%c24_80, %c0_81] : memref<36x1122xf32, #tpu.memory_space<vmem>>, vector<4x1122xf32>
    tpu.vector_store %arg11[%c24_80, %c0_81], %97 {strides = array<i32>} : memref<36x1122xf32, #tpu.memory_space<vmem>>, vector<4x1122xf32>,
    %99 = arith.extf %83 : vector<4x1122xbf16> to vector<4x1122xf32>
    %c28_82 = arith.constant 28 : index
    %c0_83 = arith.constant 0 : index
    %100 = vector.load %arg11[%c28_82, %c0_83] : memref<36x1122xf32, #tpu.memory_space<vmem>>, vector<4x1122xf32>
    tpu.vector_store %arg11[%c28_82, %c0_83], %99 {strides = array<i32>} : memref<36x1122xf32, #tpu.memory_space<vmem>>, vector<4x1122xf32>,
    %101 = arith.extf %84 : vector<4x1122xbf16> to vector<4x1122xf32>
    %c32_84 = arith.constant 32 : index
    %c0_85 = arith.constant 0 : index
    %102 = vector.load %arg11[%c32_84, %c0_85] : memref<36x1122xf32, #tpu.memory_space<vmem>>, vector<4x1122xf32>
    tpu.vector_store %arg11[%c32_84, %c0_85], %101 {strides = array<i32>} : memref<36x1122xf32, #tpu.memory_space<vmem>>, vector<4x1122xf32>,
    %c0_86 = arith.constant 0 : index
    %c0_87 = arith.constant 0 : index
    %103 = vector.load %arg4[%c0_86, %c0_87] : memref<4x36xf32, #tpu.memory_space<vmem>>, vector<4x36xf32>
    %c0_88 = arith.constant 0 : index
    %c0_89 = arith.constant 0 : index
    %104 = vector.load %arg11[%c0_88, %c0_89] : memref<36x1122xf32, #tpu.memory_space<vmem>>, vector<36x1122xf32>
    %cst_90 = arith.constant dense<0.000000e+00> : vector<4x1122xf32>
    %105 = tpu.matmul %103, %104, %cst_90 {dimension_numbers = #tpu.dot_dimension_numbers<[1], [0], [0], [1], [0, 0, 1, 1], [], []>} : vector<4x36xf32>, vector<36x1122xf32>, vector<4x1122xf32> -> vector<4x1122xf32>
    %c0_91 = arith.constant 0 : index
    %c0_92 = arith.constant 0 : index
    %106 = vector.load %arg5[%c0_91, %c0_92] : memref<4x1xf32, #tpu.memory_space<vmem>>, vector<4x1xf32>
    %c0_93 = arith.constant 0 : index
    %c0_94 = arith.constant 0 : index
    %107 = vector.load %arg6[%c0_93, %c0_94] : memref<4x1xf32, #tpu.memory_space<vmem>>, vector<4x1xf32>
    %108 = vector.broadcast %0 : vector<1x1122xf32> to vector<4x1122xf32>
    %109 = arith.mulf %105, %108 : vector<4x1122xf32>
    %cst_95 = arith.constant dense<0.000000e+00> : vector<4xf32>
    %110 = vector.multi_reduction <add>, %109, %cst_95 [1] : vector<4x1122xf32> to vector<4xf32>
    %111 = vector.shape_cast %110 : vector<4xf32> to vector<4x1xf32>
    %cst_96 = arith.constant 9.765625E-4 : f32
    %112 = vector.broadcast %cst_96 : f32 to vector<4x1xf32>
    %113 = arith.mulf %111, %112 : vector<4x1xf32>
    %114 = vector.broadcast %113 : vector<4x1xf32> to vector<4x1122xf32>
    %115 = arith.subf %105, %114 : vector<4x1122xf32>
    %116 = arith.mulf %115, %115 : vector<4x1122xf32>
    %117 = vector.broadcast %0 : vector<1x1122xf32> to vector<4x1122xf32>
    %118 = arith.mulf %116, %117 : vector<4x1122xf32>
    %cst_97 = arith.constant dense<0.000000e+00> : vector<4xf32>
    %119 = vector.multi_reduction <add>, %118, %cst_97 [1] : vector<4x1122xf32> to vector<4xf32>
    %120 = vector.shape_cast %119 : vector<4xf32> to vector<4x1xf32>
    %cst_98 = arith.constant 9.765625E-4 : f32
    %121 = vector.broadcast %cst_98 : f32 to vector<4x1xf32>
    %122 = arith.mulf %120, %121 : vector<4x1xf32>
    %cst_99 = arith.constant 9.99999974E-6 : f32
    %123 = vector.broadcast %cst_99 : f32 to vector<4x1xf32>
    %124 = arith.addf %122, %123 : vector<4x1xf32>
    %125 = math.rsqrt %124 : vector<4x1xf32>
    %126 = vector.broadcast %125 : vector<4x1xf32> to vector<4x1122xf32>
    %127 = arith.mulf %115, %126 : vector<4x1122xf32>
    %128 = vector.broadcast %106 : vector<4x1xf32> to vector<4x1122xf32>
    %129 = arith.mulf %127, %128 : vector<4x1122xf32>
    %130 = vector.broadcast %107 : vector<4x1xf32> to vector<4x1122xf32>
    %131 = arith.addf %129, %130 : vector<4x1122xf32>
    %c0_100 = arith.constant 0 : index
    %c0_101 = arith.constant 0 : index
    %c128_102 = arith.constant 128 : index
    %132 = vector.load %arg0[%c0_100, %c0_101, %c128_102] : memref<1x4x1378xbf16, #tpu.memory_space<vmem>>, vector<1x4x1122xbf16>
    %133 = vector.shape_cast %132 : vector<1x4x1122xbf16> to vector<4x1122xbf16>
    %134 = arith.extf %133 : vector<4x1122xbf16> to vector<4x1122xf32>
    %135 = arith.addf %131, %134 : vector<4x1122xf32>
    %cst_103 = arith.constant 0.000000e+00 : f32
    %136 = vector.broadcast %cst_103 : f32 to vector<4x1122xf32>
    %137 = arith.maximumf %135, %136 : vector<4x1122xf32>
    %138 = vector.broadcast %0 : vector<1x1122xf32> to vector<4x1122xf32>
    %139 = arith.mulf %137, %138 : vector<4x1122xf32>
    %cst_104 = arith.constant 0.000000e+00 : bf16
    %140 = vector.broadcast %cst_104 : bf16 to vector<4x128xbf16>
    %c0_105 = arith.constant 0 : index
    %c0_106 = arith.constant 0 : index
    %141 = vector.load %arg8[%c0_105, %c0_106] : memref<4x1378xbf16, #tpu.memory_space<vmem>>, vector<4x128xbf16>
    tpu.vector_store %arg8[%c0_105, %c0_106], %140 {strides = array<i32>} : memref<4x1378xbf16, #tpu.memory_space<vmem>>, vector<4x128xbf16>,
    %142 = arith.truncf %139 : vector<4x1122xf32> to vector<4x1122xbf16>
    %c0_107 = arith.constant 0 : index
    %c128_108 = arith.constant 128 : index
    %143 = vector.load %arg8[%c0_107, %c128_108] : memref<4x1378xbf16, #tpu.memory_space<vmem>>, vector<4x1122xbf16>
    tpu.vector_store %arg8[%c0_107, %c128_108], %142 {strides = array<i32>} : memref<4x1378xbf16, #tpu.memory_space<vmem>>, vector<4x1122xbf16>,
    %cst_109 = arith.constant 0.000000e+00 : bf16
    %144 = vector.broadcast %cst_109 : bf16 to vector<4x128xbf16>
    %c0_110 = arith.constant 0 : index
    %c1250_111 = arith.constant 1250 : index
    %145 = vector.load %arg8[%c0_110, %c1250_111] : memref<4x1378xbf16, #tpu.memory_space<vmem>>, vector<4x128xbf16>
    tpu.vector_store %arg8[%c0_110, %c1250_111], %144 {strides = array<i32>} : memref<4x1378xbf16, #tpu.memory_space<vmem>>, vector<4x128xbf16>,
    return
  }
}

module attributes {stable_mosaic.version = 11 : i64} {
  func.func @_block_kernel(%arg0: memref<4x4x324xbf16, #tpu.memory_space<vmem>>, %arg1: memref<8x36xf32, #tpu.memory_space<vmem>>, %arg2: memref<8x1xf32, #tpu.memory_space<vmem>>, %arg3: memref<8x1xf32, #tpu.memory_space<vmem>>, %arg4: memref<8x72xf32, #tpu.memory_space<vmem>>, %arg5: memref<8x1xf32, #tpu.memory_space<vmem>>, %arg6: memref<8x1xf32, #tpu.memory_space<vmem>>, %arg7: memref<1x306xf32, #tpu.memory_space<vmem>>, %arg8: memref<8x4xf32, #tpu.memory_space<vmem>>, %arg9: memref<8x1xf32, #tpu.memory_space<vmem>>, %arg10: memref<8x1xf32, #tpu.memory_space<vmem>>, %arg11: memref<8x562xbf16, #tpu.memory_space<vmem>>, %arg12: memref<8x452xbf16, #tpu.memory_space<vmem>>, %arg13: memref<36x306xf32, #tpu.memory_space<vmem>>, %arg14: memref<72x306xf32, #tpu.memory_space<vmem>>) attributes {dimension_semantics = [], scalar_prefetch = 0 : i64, scratch_operands = 3 : i64, tpu.core_type = #tpu.core_type<tc>} {
    %c0 = arith.constant 0 : index
    %c0_0 = arith.constant 0 : index
    %0 = vector.load %arg7[%c0, %c0_0] : memref<1x306xf32, #tpu.memory_space<vmem>>, vector<1x306xf32>
    %c0_1 = arith.constant 0 : index
    %c0_2 = arith.constant 0 : index
    %c0_3 = arith.constant 0 : index
    %1 = vector.load %arg0[%c0_1, %c0_2, %c0_3] : memref<4x4x324xbf16, #tpu.memory_space<vmem>>, vector<1x4x306xbf16>
    %2 = vector.shape_cast %1 : vector<1x4x306xbf16> to vector<4x306xbf16>
    %c1 = arith.constant 1 : index
    %c0_4 = arith.constant 0 : index
    %c0_5 = arith.constant 0 : index
    %3 = vector.load %arg0[%c1, %c0_4, %c0_5] : memref<4x4x324xbf16, #tpu.memory_space<vmem>>, vector<1x4x306xbf16>
    %4 = vector.shape_cast %3 : vector<1x4x306xbf16> to vector<4x306xbf16>
    %c0_6 = arith.constant 0 : index
    %c0_7 = arith.constant 0 : index
    %c1_8 = arith.constant 1 : index
    %5 = vector.load %arg0[%c0_6, %c0_7, %c1_8] : memref<4x4x324xbf16, #tpu.memory_space<vmem>>, vector<1x4x306xbf16>
    %6 = vector.shape_cast %5 : vector<1x4x306xbf16> to vector<4x306xbf16>
    %c2 = arith.constant 2 : index
    %c0_9 = arith.constant 0 : index
    %c0_10 = arith.constant 0 : index
    %7 = vector.load %arg0[%c2, %c0_9, %c0_10] : memref<4x4x324xbf16, #tpu.memory_space<vmem>>, vector<1x4x306xbf16>
    %8 = vector.shape_cast %7 : vector<1x4x306xbf16> to vector<4x306xbf16>
    %c3 = arith.constant 3 : index
    %c0_11 = arith.constant 0 : index
    %c0_12 = arith.constant 0 : index
    %9 = vector.load %arg0[%c3, %c0_11, %c0_12] : memref<4x4x324xbf16, #tpu.memory_space<vmem>>, vector<1x4x306xbf16>
    %10 = vector.shape_cast %9 : vector<1x4x306xbf16> to vector<4x306xbf16>
    %c2_13 = arith.constant 2 : index
    %c0_14 = arith.constant 0 : index
    %c1_15 = arith.constant 1 : index
    %11 = vector.load %arg0[%c2_13, %c0_14, %c1_15] : memref<4x4x324xbf16, #tpu.memory_space<vmem>>, vector<1x4x306xbf16>
    %12 = vector.shape_cast %11 : vector<1x4x306xbf16> to vector<4x306xbf16>
    %c0_16 = arith.constant 0 : index
    %c0_17 = arith.constant 0 : index
    %c17 = arith.constant 17 : index
    %13 = vector.load %arg0[%c0_16, %c0_17, %c17] : memref<4x4x324xbf16, #tpu.memory_space<vmem>>, vector<1x4x306xbf16>
    %14 = vector.shape_cast %13 : vector<1x4x306xbf16> to vector<4x306xbf16>
    %c1_18 = arith.constant 1 : index
    %c0_19 = arith.constant 0 : index
    %c17_20 = arith.constant 17 : index
    %15 = vector.load %arg0[%c1_18, %c0_19, %c17_20] : memref<4x4x324xbf16, #tpu.memory_space<vmem>>, vector<1x4x306xbf16>
    %16 = vector.shape_cast %15 : vector<1x4x306xbf16> to vector<4x306xbf16>
    %c0_21 = arith.constant 0 : index
    %c0_22 = arith.constant 0 : index
    %c18 = arith.constant 18 : index
    %17 = vector.load %arg0[%c0_21, %c0_22, %c18] : memref<4x4x324xbf16, #tpu.memory_space<vmem>>, vector<1x4x306xbf16>
    %18 = vector.shape_cast %17 : vector<1x4x306xbf16> to vector<4x306xbf16>
    %19 = arith.extf %2 : vector<4x306xbf16> to vector<4x306xf32>
    %c0_23 = arith.constant 0 : index
    %c0_24 = arith.constant 0 : index
    %20 = vector.load %arg13[%c0_23, %c0_24] : memref<36x306xf32, #tpu.memory_space<vmem>>, vector<4x306xf32>
    tpu.vector_store %arg13[%c0_23, %c0_24], %19 {strides = array<i32>} : memref<36x306xf32, #tpu.memory_space<vmem>>, vector<4x306xf32>,
    %21 = arith.extf %4 : vector<4x306xbf16> to vector<4x306xf32>
    %c4 = arith.constant 4 : index
    %c0_25 = arith.constant 0 : index
    %22 = vector.load %arg13[%c4, %c0_25] : memref<36x306xf32, #tpu.memory_space<vmem>>, vector<4x306xf32>
    tpu.vector_store %arg13[%c4, %c0_25], %21 {strides = array<i32>} : memref<36x306xf32, #tpu.memory_space<vmem>>, vector<4x306xf32>,
    %23 = arith.extf %6 : vector<4x306xbf16> to vector<4x306xf32>
    %c8 = arith.constant 8 : index
    %c0_26 = arith.constant 0 : index
    %24 = vector.load %arg13[%c8, %c0_26] : memref<36x306xf32, #tpu.memory_space<vmem>>, vector<4x306xf32>
    tpu.vector_store %arg13[%c8, %c0_26], %23 {strides = array<i32>} : memref<36x306xf32, #tpu.memory_space<vmem>>, vector<4x306xf32>,
    %25 = arith.extf %8 : vector<4x306xbf16> to vector<4x306xf32>
    %c12 = arith.constant 12 : index
    %c0_27 = arith.constant 0 : index
    %26 = vector.load %arg13[%c12, %c0_27] : memref<36x306xf32, #tpu.memory_space<vmem>>, vector<4x306xf32>
    tpu.vector_store %arg13[%c12, %c0_27], %25 {strides = array<i32>} : memref<36x306xf32, #tpu.memory_space<vmem>>, vector<4x306xf32>,
    %27 = arith.extf %10 : vector<4x306xbf16> to vector<4x306xf32>
    %c16 = arith.constant 16 : index
    %c0_28 = arith.constant 0 : index
    %28 = vector.load %arg13[%c16, %c0_28] : memref<36x306xf32, #tpu.memory_space<vmem>>, vector<4x306xf32>
    tpu.vector_store %arg13[%c16, %c0_28], %27 {strides = array<i32>} : memref<36x306xf32, #tpu.memory_space<vmem>>, vector<4x306xf32>,
    %29 = arith.extf %12 : vector<4x306xbf16> to vector<4x306xf32>
    %c20 = arith.constant 20 : index
    %c0_29 = arith.constant 0 : index
    %30 = vector.load %arg13[%c20, %c0_29] : memref<36x306xf32, #tpu.memory_space<vmem>>, vector<4x306xf32>
    tpu.vector_store %arg13[%c20, %c0_29], %29 {strides = array<i32>} : memref<36x306xf32, #tpu.memory_space<vmem>>, vector<4x306xf32>,
    %31 = arith.extf %14 : vector<4x306xbf16> to vector<4x306xf32>
    %c24 = arith.constant 24 : index
    %c0_30 = arith.constant 0 : index
    %32 = vector.load %arg13[%c24, %c0_30] : memref<36x306xf32, #tpu.memory_space<vmem>>, vector<4x306xf32>
    tpu.vector_store %arg13[%c24, %c0_30], %31 {strides = array<i32>} : memref<36x306xf32, #tpu.memory_space<vmem>>, vector<4x306xf32>,
    %33 = arith.extf %16 : vector<4x306xbf16> to vector<4x306xf32>
    %c28 = arith.constant 28 : index
    %c0_31 = arith.constant 0 : index
    %34 = vector.load %arg13[%c28, %c0_31] : memref<36x306xf32, #tpu.memory_space<vmem>>, vector<4x306xf32>
    tpu.vector_store %arg13[%c28, %c0_31], %33 {strides = array<i32>} : memref<36x306xf32, #tpu.memory_space<vmem>>, vector<4x306xf32>,
    %35 = arith.extf %18 : vector<4x306xbf16> to vector<4x306xf32>
    %c32 = arith.constant 32 : index
    %c0_32 = arith.constant 0 : index
    %36 = vector.load %arg13[%c32, %c0_32] : memref<36x306xf32, #tpu.memory_space<vmem>>, vector<4x306xf32>
    tpu.vector_store %arg13[%c32, %c0_32], %35 {strides = array<i32>} : memref<36x306xf32, #tpu.memory_space<vmem>>, vector<4x306xf32>,
    %c0_33 = arith.constant 0 : index
    %c0_34 = arith.constant 0 : index
    %37 = vector.load %arg1[%c0_33, %c0_34] : memref<8x36xf32, #tpu.memory_space<vmem>>, vector<8x36xf32>
    %c0_35 = arith.constant 0 : index
    %c0_36 = arith.constant 0 : index
    %38 = vector.load %arg13[%c0_35, %c0_36] : memref<36x306xf32, #tpu.memory_space<vmem>>, vector<36x306xf32>
    %cst = arith.constant dense<0.000000e+00> : vector<8x306xf32>
    %39 = tpu.matmul %37, %38, %cst {dimension_numbers = #tpu.dot_dimension_numbers<[1], [0], [0], [1], [0, 0, 1, 1], [], []>} : vector<8x36xf32>, vector<36x306xf32>, vector<8x306xf32> -> vector<8x306xf32>
    %c0_37 = arith.constant 0 : index
    %c0_38 = arith.constant 0 : index
    %40 = vector.load %arg2[%c0_37, %c0_38] : memref<8x1xf32, #tpu.memory_space<vmem>>, vector<8x1xf32>
    %c0_39 = arith.constant 0 : index
    %c0_40 = arith.constant 0 : index
    %41 = vector.load %arg3[%c0_39, %c0_40] : memref<8x1xf32, #tpu.memory_space<vmem>>, vector<8x1xf32>
    %42 = vector.broadcast %0 : vector<1x306xf32> to vector<8x306xf32>
    %43 = arith.mulf %39, %42 : vector<8x306xf32>
    %cst_41 = arith.constant dense<0.000000e+00> : vector<8xf32>
    %44 = vector.multi_reduction <add>, %43, %cst_41 [1] : vector<8x306xf32> to vector<8xf32>
    %45 = vector.shape_cast %44 : vector<8xf32> to vector<8x1xf32>
    %cst_42 = arith.constant 3.906250e-03 : f32
    %46 = vector.broadcast %cst_42 : f32 to vector<8x1xf32>
    %47 = arith.mulf %45, %46 : vector<8x1xf32>
    %48 = vector.broadcast %47 : vector<8x1xf32> to vector<8x306xf32>
    %49 = arith.subf %39, %48 : vector<8x306xf32>
    %50 = arith.mulf %49, %49 : vector<8x306xf32>
    %51 = vector.broadcast %0 : vector<1x306xf32> to vector<8x306xf32>
    %52 = arith.mulf %50, %51 : vector<8x306xf32>
    %cst_43 = arith.constant dense<0.000000e+00> : vector<8xf32>
    %53 = vector.multi_reduction <add>, %52, %cst_43 [1] : vector<8x306xf32> to vector<8xf32>
    %54 = vector.shape_cast %53 : vector<8xf32> to vector<8x1xf32>
    %cst_44 = arith.constant 3.906250e-03 : f32
    %55 = vector.broadcast %cst_44 : f32 to vector<8x1xf32>
    %56 = arith.mulf %54, %55 : vector<8x1xf32>
    %cst_45 = arith.constant 9.99999974E-6 : f32
    %57 = vector.broadcast %cst_45 : f32 to vector<8x1xf32>
    %58 = arith.addf %56, %57 : vector<8x1xf32>
    %59 = math.rsqrt %58 : vector<8x1xf32>
    %60 = vector.broadcast %59 : vector<8x1xf32> to vector<8x306xf32>
    %61 = arith.mulf %49, %60 : vector<8x306xf32>
    %62 = vector.broadcast %40 : vector<8x1xf32> to vector<8x306xf32>
    %63 = arith.mulf %61, %62 : vector<8x306xf32>
    %64 = vector.broadcast %41 : vector<8x1xf32> to vector<8x306xf32>
    %65 = arith.addf %63, %64 : vector<8x306xf32>
    %cst_46 = arith.constant 0.000000e+00 : f32
    %66 = vector.broadcast %cst_46 : f32 to vector<8x306xf32>
    %67 = arith.maximumf %65, %66 : vector<8x306xf32>
    %68 = vector.broadcast %0 : vector<1x306xf32> to vector<8x306xf32>
    %69 = arith.mulf %67, %68 : vector<8x306xf32>
    %cst_47 = arith.constant 0.000000e+00 : bf16
    %70 = vector.broadcast %cst_47 : bf16 to vector<8x128xbf16>
    %c0_48 = arith.constant 0 : index
    %c0_49 = arith.constant 0 : index
    %71 = vector.load %arg12[%c0_48, %c0_49] : memref<8x452xbf16, #tpu.memory_space<vmem>>, vector<8x128xbf16>
    tpu.vector_store %arg12[%c0_48, %c0_49], %70 {strides = array<i32>} : memref<8x452xbf16, #tpu.memory_space<vmem>>, vector<8x128xbf16>,
    %72 = arith.truncf %69 : vector<8x306xf32> to vector<8x306xbf16>
    %c0_50 = arith.constant 0 : index
    %c128 = arith.constant 128 : index
    %73 = vector.load %arg12[%c0_50, %c128] : memref<8x452xbf16, #tpu.memory_space<vmem>>, vector<8x306xbf16>
    tpu.vector_store %arg12[%c0_50, %c128], %72 {strides = array<i32>} : memref<8x452xbf16, #tpu.memory_space<vmem>>, vector<8x306xbf16>,
    %cst_51 = arith.constant 0.000000e+00 : bf16
    %74 = vector.broadcast %cst_51 : bf16 to vector<8x18xbf16>
    %c0_52 = arith.constant 0 : index
    %c434 = arith.constant 434 : index
    %75 = vector.load %arg12[%c0_52, %c434] : memref<8x452xbf16, #tpu.memory_space<vmem>>, vector<8x18xbf16>
    tpu.vector_store %arg12[%c0_52, %c434], %74 {strides = array<i32>} : memref<8x452xbf16, #tpu.memory_space<vmem>>, vector<8x18xbf16>,
    %c0_53 = arith.constant 0 : index
    %c110 = arith.constant 110 : index
    %76 = vector.load %arg12[%c0_53, %c110] : memref<8x452xbf16, #tpu.memory_space<vmem>>, vector<8x306xbf16>
    %c0_54 = arith.constant 0 : index
    %c111 = arith.constant 111 : index
    %77 = vector.load %arg12[%c0_54, %c111] : memref<8x452xbf16, #tpu.memory_space<vmem>>, vector<8x306xbf16>
    %c0_55 = arith.constant 0 : index
    %c112 = arith.constant 112 : index
    %78 = vector.load %arg12[%c0_55, %c112] : memref<8x452xbf16, #tpu.memory_space<vmem>>, vector<8x306xbf16>
    %c0_56 = arith.constant 0 : index
    %c127 = arith.constant 127 : index
    %79 = vector.load %arg12[%c0_56, %c127] : memref<8x452xbf16, #tpu.memory_space<vmem>>, vector<8x306xbf16>
    %c0_57 = arith.constant 0 : index
    %c128_58 = arith.constant 128 : index
    %80 = vector.load %arg12[%c0_57, %c128_58] : memref<8x452xbf16, #tpu.memory_space<vmem>>, vector<8x306xbf16>
    %c0_59 = arith.constant 0 : index
    %c129 = arith.constant 129 : index
    %81 = vector.load %arg12[%c0_59, %c129] : memref<8x452xbf16, #tpu.memory_space<vmem>>, vector<8x306xbf16>
    %c0_60 = arith.constant 0 : index
    %c144 = arith.constant 144 : index
    %82 = vector.load %arg12[%c0_60, %c144] : memref<8x452xbf16, #tpu.memory_space<vmem>>, vector<8x306xbf16>
    %c0_61 = arith.constant 0 : index
    %c145 = arith.constant 145 : index
    %83 = vector.load %arg12[%c0_61, %c145] : memref<8x452xbf16, #tpu.memory_space<vmem>>, vector<8x306xbf16>
    %c0_62 = arith.constant 0 : index
    %c146 = arith.constant 146 : index
    %84 = vector.load %arg12[%c0_62, %c146] : memref<8x452xbf16, #tpu.memory_space<vmem>>, vector<8x306xbf16>
    %85 = arith.extf %76 : vector<8x306xbf16> to vector<8x306xf32>
    %c0_63 = arith.constant 0 : index
    %c0_64 = arith.constant 0 : index
    %86 = vector.load %arg14[%c0_63, %c0_64] : memref<72x306xf32, #tpu.memory_space<vmem>>, vector<8x306xf32>
    tpu.vector_store %arg14[%c0_63, %c0_64], %85 {strides = array<i32>} : memref<72x306xf32, #tpu.memory_space<vmem>>, vector<8x306xf32>,
    %87 = arith.extf %77 : vector<8x306xbf16> to vector<8x306xf32>
    %c8_65 = arith.constant 8 : index
    %c0_66 = arith.constant 0 : index
    %88 = vector.load %arg14[%c8_65, %c0_66] : memref<72x306xf32, #tpu.memory_space<vmem>>, vector<8x306xf32>
    tpu.vector_store %arg14[%c8_65, %c0_66], %87 {strides = array<i32>} : memref<72x306xf32, #tpu.memory_space<vmem>>, vector<8x306xf32>,
    %89 = arith.extf %78 : vector<8x306xbf16> to vector<8x306xf32>
    %c16_67 = arith.constant 16 : index
    %c0_68 = arith.constant 0 : index
    %90 = vector.load %arg14[%c16_67, %c0_68] : memref<72x306xf32, #tpu.memory_space<vmem>>, vector<8x306xf32>
    tpu.vector_store %arg14[%c16_67, %c0_68], %89 {strides = array<i32>} : memref<72x306xf32, #tpu.memory_space<vmem>>, vector<8x306xf32>,
    %91 = arith.extf %79 : vector<8x306xbf16> to vector<8x306xf32>
    %c24_69 = arith.constant 24 : index
    %c0_70 = arith.constant 0 : index
    %92 = vector.load %arg14[%c24_69, %c0_70] : memref<72x306xf32, #tpu.memory_space<vmem>>, vector<8x306xf32>
    tpu.vector_store %arg14[%c24_69, %c0_70], %91 {strides = array<i32>} : memref<72x306xf32, #tpu.memory_space<vmem>>, vector<8x306xf32>,
    %93 = arith.extf %80 : vector<8x306xbf16> to vector<8x306xf32>
    %c32_71 = arith.constant 32 : index
    %c0_72 = arith.constant 0 : index
    %94 = vector.load %arg14[%c32_71, %c0_72] : memref<72x306xf32, #tpu.memory_space<vmem>>, vector<8x306xf32>
    tpu.vector_store %arg14[%c32_71, %c0_72], %93 {strides = array<i32>} : memref<72x306xf32, #tpu.memory_space<vmem>>, vector<8x306xf32>,
    %95 = arith.extf %81 : vector<8x306xbf16> to vector<8x306xf32>
    %c40 = arith.constant 40 : index
    %c0_73 = arith.constant 0 : index
    %96 = vector.load %arg14[%c40, %c0_73] : memref<72x306xf32, #tpu.memory_space<vmem>>, vector<8x306xf32>
    tpu.vector_store %arg14[%c40, %c0_73], %95 {strides = array<i32>} : memref<72x306xf32, #tpu.memory_space<vmem>>, vector<8x306xf32>,
    %97 = arith.extf %82 : vector<8x306xbf16> to vector<8x306xf32>
    %c48 = arith.constant 48 : index
    %c0_74 = arith.constant 0 : index
    %98 = vector.load %arg14[%c48, %c0_74] : memref<72x306xf32, #tpu.memory_space<vmem>>, vector<8x306xf32>
    tpu.vector_store %arg14[%c48, %c0_74], %97 {strides = array<i32>} : memref<72x306xf32, #tpu.memory_space<vmem>>, vector<8x306xf32>,
    %99 = arith.extf %83 : vector<8x306xbf16> to vector<8x306xf32>
    %c56 = arith.constant 56 : index
    %c0_75 = arith.constant 0 : index
    %100 = vector.load %arg14[%c56, %c0_75] : memref<72x306xf32, #tpu.memory_space<vmem>>, vector<8x306xf32>
    tpu.vector_store %arg14[%c56, %c0_75], %99 {strides = array<i32>} : memref<72x306xf32, #tpu.memory_space<vmem>>, vector<8x306xf32>,
    %101 = arith.extf %84 : vector<8x306xbf16> to vector<8x306xf32>
    %c64 = arith.constant 64 : index
    %c0_76 = arith.constant 0 : index
    %102 = vector.load %arg14[%c64, %c0_76] : memref<72x306xf32, #tpu.memory_space<vmem>>, vector<8x306xf32>
    tpu.vector_store %arg14[%c64, %c0_76], %101 {strides = array<i32>} : memref<72x306xf32, #tpu.memory_space<vmem>>, vector<8x306xf32>,
    %c0_77 = arith.constant 0 : index
    %c0_78 = arith.constant 0 : index
    %103 = vector.load %arg4[%c0_77, %c0_78] : memref<8x72xf32, #tpu.memory_space<vmem>>, vector<8x72xf32>
    %c0_79 = arith.constant 0 : index
    %c0_80 = arith.constant 0 : index
    %104 = vector.load %arg14[%c0_79, %c0_80] : memref<72x306xf32, #tpu.memory_space<vmem>>, vector<72x306xf32>
    %cst_81 = arith.constant dense<0.000000e+00> : vector<8x306xf32>
    %105 = tpu.matmul %103, %104, %cst_81 {dimension_numbers = #tpu.dot_dimension_numbers<[1], [0], [0], [1], [0, 0, 1, 1], [], []>} : vector<8x72xf32>, vector<72x306xf32>, vector<8x306xf32> -> vector<8x306xf32>
    %c0_82 = arith.constant 0 : index
    %c0_83 = arith.constant 0 : index
    %106 = vector.load %arg5[%c0_82, %c0_83] : memref<8x1xf32, #tpu.memory_space<vmem>>, vector<8x1xf32>
    %c0_84 = arith.constant 0 : index
    %c0_85 = arith.constant 0 : index
    %107 = vector.load %arg6[%c0_84, %c0_85] : memref<8x1xf32, #tpu.memory_space<vmem>>, vector<8x1xf32>
    %108 = vector.broadcast %0 : vector<1x306xf32> to vector<8x306xf32>
    %109 = arith.mulf %105, %108 : vector<8x306xf32>
    %cst_86 = arith.constant dense<0.000000e+00> : vector<8xf32>
    %110 = vector.multi_reduction <add>, %109, %cst_86 [1] : vector<8x306xf32> to vector<8xf32>
    %111 = vector.shape_cast %110 : vector<8xf32> to vector<8x1xf32>
    %cst_87 = arith.constant 3.906250e-03 : f32
    %112 = vector.broadcast %cst_87 : f32 to vector<8x1xf32>
    %113 = arith.mulf %111, %112 : vector<8x1xf32>
    %114 = vector.broadcast %113 : vector<8x1xf32> to vector<8x306xf32>
    %115 = arith.subf %105, %114 : vector<8x306xf32>
    %116 = arith.mulf %115, %115 : vector<8x306xf32>
    %117 = vector.broadcast %0 : vector<1x306xf32> to vector<8x306xf32>
    %118 = arith.mulf %116, %117 : vector<8x306xf32>
    %cst_88 = arith.constant dense<0.000000e+00> : vector<8xf32>
    %119 = vector.multi_reduction <add>, %118, %cst_88 [1] : vector<8x306xf32> to vector<8xf32>
    %120 = vector.shape_cast %119 : vector<8xf32> to vector<8x1xf32>
    %cst_89 = arith.constant 3.906250e-03 : f32
    %121 = vector.broadcast %cst_89 : f32 to vector<8x1xf32>
    %122 = arith.mulf %120, %121 : vector<8x1xf32>
    %cst_90 = arith.constant 9.99999974E-6 : f32
    %123 = vector.broadcast %cst_90 : f32 to vector<8x1xf32>
    %124 = arith.addf %122, %123 : vector<8x1xf32>
    %125 = math.rsqrt %124 : vector<8x1xf32>
    %126 = vector.broadcast %125 : vector<8x1xf32> to vector<8x306xf32>
    %127 = arith.mulf %115, %126 : vector<8x306xf32>
    %128 = vector.broadcast %106 : vector<8x1xf32> to vector<8x306xf32>
    %129 = arith.mulf %127, %128 : vector<8x306xf32>
    %130 = vector.broadcast %107 : vector<8x1xf32> to vector<8x306xf32>
    %131 = arith.addf %129, %130 : vector<8x306xf32>
    %c3_91 = arith.constant 3 : index
    %c0_92 = arith.constant 0 : index
    %c0_93 = arith.constant 0 : index
    %132 = vector.load %arg0[%c3_91, %c0_92, %c0_93] : memref<4x4x324xbf16, #tpu.memory_space<vmem>>, vector<1x4x306xbf16>
    %133 = vector.shape_cast %132 : vector<1x4x306xbf16> to vector<4x306xbf16>
    %134 = arith.extf %133 : vector<4x306xbf16> to vector<4x306xf32>
    %c0_94 = arith.constant 0 : index
    %c0_95 = arith.constant 0 : index
    %135 = vector.load %arg8[%c0_94, %c0_95] : memref<8x4xf32, #tpu.memory_space<vmem>>, vector<8x4xf32>
    %cst_96 = arith.constant dense<0.000000e+00> : vector<8x306xf32>
    %136 = tpu.matmul %135, %134, %cst_96 {dimension_numbers = #tpu.dot_dimension_numbers<[1], [0], [0], [1], [0, 0, 1, 1], [], []>} : vector<8x4xf32>, vector<4x306xf32>, vector<8x306xf32> -> vector<8x306xf32>
    %c0_97 = arith.constant 0 : index
    %c0_98 = arith.constant 0 : index
    %137 = vector.load %arg9[%c0_97, %c0_98] : memref<8x1xf32, #tpu.memory_space<vmem>>, vector<8x1xf32>
    %c0_99 = arith.constant 0 : index
    %c0_100 = arith.constant 0 : index
    %138 = vector.load %arg10[%c0_99, %c0_100] : memref<8x1xf32, #tpu.memory_space<vmem>>, vector<8x1xf32>
    %139 = vector.broadcast %0 : vector<1x306xf32> to vector<8x306xf32>
    %140 = arith.mulf %136, %139 : vector<8x306xf32>
    %cst_101 = arith.constant dense<0.000000e+00> : vector<8xf32>
    %141 = vector.multi_reduction <add>, %140, %cst_101 [1] : vector<8x306xf32> to vector<8xf32>
    %142 = vector.shape_cast %141 : vector<8xf32> to vector<8x1xf32>
    %cst_102 = arith.constant 3.906250e-03 : f32
    %143 = vector.broadcast %cst_102 : f32 to vector<8x1xf32>
    %144 = arith.mulf %142, %143 : vector<8x1xf32>
    %145 = vector.broadcast %144 : vector<8x1xf32> to vector<8x306xf32>
    %146 = arith.subf %136, %145 : vector<8x306xf32>
    %147 = arith.mulf %146, %146 : vector<8x306xf32>
    %148 = vector.broadcast %0 : vector<1x306xf32> to vector<8x306xf32>
    %149 = arith.mulf %147, %148 : vector<8x306xf32>
    %cst_103 = arith.constant dense<0.000000e+00> : vector<8xf32>
    %150 = vector.multi_reduction <add>, %149, %cst_103 [1] : vector<8x306xf32> to vector<8xf32>
    %151 = vector.shape_cast %150 : vector<8xf32> to vector<8x1xf32>
    %cst_104 = arith.constant 3.906250e-03 : f32
    %152 = vector.broadcast %cst_104 : f32 to vector<8x1xf32>
    %153 = arith.mulf %151, %152 : vector<8x1xf32>
    %cst_105 = arith.constant 9.99999974E-6 : f32
    %154 = vector.broadcast %cst_105 : f32 to vector<8x1xf32>
    %155 = arith.addf %153, %154 : vector<8x1xf32>
    %156 = math.rsqrt %155 : vector<8x1xf32>
    %157 = vector.broadcast %156 : vector<8x1xf32> to vector<8x306xf32>
    %158 = arith.mulf %146, %157 : vector<8x306xf32>
    %159 = vector.broadcast %137 : vector<8x1xf32> to vector<8x306xf32>
    %160 = arith.mulf %158, %159 : vector<8x306xf32>
    %161 = vector.broadcast %138 : vector<8x1xf32> to vector<8x306xf32>
    %162 = arith.addf %160, %161 : vector<8x306xf32>
    %163 = arith.addf %131, %162 : vector<8x306xf32>
    %cst_106 = arith.constant 0.000000e+00 : f32
    %164 = vector.broadcast %cst_106 : f32 to vector<8x306xf32>
    %165 = arith.maximumf %163, %164 : vector<8x306xf32>
    %166 = vector.broadcast %0 : vector<1x306xf32> to vector<8x306xf32>
    %167 = arith.mulf %165, %166 : vector<8x306xf32>
    %cst_107 = arith.constant 0.000000e+00 : bf16
    %168 = vector.broadcast %cst_107 : bf16 to vector<8x128xbf16>
    %c0_108 = arith.constant 0 : index
    %c0_109 = arith.constant 0 : index
    %169 = vector.load %arg11[%c0_108, %c0_109] : memref<8x562xbf16, #tpu.memory_space<vmem>>, vector<8x128xbf16>
    tpu.vector_store %arg11[%c0_108, %c0_109], %168 {strides = array<i32>} : memref<8x562xbf16, #tpu.memory_space<vmem>>, vector<8x128xbf16>,
    %170 = arith.truncf %167 : vector<8x306xf32> to vector<8x306xbf16>
    %c0_110 = arith.constant 0 : index
    %c128_111 = arith.constant 128 : index
    %171 = vector.load %arg11[%c0_110, %c128_111] : memref<8x562xbf16, #tpu.memory_space<vmem>>, vector<8x306xbf16>
    tpu.vector_store %arg11[%c0_110, %c128_111], %170 {strides = array<i32>} : memref<8x562xbf16, #tpu.memory_space<vmem>>, vector<8x306xbf16>,
    %cst_112 = arith.constant 0.000000e+00 : bf16
    %172 = vector.broadcast %cst_112 : bf16 to vector<8x128xbf16>
    %c0_113 = arith.constant 0 : index
    %c434_114 = arith.constant 434 : index
    %173 = vector.load %arg11[%c0_113, %c434_114] : memref<8x562xbf16, #tpu.memory_space<vmem>>, vector<8x128xbf16>
    tpu.vector_store %arg11[%c0_113, %c434_114], %172 {strides = array<i32>} : memref<8x562xbf16, #tpu.memory_space<vmem>>, vector<8x128xbf16>,
    return
  }
}

module attributes {stable_mosaic.version = 11 : i64} {
  func.func @_block_kernel(%arg0: memref<4x8x100xbf16, #tpu.memory_space<vmem>>, %arg1: memref<16x72xf32, #tpu.memory_space<vmem>>, %arg2: memref<16x1xf32, #tpu.memory_space<vmem>>, %arg3: memref<16x1xf32, #tpu.memory_space<vmem>>, %arg4: memref<16x144xf32, #tpu.memory_space<vmem>>, %arg5: memref<16x1xf32, #tpu.memory_space<vmem>>, %arg6: memref<16x1xf32, #tpu.memory_space<vmem>>, %arg7: memref<1x90xf32, #tpu.memory_space<vmem>>, %arg8: memref<16x8xf32, #tpu.memory_space<vmem>>, %arg9: memref<16x1xf32, #tpu.memory_space<vmem>>, %arg10: memref<16x1xf32, #tpu.memory_space<vmem>>, %arg11: memref<16x346xbf16, #tpu.memory_space<vmem>>, %arg12: memref<16x228xbf16, #tpu.memory_space<vmem>>, %arg13: memref<72x90xf32, #tpu.memory_space<vmem>>, %arg14: memref<144x90xf32, #tpu.memory_space<vmem>>) attributes {dimension_semantics = [], scalar_prefetch = 0 : i64, scratch_operands = 3 : i64, tpu.core_type = #tpu.core_type<tc>} {
    %c0 = arith.constant 0 : index
    %c0_0 = arith.constant 0 : index
    %0 = vector.load %arg7[%c0, %c0_0] : memref<1x90xf32, #tpu.memory_space<vmem>>, vector<1x90xf32>
    %c0_1 = arith.constant 0 : index
    %c0_2 = arith.constant 0 : index
    %c0_3 = arith.constant 0 : index
    %1 = vector.load %arg0[%c0_1, %c0_2, %c0_3] : memref<4x8x100xbf16, #tpu.memory_space<vmem>>, vector<1x8x90xbf16>
    %2 = vector.shape_cast %1 : vector<1x8x90xbf16> to vector<8x90xbf16>
    %c1 = arith.constant 1 : index
    %c0_4 = arith.constant 0 : index
    %c0_5 = arith.constant 0 : index
    %3 = vector.load %arg0[%c1, %c0_4, %c0_5] : memref<4x8x100xbf16, #tpu.memory_space<vmem>>, vector<1x8x90xbf16>
    %4 = vector.shape_cast %3 : vector<1x8x90xbf16> to vector<8x90xbf16>
    %c0_6 = arith.constant 0 : index
    %c0_7 = arith.constant 0 : index
    %c1_8 = arith.constant 1 : index
    %5 = vector.load %arg0[%c0_6, %c0_7, %c1_8] : memref<4x8x100xbf16, #tpu.memory_space<vmem>>, vector<1x8x90xbf16>
    %6 = vector.shape_cast %5 : vector<1x8x90xbf16> to vector<8x90xbf16>
    %c2 = arith.constant 2 : index
    %c0_9 = arith.constant 0 : index
    %c0_10 = arith.constant 0 : index
    %7 = vector.load %arg0[%c2, %c0_9, %c0_10] : memref<4x8x100xbf16, #tpu.memory_space<vmem>>, vector<1x8x90xbf16>
    %8 = vector.shape_cast %7 : vector<1x8x90xbf16> to vector<8x90xbf16>
    %c3 = arith.constant 3 : index
    %c0_11 = arith.constant 0 : index
    %c0_12 = arith.constant 0 : index
    %9 = vector.load %arg0[%c3, %c0_11, %c0_12] : memref<4x8x100xbf16, #tpu.memory_space<vmem>>, vector<1x8x90xbf16>
    %10 = vector.shape_cast %9 : vector<1x8x90xbf16> to vector<8x90xbf16>
    %c2_13 = arith.constant 2 : index
    %c0_14 = arith.constant 0 : index
    %c1_15 = arith.constant 1 : index
    %11 = vector.load %arg0[%c2_13, %c0_14, %c1_15] : memref<4x8x100xbf16, #tpu.memory_space<vmem>>, vector<1x8x90xbf16>
    %12 = vector.shape_cast %11 : vector<1x8x90xbf16> to vector<8x90xbf16>
    %c0_16 = arith.constant 0 : index
    %c0_17 = arith.constant 0 : index
    %c9 = arith.constant 9 : index
    %13 = vector.load %arg0[%c0_16, %c0_17, %c9] : memref<4x8x100xbf16, #tpu.memory_space<vmem>>, vector<1x8x90xbf16>
    %14 = vector.shape_cast %13 : vector<1x8x90xbf16> to vector<8x90xbf16>
    %c1_18 = arith.constant 1 : index
    %c0_19 = arith.constant 0 : index
    %c9_20 = arith.constant 9 : index
    %15 = vector.load %arg0[%c1_18, %c0_19, %c9_20] : memref<4x8x100xbf16, #tpu.memory_space<vmem>>, vector<1x8x90xbf16>
    %16 = vector.shape_cast %15 : vector<1x8x90xbf16> to vector<8x90xbf16>
    %c0_21 = arith.constant 0 : index
    %c0_22 = arith.constant 0 : index
    %c10 = arith.constant 10 : index
    %17 = vector.load %arg0[%c0_21, %c0_22, %c10] : memref<4x8x100xbf16, #tpu.memory_space<vmem>>, vector<1x8x90xbf16>
    %18 = vector.shape_cast %17 : vector<1x8x90xbf16> to vector<8x90xbf16>
    %19 = arith.extf %2 : vector<8x90xbf16> to vector<8x90xf32>
    %c0_23 = arith.constant 0 : index
    %c0_24 = arith.constant 0 : index
    %20 = vector.load %arg13[%c0_23, %c0_24] : memref<72x90xf32, #tpu.memory_space<vmem>>, vector<8x90xf32>
    tpu.vector_store %arg13[%c0_23, %c0_24], %19 {strides = array<i32>} : memref<72x90xf32, #tpu.memory_space<vmem>>, vector<8x90xf32>,
    %21 = arith.extf %4 : vector<8x90xbf16> to vector<8x90xf32>
    %c8 = arith.constant 8 : index
    %c0_25 = arith.constant 0 : index
    %22 = vector.load %arg13[%c8, %c0_25] : memref<72x90xf32, #tpu.memory_space<vmem>>, vector<8x90xf32>
    tpu.vector_store %arg13[%c8, %c0_25], %21 {strides = array<i32>} : memref<72x90xf32, #tpu.memory_space<vmem>>, vector<8x90xf32>,
    %23 = arith.extf %6 : vector<8x90xbf16> to vector<8x90xf32>
    %c16 = arith.constant 16 : index
    %c0_26 = arith.constant 0 : index
    %24 = vector.load %arg13[%c16, %c0_26] : memref<72x90xf32, #tpu.memory_space<vmem>>, vector<8x90xf32>
    tpu.vector_store %arg13[%c16, %c0_26], %23 {strides = array<i32>} : memref<72x90xf32, #tpu.memory_space<vmem>>, vector<8x90xf32>,
    %25 = arith.extf %8 : vector<8x90xbf16> to vector<8x90xf32>
    %c24 = arith.constant 24 : index
    %c0_27 = arith.constant 0 : index
    %26 = vector.load %arg13[%c24, %c0_27] : memref<72x90xf32, #tpu.memory_space<vmem>>, vector<8x90xf32>
    tpu.vector_store %arg13[%c24, %c0_27], %25 {strides = array<i32>} : memref<72x90xf32, #tpu.memory_space<vmem>>, vector<8x90xf32>,
    %27 = arith.extf %10 : vector<8x90xbf16> to vector<8x90xf32>
    %c32 = arith.constant 32 : index
    %c0_28 = arith.constant 0 : index
    %28 = vector.load %arg13[%c32, %c0_28] : memref<72x90xf32, #tpu.memory_space<vmem>>, vector<8x90xf32>
    tpu.vector_store %arg13[%c32, %c0_28], %27 {strides = array<i32>} : memref<72x90xf32, #tpu.memory_space<vmem>>, vector<8x90xf32>,
    %29 = arith.extf %12 : vector<8x90xbf16> to vector<8x90xf32>
    %c40 = arith.constant 40 : index
    %c0_29 = arith.constant 0 : index
    %30 = vector.load %arg13[%c40, %c0_29] : memref<72x90xf32, #tpu.memory_space<vmem>>, vector<8x90xf32>
    tpu.vector_store %arg13[%c40, %c0_29], %29 {strides = array<i32>} : memref<72x90xf32, #tpu.memory_space<vmem>>, vector<8x90xf32>,
    %31 = arith.extf %14 : vector<8x90xbf16> to vector<8x90xf32>
    %c48 = arith.constant 48 : index
    %c0_30 = arith.constant 0 : index
    %32 = vector.load %arg13[%c48, %c0_30] : memref<72x90xf32, #tpu.memory_space<vmem>>, vector<8x90xf32>
    tpu.vector_store %arg13[%c48, %c0_30], %31 {strides = array<i32>} : memref<72x90xf32, #tpu.memory_space<vmem>>, vector<8x90xf32>,
    %33 = arith.extf %16 : vector<8x90xbf16> to vector<8x90xf32>
    %c56 = arith.constant 56 : index
    %c0_31 = arith.constant 0 : index
    %34 = vector.load %arg13[%c56, %c0_31] : memref<72x90xf32, #tpu.memory_space<vmem>>, vector<8x90xf32>
    tpu.vector_store %arg13[%c56, %c0_31], %33 {strides = array<i32>} : memref<72x90xf32, #tpu.memory_space<vmem>>, vector<8x90xf32>,
    %35 = arith.extf %18 : vector<8x90xbf16> to vector<8x90xf32>
    %c64 = arith.constant 64 : index
    %c0_32 = arith.constant 0 : index
    %36 = vector.load %arg13[%c64, %c0_32] : memref<72x90xf32, #tpu.memory_space<vmem>>, vector<8x90xf32>
    tpu.vector_store %arg13[%c64, %c0_32], %35 {strides = array<i32>} : memref<72x90xf32, #tpu.memory_space<vmem>>, vector<8x90xf32>,
    %c0_33 = arith.constant 0 : index
    %c0_34 = arith.constant 0 : index
    %37 = vector.load %arg1[%c0_33, %c0_34] : memref<16x72xf32, #tpu.memory_space<vmem>>, vector<16x72xf32>
    %c0_35 = arith.constant 0 : index
    %c0_36 = arith.constant 0 : index
    %38 = vector.load %arg13[%c0_35, %c0_36] : memref<72x90xf32, #tpu.memory_space<vmem>>, vector<72x90xf32>
    %cst = arith.constant dense<0.000000e+00> : vector<16x90xf32>
    %39 = tpu.matmul %37, %38, %cst {dimension_numbers = #tpu.dot_dimension_numbers<[1], [0], [0], [1], [0, 0, 1, 1], [], []>} : vector<16x72xf32>, vector<72x90xf32>, vector<16x90xf32> -> vector<16x90xf32>
    %c0_37 = arith.constant 0 : index
    %c0_38 = arith.constant 0 : index
    %40 = vector.load %arg2[%c0_37, %c0_38] : memref<16x1xf32, #tpu.memory_space<vmem>>, vector<16x1xf32>
    %c0_39 = arith.constant 0 : index
    %c0_40 = arith.constant 0 : index
    %41 = vector.load %arg3[%c0_39, %c0_40] : memref<16x1xf32, #tpu.memory_space<vmem>>, vector<16x1xf32>
    %42 = vector.broadcast %0 : vector<1x90xf32> to vector<16x90xf32>
    %43 = arith.mulf %39, %42 : vector<16x90xf32>
    %cst_41 = arith.constant dense<0.000000e+00> : vector<16xf32>
    %44 = vector.multi_reduction <add>, %43, %cst_41 [1] : vector<16x90xf32> to vector<16xf32>
    %45 = vector.shape_cast %44 : vector<16xf32> to vector<16x1xf32>
    %cst_42 = arith.constant 1.562500e-02 : f32
    %46 = vector.broadcast %cst_42 : f32 to vector<16x1xf32>
    %47 = arith.mulf %45, %46 : vector<16x1xf32>
    %48 = vector.broadcast %47 : vector<16x1xf32> to vector<16x90xf32>
    %49 = arith.subf %39, %48 : vector<16x90xf32>
    %50 = arith.mulf %49, %49 : vector<16x90xf32>
    %51 = vector.broadcast %0 : vector<1x90xf32> to vector<16x90xf32>
    %52 = arith.mulf %50, %51 : vector<16x90xf32>
    %cst_43 = arith.constant dense<0.000000e+00> : vector<16xf32>
    %53 = vector.multi_reduction <add>, %52, %cst_43 [1] : vector<16x90xf32> to vector<16xf32>
    %54 = vector.shape_cast %53 : vector<16xf32> to vector<16x1xf32>
    %cst_44 = arith.constant 1.562500e-02 : f32
    %55 = vector.broadcast %cst_44 : f32 to vector<16x1xf32>
    %56 = arith.mulf %54, %55 : vector<16x1xf32>
    %cst_45 = arith.constant 9.99999974E-6 : f32
    %57 = vector.broadcast %cst_45 : f32 to vector<16x1xf32>
    %58 = arith.addf %56, %57 : vector<16x1xf32>
    %59 = math.rsqrt %58 : vector<16x1xf32>
    %60 = vector.broadcast %59 : vector<16x1xf32> to vector<16x90xf32>
    %61 = arith.mulf %49, %60 : vector<16x90xf32>
    %62 = vector.broadcast %40 : vector<16x1xf32> to vector<16x90xf32>
    %63 = arith.mulf %61, %62 : vector<16x90xf32>
    %64 = vector.broadcast %41 : vector<16x1xf32> to vector<16x90xf32>
    %65 = arith.addf %63, %64 : vector<16x90xf32>
    %cst_46 = arith.constant 0.000000e+00 : f32
    %66 = vector.broadcast %cst_46 : f32 to vector<16x90xf32>
    %67 = arith.maximumf %65, %66 : vector<16x90xf32>
    %68 = vector.broadcast %0 : vector<1x90xf32> to vector<16x90xf32>
    %69 = arith.mulf %67, %68 : vector<16x90xf32>
    %cst_47 = arith.constant 0.000000e+00 : bf16
    %70 = vector.broadcast %cst_47 : bf16 to vector<16x128xbf16>
    %c0_48 = arith.constant 0 : index
    %c0_49 = arith.constant 0 : index
    %71 = vector.load %arg12[%c0_48, %c0_49] : memref<16x228xbf16, #tpu.memory_space<vmem>>, vector<16x128xbf16>
    tpu.vector_store %arg12[%c0_48, %c0_49], %70 {strides = array<i32>} : memref<16x228xbf16, #tpu.memory_space<vmem>>, vector<16x128xbf16>,
    %72 = arith.truncf %69 : vector<16x90xf32> to vector<16x90xbf16>
    %c0_50 = arith.constant 0 : index
    %c128 = arith.constant 128 : index
    %73 = vector.load %arg12[%c0_50, %c128] : memref<16x228xbf16, #tpu.memory_space<vmem>>, vector<16x90xbf16>
    tpu.vector_store %arg12[%c0_50, %c128], %72 {strides = array<i32>} : memref<16x228xbf16, #tpu.memory_space<vmem>>, vector<16x90xbf16>,
    %cst_51 = arith.constant 0.000000e+00 : bf16
    %74 = vector.broadcast %cst_51 : bf16 to vector<16x10xbf16>
    %c0_52 = arith.constant 0 : index
    %c218 = arith.constant 218 : index
    %75 = vector.load %arg12[%c0_52, %c218] : memref<16x228xbf16, #tpu.memory_space<vmem>>, vector<16x10xbf16>
    tpu.vector_store %arg12[%c0_52, %c218], %74 {strides = array<i32>} : memref<16x228xbf16, #tpu.memory_space<vmem>>, vector<16x10xbf16>,
    %c0_53 = arith.constant 0 : index
    %c118 = arith.constant 118 : index
    %76 = vector.load %arg12[%c0_53, %c118] : memref<16x228xbf16, #tpu.memory_space<vmem>>, vector<16x90xbf16>
    %c0_54 = arith.constant 0 : index
    %c119 = arith.constant 119 : index
    %77 = vector.load %arg12[%c0_54, %c119] : memref<16x228xbf16, #tpu.memory_space<vmem>>, vector<16x90xbf16>
    %c0_55 = arith.constant 0 : index
    %c120 = arith.constant 120 : index
    %78 = vector.load %arg12[%c0_55, %c120] : memref<16x228xbf16, #tpu.memory_space<vmem>>, vector<16x90xbf16>
    %c0_56 = arith.constant 0 : index
    %c127 = arith.constant 127 : index
    %79 = vector.load %arg12[%c0_56, %c127] : memref<16x228xbf16, #tpu.memory_space<vmem>>, vector<16x90xbf16>
    %c0_57 = arith.constant 0 : index
    %c128_58 = arith.constant 128 : index
    %80 = vector.load %arg12[%c0_57, %c128_58] : memref<16x228xbf16, #tpu.memory_space<vmem>>, vector<16x90xbf16>
    %c0_59 = arith.constant 0 : index
    %c129 = arith.constant 129 : index
    %81 = vector.load %arg12[%c0_59, %c129] : memref<16x228xbf16, #tpu.memory_space<vmem>>, vector<16x90xbf16>
    %c0_60 = arith.constant 0 : index
    %c136 = arith.constant 136 : index
    %82 = vector.load %arg12[%c0_60, %c136] : memref<16x228xbf16, #tpu.memory_space<vmem>>, vector<16x90xbf16>
    %c0_61 = arith.constant 0 : index
    %c137 = arith.constant 137 : index
    %83 = vector.load %arg12[%c0_61, %c137] : memref<16x228xbf16, #tpu.memory_space<vmem>>, vector<16x90xbf16>
    %c0_62 = arith.constant 0 : index
    %c138 = arith.constant 138 : index
    %84 = vector.load %arg12[%c0_62, %c138] : memref<16x228xbf16, #tpu.memory_space<vmem>>, vector<16x90xbf16>
    %85 = arith.extf %76 : vector<16x90xbf16> to vector<16x90xf32>
    %c0_63 = arith.constant 0 : index
    %c0_64 = arith.constant 0 : index
    %86 = vector.load %arg14[%c0_63, %c0_64] : memref<144x90xf32, #tpu.memory_space<vmem>>, vector<16x90xf32>
    tpu.vector_store %arg14[%c0_63, %c0_64], %85 {strides = array<i32>} : memref<144x90xf32, #tpu.memory_space<vmem>>, vector<16x90xf32>,
    %87 = arith.extf %77 : vector<16x90xbf16> to vector<16x90xf32>
    %c16_65 = arith.constant 16 : index
    %c0_66 = arith.constant 0 : index
    %88 = vector.load %arg14[%c16_65, %c0_66] : memref<144x90xf32, #tpu.memory_space<vmem>>, vector<16x90xf32>
    tpu.vector_store %arg14[%c16_65, %c0_66], %87 {strides = array<i32>} : memref<144x90xf32, #tpu.memory_space<vmem>>, vector<16x90xf32>,
    %89 = arith.extf %78 : vector<16x90xbf16> to vector<16x90xf32>
    %c32_67 = arith.constant 32 : index
    %c0_68 = arith.constant 0 : index
    %90 = vector.load %arg14[%c32_67, %c0_68] : memref<144x90xf32, #tpu.memory_space<vmem>>, vector<16x90xf32>
    tpu.vector_store %arg14[%c32_67, %c0_68], %89 {strides = array<i32>} : memref<144x90xf32, #tpu.memory_space<vmem>>, vector<16x90xf32>,
    %91 = arith.extf %79 : vector<16x90xbf16> to vector<16x90xf32>
    %c48_69 = arith.constant 48 : index
    %c0_70 = arith.constant 0 : index
    %92 = vector.load %arg14[%c48_69, %c0_70] : memref<144x90xf32, #tpu.memory_space<vmem>>, vector<16x90xf32>
    tpu.vector_store %arg14[%c48_69, %c0_70], %91 {strides = array<i32>} : memref<144x90xf32, #tpu.memory_space<vmem>>, vector<16x90xf32>,
    %93 = arith.extf %80 : vector<16x90xbf16> to vector<16x90xf32>
    %c64_71 = arith.constant 64 : index
    %c0_72 = arith.constant 0 : index
    %94 = vector.load %arg14[%c64_71, %c0_72] : memref<144x90xf32, #tpu.memory_space<vmem>>, vector<16x90xf32>
    tpu.vector_store %arg14[%c64_71, %c0_72], %93 {strides = array<i32>} : memref<144x90xf32, #tpu.memory_space<vmem>>, vector<16x90xf32>,
    %95 = arith.extf %81 : vector<16x90xbf16> to vector<16x90xf32>
    %c80 = arith.constant 80 : index
    %c0_73 = arith.constant 0 : index
    %96 = vector.load %arg14[%c80, %c0_73] : memref<144x90xf32, #tpu.memory_space<vmem>>, vector<16x90xf32>
    tpu.vector_store %arg14[%c80, %c0_73], %95 {strides = array<i32>} : memref<144x90xf32, #tpu.memory_space<vmem>>, vector<16x90xf32>,
    %97 = arith.extf %82 : vector<16x90xbf16> to vector<16x90xf32>
    %c96 = arith.constant 96 : index
    %c0_74 = arith.constant 0 : index
    %98 = vector.load %arg14[%c96, %c0_74] : memref<144x90xf32, #tpu.memory_space<vmem>>, vector<16x90xf32>
    tpu.vector_store %arg14[%c96, %c0_74], %97 {strides = array<i32>} : memref<144x90xf32, #tpu.memory_space<vmem>>, vector<16x90xf32>,
    %99 = arith.extf %83 : vector<16x90xbf16> to vector<16x90xf32>
    %c112 = arith.constant 112 : index
    %c0_75 = arith.constant 0 : index
    %100 = vector.load %arg14[%c112, %c0_75] : memref<144x90xf32, #tpu.memory_space<vmem>>, vector<16x90xf32>
    tpu.vector_store %arg14[%c112, %c0_75], %99 {strides = array<i32>} : memref<144x90xf32, #tpu.memory_space<vmem>>, vector<16x90xf32>,
    %101 = arith.extf %84 : vector<16x90xbf16> to vector<16x90xf32>
    %c128_76 = arith.constant 128 : index
    %c0_77 = arith.constant 0 : index
    %102 = vector.load %arg14[%c128_76, %c0_77] : memref<144x90xf32, #tpu.memory_space<vmem>>, vector<16x90xf32>
    tpu.vector_store %arg14[%c128_76, %c0_77], %101 {strides = array<i32>} : memref<144x90xf32, #tpu.memory_space<vmem>>, vector<16x90xf32>,
    %c0_78 = arith.constant 0 : index
    %c0_79 = arith.constant 0 : index
    %103 = vector.load %arg4[%c0_78, %c0_79] : memref<16x144xf32, #tpu.memory_space<vmem>>, vector<16x144xf32>
    %c0_80 = arith.constant 0 : index
    %c0_81 = arith.constant 0 : index
    %104 = vector.load %arg14[%c0_80, %c0_81] : memref<144x90xf32, #tpu.memory_space<vmem>>, vector<144x90xf32>
    %cst_82 = arith.constant dense<0.000000e+00> : vector<16x90xf32>
    %105 = tpu.matmul %103, %104, %cst_82 {dimension_numbers = #tpu.dot_dimension_numbers<[1], [0], [0], [1], [0, 0, 1, 1], [], []>} : vector<16x144xf32>, vector<144x90xf32>, vector<16x90xf32> -> vector<16x90xf32>
    %c0_83 = arith.constant 0 : index
    %c0_84 = arith.constant 0 : index
    %106 = vector.load %arg5[%c0_83, %c0_84] : memref<16x1xf32, #tpu.memory_space<vmem>>, vector<16x1xf32>
    %c0_85 = arith.constant 0 : index
    %c0_86 = arith.constant 0 : index
    %107 = vector.load %arg6[%c0_85, %c0_86] : memref<16x1xf32, #tpu.memory_space<vmem>>, vector<16x1xf32>
    %108 = vector.broadcast %0 : vector<1x90xf32> to vector<16x90xf32>
    %109 = arith.mulf %105, %108 : vector<16x90xf32>
    %cst_87 = arith.constant dense<0.000000e+00> : vector<16xf32>
    %110 = vector.multi_reduction <add>, %109, %cst_87 [1] : vector<16x90xf32> to vector<16xf32>
    %111 = vector.shape_cast %110 : vector<16xf32> to vector<16x1xf32>
    %cst_88 = arith.constant 1.562500e-02 : f32
    %112 = vector.broadcast %cst_88 : f32 to vector<16x1xf32>
    %113 = arith.mulf %111, %112 : vector<16x1xf32>
    %114 = vector.broadcast %113 : vector<16x1xf32> to vector<16x90xf32>
    %115 = arith.subf %105, %114 : vector<16x90xf32>
    %116 = arith.mulf %115, %115 : vector<16x90xf32>
    %117 = vector.broadcast %0 : vector<1x90xf32> to vector<16x90xf32>
    %118 = arith.mulf %116, %117 : vector<16x90xf32>
    %cst_89 = arith.constant dense<0.000000e+00> : vector<16xf32>
    %119 = vector.multi_reduction <add>, %118, %cst_89 [1] : vector<16x90xf32> to vector<16xf32>
    %120 = vector.shape_cast %119 : vector<16xf32> to vector<16x1xf32>
    %cst_90 = arith.constant 1.562500e-02 : f32
    %121 = vector.broadcast %cst_90 : f32 to vector<16x1xf32>
    %122 = arith.mulf %120, %121 : vector<16x1xf32>
    %cst_91 = arith.constant 9.99999974E-6 : f32
    %123 = vector.broadcast %cst_91 : f32 to vector<16x1xf32>
    %124 = arith.addf %122, %123 : vector<16x1xf32>
    %125 = math.rsqrt %124 : vector<16x1xf32>
    %126 = vector.broadcast %125 : vector<16x1xf32> to vector<16x90xf32>
    %127 = arith.mulf %115, %126 : vector<16x90xf32>
    %128 = vector.broadcast %106 : vector<16x1xf32> to vector<16x90xf32>
    %129 = arith.mulf %127, %128 : vector<16x90xf32>
    %130 = vector.broadcast %107 : vector<16x1xf32> to vector<16x90xf32>
    %131 = arith.addf %129, %130 : vector<16x90xf32>
    %c3_92 = arith.constant 3 : index
    %c0_93 = arith.constant 0 : index
    %c0_94 = arith.constant 0 : index
    %132 = vector.load %arg0[%c3_92, %c0_93, %c0_94] : memref<4x8x100xbf16, #tpu.memory_space<vmem>>, vector<1x8x90xbf16>
    %133 = vector.shape_cast %132 : vector<1x8x90xbf16> to vector<8x90xbf16>
    %134 = arith.extf %133 : vector<8x90xbf16> to vector<8x90xf32>
    %c0_95 = arith.constant 0 : index
    %c0_96 = arith.constant 0 : index
    %135 = vector.load %arg8[%c0_95, %c0_96] : memref<16x8xf32, #tpu.memory_space<vmem>>, vector<16x8xf32>
    %cst_97 = arith.constant dense<0.000000e+00> : vector<16x90xf32>
    %136 = tpu.matmul %135, %134, %cst_97 {dimension_numbers = #tpu.dot_dimension_numbers<[1], [0], [0], [1], [0, 0, 1, 1], [], []>} : vector<16x8xf32>, vector<8x90xf32>, vector<16x90xf32> -> vector<16x90xf32>
    %c0_98 = arith.constant 0 : index
    %c0_99 = arith.constant 0 : index
    %137 = vector.load %arg9[%c0_98, %c0_99] : memref<16x1xf32, #tpu.memory_space<vmem>>, vector<16x1xf32>
    %c0_100 = arith.constant 0 : index
    %c0_101 = arith.constant 0 : index
    %138 = vector.load %arg10[%c0_100, %c0_101] : memref<16x1xf32, #tpu.memory_space<vmem>>, vector<16x1xf32>
    %139 = vector.broadcast %0 : vector<1x90xf32> to vector<16x90xf32>
    %140 = arith.mulf %136, %139 : vector<16x90xf32>
    %cst_102 = arith.constant dense<0.000000e+00> : vector<16xf32>
    %141 = vector.multi_reduction <add>, %140, %cst_102 [1] : vector<16x90xf32> to vector<16xf32>
    %142 = vector.shape_cast %141 : vector<16xf32> to vector<16x1xf32>
    %cst_103 = arith.constant 1.562500e-02 : f32
    %143 = vector.broadcast %cst_103 : f32 to vector<16x1xf32>
    %144 = arith.mulf %142, %143 : vector<16x1xf32>
    %145 = vector.broadcast %144 : vector<16x1xf32> to vector<16x90xf32>
    %146 = arith.subf %136, %145 : vector<16x90xf32>
    %147 = arith.mulf %146, %146 : vector<16x90xf32>
    %148 = vector.broadcast %0 : vector<1x90xf32> to vector<16x90xf32>
    %149 = arith.mulf %147, %148 : vector<16x90xf32>
    %cst_104 = arith.constant dense<0.000000e+00> : vector<16xf32>
    %150 = vector.multi_reduction <add>, %149, %cst_104 [1] : vector<16x90xf32> to vector<16xf32>
    %151 = vector.shape_cast %150 : vector<16xf32> to vector<16x1xf32>
    %cst_105 = arith.constant 1.562500e-02 : f32
    %152 = vector.broadcast %cst_105 : f32 to vector<16x1xf32>
    %153 = arith.mulf %151, %152 : vector<16x1xf32>
    %cst_106 = arith.constant 9.99999974E-6 : f32
    %154 = vector.broadcast %cst_106 : f32 to vector<16x1xf32>
    %155 = arith.addf %153, %154 : vector<16x1xf32>
    %156 = math.rsqrt %155 : vector<16x1xf32>
    %157 = vector.broadcast %156 : vector<16x1xf32> to vector<16x90xf32>
    %158 = arith.mulf %146, %157 : vector<16x90xf32>
    %159 = vector.broadcast %137 : vector<16x1xf32> to vector<16x90xf32>
    %160 = arith.mulf %158, %159 : vector<16x90xf32>
    %161 = vector.broadcast %138 : vector<16x1xf32> to vector<16x90xf32>
    %162 = arith.addf %160, %161 : vector<16x90xf32>
    %163 = arith.addf %131, %162 : vector<16x90xf32>
    %cst_107 = arith.constant 0.000000e+00 : f32
    %164 = vector.broadcast %cst_107 : f32 to vector<16x90xf32>
    %165 = arith.maximumf %163, %164 : vector<16x90xf32>
    %166 = vector.broadcast %0 : vector<1x90xf32> to vector<16x90xf32>
    %167 = arith.mulf %165, %166 : vector<16x90xf32>
    %cst_108 = arith.constant 0.000000e+00 : bf16
    %168 = vector.broadcast %cst_108 : bf16 to vector<16x128xbf16>
    %c0_109 = arith.constant 0 : index
    %c0_110 = arith.constant 0 : index
    %169 = vector.load %arg11[%c0_109, %c0_110] : memref<16x346xbf16, #tpu.memory_space<vmem>>, vector<16x128xbf16>
    tpu.vector_store %arg11[%c0_109, %c0_110], %168 {strides = array<i32>} : memref<16x346xbf16, #tpu.memory_space<vmem>>, vector<16x128xbf16>,
    %170 = arith.truncf %167 : vector<16x90xf32> to vector<16x90xbf16>
    %c0_111 = arith.constant 0 : index
    %c128_112 = arith.constant 128 : index
    %171 = vector.load %arg11[%c0_111, %c128_112] : memref<16x346xbf16, #tpu.memory_space<vmem>>, vector<16x90xbf16>
    tpu.vector_store %arg11[%c0_111, %c128_112], %170 {strides = array<i32>} : memref<16x346xbf16, #tpu.memory_space<vmem>>, vector<16x90xbf16>,
    %cst_113 = arith.constant 0.000000e+00 : bf16
    %172 = vector.broadcast %cst_113 : bf16 to vector<16x128xbf16>
    %c0_114 = arith.constant 0 : index
    %c218_115 = arith.constant 218 : index
    %173 = vector.load %arg11[%c0_114, %c218_115] : memref<16x346xbf16, #tpu.memory_space<vmem>>, vector<16x128xbf16>
    tpu.vector_store %arg11[%c0_114, %c218_115], %172 {strides = array<i32>} : memref<16x346xbf16, #tpu.memory_space<vmem>>, vector<16x128xbf16>,
    return
  }
}

module attributes {stable_mosaic.version = 11 : i64} {
  func.func @_block_kernel(%arg0: memref<4x16x36xbf16, #tpu.memory_space<vmem>>, %arg1: memref<32x144xf32, #tpu.memory_space<vmem>>, %arg2: memref<32x1xf32, #tpu.memory_space<vmem>>, %arg3: memref<32x1xf32, #tpu.memory_space<vmem>>, %arg4: memref<32x288xf32, #tpu.memory_space<vmem>>, %arg5: memref<32x1xf32, #tpu.memory_space<vmem>>, %arg6: memref<32x1xf32, #tpu.memory_space<vmem>>, %arg7: memref<1x30xf32, #tpu.memory_space<vmem>>, %arg8: memref<32x16xf32, #tpu.memory_space<vmem>>, %arg9: memref<32x1xf32, #tpu.memory_space<vmem>>, %arg10: memref<32x1xf32, #tpu.memory_space<vmem>>, %arg11: memref<6x30xf32, #tpu.memory_space<vmem>>, %arg12: memref<32x12xf32, #tpu.memory_space<vmem>>, %arg13: memref<32x164xbf16, #tpu.memory_space<vmem>>, %arg14: memref<144x30xf32, #tpu.memory_space<vmem>>, %arg15: memref<288x30xf32, #tpu.memory_space<vmem>>) attributes {dimension_semantics = [], scalar_prefetch = 0 : i64, scratch_operands = 3 : i64, tpu.core_type = #tpu.core_type<tc>} {
    %c0 = arith.constant 0 : index
    %c0_0 = arith.constant 0 : index
    %0 = vector.load %arg7[%c0, %c0_0] : memref<1x30xf32, #tpu.memory_space<vmem>>, vector<1x30xf32>
    %c0_1 = arith.constant 0 : index
    %c0_2 = arith.constant 0 : index
    %c0_3 = arith.constant 0 : index
    %1 = vector.load %arg0[%c0_1, %c0_2, %c0_3] : memref<4x16x36xbf16, #tpu.memory_space<vmem>>, vector<1x16x30xbf16>
    %2 = vector.shape_cast %1 : vector<1x16x30xbf16> to vector<16x30xbf16>
    %c1 = arith.constant 1 : index
    %c0_4 = arith.constant 0 : index
    %c0_5 = arith.constant 0 : index
    %3 = vector.load %arg0[%c1, %c0_4, %c0_5] : memref<4x16x36xbf16, #tpu.memory_space<vmem>>, vector<1x16x30xbf16>
    %4 = vector.shape_cast %3 : vector<1x16x30xbf16> to vector<16x30xbf16>
    %c0_6 = arith.constant 0 : index
    %c0_7 = arith.constant 0 : index
    %c1_8 = arith.constant 1 : index
    %5 = vector.load %arg0[%c0_6, %c0_7, %c1_8] : memref<4x16x36xbf16, #tpu.memory_space<vmem>>, vector<1x16x30xbf16>
    %6 = vector.shape_cast %5 : vector<1x16x30xbf16> to vector<16x30xbf16>
    %c2 = arith.constant 2 : index
    %c0_9 = arith.constant 0 : index
    %c0_10 = arith.constant 0 : index
    %7 = vector.load %arg0[%c2, %c0_9, %c0_10] : memref<4x16x36xbf16, #tpu.memory_space<vmem>>, vector<1x16x30xbf16>
    %8 = vector.shape_cast %7 : vector<1x16x30xbf16> to vector<16x30xbf16>
    %c3 = arith.constant 3 : index
    %c0_11 = arith.constant 0 : index
    %c0_12 = arith.constant 0 : index
    %9 = vector.load %arg0[%c3, %c0_11, %c0_12] : memref<4x16x36xbf16, #tpu.memory_space<vmem>>, vector<1x16x30xbf16>
    %10 = vector.shape_cast %9 : vector<1x16x30xbf16> to vector<16x30xbf16>
    %c2_13 = arith.constant 2 : index
    %c0_14 = arith.constant 0 : index
    %c1_15 = arith.constant 1 : index
    %11 = vector.load %arg0[%c2_13, %c0_14, %c1_15] : memref<4x16x36xbf16, #tpu.memory_space<vmem>>, vector<1x16x30xbf16>
    %12 = vector.shape_cast %11 : vector<1x16x30xbf16> to vector<16x30xbf16>
    %c0_16 = arith.constant 0 : index
    %c0_17 = arith.constant 0 : index
    %c5 = arith.constant 5 : index
    %13 = vector.load %arg0[%c0_16, %c0_17, %c5] : memref<4x16x36xbf16, #tpu.memory_space<vmem>>, vector<1x16x30xbf16>
    %14 = vector.shape_cast %13 : vector<1x16x30xbf16> to vector<16x30xbf16>
    %c1_18 = arith.constant 1 : index
    %c0_19 = arith.constant 0 : index
    %c5_20 = arith.constant 5 : index
    %15 = vector.load %arg0[%c1_18, %c0_19, %c5_20] : memref<4x16x36xbf16, #tpu.memory_space<vmem>>, vector<1x16x30xbf16>
    %16 = vector.shape_cast %15 : vector<1x16x30xbf16> to vector<16x30xbf16>
    %c0_21 = arith.constant 0 : index
    %c0_22 = arith.constant 0 : index
    %c6 = arith.constant 6 : index
    %17 = vector.load %arg0[%c0_21, %c0_22, %c6] : memref<4x16x36xbf16, #tpu.memory_space<vmem>>, vector<1x16x30xbf16>
    %18 = vector.shape_cast %17 : vector<1x16x30xbf16> to vector<16x30xbf16>
    %19 = arith.extf %2 : vector<16x30xbf16> to vector<16x30xf32>
    %c0_23 = arith.constant 0 : index
    %c0_24 = arith.constant 0 : index
    %20 = vector.load %arg14[%c0_23, %c0_24] : memref<144x30xf32, #tpu.memory_space<vmem>>, vector<16x30xf32>
    tpu.vector_store %arg14[%c0_23, %c0_24], %19 {strides = array<i32>} : memref<144x30xf32, #tpu.memory_space<vmem>>, vector<16x30xf32>,
    %21 = arith.extf %4 : vector<16x30xbf16> to vector<16x30xf32>
    %c16 = arith.constant 16 : index
    %c0_25 = arith.constant 0 : index
    %22 = vector.load %arg14[%c16, %c0_25] : memref<144x30xf32, #tpu.memory_space<vmem>>, vector<16x30xf32>
    tpu.vector_store %arg14[%c16, %c0_25], %21 {strides = array<i32>} : memref<144x30xf32, #tpu.memory_space<vmem>>, vector<16x30xf32>,
    %23 = arith.extf %6 : vector<16x30xbf16> to vector<16x30xf32>
    %c32 = arith.constant 32 : index
    %c0_26 = arith.constant 0 : index
    %24 = vector.load %arg14[%c32, %c0_26] : memref<144x30xf32, #tpu.memory_space<vmem>>, vector<16x30xf32>
    tpu.vector_store %arg14[%c32, %c0_26], %23 {strides = array<i32>} : memref<144x30xf32, #tpu.memory_space<vmem>>, vector<16x30xf32>,
    %25 = arith.extf %8 : vector<16x30xbf16> to vector<16x30xf32>
    %c48 = arith.constant 48 : index
    %c0_27 = arith.constant 0 : index
    %26 = vector.load %arg14[%c48, %c0_27] : memref<144x30xf32, #tpu.memory_space<vmem>>, vector<16x30xf32>
    tpu.vector_store %arg14[%c48, %c0_27], %25 {strides = array<i32>} : memref<144x30xf32, #tpu.memory_space<vmem>>, vector<16x30xf32>,
    %27 = arith.extf %10 : vector<16x30xbf16> to vector<16x30xf32>
    %c64 = arith.constant 64 : index
    %c0_28 = arith.constant 0 : index
    %28 = vector.load %arg14[%c64, %c0_28] : memref<144x30xf32, #tpu.memory_space<vmem>>, vector<16x30xf32>
    tpu.vector_store %arg14[%c64, %c0_28], %27 {strides = array<i32>} : memref<144x30xf32, #tpu.memory_space<vmem>>, vector<16x30xf32>,
    %29 = arith.extf %12 : vector<16x30xbf16> to vector<16x30xf32>
    %c80 = arith.constant 80 : index
    %c0_29 = arith.constant 0 : index
    %30 = vector.load %arg14[%c80, %c0_29] : memref<144x30xf32, #tpu.memory_space<vmem>>, vector<16x30xf32>
    tpu.vector_store %arg14[%c80, %c0_29], %29 {strides = array<i32>} : memref<144x30xf32, #tpu.memory_space<vmem>>, vector<16x30xf32>,
    %31 = arith.extf %14 : vector<16x30xbf16> to vector<16x30xf32>
    %c96 = arith.constant 96 : index
    %c0_30 = arith.constant 0 : index
    %32 = vector.load %arg14[%c96, %c0_30] : memref<144x30xf32, #tpu.memory_space<vmem>>, vector<16x30xf32>
    tpu.vector_store %arg14[%c96, %c0_30], %31 {strides = array<i32>} : memref<144x30xf32, #tpu.memory_space<vmem>>, vector<16x30xf32>,
    %33 = arith.extf %16 : vector<16x30xbf16> to vector<16x30xf32>
    %c112 = arith.constant 112 : index
    %c0_31 = arith.constant 0 : index
    %34 = vector.load %arg14[%c112, %c0_31] : memref<144x30xf32, #tpu.memory_space<vmem>>, vector<16x30xf32>
    tpu.vector_store %arg14[%c112, %c0_31], %33 {strides = array<i32>} : memref<144x30xf32, #tpu.memory_space<vmem>>, vector<16x30xf32>,
    %35 = arith.extf %18 : vector<16x30xbf16> to vector<16x30xf32>
    %c128 = arith.constant 128 : index
    %c0_32 = arith.constant 0 : index
    %36 = vector.load %arg14[%c128, %c0_32] : memref<144x30xf32, #tpu.memory_space<vmem>>, vector<16x30xf32>
    tpu.vector_store %arg14[%c128, %c0_32], %35 {strides = array<i32>} : memref<144x30xf32, #tpu.memory_space<vmem>>, vector<16x30xf32>,
    %c0_33 = arith.constant 0 : index
    %c0_34 = arith.constant 0 : index
    %37 = vector.load %arg1[%c0_33, %c0_34] : memref<32x144xf32, #tpu.memory_space<vmem>>, vector<32x144xf32>
    %c0_35 = arith.constant 0 : index
    %c0_36 = arith.constant 0 : index
    %38 = vector.load %arg14[%c0_35, %c0_36] : memref<144x30xf32, #tpu.memory_space<vmem>>, vector<144x30xf32>
    %cst = arith.constant dense<0.000000e+00> : vector<32x30xf32>
    %39 = tpu.matmul %37, %38, %cst {dimension_numbers = #tpu.dot_dimension_numbers<[1], [0], [0], [1], [0, 0, 1, 1], [], []>} : vector<32x144xf32>, vector<144x30xf32>, vector<32x30xf32> -> vector<32x30xf32>
    %c0_37 = arith.constant 0 : index
    %c0_38 = arith.constant 0 : index
    %40 = vector.load %arg2[%c0_37, %c0_38] : memref<32x1xf32, #tpu.memory_space<vmem>>, vector<32x1xf32>
    %c0_39 = arith.constant 0 : index
    %c0_40 = arith.constant 0 : index
    %41 = vector.load %arg3[%c0_39, %c0_40] : memref<32x1xf32, #tpu.memory_space<vmem>>, vector<32x1xf32>
    %42 = vector.broadcast %0 : vector<1x30xf32> to vector<32x30xf32>
    %43 = arith.mulf %39, %42 : vector<32x30xf32>
    %cst_41 = arith.constant dense<0.000000e+00> : vector<32xf32>
    %44 = vector.multi_reduction <add>, %43, %cst_41 [1] : vector<32x30xf32> to vector<32xf32>
    %45 = vector.shape_cast %44 : vector<32xf32> to vector<32x1xf32>
    %cst_42 = arith.constant 6.250000e-02 : f32
    %46 = vector.broadcast %cst_42 : f32 to vector<32x1xf32>
    %47 = arith.mulf %45, %46 : vector<32x1xf32>
    %48 = vector.broadcast %47 : vector<32x1xf32> to vector<32x30xf32>
    %49 = arith.subf %39, %48 : vector<32x30xf32>
    %50 = arith.mulf %49, %49 : vector<32x30xf32>
    %51 = vector.broadcast %0 : vector<1x30xf32> to vector<32x30xf32>
    %52 = arith.mulf %50, %51 : vector<32x30xf32>
    %cst_43 = arith.constant dense<0.000000e+00> : vector<32xf32>
    %53 = vector.multi_reduction <add>, %52, %cst_43 [1] : vector<32x30xf32> to vector<32xf32>
    %54 = vector.shape_cast %53 : vector<32xf32> to vector<32x1xf32>
    %cst_44 = arith.constant 6.250000e-02 : f32
    %55 = vector.broadcast %cst_44 : f32 to vector<32x1xf32>
    %56 = arith.mulf %54, %55 : vector<32x1xf32>
    %cst_45 = arith.constant 9.99999974E-6 : f32
    %57 = vector.broadcast %cst_45 : f32 to vector<32x1xf32>
    %58 = arith.addf %56, %57 : vector<32x1xf32>
    %59 = math.rsqrt %58 : vector<32x1xf32>
    %60 = vector.broadcast %59 : vector<32x1xf32> to vector<32x30xf32>
    %61 = arith.mulf %49, %60 : vector<32x30xf32>
    %62 = vector.broadcast %40 : vector<32x1xf32> to vector<32x30xf32>
    %63 = arith.mulf %61, %62 : vector<32x30xf32>
    %64 = vector.broadcast %41 : vector<32x1xf32> to vector<32x30xf32>
    %65 = arith.addf %63, %64 : vector<32x30xf32>
    %cst_46 = arith.constant 0.000000e+00 : f32
    %66 = vector.broadcast %cst_46 : f32 to vector<32x30xf32>
    %67 = arith.maximumf %65, %66 : vector<32x30xf32>
    %68 = vector.broadcast %0 : vector<1x30xf32> to vector<32x30xf32>
    %69 = arith.mulf %67, %68 : vector<32x30xf32>
    %cst_47 = arith.constant 0.000000e+00 : bf16
    %70 = vector.broadcast %cst_47 : bf16 to vector<32x128xbf16>
    %c0_48 = arith.constant 0 : index
    %c0_49 = arith.constant 0 : index
    %71 = vector.load %arg13[%c0_48, %c0_49] : memref<32x164xbf16, #tpu.memory_space<vmem>>, vector<32x128xbf16>
    tpu.vector_store %arg13[%c0_48, %c0_49], %70 {strides = array<i32>} : memref<32x164xbf16, #tpu.memory_space<vmem>>, vector<32x128xbf16>,
    %72 = arith.truncf %69 : vector<32x30xf32> to vector<32x30xbf16>
    %c0_50 = arith.constant 0 : index
    %c128_51 = arith.constant 128 : index
    %73 = vector.load %arg13[%c0_50, %c128_51] : memref<32x164xbf16, #tpu.memory_space<vmem>>, vector<32x30xbf16>
    tpu.vector_store %arg13[%c0_50, %c128_51], %72 {strides = array<i32>} : memref<32x164xbf16, #tpu.memory_space<vmem>>, vector<32x30xbf16>,
    %cst_52 = arith.constant 0.000000e+00 : bf16
    %74 = vector.broadcast %cst_52 : bf16 to vector<32x6xbf16>
    %c0_53 = arith.constant 0 : index
    %c158 = arith.constant 158 : index
    %75 = vector.load %arg13[%c0_53, %c158] : memref<32x164xbf16, #tpu.memory_space<vmem>>, vector<32x6xbf16>
    tpu.vector_store %arg13[%c0_53, %c158], %74 {strides = array<i32>} : memref<32x164xbf16, #tpu.memory_space<vmem>>, vector<32x6xbf16>,
    %c0_54 = arith.constant 0 : index
    %c122 = arith.constant 122 : index
    %76 = vector.load %arg13[%c0_54, %c122] : memref<32x164xbf16, #tpu.memory_space<vmem>>, vector<32x30xbf16>
    %c0_55 = arith.constant 0 : index
    %c123 = arith.constant 123 : index
    %77 = vector.load %arg13[%c0_55, %c123] : memref<32x164xbf16, #tpu.memory_space<vmem>>, vector<32x30xbf16>
    %c0_56 = arith.constant 0 : index
    %c124 = arith.constant 124 : index
    %78 = vector.load %arg13[%c0_56, %c124] : memref<32x164xbf16, #tpu.memory_space<vmem>>, vector<32x30xbf16>
    %c0_57 = arith.constant 0 : index
    %c127 = arith.constant 127 : index
    %79 = vector.load %arg13[%c0_57, %c127] : memref<32x164xbf16, #tpu.memory_space<vmem>>, vector<32x30xbf16>
    %c0_58 = arith.constant 0 : index
    %c128_59 = arith.constant 128 : index
    %80 = vector.load %arg13[%c0_58, %c128_59] : memref<32x164xbf16, #tpu.memory_space<vmem>>, vector<32x30xbf16>
    %c0_60 = arith.constant 0 : index
    %c129 = arith.constant 129 : index
    %81 = vector.load %arg13[%c0_60, %c129] : memref<32x164xbf16, #tpu.memory_space<vmem>>, vector<32x30xbf16>
    %c0_61 = arith.constant 0 : index
    %c132 = arith.constant 132 : index
    %82 = vector.load %arg13[%c0_61, %c132] : memref<32x164xbf16, #tpu.memory_space<vmem>>, vector<32x30xbf16>
    %c0_62 = arith.constant 0 : index
    %c133 = arith.constant 133 : index
    %83 = vector.load %arg13[%c0_62, %c133] : memref<32x164xbf16, #tpu.memory_space<vmem>>, vector<32x30xbf16>
    %c0_63 = arith.constant 0 : index
    %c134 = arith.constant 134 : index
    %84 = vector.load %arg13[%c0_63, %c134] : memref<32x164xbf16, #tpu.memory_space<vmem>>, vector<32x30xbf16>
    %85 = arith.extf %76 : vector<32x30xbf16> to vector<32x30xf32>
    %c0_64 = arith.constant 0 : index
    %c0_65 = arith.constant 0 : index
    %86 = vector.load %arg15[%c0_64, %c0_65] : memref<288x30xf32, #tpu.memory_space<vmem>>, vector<32x30xf32>
    tpu.vector_store %arg15[%c0_64, %c0_65], %85 {strides = array<i32>} : memref<288x30xf32, #tpu.memory_space<vmem>>, vector<32x30xf32>,
    %87 = arith.extf %77 : vector<32x30xbf16> to vector<32x30xf32>
    %c32_66 = arith.constant 32 : index
    %c0_67 = arith.constant 0 : index
    %88 = vector.load %arg15[%c32_66, %c0_67] : memref<288x30xf32, #tpu.memory_space<vmem>>, vector<32x30xf32>
    tpu.vector_store %arg15[%c32_66, %c0_67], %87 {strides = array<i32>} : memref<288x30xf32, #tpu.memory_space<vmem>>, vector<32x30xf32>,
    %89 = arith.extf %78 : vector<32x30xbf16> to vector<32x30xf32>
    %c64_68 = arith.constant 64 : index
    %c0_69 = arith.constant 0 : index
    %90 = vector.load %arg15[%c64_68, %c0_69] : memref<288x30xf32, #tpu.memory_space<vmem>>, vector<32x30xf32>
    tpu.vector_store %arg15[%c64_68, %c0_69], %89 {strides = array<i32>} : memref<288x30xf32, #tpu.memory_space<vmem>>, vector<32x30xf32>,
    %91 = arith.extf %79 : vector<32x30xbf16> to vector<32x30xf32>
    %c96_70 = arith.constant 96 : index
    %c0_71 = arith.constant 0 : index
    %92 = vector.load %arg15[%c96_70, %c0_71] : memref<288x30xf32, #tpu.memory_space<vmem>>, vector<32x30xf32>
    tpu.vector_store %arg15[%c96_70, %c0_71], %91 {strides = array<i32>} : memref<288x30xf32, #tpu.memory_space<vmem>>, vector<32x30xf32>,
    %93 = arith.extf %80 : vector<32x30xbf16> to vector<32x30xf32>
    %c128_72 = arith.constant 128 : index
    %c0_73 = arith.constant 0 : index
    %94 = vector.load %arg15[%c128_72, %c0_73] : memref<288x30xf32, #tpu.memory_space<vmem>>, vector<32x30xf32>
    tpu.vector_store %arg15[%c128_72, %c0_73], %93 {strides = array<i32>} : memref<288x30xf32, #tpu.memory_space<vmem>>, vector<32x30xf32>,
    %95 = arith.extf %81 : vector<32x30xbf16> to vector<32x30xf32>
    %c160 = arith.constant 160 : index
    %c0_74 = arith.constant 0 : index
    %96 = vector.load %arg15[%c160, %c0_74] : memref<288x30xf32, #tpu.memory_space<vmem>>, vector<32x30xf32>
    tpu.vector_store %arg15[%c160, %c0_74], %95 {strides = array<i32>} : memref<288x30xf32, #tpu.memory_space<vmem>>, vector<32x30xf32>,
    %97 = arith.extf %82 : vector<32x30xbf16> to vector<32x30xf32>
    %c192 = arith.constant 192 : index
    %c0_75 = arith.constant 0 : index
    %98 = vector.load %arg15[%c192, %c0_75] : memref<288x30xf32, #tpu.memory_space<vmem>>, vector<32x30xf32>
    tpu.vector_store %arg15[%c192, %c0_75], %97 {strides = array<i32>} : memref<288x30xf32, #tpu.memory_space<vmem>>, vector<32x30xf32>,
    %99 = arith.extf %83 : vector<32x30xbf16> to vector<32x30xf32>
    %c224 = arith.constant 224 : index
    %c0_76 = arith.constant 0 : index
    %100 = vector.load %arg15[%c224, %c0_76] : memref<288x30xf32, #tpu.memory_space<vmem>>, vector<32x30xf32>
    tpu.vector_store %arg15[%c224, %c0_76], %99 {strides = array<i32>} : memref<288x30xf32, #tpu.memory_space<vmem>>, vector<32x30xf32>,
    %101 = arith.extf %84 : vector<32x30xbf16> to vector<32x30xf32>
    %c256 = arith.constant 256 : index
    %c0_77 = arith.constant 0 : index
    %102 = vector.load %arg15[%c256, %c0_77] : memref<288x30xf32, #tpu.memory_space<vmem>>, vector<32x30xf32>
    tpu.vector_store %arg15[%c256, %c0_77], %101 {strides = array<i32>} : memref<288x30xf32, #tpu.memory_space<vmem>>, vector<32x30xf32>,
    %c0_78 = arith.constant 0 : index
    %c0_79 = arith.constant 0 : index
    %103 = vector.load %arg4[%c0_78, %c0_79] : memref<32x288xf32, #tpu.memory_space<vmem>>, vector<32x288xf32>
    %c0_80 = arith.constant 0 : index
    %c0_81 = arith.constant 0 : index
    %104 = vector.load %arg15[%c0_80, %c0_81] : memref<288x30xf32, #tpu.memory_space<vmem>>, vector<288x30xf32>
    %cst_82 = arith.constant dense<0.000000e+00> : vector<32x30xf32>
    %105 = tpu.matmul %103, %104, %cst_82 {dimension_numbers = #tpu.dot_dimension_numbers<[1], [0], [0], [1], [0, 0, 1, 1], [], []>} : vector<32x288xf32>, vector<288x30xf32>, vector<32x30xf32> -> vector<32x30xf32>
    %c0_83 = arith.constant 0 : index
    %c0_84 = arith.constant 0 : index
    %106 = vector.load %arg5[%c0_83, %c0_84] : memref<32x1xf32, #tpu.memory_space<vmem>>, vector<32x1xf32>
    %c0_85 = arith.constant 0 : index
    %c0_86 = arith.constant 0 : index
    %107 = vector.load %arg6[%c0_85, %c0_86] : memref<32x1xf32, #tpu.memory_space<vmem>>, vector<32x1xf32>
    %108 = vector.broadcast %0 : vector<1x30xf32> to vector<32x30xf32>
    %109 = arith.mulf %105, %108 : vector<32x30xf32>
    %cst_87 = arith.constant dense<0.000000e+00> : vector<32xf32>
    %110 = vector.multi_reduction <add>, %109, %cst_87 [1] : vector<32x30xf32> to vector<32xf32>
    %111 = vector.shape_cast %110 : vector<32xf32> to vector<32x1xf32>
    %cst_88 = arith.constant 6.250000e-02 : f32
    %112 = vector.broadcast %cst_88 : f32 to vector<32x1xf32>
    %113 = arith.mulf %111, %112 : vector<32x1xf32>
    %114 = vector.broadcast %113 : vector<32x1xf32> to vector<32x30xf32>
    %115 = arith.subf %105, %114 : vector<32x30xf32>
    %116 = arith.mulf %115, %115 : vector<32x30xf32>
    %117 = vector.broadcast %0 : vector<1x30xf32> to vector<32x30xf32>
    %118 = arith.mulf %116, %117 : vector<32x30xf32>
    %cst_89 = arith.constant dense<0.000000e+00> : vector<32xf32>
    %119 = vector.multi_reduction <add>, %118, %cst_89 [1] : vector<32x30xf32> to vector<32xf32>
    %120 = vector.shape_cast %119 : vector<32xf32> to vector<32x1xf32>
    %cst_90 = arith.constant 6.250000e-02 : f32
    %121 = vector.broadcast %cst_90 : f32 to vector<32x1xf32>
    %122 = arith.mulf %120, %121 : vector<32x1xf32>
    %cst_91 = arith.constant 9.99999974E-6 : f32
    %123 = vector.broadcast %cst_91 : f32 to vector<32x1xf32>
    %124 = arith.addf %122, %123 : vector<32x1xf32>
    %125 = math.rsqrt %124 : vector<32x1xf32>
    %126 = vector.broadcast %125 : vector<32x1xf32> to vector<32x30xf32>
    %127 = arith.mulf %115, %126 : vector<32x30xf32>
    %128 = vector.broadcast %106 : vector<32x1xf32> to vector<32x30xf32>
    %129 = arith.mulf %127, %128 : vector<32x30xf32>
    %130 = vector.broadcast %107 : vector<32x1xf32> to vector<32x30xf32>
    %131 = arith.addf %129, %130 : vector<32x30xf32>
    %c3_92 = arith.constant 3 : index
    %c0_93 = arith.constant 0 : index
    %c0_94 = arith.constant 0 : index
    %132 = vector.load %arg0[%c3_92, %c0_93, %c0_94] : memref<4x16x36xbf16, #tpu.memory_space<vmem>>, vector<1x16x30xbf16>
    %133 = vector.shape_cast %132 : vector<1x16x30xbf16> to vector<16x30xbf16>
    %134 = arith.extf %133 : vector<16x30xbf16> to vector<16x30xf32>
    %c0_95 = arith.constant 0 : index
    %c0_96 = arith.constant 0 : index
    %135 = vector.load %arg8[%c0_95, %c0_96] : memref<32x16xf32, #tpu.memory_space<vmem>>, vector<32x16xf32>
    %cst_97 = arith.constant dense<0.000000e+00> : vector<32x30xf32>
    %136 = tpu.matmul %135, %134, %cst_97 {dimension_numbers = #tpu.dot_dimension_numbers<[1], [0], [0], [1], [0, 0, 1, 1], [], []>} : vector<32x16xf32>, vector<16x30xf32>, vector<32x30xf32> -> vector<32x30xf32>
    %c0_98 = arith.constant 0 : index
    %c0_99 = arith.constant 0 : index
    %137 = vector.load %arg9[%c0_98, %c0_99] : memref<32x1xf32, #tpu.memory_space<vmem>>, vector<32x1xf32>
    %c0_100 = arith.constant 0 : index
    %c0_101 = arith.constant 0 : index
    %138 = vector.load %arg10[%c0_100, %c0_101] : memref<32x1xf32, #tpu.memory_space<vmem>>, vector<32x1xf32>
    %139 = vector.broadcast %0 : vector<1x30xf32> to vector<32x30xf32>
    %140 = arith.mulf %136, %139 : vector<32x30xf32>
    %cst_102 = arith.constant dense<0.000000e+00> : vector<32xf32>
    %141 = vector.multi_reduction <add>, %140, %cst_102 [1] : vector<32x30xf32> to vector<32xf32>
    %142 = vector.shape_cast %141 : vector<32xf32> to vector<32x1xf32>
    %cst_103 = arith.constant 6.250000e-02 : f32
    %143 = vector.broadcast %cst_103 : f32 to vector<32x1xf32>
    %144 = arith.mulf %142, %143 : vector<32x1xf32>
    %145 = vector.broadcast %144 : vector<32x1xf32> to vector<32x30xf32>
    %146 = arith.subf %136, %145 : vector<32x30xf32>
    %147 = arith.mulf %146, %146 : vector<32x30xf32>
    %148 = vector.broadcast %0 : vector<1x30xf32> to vector<32x30xf32>
    %149 = arith.mulf %147, %148 : vector<32x30xf32>
    %cst_104 = arith.constant dense<0.000000e+00> : vector<32xf32>
    %150 = vector.multi_reduction <add>, %149, %cst_104 [1] : vector<32x30xf32> to vector<32xf32>
    %151 = vector.shape_cast %150 : vector<32xf32> to vector<32x1xf32>
    %cst_105 = arith.constant 6.250000e-02 : f32
    %152 = vector.broadcast %cst_105 : f32 to vector<32x1xf32>
    %153 = arith.mulf %151, %152 : vector<32x1xf32>
    %cst_106 = arith.constant 9.99999974E-6 : f32
    %154 = vector.broadcast %cst_106 : f32 to vector<32x1xf32>
    %155 = arith.addf %153, %154 : vector<32x1xf32>
    %156 = math.rsqrt %155 : vector<32x1xf32>
    %157 = vector.broadcast %156 : vector<32x1xf32> to vector<32x30xf32>
    %158 = arith.mulf %146, %157 : vector<32x30xf32>
    %159 = vector.broadcast %137 : vector<32x1xf32> to vector<32x30xf32>
    %160 = arith.mulf %158, %159 : vector<32x30xf32>
    %161 = vector.broadcast %138 : vector<32x1xf32> to vector<32x30xf32>
    %162 = arith.addf %160, %161 : vector<32x30xf32>
    %163 = arith.addf %131, %162 : vector<32x30xf32>
    %cst_107 = arith.constant 0.000000e+00 : f32
    %164 = vector.broadcast %cst_107 : f32 to vector<32x30xf32>
    %165 = arith.maximumf %163, %164 : vector<32x30xf32>
    %166 = vector.broadcast %0 : vector<1x30xf32> to vector<32x30xf32>
    %167 = arith.mulf %165, %166 : vector<32x30xf32>
    %c0_108 = arith.constant 0 : index
    %c0_109 = arith.constant 0 : index
    %168 = vector.load %arg11[%c0_108, %c0_109] : memref<6x30xf32, #tpu.memory_space<vmem>>, vector<1x30xf32>
    %169 = vector.broadcast %168 : vector<1x30xf32> to vector<32x30xf32>
    %170 = arith.mulf %167, %169 : vector<32x30xf32>
    %cst_110 = arith.constant dense<0.000000e+00> : vector<32xf32>
    %171 = vector.multi_reduction <add>, %170, %cst_110 [1] : vector<32x30xf32> to vector<32xf32>
    %172 = vector.shape_cast %171 : vector<32xf32> to vector<32x1xf32>
    %cst_111 = arith.constant 2.500000e-01 : f32
    %173 = vector.broadcast %cst_111 : f32 to vector<32x1xf32>
    %174 = arith.mulf %172, %173 : vector<32x1xf32>
    %175 = vector.broadcast %174 : vector<32x1xf32> to vector<32x30xf32>
    %176 = arith.subf %167, %175 : vector<32x30xf32>
    %177 = vector.broadcast %168 : vector<1x30xf32> to vector<32x30xf32>
    %178 = arith.mulf %176, %177 : vector<32x30xf32>
    %179 = arith.mulf %178, %178 : vector<32x30xf32>
    %cst_112 = arith.constant dense<0.000000e+00> : vector<32xf32>
    %180 = vector.multi_reduction <add>, %179, %cst_112 [1] : vector<32x30xf32> to vector<32xf32>
    %181 = vector.shape_cast %180 : vector<32xf32> to vector<32x1xf32>
    %cst_113 = arith.constant 2.500000e-01 : f32
    %182 = vector.broadcast %cst_113 : f32 to vector<32x1xf32>
    %183 = arith.mulf %181, %182 : vector<32x1xf32>
    %cst_114 = arith.constant 1.000000e-10 : f32
    %184 = vector.broadcast %cst_114 : f32 to vector<32x1xf32>
    %185 = arith.maximumf %183, %184 : vector<32x1xf32>
    %186 = math.sqrt %185 : vector<32x1xf32>
    %c1_115 = arith.constant 1 : index
    %c0_116 = arith.constant 0 : index
    %187 = vector.load %arg11[%c1_115, %c0_116] : memref<6x30xf32, #tpu.memory_space<vmem>>, vector<1x30xf32>
    %188 = vector.broadcast %187 : vector<1x30xf32> to vector<32x30xf32>
    %189 = arith.mulf %167, %188 : vector<32x30xf32>
    %cst_117 = arith.constant dense<0.000000e+00> : vector<32xf32>
    %190 = vector.multi_reduction <add>, %189, %cst_117 [1] : vector<32x30xf32> to vector<32xf32>
    %191 = vector.shape_cast %190 : vector<32xf32> to vector<32x1xf32>
    %cst_118 = arith.constant 2.500000e-01 : f32
    %192 = vector.broadcast %cst_118 : f32 to vector<32x1xf32>
    %193 = arith.mulf %191, %192 : vector<32x1xf32>
    %194 = vector.broadcast %193 : vector<32x1xf32> to vector<32x30xf32>
    %195 = arith.subf %167, %194 : vector<32x30xf32>
    %196 = vector.broadcast %187 : vector<1x30xf32> to vector<32x30xf32>
    %197 = arith.mulf %195, %196 : vector<32x30xf32>
    %198 = arith.mulf %197, %197 : vector<32x30xf32>
    %cst_119 = arith.constant dense<0.000000e+00> : vector<32xf32>
    %199 = vector.multi_reduction <add>, %198, %cst_119 [1] : vector<32x30xf32> to vector<32xf32>
    %200 = vector.shape_cast %199 : vector<32xf32> to vector<32x1xf32>
    %cst_120 = arith.constant 2.500000e-01 : f32
    %201 = vector.broadcast %cst_120 : f32 to vector<32x1xf32>
    %202 = arith.mulf %200, %201 : vector<32x1xf32>
    %cst_121 = arith.constant 1.000000e-10 : f32
    %203 = vector.broadcast %cst_121 : f32 to vector<32x1xf32>
    %204 = arith.maximumf %202, %203 : vector<32x1xf32>
    %205 = math.sqrt %204 : vector<32x1xf32>
    %c2_122 = arith.constant 2 : index
    %c0_123 = arith.constant 0 : index
    %206 = vector.load %arg11[%c2_122, %c0_123] : memref<6x30xf32, #tpu.memory_space<vmem>>, vector<1x30xf32>
    %207 = vector.broadcast %206 : vector<1x30xf32> to vector<32x30xf32>
    %208 = arith.mulf %167, %207 : vector<32x30xf32>
    %cst_124 = arith.constant dense<0.000000e+00> : vector<32xf32>
    %209 = vector.multi_reduction <add>, %208, %cst_124 [1] : vector<32x30xf32> to vector<32xf32>
    %210 = vector.shape_cast %209 : vector<32xf32> to vector<32x1xf32>
    %cst_125 = arith.constant 2.500000e-01 : f32
    %211 = vector.broadcast %cst_125 : f32 to vector<32x1xf32>
    %212 = arith.mulf %210, %211 : vector<32x1xf32>
    %213 = vector.broadcast %212 : vector<32x1xf32> to vector<32x30xf32>
    %214 = arith.subf %167, %213 : vector<32x30xf32>
    %215 = vector.broadcast %206 : vector<1x30xf32> to vector<32x30xf32>
    %216 = arith.mulf %214, %215 : vector<32x30xf32>
    %217 = arith.mulf %216, %216 : vector<32x30xf32>
    %cst_126 = arith.constant dense<0.000000e+00> : vector<32xf32>
    %218 = vector.multi_reduction <add>, %217, %cst_126 [1] : vector<32x30xf32> to vector<32xf32>
    %219 = vector.shape_cast %218 : vector<32xf32> to vector<32x1xf32>
    %cst_127 = arith.constant 2.500000e-01 : f32
    %220 = vector.broadcast %cst_127 : f32 to vector<32x1xf32>
    %221 = arith.mulf %219, %220 : vector<32x1xf32>
    %cst_128 = arith.constant 1.000000e-10 : f32
    %222 = vector.broadcast %cst_128 : f32 to vector<32x1xf32>
    %223 = arith.maximumf %221, %222 : vector<32x1xf32>
    %224 = math.sqrt %223 : vector<32x1xf32>
    %c3_129 = arith.constant 3 : index
    %c0_130 = arith.constant 0 : index
    %225 = vector.load %arg11[%c3_129, %c0_130] : memref<6x30xf32, #tpu.memory_space<vmem>>, vector<1x30xf32>
    %226 = vector.broadcast %225 : vector<1x30xf32> to vector<32x30xf32>
    %227 = arith.mulf %167, %226 : vector<32x30xf32>
    %cst_131 = arith.constant dense<0.000000e+00> : vector<32xf32>
    %228 = vector.multi_reduction <add>, %227, %cst_131 [1] : vector<32x30xf32> to vector<32xf32>
    %229 = vector.shape_cast %228 : vector<32xf32> to vector<32x1xf32>
    %cst_132 = arith.constant 2.500000e-01 : f32
    %230 = vector.broadcast %cst_132 : f32 to vector<32x1xf32>
    %231 = arith.mulf %229, %230 : vector<32x1xf32>
    %232 = vector.broadcast %231 : vector<32x1xf32> to vector<32x30xf32>
    %233 = arith.subf %167, %232 : vector<32x30xf32>
    %234 = vector.broadcast %225 : vector<1x30xf32> to vector<32x30xf32>
    %235 = arith.mulf %233, %234 : vector<32x30xf32>
    %236 = arith.mulf %235, %235 : vector<32x30xf32>
    %cst_133 = arith.constant dense<0.000000e+00> : vector<32xf32>
    %237 = vector.multi_reduction <add>, %236, %cst_133 [1] : vector<32x30xf32> to vector<32xf32>
    %238 = vector.shape_cast %237 : vector<32xf32> to vector<32x1xf32>
    %cst_134 = arith.constant 2.500000e-01 : f32
    %239 = vector.broadcast %cst_134 : f32 to vector<32x1xf32>
    %240 = arith.mulf %238, %239 : vector<32x1xf32>
    %cst_135 = arith.constant 1.000000e-10 : f32
    %241 = vector.broadcast %cst_135 : f32 to vector<32x1xf32>
    %242 = arith.maximumf %240, %241 : vector<32x1xf32>
    %243 = math.sqrt %242 : vector<32x1xf32>
    %c4 = arith.constant 4 : index
    %c0_136 = arith.constant 0 : index
    %244 = vector.load %arg11[%c4, %c0_136] : memref<6x30xf32, #tpu.memory_space<vmem>>, vector<1x30xf32>
    %245 = vector.broadcast %244 : vector<1x30xf32> to vector<32x30xf32>
    %246 = arith.mulf %167, %245 : vector<32x30xf32>
    %cst_137 = arith.constant dense<0.000000e+00> : vector<32xf32>
    %247 = vector.multi_reduction <add>, %246, %cst_137 [1] : vector<32x30xf32> to vector<32xf32>
    %248 = vector.shape_cast %247 : vector<32xf32> to vector<32x1xf32>
    %cst_138 = arith.constant 2.500000e-01 : f32
    %249 = vector.broadcast %cst_138 : f32 to vector<32x1xf32>
    %250 = arith.mulf %248, %249 : vector<32x1xf32>
    %251 = vector.broadcast %250 : vector<32x1xf32> to vector<32x30xf32>
    %252 = arith.subf %167, %251 : vector<32x30xf32>
    %253 = vector.broadcast %244 : vector<1x30xf32> to vector<32x30xf32>
    %254 = arith.mulf %252, %253 : vector<32x30xf32>
    %255 = arith.mulf %254, %254 : vector<32x30xf32>
    %cst_139 = arith.constant dense<0.000000e+00> : vector<32xf32>
    %256 = vector.multi_reduction <add>, %255, %cst_139 [1] : vector<32x30xf32> to vector<32xf32>
    %257 = vector.shape_cast %256 : vector<32xf32> to vector<32x1xf32>
    %cst_140 = arith.constant 2.500000e-01 : f32
    %258 = vector.broadcast %cst_140 : f32 to vector<32x1xf32>
    %259 = arith.mulf %257, %258 : vector<32x1xf32>
    %cst_141 = arith.constant 1.000000e-10 : f32
    %260 = vector.broadcast %cst_141 : f32 to vector<32x1xf32>
    %261 = arith.maximumf %259, %260 : vector<32x1xf32>
    %262 = math.sqrt %261 : vector<32x1xf32>
    %c5_142 = arith.constant 5 : index
    %c0_143 = arith.constant 0 : index
    %263 = vector.load %arg11[%c5_142, %c0_143] : memref<6x30xf32, #tpu.memory_space<vmem>>, vector<1x30xf32>
    %264 = vector.broadcast %263 : vector<1x30xf32> to vector<32x30xf32>
    %265 = arith.mulf %167, %264 : vector<32x30xf32>
    %cst_144 = arith.constant dense<0.000000e+00> : vector<32xf32>
    %266 = vector.multi_reduction <add>, %265, %cst_144 [1] : vector<32x30xf32> to vector<32xf32>
    %267 = vector.shape_cast %266 : vector<32xf32> to vector<32x1xf32>
    %cst_145 = arith.constant 2.500000e-01 : f32
    %268 = vector.broadcast %cst_145 : f32 to vector<32x1xf32>
    %269 = arith.mulf %267, %268 : vector<32x1xf32>
    %270 = vector.broadcast %269 : vector<32x1xf32> to vector<32x30xf32>
    %271 = arith.subf %167, %270 : vector<32x30xf32>
    %272 = vector.broadcast %263 : vector<1x30xf32> to vector<32x30xf32>
    %273 = arith.mulf %271, %272 : vector<32x30xf32>
    %274 = arith.mulf %273, %273 : vector<32x30xf32>
    %cst_146 = arith.constant dense<0.000000e+00> : vector<32xf32>
    %275 = vector.multi_reduction <add>, %274, %cst_146 [1] : vector<32x30xf32> to vector<32xf32>
    %276 = vector.shape_cast %275 : vector<32xf32> to vector<32x1xf32>
    %cst_147 = arith.constant 2.500000e-01 : f32
    %277 = vector.broadcast %cst_147 : f32 to vector<32x1xf32>
    %278 = arith.mulf %276, %277 : vector<32x1xf32>
    %cst_148 = arith.constant 1.000000e-10 : f32
    %279 = vector.broadcast %cst_148 : f32 to vector<32x1xf32>
    %280 = arith.maximumf %278, %279 : vector<32x1xf32>
    %281 = math.sqrt %280 : vector<32x1xf32>
    %282 = tpu.concatenate %174, %186, %193, %205, %212, %224, %231, %243, %250, %262, %269, %281 in 1 : vector<32x1xf32>, vector<32x1xf32>, vector<32x1xf32>, vector<32x1xf32>, vector<32x1xf32>, vector<32x1xf32>, vector<32x1xf32>, vector<32x1xf32>, vector<32x1xf32>, vector<32x1xf32>, vector<32x1xf32>, vector<32x1xf32> -> vector<32x12xf32>
    %c0_149 = arith.constant 0 : index
    %c0_150 = arith.constant 0 : index
    %283 = vector.load %arg12[%c0_149, %c0_150] : memref<32x12xf32, #tpu.memory_space<vmem>>, vector<32x12xf32>
    tpu.vector_store %arg12[%c0_149, %c0_150], %282 {strides = array<i32>} : memref<32x12xf32, #tpu.memory_space<vmem>>, vector<32x12xf32>,
    return
  }
}

</mosaic_0001>

<bundles_post_ra>
// kernel: _lambda_.5
= control target key start
LH: loop header
LB: loop body
LE: loop exit
PB: predicated region body
PF: predicated region fallthrough
CT: control target
= control target key end

     0   :  { %v37_v0 = vlaneseq  ;;  %v988_v3 = vmov 1966171168   ;;  %s989_s26 = smov 33   ;;  %s990_s27 = smov 34   ;;  %v997_v28 = vmov 0.0   ;;  %vm85_vm1 = vcmask 269312   ;;  %s1225_s0 = inlined_call_operand.vmem [shape: bf16[1,1378], index: 0, kind: input, shape index: {}]   ;;  %s1226_s1 = inlined_call_operand.vmem [shape: f32[4,9], index: 1, kind: input, shape index: {}]   ;;  %s1227_s4 = inlined_call_operand.vmem [shape: f32[1,1122], index: 4, kind: input, shape index: {}]   ;;  %s1228_s5 = inlined_call_operand.vmem [shape: bf16[4,1378], index: 5, kind: output, shape index: {}]   ;;  %s1229_s2 = inlined_call_operand.vmem [shape: f32[4,1], index: 2, kind: input, shape index: {}]   ;;  %s1230_s3 = inlined_call_operand.vmem [shape: f32[4,1], index: 3, kind: input, shape index: {}]  }
   0x1   :  { %v24_v1 = vld [vmem:[%s1225_s0 + $0x8] sm:$0x3]  ;;  %v35_v4 = vunpack.c.l.s4 %v988_v3  ;;  %v23_v5 = vld [vmem:[%s1225_s0] sm:$0xff]  ;;  %s991_s28 = smov 32   ;;  %s992_s6 = smov 1   ;;  %363 = vmatprep.mubr.f32.mxu0 %v997_v28  ;;  %434 = vmatprep.mubr.f32.mxu1 %v997_v28  ;;  %vm64_vm2 = vcmask 277504  }
   0x2   :  { %v25_v2 = vld [vmem:[%s1225_s0 + $0x1] sm:$0xff]  ;;  %v30_v6 = vunpack.c.l.bf16 %v24_v1  ;;  %v1042_v7 = vshrl.u32 %v37_v0, 7  ;;  %v26_v8 = vld [vmem:[%s1225_s0 + $0x9] sm:$0x1]  ;;  %v28_v10 = vunpack.c.l.bf16 %v23_v5  ;;  %v29_v11 = vunpack.c.h.bf16 %v23_v5  ;;  %s993_s7 = smov 127   ;;  %s994_s8 = smov 96  }
   0x3   :  { %v36_v9 = vunpack.c.0.s8 %v35_v4  ;;  %v134_v12 = vunpack.c.l.bf16 %v26_v8  ;;  %v132_v13 = vunpack.c.l.bf16 %v25_v2  ;;  %v133_v14 = vunpack.c.h.bf16 %v25_v2  ;;  %v27_v25 = vld [vmem:[%s1225_s0 + $0x9] sm:$0x3]  ;;  %s995_s9 = smov 95   ;;  %s996_s10 = smov 94  }
   0x4   :  { %vm1048_vm0 = vcmp.lt.s32.totalorder %v37_v0, 98  ;;  %v185_v26 = vunpack.c.l.bf16 %v27_v25  ;;  %vm103_vm3 = vcmask 261120   ;;  %vm62_vm4 = vcmask 1046528  }
   0x5   :  { %v39_v15 = vsub.s32 %v36_v9, %v1042_v7  ;;  %vm121_vm5 = vcmask 7168   ;;  %vm175_vm6 = vcmask 1039360   ;;  %vm201_vm7 = vcmask 785408  }
   0x6   :  { %vm219_vm8 = vcmask 777216   ;;  %vm237_vm9 = vcmask 769024   ;;  %vm271_vm10 = vcmask 1040384   ;;  %vm998_vm11 = vmmov 1  }
   0x7   :  { %v55_v16 = vrot.slane %v30_v6, %v39_v15  ;;  %v40_v17 = vrot.slane %v28_v10, %v39_v15  ;;  %v47_v18 = vrot.slane %v29_v11, %v39_v15  ;;  %v159_v19 = vrot.slane %v134_v12, %v39_v15  ;;  %vm1089_vm12 = vmpackc.low %vm271_vm10, %vm998_vm11 }
   0x8   :  { %v144_v21 = vrot.slane %v132_v13, %v39_v15  ;;  %v151_v22 = vrot.slane %v133_v14, %v39_v15  ;;  %v193_v27 = vrot.slane %v185_v26, %v39_v15  ;;  %vm267_vm13 = vcmask 72704  }
   0x9   :  { %80 = vrot.lane.b32.xlu1 %v55_v16, %s989_s26  ;;  %58 = vrot.lane.b32.xlu0 %v55_v16, %s990_s27  ;;  %v48_v23 = vcombine.low %v40_v17, %v47_v18  ;;  %166 = vst.msk [vmem:[#allocation2 + $0x44] ss:$8 sm:$0x1] %vm1048_vm0, %v159_v19  ;;  %vm1000_vm14 = vmmov 0   ;;  %vm711_vm15 = vcmask 1043456  }
   0xa   :  { %v152_v24 = vcombine.low %v144_v21, %v151_v22 }
   0xc   :  { %164 = vst [vmem:[#allocation2 + $0x4] ss:$8 sm:$0xf0] %v152_v24  ;;  %163 = vst [vmem:[#allocation2 + $0x4] ss:$8 sm:$0xf] %v152_v24 }
   0xd   :  { %98 = vrot.lane.b32.xlu1 %v55_v16, %s991_s28  ;;  %56 = vrot.lane.b32.xlu0 %v48_v23, %s990_s27 }
  0x11   :  { %78 = vrot.lane.b32.xlu1 %v48_v23, %s989_s26  ;;  %96 = vrot.lane.b32.xlu0 %v48_v23, %s991_s28 }
  0x15   :  { %116 = vrot.lane.b32.xlu1 %v55_v16, %s992_s6  ;;  %114 = vrot.lane.b32.xlu0 %v48_v23, %s992_s6 }
  0x19   :  { %170 = vrot.lane.b32.xlu1 %v159_v19, %s993_s7  ;;  %168 = vrot.lane.b32.xlu0 %v152_v24, %s993_s7 }
  0x1d   :  { %196 = vrot.lane.b32.xlu1 %v193_v27, %s994_s8  ;;  %194 = vrot.lane.b32.xlu0 %v152_v24, %s994_s8 }
  0x21   :  { %214 = vrot.lane.b32.xlu1 %v193_v27, %s995_s9  ;;  %212 = vrot.lane.b32.xlu0 %v152_v24, %s995_s9 }
  0x25   :  { %232 = vrot.lane.b32.xlu1 %v193_v27, %s996_s10  ;;  %230 = vrot.lane.b32.xlu0 %v152_v24, %s996_s10 }
  0x7b   :  { %v81_v29 = vpop.permute.xlu1 %80  ;;  %v59_v30 = vpop.permute.xlu0 %58 }
  0x7c   :  { %v83_v31 = vrot.slane %v81_v29, 1  ;;  %v61_v32 = vrot.slane %v59_v30, 1 }
  0x7e   :  { %v87_v33 = vsel %vm85_vm1, %v81_v29, %v83_v31  ;;  %v66_v34 = vsel %vm64_vm2, %v59_v30, %v61_v32 }
  0x7f   :  { %94 = vst.msk [vmem:[#allocation2 + $0x41] ss:$8 sm:$0x1] %vm1048_vm0, %v87_v33  ;;  %76 = vst.msk [vmem:[#allocation2 + $0x40] ss:$8 sm:$0x1] %vm1048_vm0, %v66_v34  ;;  %v99_v35 = vpop.permute.xlu1 %98  ;;  %v57_v36 = vpop.permute.xlu0 %56 }
  0x80   :  { %v101_v37 = vrot.slane %v99_v35, 1  ;;  %v60_v38 = vrot.slane %v57_v36, 1 }
  0x82   :  { %v105_v39 = vsel %vm103_vm3, %v99_v35, %v101_v37  ;;  %v63_v40 = vsel %vm62_vm4, %v60_v38, %v61_v32 }
  0x83   :  { %112 = vst.msk [vmem:[#allocation2 + $0x42] ss:$8 sm:$0x1] %vm1048_vm0, %v105_v39  ;;  %v65_v41 = vsel %vm64_vm2, %v57_v36, %v63_v40  ;;  %v79_v42 = vpop.permute.xlu1 %78  ;;  %v97_v43 = vpop.permute.xlu0 %96  ;;  %vm905_vm2 = vcmask 797698  }
  0x84   :  { %69 = vst [vmem:[#allocation2] ss:$8 sm:$0xf] %v65_v41  ;;  %70 = vst [vmem:[#allocation2] ss:$8 sm:$0xf0] %v65_v41 }
  0x85   :  { %v82_v44 = vrot.slane %v79_v42, 1  ;;  %v100_v45 = vrot.slane %v97_v43, 1 }
  0x87   :  { %v84_v46 = vsel %vm62_vm4, %v82_v44, %v83_v31  ;;  %v102_v47 = vsel %vm62_vm4, %v100_v45, %v101_v37  ;;  %v117_v50 = vpop.permute.xlu1 %116  ;;  %v115_v51 = vpop.permute.xlu0 %114 }
  0x88   :  { %v86_v48 = vsel %vm85_vm1, %v79_v42, %v84_v46  ;;  %v104_v49 = vsel %vm103_vm3, %v97_v43, %v102_v47  ;;  %v119_v52 = vrot.slane %v117_v50, 1  ;;  %v118_v53 = vrot.slane %v115_v51, 1  ;;  %v248_v43 = vld [vmem:[%s1226_s1] sm:$0xf] }
  0x89   :  { %91 = vst [vmem:[#allocation2 + $0x1] ss:$8 sm:$0xf] %v86_v48  ;;  %92 = vst [vmem:[#allocation2 + $0x1] ss:$8 sm:$0xf0] %v86_v48 }
  0x8a   :  { %109 = vst [vmem:[#allocation2 + $0x2] ss:$8 sm:$0xf] %v104_v49  ;;  %110 = vst [vmem:[#allocation2 + $0x2] ss:$8 sm:$0xf0] %v104_v49  ;;  %v123_v54 = vsel %vm121_vm5, %v117_v50, %v119_v52  ;;  %v120_v55 = vsel %vm62_vm4, %v118_v53, %v119_v52 }
  0x8b   :  { %130 = vst.msk [vmem:[#allocation2 + $0x43] ss:$8 sm:$0x1] %vm1048_vm0, %v123_v54  ;;  %v122_v56 = vsel %vm121_vm5, %v115_v51, %v120_v55  ;;  %v171_v57 = vpop.permute.xlu1 %170  ;;  %v169_v58 = vpop.permute.xlu0 %168  ;;  %v999_v49 = vmov 0.0|0.0   ;;  %v659_v52 = vsub.s32 0, %v1042_v7  ;;  %v667_v53 = vsub.s32 2, %v1042_v7 }
  0x8c   :  { %127 = vst [vmem:[#allocation2 + $0x3] ss:$8 sm:$0xf] %v122_v56  ;;  %128 = vst [vmem:[#allocation2 + $0x3] ss:$8 sm:$0xf0] %v122_v56 }
  0x8d   :  { %v173_v59 = vrot.slane %v171_v57, 1  ;;  %183 = vst.msk [vmem:[#allocation2 + $0x45] ss:$8 sm:$0x1] %vm1048_vm0, %v171_v57  ;;  %v172_v60 = vrot.slane %v169_v58, 1  ;;  %v21_v54 = vld [vmem:[%s1227_s4] sm:$0xff] }
  0x8e   :  { %v663_v55 = vsub.s32 1, %v1042_v7  ;;  %v671_v56 = vsub.s32 3, %v1042_v7  ;;  %v1129_v57 = vrot.slane %v21_v54, %v659_v52  ;;  %vm904_vm1 = vcmask 1042192  }
  0x8f   :  { %v174_v61 = vsel %vm62_vm4, %v172_v60, %v173_v59  ;;  %v197_v63 = vpop.permute.xlu1 %196  ;;  %v195_v0 = vpop.permute.xlu0 %194  ;;  %v679_v60 = vsub.s32 5, %v1042_v7  ;;  %vm902_vm3 = vcmask 795648  }
  0x90   :  { %v176_v62 = vsel %vm175_vm6, %v169_v58, %v174_v61  ;;  %v199_v1 = vrot.slane %v197_v63, 1  ;;  %v198_v2 = vrot.slane %v195_v0, 1  ;;  %v1131_v58 = vrot.slane %v21_v54, %v667_v53 }
  0x91   :  { %180 = vst [vmem:[#allocation2 + $0x5] ss:$8 sm:$0xf] %v176_v62  ;;  %181 = vst [vmem:[#allocation2 + $0x5] ss:$8 sm:$0xf0] %v176_v62  ;;  %v1134_v59 = vrot.slane %v21_v54, %v663_v55 }
  0x92   :  { %v203_v3 = vsel %vm201_vm7, %v197_v63, %v199_v1  ;;  %v200_v4 = vsel %vm62_vm4, %v198_v2, %v199_v1  ;;  %v1137_v63 = vrot.slane %v21_v54, %v671_v56 }
  0x93   :  { %210 = vst.msk [vmem:[#allocation2 + $0x46] ss:$8 sm:$0x1] %vm1048_vm0, %v203_v3  ;;  %v202_v5 = vsel %vm201_vm7, %v195_v0, %v200_v4  ;;  %v215_v6 = vpop.permute.xlu1 %214  ;;  %v213_v8 = vpop.permute.xlu0 %212  ;;  %v683_v0 = vsub.s32 6, %v1042_v7 }
  0x94   :  { %207 = vst [vmem:[#allocation2 + $0x6] ss:$8 sm:$0xf] %v202_v5  ;;  %208 = vst [vmem:[#allocation2 + $0x6] ss:$8 sm:$0xf0] %v202_v5 }
  0x95   :  { %v217_v9 = vrot.slane %v215_v6, 1  ;;  %v216_v10 = vrot.slane %v213_v8, 1 }
  0x97   :  { %v221_v11 = vsel %vm219_vm8, %v215_v6, %v217_v9  ;;  %v218_v12 = vsel %vm62_vm4, %v216_v10, %v217_v9  ;;  %v233_v14 = vpop.permute.xlu1 %232  ;;  %v231_v15 = vpop.permute.xlu0 %230  ;;  %v1146_v9 = vrot.slane %v21_v54, %v679_v60  ;;  %v687_v10 = vsub.s32 7, %v1042_v7 }
  0x98   :  { %228 = vst.msk [vmem:[#allocation2 + $0x47] ss:$8 sm:$0x1] %vm1048_vm0, %v221_v11  ;;  %v220_v13 = vsel %vm219_vm8, %v213_v8, %v218_v12  ;;  %v235_v16 = vrot.slane %v233_v14, 1  ;;  %v234_v17 = vrot.slane %v231_v15, 1 }
  0x99   :  { %225 = vst [vmem:[#allocation2 + $0x7] ss:$8 sm:$0xf] %v220_v13  ;;  %226 = vst [vmem:[#allocation2 + $0x7] ss:$8 sm:$0xf0] %v220_v13  ;;  %v1155_v23 = vrot.slane %v21_v54, %v687_v10 }
  0x9a   :  { %v239_v18 = vsel %vm237_vm9, %v233_v14, %v235_v16  ;;  %v236_v19 = vsel %vm62_vm4, %v234_v17, %v235_v16  ;;  %v1152_v16 = vrot.slane %v21_v54, %v683_v0  ;;  %vm906_vm4 = vmor %vm905_vm2, %vm904_vm1 }
  0x9b   :  { %246 = vst.msk [vmem:[#allocation2 + $0x88] ss:$8 sm:$0x1] %vm1048_vm0, %v239_v18  ;;  %v238_v21 = vsel %vm237_vm9, %v231_v15, %v236_v19  ;;  %vm727_vm0 = vcmask 797696  }
  0x9c   :  { %243 = vst [vmem:[#allocation2 + $0x48] ss:$8 sm:$0xf] %v238_v21  ;;  %244 = vst [vmem:[#allocation2 + $0x48] ss:$8 sm:$0xf0] %v238_v21 }
  0x9f   :  { %v257_v50 = vld [vmem:[#allocation2 + $0x40] sm:$0xff] }
  0xa0   :  { %v250_v22 = vld [vmem:[#allocation2 + $0x8] sm:$0xff]  ;;  %v252_v24 = vld [vmem:[#allocation2 + $0x18] sm:$0xff]  ;;  %v249_v25 = vld [vmem:[#allocation2] sm:$0xff] }
  0xa1   :  { %v251_v26 = vld [vmem:[#allocation2 + $0x10] sm:$0xff]  ;;  %v254_v37 = vld [vmem:[#allocation2 + $0x28] sm:$0xff]  ;;  %v256_v38 = vld [vmem:[#allocation2 + $0x38] sm:$0xff] }
  0xa2   :  { %v253_v44 = vld [vmem:[#allocation2 + $0x20] sm:$0xff]  ;;  %v255_v45 = vld [vmem:[#allocation2 + $0x30] sm:$0xff]  ;;  %v266_v48 = vld [vmem:[#allocation2 + $0x88] sm:$0x1] }
  0xa3   :  { %v259_v27 = vld [vmem:[#allocation2 + $0x50] sm:$0x1]  ;;  %v261_v29 = vld [vmem:[#allocation2 + $0x60] sm:$0x1]  ;;  %v258_v30 = vld [vmem:[#allocation2 + $0x48] sm:$0x1]  ;;  %v966_v51 = vpack.c.bf16 %v266_v48, %v257_v50 }
  0xa4   :  { %v941_v31 = vpack.c.bf16 %v259_v27, %v250_v22  ;;  %v947_v32 = vpack.c.bf16 %v261_v29, %v252_v24  ;;  %v944_v20 = vpack.c.bf16 %v258_v30, %v249_v25  ;;  %v260_v33 = vld [vmem:[#allocation2 + $0x58] sm:$0x1]  ;;  %v263_v34 = vld [vmem:[#allocation2 + $0x70] sm:$0x1]  ;;  %v265_v35 = vld [vmem:[#allocation2 + $0x80] sm:$0x1] }
  0xa5   :  { %v950_v36 = vpack.c.bf16 %v260_v33, %v251_v26  ;;  %v953_v39 = vpack.c.bf16 %v263_v34, %v254_v37  ;;  %v959_v40 = vpack.c.bf16 %v265_v35, %v256_v38  ;;  %v262_v41 = vld [vmem:[#allocation2 + $0x68] sm:$0x1]  ;;  %v264_v42 = vld [vmem:[#allocation2 + $0x78] sm:$0x1] }
  0xa6   :  { %943 = vmatprep.subr.msk.bf16.mxu0 %vm1089_vm12, %v941_v31  ;;  %949 = vmatprep.subr.msk.bf16.mxu1 %vm1089_vm12, %v947_v32  ;;  %v956_v46 = vpack.c.bf16 %v262_v41, %v253_v44  ;;  %v962_v47 = vpack.c.bf16 %v264_v42, %v255_v45  ;;  %v1164_v31 = vld [vmem:[%s1227_s4 + $0x8] ss:$0 sm:$0xff]  ;;  %v653_v44 = vld [vmem:[%s1229_s2] sm:$0xf] }
  0xa7   :  { %946 = vmatpush1.bf16.msk.msra.mxu0 %vm1089_vm12, %v944_v20  ;;  %952 = vmatpush1.bf16.msk.msra.mxu1 %vm1089_vm12, %v950_v36 }
  0xa8   :  { %955 = vmatprep.subr.msk.bf16.mxu0 %vm1089_vm12, %v953_v39  ;;  %961 = vmatprep.subr.msk.bf16.mxu1 %vm1089_vm12, %v959_v40 }
  0xaa   :  { %914 = vmatmul.mubr.msk.f32.vlgmr.msra.gmra.mrb[0].mxu0 %vm267_vm13, %v248_v43  ;;  %917 = vmatmul.mubr.msk.f32.vlgmr.msra.gmra.mrb[0].mxu1 %vm267_vm13, %v248_v43 }
  0xab   :  { %958 = vmatpush1.bf16.msk.msra.mxu0 %vm1089_vm12, %v956_v46  ;;  %964 = vmatpush1.bf16.msk.msra.mxu1 %vm1089_vm12, %v962_v47 }
  0xac   :  { %505 = vmatprep.mubr.f32.mxu0 %v997_v28  ;;  %965 = vmatprep.subr.bf16.mxu0 %v999_v49 }
  0xad   :  { %576 = vmatprep.mubr.f32.mxu1 %v997_v28 }
  0xae   :  { %920 = vmatmul.mubr.msk.f32.vlgmr.msra.gmra.mrb[2].mxu0 %vm267_vm13, %v248_v43  ;;  %923 = vmatmul.mubr.msk.f32.vlgmr.msra.gmra.mrb[2].mxu1 %vm267_vm13, %v248_v43 }
  0xaf   :  { %968 = vmatpush3.bf16.msk.msra.mxu0 %vm1089_vm12, %v966_v51  ;;  %938 = vmatprep.mubr.msk.f32.mxu0 %vm1000_vm14, %v997_v28  ;;  %v675_v28 = vsub.s32 4, %v1042_v7 }
  0xb1   :  { %v1142_v5 = vrot.slane %v21_v54, %v675_v28 }
  0xb2   :  { %939 = vmatmul.mubr.msk.f32.vlgmr.msra.gmra.mrb[4].mxu0 %vm267_vm13, %v248_v43  ;;  %v1001_v43 = vmov 0  }
  0xb3   :  { %984 = vset.pattern.permute.xlu0 %v1001_v43  ;;  %837 = vst [vmem:[%s1228_s5] sm:$0x3] %v1001_v43  ;;  %985 = vset.pattern.permute.xlu1 %v1001_v43 }
 0x17d   :  { %v365_v61 = vpop.f32.mrb[0].mxu0  ;;  %v436_v62 = vpop.f32.mrb[0].mxu1 }
 0x17e   :  { %v702_v1 = vmul.f32 %v1129_v57, %v365_v61  ;;  %v367_v2 = vpop.f32.mrb[1].mxu0  ;;  %v704_v3 = vmul.f32 %v1131_v58, %v436_v62  ;;  %v438_v4 = vpop.f32.mrb[1].mxu1 }
 0x17f   :  { %v703_v6 = vmul.f32 %v1134_v59, %v367_v2  ;;  %v705_v13 = vmul.f32 %v1137_v63, %v438_v4 }
 0x180   :  { %v712_v8 = vsel %vm711_vm15, %v702_v1, 0.0  ;;  %v715_v12 = vsel %vm711_vm15, %v704_v3, 0.0 }
 0x181   :  { %v713_v11 = vsel %vm711_vm15, %v703_v6, 0.0  ;;  %v507_v14 = vpop.f32.mrb[2].mxu0  ;;  %v578_v15 = vpop.f32.mrb[2].mxu1  ;;  %v717_v24 = vsel %vm711_vm15, %v705_v13, 0.0 }
 0x182   :  { %v714_v17 = vadd.f32 %v713_v11, %v712_v8  ;;  %v706_v18 = vmul.f32 %v1142_v5, %v507_v14  ;;  %v509_v19 = vpop.f32.mrb[3].mxu0  ;;  %v580_v21 = vpop.f32.mrb[3].mxu1  ;;  %v708_v27 = vmul.f32 %v1152_v16, %v578_v15 }
 0x183   :  { %v707_v26 = vmul.f32 %v1146_v9, %v509_v19  ;;  %v709_v35 = vmul.f32 %v1155_v23, %v580_v21 }
 0x184   :  { %v716_v22 = vadd.f32 %v715_v12, %v714_v17  ;;  %v719_v25 = vsel %vm711_vm15, %v706_v18, 0.0  ;;  %v723_v34 = vsel %vm711_vm15, %v708_v27, 0.0 }
 0x185   :  { %v649_v29 = vpop.f32.mrb[4].mxu0  ;;  %v721_v33 = vsel %vm711_vm15, %v707_v26, 0.0  ;;  %v725_v39 = vsel %vm711_vm15, %v709_v35, 0.0 }
 0x186   :  { %v718_v30 = vadd.f32 %v717_v24, %v716_v22  ;;  %v940_v32 = vpop.f32.mrb[5].mxu0  ;;  %v710_v36 = vmul.f32 %v1164_v31, %v649_v29 }
 0x188   :  { %v720_v20 = vadd.f32 %v719_v25, %v718_v30  ;;  %v728_v40 = vsel %vm727_vm0, %v710_v36, 0.0 }
 0x18a   :  { %v722_v37 = vadd.f32 %v721_v33, %v720_v20 }
 0x18c   :  { %v724_v38 = vadd.f32 %v723_v34, %v722_v37  ;;  %v654_v37 = vld [vmem:[%s1230_s3] sm:$0xf] }
 0x18e   :  { %v726_v41 = vadd.f32 %v725_v39, %v724_v38 }
 0x190   :  { %v729_v42 = vadd.f32 %v728_v40, %v726_v41  ;;  %v1002_v41 = vmov 1983009808  }
 0x192   :  { %730 = vadd.xlane.f32.xlu0 %v729_v42  ;;  %v859_v42 = vunpack.c.l.s4 %v1002_v41 }
 0x1a8   :  { %793 = vperm.xlu0 %984, %v653_v44   ;;  %v860_v44 = vunpack.c.0.s8 %v859_v42 }
 0x21f   :  { %v731_v45 = vpop.xlane.xlu0 %730 }
 0x220   :  { %v732_v46 = vmul.f32 0.0009765625, %v731_v45 }
 0x222   :  { %v733_v47 = vsub.f32 %v365_v61, %v732_v46  ;;  %v734_v48 = vsub.f32 %v367_v2, %v732_v46  ;;  %v735_v49 = vsub.f32 %v436_v62, %v732_v46  ;;  %v736_v50 = vsub.f32 %v438_v4, %v732_v46 }
 0x223   :  { %v737_v51 = vsub.f32 %v507_v14, %v732_v46  ;;  %v738_v55 = vsub.f32 %v509_v19, %v732_v46  ;;  %v739_v0 = vsub.f32 %v578_v15, %v732_v46  ;;  %v740_v61 = vsub.f32 %v580_v21, %v732_v46 }
 0x224   :  { %v742_v52 = vmul.f32 %v733_v47, %v733_v47  ;;  %v743_v53 = vmul.f32 %v734_v48, %v734_v48  ;;  %v744_v54 = vmul.f32 %v735_v49, %v735_v49  ;;  %v745_v56 = vmul.f32 %v736_v50, %v736_v50 }
 0x225   :  { %v746_v1 = vmul.f32 %v737_v51, %v737_v51  ;;  %v747_v2 = vmul.f32 %v738_v55, %v738_v55  ;;  %v741_v10 = vsub.f32 %v649_v29, %v732_v46  ;;  %v748_v11 = vmul.f32 %v739_v0, %v739_v0 }
 0x226   :  { %v751_v28 = vmul.f32 %v742_v52, %v1129_v57  ;;  %v752_v60 = vmul.f32 %v743_v53, %v1134_v59  ;;  %v753_v3 = vmul.f32 %v744_v54, %v1131_v58  ;;  %v754_v62 = vmul.f32 %v745_v56, %v1137_v63 }
 0x227   :  { %v755_v12 = vmul.f32 %v746_v1, %v1142_v5  ;;  %v749_v15 = vmul.f32 %v740_v61, %v740_v61  ;;  %v756_v17 = vmul.f32 %v747_v2, %v1146_v9  ;;  %v750_v21 = vmul.f32 %v741_v10, %v741_v10  ;;  %v794_v46 = vpop.permute.xlu0 %793 }
 0x228   :  { %v760_v6 = vsel %vm711_vm15, %v751_v28, 0.0  ;;  %v761_v4 = vsel %vm711_vm15, %v752_v60, 0.0  ;;  %v763_v13 = vsel %vm711_vm15, %v753_v3, 0.0  ;;  %v765_v18 = vsel %vm711_vm15, %v754_v62, 0.0 }
 0x229   :  { %v762_v8 = vadd.f32 %v761_v4, %v760_v6  ;;  %v757_v22 = vmul.f32 %v748_v11, %v1152_v16  ;;  %v767_v24 = vsel %vm711_vm15, %v755_v12, 0.0  ;;  %v758_v26 = vmul.f32 %v749_v15, %v1155_v23 }
 0x22a   :  { %v769_v27 = vsel %vm711_vm15, %v756_v17, 0.0  ;;  %v759_v30 = vmul.f32 %v1164_v31, %v750_v21  ;;  %v863_v52 = vsub.s32 %v860_v44, %v1042_v7 }
 0x22b   :  { %v764_v14 = vadd.f32 %v763_v13, %v762_v8  ;;  %v771_v32 = vsel %vm711_vm15, %v757_v22, 0.0  ;;  %v773_v33 = vsel %vm711_vm15, %v758_v26, 0.0 }
 0x22c   :  { %v775_v35 = vsel %vm727_vm0, %v759_v30, 0.0 }
 0x22d   :  { %v766_v19 = vadd.f32 %v765_v18, %v764_v14 }
 0x22f   :  { %v768_v25 = vadd.f32 %v767_v24, %v766_v19 }
 0x231   :  { %v770_v29 = vadd.f32 %v769_v27, %v768_v25 }
 0x233   :  { %v772_v20 = vadd.f32 %v771_v32, %v770_v29 }
 0x235   :  { %v774_v34 = vadd.f32 %v773_v33, %v772_v20 }
 0x237   :  { %v776_v36 = vadd.f32 %v775_v35, %v774_v34 }
 0x239   :  { %777 = vadd.xlane.f32.xlu1 %v776_v36 }
 0x24a   :  { %807 = vperm.xlu1 %985, %v654_v37  }
 0x2c6   :  { %v778_v38 = vpop.xlane.xlu1 %777 }
 0x2c7   :  { %v779_v39 = vmul.f32 0.0009765625, %v778_v38 }
 0x2c9   :  { %v780_v40 = vadd.f32 1e-05, %v779_v39 }
 0x2ca   :  { %v808_v2 = vpop.permute.xlu1 %807 }
 0x2cb   :  { %986 = vrsqrt.f32 %v780_v40 }
 0x2d5   :  { %v987_v45 = vpop.eup %986 }
 0x2d6   :  { %v782_v53 = vmul.f32 %v987_v45, %v733_v47  ;;  %v783_v54 = vmul.f32 %v987_v45, %v734_v48  ;;  %v784_v56 = vmul.f32 %v987_v45, %v735_v49  ;;  %v785_v28 = vmul.f32 %v987_v45, %v736_v50 }
 0x2d7   :  { %v786_v60 = vmul.f32 %v987_v45, %v737_v51  ;;  %v787_v1 = vmul.f32 %v987_v45, %v738_v55  ;;  %v788_v3 = vmul.f32 %v987_v45, %v739_v0  ;;  %v789_v6 = vmul.f32 %v987_v45, %v740_v61 }
 0x2d8   :  { %v790_v62 = vmul.f32 %v987_v45, %v741_v10  ;;  %v796_v4 = vmul.f32 %v794_v46, %v782_v53  ;;  %v797_v8 = vmul.f32 %v794_v46, %v783_v54  ;;  %v798_v11 = vmul.f32 %v794_v46, %v784_v56 }
 0x2d9   :  { %v799_v12 = vmul.f32 %v794_v46, %v785_v28  ;;  %v800_v13 = vmul.f32 %v794_v46, %v786_v60  ;;  %v801_v14 = vmul.f32 %v794_v46, %v787_v1  ;;  %v802_v15 = vmul.f32 %v794_v46, %v788_v3 }
 0x2da   :  { %v803_v17 = vmul.f32 %v794_v46, %v789_v6  ;;  %v804_v18 = vmul.f32 %v794_v46, %v790_v62  ;;  %v810_v7 = vadd.f32 %v808_v2, %v796_v4  ;;  %v811_v47 = vadd.f32 %v808_v2, %v797_v8 }
 0x2db   :  { %v812_v48 = vadd.f32 %v808_v2, %v798_v11  ;;  %v813_v49 = vadd.f32 %v808_v2, %v799_v12  ;;  %v814_v50 = vadd.f32 %v808_v2, %v800_v13  ;;  %v815_v51 = vadd.f32 %v808_v2, %v801_v14 }
 0x2dc   :  { %v816_v55 = vadd.f32 %v808_v2, %v802_v15  ;;  %v817_v0 = vadd.f32 %v808_v2, %v803_v17  ;;  %v818_v61 = vadd.f32 %v808_v2, %v804_v18  ;;  %v819_v19 = vmax.f32 %v810_v7, 0.0 }
 0x2dd   :  { %v820_v10 = vmax.f32 %v811_v47, 0.0  ;;  %v821_v21 = vmax.f32 %v812_v48, 0.0  ;;  %v822_v22 = vmax.f32 %v813_v49, 0.0  ;;  %v823_v24 = vmax.f32 %v814_v50, 0.0 }
 0x2de   :  { %v824_v25 = vmax.f32 %v815_v51, 0.0  ;;  %v825_v26 = vmax.f32 %v816_v55, 0.0  ;;  %v826_v27 = vmax.f32 %v817_v0, 0.0  ;;  %v827_v29 = vmax.f32 %v818_v61, 0.0 }
 0x2df   :  { %v828_v30 = vmul.f32 %v819_v19, %v1129_v57  ;;  %v829_v32 = vmul.f32 %v820_v10, %v1134_v59  ;;  %v830_v20 = vmul.f32 %v821_v21, %v1131_v58  ;;  %v831_v33 = vmul.f32 %v822_v22, %v1137_v63 }
 0x2e0   :  { %v832_v34 = vmul.f32 %v823_v24, %v1142_v5  ;;  %v833_v35 = vmul.f32 %v824_v25, %v1146_v9  ;;  %v834_v36 = vmul.f32 %v825_v26, %v1152_v16  ;;  %v835_v37 = vmul.f32 %v826_v27, %v1155_v23 }
 0x2e1   :  { %v836_v38 = vmul.f32 %v1164_v31, %v827_v29  ;;  %v927_v39 = vpack.c.bf16 %v829_v32, %v828_v30  ;;  %v928_v40 = vpack.c.bf16 %v831_v33, %v830_v20 }
 0x2e2   :  { %v929_v57 = vpack.c.bf16 %v833_v35, %v832_v34  ;;  %v930_v59 = vpack.c.bf16 %v835_v37, %v834_v36 }
 0x2e3   :  { %v846_v41 = vpack.c.bf16 %v836_v38, %v836_v38  ;;  %v864_v58 = vrot.slane %v927_v39, %v863_v52  ;;  %v871_v42 = vrot.slane %v928_v40, %v863_v52 }
 0x2e4   :  { %v881_v63 = vrot.slane %v929_v57, %v863_v52  ;;  %v888_v5 = vrot.slane %v930_v59, %v863_v52 }
 0x2e5   :  { %v872_v9 = vcombine.low %v864_v58, %v871_v42  ;;  %v896_v44 = vrot.slane %v846_v41, %v863_v52 }
 0x2e6   :  { %v889_v16 = vcombine.low %v881_v63, %v888_v5 }
 0x2e7   :  { %900 = vst [vmem:[%s1228_s5 + $0x2] sm:$0xff] %v872_v9  ;;  %903 = vst.msk [vmem:[%s1228_s5 + $0x12] sm:$0x3] %vm902_vm3, %v896_v44 }
 0x2e8   :  { %901 = vst [vmem:[%s1228_s5 + $0xa] sm:$0xff] %v889_v16  ;;  %907 = vst.msk [vmem:[%s1228_s5 + $0x12] sm:$0xf] %vm906_vm4, %v1001_v43 }

// kernel: _lambda_.6
= control target key start
LH: loop header
LB: loop body
LE: loop exit
PB: predicated region body
PF: predicated region fallthrough
CT: control target
= control target key end

     0   :  { %s2797_s11 = smov 32   ;;  %s2798_s12 = smov 34   ;;  %vm101_vm0 = vcmask 797696   ;;  %v2805_v48 = vmov 0.0   ;;  %vm177_vm1 = vcmask 261120   ;;  %vm74_vm2 = vcmask 277504   ;;  %s3766_s0 = inlined_call_operand.vmem [shape: bf16[1,4,1378], index: 0, kind: input, shape index: {}]   ;;  %s3767_s1 = inlined_call_operand.vmem [shape: f32[4,36], index: 1, kind: input, shape index: {}]   ;;  %s3768_s7 = inlined_call_operand.vmem [shape: f32[1,1122], index: 7, kind: input, shape index: {}]   ;;  %s3769_s8 = inlined_call_operand.vmem [shape: bf16[4,1378], index: 8, kind: output, shape index: {}]   ;;  %s3770_s3 = inlined_call_operand.vmem [shape: f32[4,1], index: 3, kind: input, shape index: {}, may-alias: {3,6}]   ;;  %s3771_s2 = inlined_call_operand.vmem [shape: f32[4,1], index: 2, kind: input, shape index: {}, may-alias: {2,5}]   ;;  %s3772_s4 = inlined_call_operand.vmem [shape: f32[4,36], index: 4, kind: input, shape index: {}]   ;;  %s3773_s5 = inlined_call_operand.vmem [shape: f32[4,1], index: 5, kind: input, shape index: {}, may-alias: {2,5}]   ;;  %s3774_s6 = inlined_call_operand.vmem [shape: f32[4,1], index: 6, kind: input, shape index: {}, may-alias: {3,6}]  }
   0x1   :  { %v32_v0 = vld [vmem:[%s3766_s0] sm:$0xff]  ;;  %v36_v6 = vld [vmem:[%s3766_s0 + $0xa] sm:$0xff]  ;;  %v37_v17 = vld [vmem:[%s3766_s0 + $0x12] sm:$0x3]  ;;  %s2799_s15 = smov 1   ;;  %s2800_s16 = smov 33   ;;  %620 = vmatprep.mubr.f32.mxu0 %v2805_v48  ;;  %691 = vmatprep.mubr.f32.mxu1 %v2805_v48 }
   0x2   :  { %v35_v1 = vld [vmem:[%s3766_s0 + $0x2] sm:$0xff]  ;;  %v39_v2 = vunpack.c.l.bf16 %v32_v0  ;;  %v40_v3 = vunpack.c.h.bf16 %v32_v0  ;;  %v2864_v7 = vunpack.c.l.bf16 %v36_v6  ;;  %v2866_v8 = vunpack.c.h.bf16 %v36_v6  ;;  %s2801_s19 = smov 96   ;;  %s2802_s20 = smov 127   ;;  %v34_v44 = vld [vmem:[%s3766_s0 + $0x10] sm:$0xf] }
   0x3   :  { %v253_v4 = vunpack.c.l.bf16 %v35_v1  ;;  %v254_v5 = vunpack.c.h.bf16 %v35_v1  ;;  %v2879_v21 = vunpack.c.l.bf16 %v37_v17  ;;  %v33_v27 = vld [vmem:[%s3766_s0 + $0x8] sm:$0xff]  ;;  %s2803_s21 = smov 95   ;;  %v43_v45 = vunpack.c.l.bf16 %v34_v44  ;;  %s2804_s24 = smov 94   ;;  %v38_v53 = vld [vmem:[%s3766_s0 + $0x12] sm:$0xf] }
   0x4   :  { %v49_v9 = vcombine.high %v39_v2, %v39_v2  ;;  %v104_v10 = vcombine.low %v40_v3, %v40_v3  ;;  %275 = vst [vmem:[#allocation3 + $0xb0] sm:$0xf] %v2864_v7  ;;  %277 = vst [vmem:[#allocation3 + $0xc0] sm:$0xf] %v2866_v8  ;;  %v103_v14 = vcombine.low %v39_v2, %v39_v2  ;;  %v41_v29 = vunpack.c.l.bf16 %v33_v27 }
   0x5   :  { %271 = vst [vmem:[#allocation3 + $0x90] sm:$0xf] %v253_v4  ;;  %273 = vst [vmem:[#allocation3 + $0xa0] sm:$0xf] %v254_v5  ;;  %v263_v11 = vcombine.high %v253_v4, %v253_v4  ;;  %v264_v12 = vcombine.high %v254_v5, %v254_v5  ;;  %v50_v16 = vcombine.high %v40_v3, %v40_v3  ;;  %v42_v33 = vunpack.c.h.bf16 %v33_v27 }
   0x6   :  { %v2440_v13 = vpack.i.bf16 %v40_v3, %v49_v9  ;;  %v2445_v15 = vpack.i.bf16 %v104_v10, %v39_v2  ;;  %v265_v18 = vcombine.high %v2864_v7, %v2864_v7  ;;  %v2455_v19 = vpack.i.bf16 %v40_v3, %v103_v14  ;;  %279 = vst.msk [vmem:[#allocation3 + $0xd0] sm:$0xf] %vm101_vm0, %v2879_v21 }
   0x7   :  { %272 = vst [vmem:[#allocation3 + $0x98] sm:$0xf] %v263_v11  ;;  %274 = vst [vmem:[#allocation3 + $0xa8] sm:$0xf] %v264_v12  ;;  %v2450_v20 = vpack.i.bf16 %v50_v16, %v39_v2  ;;  %v2885_v22 = vcombine.high %v2866_v8, %v2866_v8  ;;  %v281_v23 = vcombine.low %v254_v5, %v254_v5  ;;  %v330_v54 = vunpack.c.l.bf16 %v38_v53 }
   0x8   :  { %2441 = vrot.lane.b32.xlu1 %v2440_v13, %s2797_s11  ;;  %2431 = vrot.lane.b32.xlu0 %v2440_v13, %s2798_s12  ;;  %276 = vst [vmem:[#allocation3 + $0xb8] sm:$0xf] %v265_v18  ;;  %v2475_v24 = vpack.i.bf16 %v254_v5, %v263_v11  ;;  %v280_v26 = vcombine.low %v253_v4, %v253_v4  ;;  %vm225_vm3 = vcmask 7168   ;;  %vm128_vm4 = vcmask 269312  }
   0x9   :  { %278 = vst [vmem:[#allocation3 + $0xc8] sm:$0xf] %v2885_v22  ;;  %v2470_v25 = vpack.i.bf16 %v281_v23, %v253_v4  ;;  %v2490_v30 = vpack.i.bf16 %v264_v12, %v253_v4  ;;  %v105_v31 = vcombine.low %v41_v29, %v41_v29  ;;  %v51_v32 = vcombine.high %v41_v29, %v41_v29 }
   0xa   :  { %v2485_v28 = vpack.i.bf16 %v254_v5, %v280_v26  ;;  %v106_v36 = vcombine.low %v42_v33, %v42_v33  ;;  %v52_v37 = vcombine.high %v42_v33, %v42_v33  ;;  %v282_v40 = vcombine.low %v2864_v7, %v2864_v7 }
   0xb   :  { %v2505_v34 = vpack.i.bf16 %v41_v29, %v105_v31  ;;  %v2500_v35 = vpack.i.bf16 %v51_v32, %v41_v29  ;;  %v2545_v41 = vpack.i.bf16 %v265_v18, %v2864_v7  ;;  %v283_v43 = vcombine.low %v2866_v8, %v2866_v8 }
   0xc   :  { %2446 = vrot.lane.b32.xlu1 %v2445_v15, %s2799_s15  ;;  %2436 = vrot.lane.b32.xlu0 %v2445_v15, %s2800_s16  ;;  %v2525_v38 = vpack.i.bf16 %v42_v33, %v106_v36  ;;  %v2520_v39 = vpack.i.bf16 %v52_v37, %v42_v33  ;;  %v2540_v42 = vpack.i.bf16 %v2864_v7, %v282_v40  ;;  %vm353_vm5 = vcmask 785408  }
   0xd   :  { %v2565_v46 = vpack.i.bf16 %v2866_v8, %v283_v43  ;;  %v107_v47 = vcombine.low %v43_v45, %v43_v45  ;;  %v2570_v49 = vpack.i.bf16 %v2885_v22, %v2866_v8  ;;  %v53_v50 = vcombine.high %v43_v45, %v43_v45 }
   0xe   :  { %v284_v55 = vcombine.low %v2879_v21, %v2879_v21  ;;  %v332_v56 = vcombine.high %v330_v54, %v330_v54  ;;  %v381_v57 = vcombine.low %v330_v54, %v330_v54  ;;  %v2605_v59 = vpack.i.bf16 %v330_v54, %v2885_v22 }
   0xf   :  { %v2585_v51 = vpack.i.bf16 %v43_v45, %v107_v47  ;;  %v2580_v52 = vpack.i.bf16 %v53_v50, %v43_v45  ;;  %vm303_vm6 = vcmask 1039360   ;;  %vm402_vm7 = vcmask 777216  }
  0x10   :  { %2456 = vrot.lane.b32.xlu1 %v2455_v19, %s2800_s16  ;;  %2451 = vrot.lane.b32.xlu0 %v2450_v20, %s2798_s12  ;;  %v2600_v58 = vpack.i.bf16 %v332_v56, %v330_v54  ;;  %vm450_vm8 = vcmask 769024   ;;  %vm528_vm9 = vcmask 1043456   ;;  %vm155_vm10 = vcmask 801796  }
  0x11   :  { %vm524_vm11 = vcmask 293888   ;;  %vm3775_vm12 = vmmov 0   ;;  %vm1159_vm13 = vcmask 1042192   ;;  %vm1160_vm14 = vcmask 27650  }
  0x12   :  { %vm1157_vm15 = vcmask 795648  }
  0x14   :  { %2466 = vrot.lane.b32.xlu1 %v2455_v19, %s2799_s15  ;;  %2461 = vrot.lane.b32.xlu0 %v2450_v20, %s2797_s11 }
  0x18   :  { %2476 = vrot.lane.b32.xlu1 %v2475_v24, %s2801_s19  ;;  %2471 = vrot.lane.b32.xlu0 %v2470_v25, %s2802_s20 }
  0x1c   :  { %2486 = vrot.lane.b32.xlu1 %v2485_v28, %s2802_s20  ;;  %2481 = vrot.lane.b32.xlu0 %v2470_v25, %s2803_s21 }
  0x20   :  { %2496 = vrot.lane.b32.xlu1 %v2485_v28, %s2803_s21  ;;  %2491 = vrot.lane.b32.xlu0 %v2490_v30, %s2801_s19 }
  0x24   :  { %2506 = vrot.lane.b32.xlu1 %v2505_v34, %s2800_s16  ;;  %2501 = vrot.lane.b32.xlu0 %v2500_v35, %s2798_s12 }
  0x28   :  { %2516 = vrot.lane.b32.xlu1 %v2505_v34, %s2799_s15  ;;  %2511 = vrot.lane.b32.xlu0 %v2500_v35, %s2797_s11 }
  0x2c   :  { %2526 = vrot.lane.b32.xlu1 %v2525_v38, %s2800_s16  ;;  %2521 = vrot.lane.b32.xlu0 %v2520_v39, %s2798_s12 }
  0x30   :  { %2536 = vrot.lane.b32.xlu1 %v2525_v38, %s2799_s15  ;;  %2531 = vrot.lane.b32.xlu0 %v2520_v39, %s2797_s11 }
  0x34   :  { %2546 = vrot.lane.b32.xlu1 %v2545_v41, %s2801_s19  ;;  %2541 = vrot.lane.b32.xlu0 %v2540_v42, %s2802_s20 }
  0x38   :  { %2556 = vrot.lane.b32.xlu1 %v2475_v24, %s2804_s24  ;;  %2551 = vrot.lane.b32.xlu0 %v2540_v42, %s2803_s21 }
  0x3c   :  { %2566 = vrot.lane.b32.xlu1 %v2565_v46, %s2802_s20  ;;  %2561 = vrot.lane.b32.xlu0 %v2490_v30, %s2804_s24 }
  0x40   :  { %2576 = vrot.lane.b32.xlu1 %v2565_v46, %s2803_s21  ;;  %2571 = vrot.lane.b32.xlu0 %v2570_v49, %s2801_s19 }
  0x44   :  { %2586 = vrot.lane.b32.xlu1 %v2585_v51, %s2800_s16  ;;  %2581 = vrot.lane.b32.xlu0 %v2580_v52, %s2798_s12 }
  0x48   :  { %221 = vrot.lane.b32.xlu1 %v107_v47, %s2799_s15  ;;  %2591 = vrot.lane.b32.xlu0 %v2580_v52, %s2797_s11 }
  0x4c   :  { %301 = vrot.lane.b32.xlu1 %v284_v55, %s2802_s20  ;;  %2596 = vrot.lane.b32.xlu0 %v2545_v41, %s2804_s24 }
  0x50   :  { %398 = vrot.lane.b32.xlu1 %v381_v57, %s2803_s21  ;;  %2601 = vrot.lane.b32.xlu0 %v2600_v58, %s2801_s19 }
  0x54   :  { %223 = vrot.lane.b32.xlu1 %v43_v45, %s2799_s15  ;;  %442 = vrot.lane.b32.xlu0 %v2866_v8, %s2804_s24 }
  0x58   :  { %2606 = vrot.lane.b32.xlu1 %v2605_v59, %s2804_s24  ;;  %400 = vrot.lane.b32.xlu0 %v330_v54, %s2803_s21 }
  0x5c   :  { %448 = vrot.lane.b32.xlu0 %v332_v56, %s2804_s24 }
  0x7a   :  { %v2442_v60 = vpop.permute.xlu1 %2441  ;;  %v2432_v61 = vpop.permute.xlu0 %2431 }
  0x7b   :  { %v2444_v62 = vunpack.i.h.bf16 %v2442_v60  ;;  %v2443_v63 = vunpack.i.l.bf16 %v2442_v60  ;;  %v2434_v0 = vunpack.i.h.bf16 %v2432_v61  ;;  %v2433_v1 = vunpack.i.l.bf16 %v2432_v61 }
  0x7d   :  { %v179_v2 = vsel %vm177_vm1, %v2443_v63, %v2444_v62  ;;  %v76_v3 = vsel %vm74_vm2, %v2433_v1, %v2434_v0 }
  0x7e   :  { %197 = vst [vmem:[#allocation3 + $0x50] sm:$0xf] %v179_v2  ;;  %94 = vst [vmem:[#allocation3 + $0x8] sm:$0xf] %v76_v3  ;;  %v2447_v4 = vpop.permute.xlu1 %2446  ;;  %v2437_v5 = vpop.permute.xlu0 %2436 }
  0x7f   :  { %v2449_v6 = vunpack.i.h.bf16 %v2447_v4  ;;  %v2448_v7 = vunpack.i.l.bf16 %v2447_v4  ;;  %v2439_v8 = vunpack.i.h.bf16 %v2437_v5  ;;  %v2438_v9 = vunpack.i.l.bf16 %v2437_v5 }
  0x81   :  { %v227_v10 = vsel %vm225_vm3, %v2448_v7, %v2449_v6  ;;  %v130_v11 = vsel %vm128_vm4, %v2438_v9, %v2439_v8 }
  0x82   :  { %245 = vst [vmem:[#allocation3 + $0x50] sm:$0xf0] %v227_v10  ;;  %148 = vst [vmem:[#allocation3 + $0x8] sm:$0xf0] %v130_v11  ;;  %v2955_v12 = vpop.permute.xlu1 %2456  ;;  %v2957_v13 = vpop.permute.xlu0 %2451 }
  0x83   :  { %v2459_v14 = vunpack.i.h.bf16 %v2955_v12  ;;  %v2458_v15 = vunpack.i.l.bf16 %v2955_v12  ;;  %v2454_v16 = vunpack.i.h.bf16 %v2957_v13  ;;  %v2453_v17 = vunpack.i.l.bf16 %v2957_v13 }
  0x85   :  { %v129_v18 = vsel %vm128_vm4, %v2458_v15, %v2438_v9  ;;  %v131_v19 = vsel %vm128_vm4, %v2439_v8, %v2459_v14  ;;  %v75_v20 = vsel %vm74_vm2, %v2453_v17, %v2433_v1  ;;  %v77_v21 = vsel %vm74_vm2, %v2434_v0, %v2454_v16 }
  0x86   :  { %147 = vst [vmem:[#allocation3] sm:$0xf0] %v129_v18  ;;  %149 = vst [vmem:[#allocation3 + $0x10] sm:$0xf0] %v131_v19  ;;  %v2971_v22 = vpop.permute.xlu1 %2466  ;;  %v2973_v23 = vpop.permute.xlu0 %2461 }
  0x87   :  { %93 = vst [vmem:[#allocation3] sm:$0xf] %v75_v20  ;;  %95 = vst [vmem:[#allocation3 + $0x10] sm:$0xf] %v77_v21  ;;  %v2469_v24 = vunpack.i.h.bf16 %v2971_v22  ;;  %v2468_v25 = vunpack.i.l.bf16 %v2971_v22  ;;  %v2464_v26 = vunpack.i.h.bf16 %v2973_v23  ;;  %v2463_v27 = vunpack.i.l.bf16 %v2973_v23 }
  0x89   :  { %v226_v28 = vsel %vm225_vm3, %v2468_v25, %v2448_v7  ;;  %v228_v29 = vsel %vm225_vm3, %v2449_v6, %v2469_v24  ;;  %v180_v30 = vsel %vm177_vm1, %v2444_v62, %v2464_v26  ;;  %v178_v31 = vsel %vm177_vm1, %v2463_v27, %v2443_v63  ;;  %v480_v32 = vld [vmem:[#allocation3 + $0x8] sm:$0xff]  ;;  %v489_v33 = vld [vmem:[#allocation3 + $0x50] sm:$0xff] }
  0x8a   :  { %244 = vst [vmem:[#allocation3 + $0x48] sm:$0xf0] %v226_v28  ;;  %246 = vst [vmem:[#allocation3 + $0x58] sm:$0xf0] %v228_v29  ;;  %v2477_v34 = vpop.permute.xlu1 %2476  ;;  %v2472_v35 = vpop.permute.xlu0 %2471  ;;  %v2341_v36 = vpack.c.bf16 %v489_v33, %v480_v32 }
  0x8b   :  { %198 = vst [vmem:[#allocation3 + $0x58] sm:$0xf] %v180_v30  ;;  %196 = vst [vmem:[#allocation3 + $0x48] sm:$0xf] %v178_v31  ;;  %v2479_v37 = vunpack.i.h.bf16 %v2477_v34  ;;  %v2478_v38 = vunpack.i.l.bf16 %v2477_v34  ;;  %v2474_v39 = vunpack.i.h.bf16 %v2472_v35  ;;  %v2473_v40 = vunpack.i.l.bf16 %v2472_v35 }
  0x8c   :  { %2342 = vmatprep.subr.bf16.mxu0 %v2341_v36 }
  0x8d   :  { %v355_v41 = vsel %vm353_vm5, %v2478_v38, %v2479_v37  ;;  %v305_v42 = vsel %vm303_vm6, %v2473_v40, %v2474_v39 }
  0x8e   :  { %373 = vst [vmem:[#allocation3 + $0xe0] sm:$0xf] %v355_v41  ;;  %322 = vst [vmem:[#allocation3 + $0x98] sm:$0xf0] %v305_v42  ;;  %v2989_v43 = vpop.permute.xlu1 %2486  ;;  %v2482_v44 = vpop.permute.xlu0 %2481  ;;  %v479_v53 = vld [vmem:[#allocation3] sm:$0xff] }
  0x8f   :  { %v2489_v45 = vunpack.i.h.bf16 %v2989_v43  ;;  %v2488_v46 = vunpack.i.l.bf16 %v2989_v43  ;;  %v2484_v47 = vunpack.i.h.bf16 %v2482_v44  ;;  %v2483_v49 = vunpack.i.l.bf16 %v2482_v44 }
  0x91   :  { %v304_v50 = vsel %vm303_vm6, %v2488_v46, %v2473_v40  ;;  %v306_v51 = vsel %vm303_vm6, %v2474_v39, %v2489_v45  ;;  %v404_v52 = vsel %vm402_vm7, %v2483_v49, %v2484_v47 }
  0x92   :  { %v488_v54 = vld [vmem:[#allocation3 + $0x48] sm:$0xff]  ;;  %321 = vst [vmem:[#allocation3 + $0x90] sm:$0xf0] %v304_v50  ;;  %323 = vst [vmem:[#allocation3 + $0xa0] sm:$0xf0] %v306_v51  ;;  %v2998_v55 = vpop.permute.xlu1 %2496  ;;  %v3000_v56 = vpop.permute.xlu0 %2491  ;;  %v490_v46 = vld [vmem:[#allocation3 + $0x58] sm:$0xff] }
  0x93   :  { %422 = vst [vmem:[#allocation3 + $0xe0] sm:$0xf0] %v404_v52  ;;  %v2343_v57 = vpack.c.bf16 %v488_v54, %v479_v53  ;;  %v2499_v58 = vunpack.i.h.bf16 %v2998_v55  ;;  %v2498_v59 = vunpack.i.l.bf16 %v2998_v55  ;;  %v2494_v60 = vunpack.i.h.bf16 %v3000_v56  ;;  %v481_v54 = vld [vmem:[#allocation3 + $0x10] sm:$0xff] }
  0x94   :  { %v2493_v61 = vunpack.i.l.bf16 %v3000_v56 }
  0x95   :  { %2344 = vmatpush1.bf16.msra.mxu0 %v2343_v57  ;;  %v403_v62 = vsel %vm402_vm7, %v2498_v59, %v2483_v49  ;;  %v405_v63 = vsel %vm402_vm7, %v2484_v47, %v2499_v58  ;;  %v356_v0 = vsel %vm353_vm5, %v2479_v37, %v2494_v60  ;;  %v498_v15 = vld [vmem:[#allocation3 + $0x98] sm:$0xff] }
  0x96   :  { %v354_v1 = vsel %vm353_vm5, %v2493_v61, %v2478_v38  ;;  %421 = vst [vmem:[#allocation3 + $0xd8] sm:$0xf0] %v403_v62  ;;  %423 = vst [vmem:[#allocation3 + $0xe8] sm:$0xf0] %v405_v63  ;;  %v2507_v2 = vpop.permute.xlu1 %2506  ;;  %v2502_v3 = vpop.permute.xlu0 %2501  ;;  %v2351_v62 = vpack.c.bf16 %v490_v46, %v481_v54 }
  0x97   :  { %374 = vst [vmem:[#allocation3 + $0xe8] sm:$0xf] %v356_v0  ;;  %372 = vst [vmem:[#allocation3 + $0xd8] sm:$0xf] %v354_v1  ;;  %v2509_v4 = vunpack.i.h.bf16 %v2507_v2  ;;  %v2508_v5 = vunpack.i.l.bf16 %v2507_v2  ;;  %v2504_v6 = vunpack.i.h.bf16 %v2502_v3  ;;  %v2503_v7 = vunpack.i.l.bf16 %v2502_v3 }
  0x99   :  { %v132_v8 = vsel %vm128_vm4, %v2459_v14, %v2508_v5  ;;  %v133_v9 = vsel %vm128_vm4, %v2508_v5, %v2509_v4  ;;  %v78_v10 = vsel %vm74_vm2, %v2454_v16, %v2503_v7  ;;  %v79_v11 = vsel %vm74_vm2, %v2503_v7, %v2504_v6  ;;  %v497_v29 = vld [vmem:[#allocation3 + $0x90] sm:$0xff] }
  0x9a   :  { %v507_v17 = vld [vmem:[#allocation3 + $0xe0] sm:$0xff]  ;;  %150 = vst [vmem:[#allocation3 + $0x18] sm:$0xf0] %v132_v8  ;;  %151 = vst [vmem:[#allocation3 + $0x20] sm:$0xf0] %v133_v9  ;;  %v2517_v18 = vpop.permute.xlu1 %2516  ;;  %v2512_v19 = vpop.permute.xlu0 %2511 }
  0x9b   :  { %96 = vst [vmem:[#allocation3 + $0x18] sm:$0xf] %v78_v10  ;;  %97 = vst [vmem:[#allocation3 + $0x20] sm:$0xf] %v79_v11  ;;  %v2345_v20 = vpack.c.bf16 %v507_v17, %v498_v15  ;;  %v2519_v12 = vunpack.i.h.bf16 %v2517_v18  ;;  %v2518_v21 = vunpack.i.l.bf16 %v2517_v18  ;;  %v2514_v14 = vunpack.i.h.bf16 %v2512_v19 }
  0x9c   :  { %v2513_v25 = vunpack.i.l.bf16 %v2512_v19 }
  0x9d   :  { %2346 = vmatprep.subr.bf16.mxu0 %v2345_v20  ;;  %v229_v13 = vsel %vm225_vm3, %v2469_v24, %v2518_v21  ;;  %v230_v16 = vsel %vm225_vm3, %v2518_v21, %v2519_v12 }
  0x9e   :  { %v181_v27 = vsel %vm177_vm1, %v2464_v26, %v2513_v25  ;;  %v182_v28 = vsel %vm177_vm1, %v2513_v25, %v2514_v14  ;;  %v506_v30 = vld [vmem:[#allocation3 + $0xd8] sm:$0xff]  ;;  %247 = vst [vmem:[#allocation3 + $0x60] sm:$0xf0] %v229_v13  ;;  %248 = vst [vmem:[#allocation3 + $0x68] sm:$0xf0] %v230_v16  ;;  %v3030_v31 = vpop.permute.xlu1 %2526  ;;  %v3032_v32 = vpop.permute.xlu0 %2521 }
  0x9f   :  { %199 = vst [vmem:[#allocation3 + $0x60] sm:$0xf] %v181_v27  ;;  %200 = vst [vmem:[#allocation3 + $0x68] sm:$0xf] %v182_v28  ;;  %v2347_v22 = vpack.c.bf16 %v506_v30, %v497_v29  ;;  %v2529_v24 = vunpack.i.h.bf16 %v3030_v31  ;;  %v2528_v33 = vunpack.i.l.bf16 %v3030_v31  ;;  %v2524_v23 = vunpack.i.h.bf16 %v3032_v32  ;;  %v508_v30 = vld [vmem:[#allocation3 + $0xe8] sm:$0xff] }
  0xa0   :  { %v2523_v26 = vunpack.i.l.bf16 %v3032_v32 }
  0xa1   :  { %2348 = vmatpush1.bf16.msra.mxu0 %v2347_v22  ;;  %v134_v34 = vsel %vm128_vm4, %v2509_v4, %v2528_v33  ;;  %v135_v35 = vsel %vm128_vm4, %v2528_v33, %v2529_v24  ;;  %v499_v22 = vld [vmem:[#allocation3 + $0xa0] sm:$0xff] }
  0xa2   :  { %v80_v36 = vsel %vm74_vm2, %v2504_v6, %v2523_v26  ;;  %v81_v37 = vsel %vm74_vm2, %v2523_v26, %v2524_v23  ;;  %152 = vst [vmem:[#allocation3 + $0x28] sm:$0xf0] %v134_v34  ;;  %153 = vst [vmem:[#allocation3 + $0x30] sm:$0xf0] %v135_v35  ;;  %v3046_v38 = vpop.permute.xlu1 %2536  ;;  %v3048_v39 = vpop.permute.xlu0 %2531  ;;  %v482_v52 = vld [vmem:[#allocation3 + $0x18] sm:$0xff] }
  0xa3   :  { %98 = vst [vmem:[#allocation3 + $0x28] sm:$0xf] %v80_v36  ;;  %99 = vst [vmem:[#allocation3 + $0x30] sm:$0xf] %v81_v37  ;;  %v2539_v40 = vunpack.i.h.bf16 %v3046_v38  ;;  %v2538_v41 = vunpack.i.l.bf16 %v3046_v38  ;;  %v2534_v42 = vunpack.i.h.bf16 %v3048_v39  ;;  %v2533_v44 = vunpack.i.l.bf16 %v3048_v39 }
  0xa5   :  { %v231_v47 = vsel %vm225_vm3, %v2519_v12, %v2538_v41  ;;  %v232_v49 = vsel %vm225_vm3, %v2538_v41, %v2539_v40  ;;  %v183_v50 = vsel %vm177_vm1, %v2514_v14, %v2533_v44  ;;  %v184_v51 = vsel %vm177_vm1, %v2533_v44, %v2534_v42 }
  0xa6   :  { %v491_v53 = vld [vmem:[#allocation3 + $0x60] sm:$0xff]  ;;  %249 = vst [vmem:[#allocation3 + $0x70] sm:$0xf0] %v231_v47  ;;  %250 = vst [vmem:[#allocation3 + $0x78] sm:$0xf0] %v232_v49  ;;  %v2547_v57 = vpop.permute.xlu1 %2546  ;;  %v2542_v59 = vpop.permute.xlu0 %2541 }
  0xa7   :  { %201 = vst [vmem:[#allocation3 + $0x70] sm:$0xf] %v183_v50  ;;  %202 = vst [vmem:[#allocation3 + $0x78] sm:$0xf] %v184_v51  ;;  %v2349_v61 = vpack.c.bf16 %v491_v53, %v482_v52  ;;  %v2549_v63 = vunpack.i.h.bf16 %v2547_v57  ;;  %v2548_v0 = vunpack.i.l.bf16 %v2547_v57  ;;  %v2544_v1 = vunpack.i.h.bf16 %v2542_v59 }
  0xa8   :  { %v2543_v2 = vunpack.i.l.bf16 %v2542_v59  ;;  %v2355_v50 = vpack.c.bf16 %v508_v30, %v499_v22  ;;  %v492_v59 = vld [vmem:[#allocation3 + $0x68] sm:$0xff] }
  0xa9   :  { %2350 = vmatprep.subr.bf16.mxu1 %v2349_v61  ;;  %v357_v3 = vsel %vm353_vm5, %v2494_v60, %v2548_v0  ;;  %v358_v4 = vsel %vm353_vm5, %v2548_v0, %v2549_v63 }
  0xaa   :  { %v307_v5 = vsel %vm303_vm6, %v2489_v45, %v2543_v2  ;;  %v308_v6 = vsel %vm303_vm6, %v2543_v2, %v2544_v1  ;;  %2352 = vmatpush1.bf16.msra.mxu1 %v2351_v62  ;;  %375 = vst [vmem:[#allocation3 + $0xf0] sm:$0xf] %v357_v3  ;;  %376 = vst [vmem:[#allocation3 + $0xf8] sm:$0xf] %v358_v4  ;;  %v2557_v7 = vpop.permute.xlu1 %2556  ;;  %v2552_v8 = vpop.permute.xlu0 %2551  ;;  %v484_v57 = vld [vmem:[#allocation3 + $0x28] sm:$0xff]  ;;  %v483_v4 = vld [vmem:[#allocation3 + $0x20] sm:$0xff] }
  0xab   :  { %324 = vst [vmem:[#allocation3 + $0xa8] sm:$0xf0] %v307_v5  ;;  %325 = vst [vmem:[#allocation3 + $0xb0] sm:$0xf0] %v308_v6  ;;  %v2559_v9 = vunpack.i.h.bf16 %v2557_v7  ;;  %v2558_v56 = vunpack.i.l.bf16 %v2557_v7  ;;  %v2554_v10 = vunpack.i.h.bf16 %v2552_v8  ;;  %v2553_v60 = vunpack.i.l.bf16 %v2552_v8  ;;  %v3111_v62 = vld [vmem:[%s3767_s1] sm:$0xf] }
  0xad   :  { %v452_v11 = vsel %vm450_vm8, %v2558_v56, %v2559_v9  ;;  %v406_v43 = vsel %vm402_vm7, %v2499_v58, %v2553_v60  ;;  %v407_v45 = vsel %vm402_vm7, %v2553_v60, %v2554_v10 }
  0xae   :  { %470 = vst [vmem:[#allocation3 + $0x128] sm:$0xf] %v452_v11  ;;  %424 = vst [vmem:[#allocation3 + $0xf0] sm:$0xf0] %v406_v43  ;;  %v3075_v15 = vpop.permute.xlu1 %2566  ;;  %v3077_v17 = vpop.permute.xlu0 %2561  ;;  %v493_v33 = vld [vmem:[#allocation3 + $0x70] sm:$0xff] }
  0xaf   :  { %425 = vst [vmem:[#allocation3 + $0xf8] sm:$0xf0] %v407_v45  ;;  %v2569_v18 = vunpack.i.h.bf16 %v3075_v15  ;;  %v2568_v19 = vunpack.i.l.bf16 %v3075_v15  ;;  %v2564_v20 = vunpack.i.h.bf16 %v3077_v17  ;;  %v2563_v12 = vunpack.i.l.bf16 %v3077_v17 }
  0xb0   :  { %v2357_v61 = vpack.c.bf16 %v493_v33, %v484_v57 }
  0xb1   :  { %v309_v55 = vsel %vm303_vm6, %v2544_v1, %v2568_v19  ;;  %v310_v58 = vsel %vm303_vm6, %v2568_v19, %v2569_v18  ;;  %v453_v21 = vsel %vm450_vm8, %v2559_v9, %v2564_v20  ;;  %v451_v14 = vsel %vm450_vm8, %v2563_v12, %v2558_v56 }
  0xb2   :  { %326 = vst [vmem:[#allocation3 + $0xb8] sm:$0xf0] %v309_v55  ;;  %327 = vst [vmem:[#allocation3 + $0xc0] sm:$0xf0] %v310_v58  ;;  %v3091_v25 = vpop.permute.xlu1 %2576  ;;  %v3093_v13 = vpop.permute.xlu0 %2571  ;;  %v500_v41 = vld [vmem:[#allocation3 + $0xa8] sm:$0xff]  ;;  %v501_v11 = vld [vmem:[#allocation3 + $0xb0] sm:$0xff] }
  0xb3   :  { %471 = vst [vmem:[#allocation3 + $0x130] sm:$0xf] %v453_v21  ;;  %469 = vst [vmem:[#allocation3 + $0x120] sm:$0xf] %v451_v14  ;;  %v2579_v16 = vunpack.i.h.bf16 %v3091_v25  ;;  %v2578_v27 = vunpack.i.l.bf16 %v3091_v25  ;;  %v2574_v28 = vunpack.i.h.bf16 %v3093_v13  ;;  %v2573_v29 = vunpack.i.l.bf16 %v3093_v13 }
  0xb5   :  { %v408_v26 = vsel %vm402_vm7, %v2554_v10, %v2578_v27  ;;  %v409_v34 = vsel %vm402_vm7, %v2578_v27, %v2579_v16  ;;  %v359_v35 = vsel %vm353_vm5, %v2549_v63, %v2573_v29  ;;  %v360_v36 = vsel %vm353_vm5, %v2573_v29, %v2574_v28  ;;  %v516_v37 = vld [vmem:[#allocation3 + $0x128] sm:$0xf]  ;;  %v509_v44 = vld [vmem:[#allocation3 + $0xf0] sm:$0xff] }
  0xb6   :  { %426 = vst [vmem:[#allocation3 + $0x100] sm:$0xf0] %v408_v26  ;;  %427 = vst [vmem:[#allocation3 + $0x108] sm:$0xf0] %v409_v34  ;;  %v2587_v46 = vpop.permute.xlu1 %2586  ;;  %v2582_v47 = vpop.permute.xlu0 %2581  ;;  %2266 = vmatprep.subr.msk.mxu0 %vm528_vm9, %v516_v37  ;;  %v2353_v49 = vpack.c.bf16 %v509_v44, %v500_v41  ;;  %v510_v7 = vld [vmem:[#allocation3 + $0xf8] sm:$0xff] }
  0xb7   :  { %377 = vst [vmem:[#allocation3 + $0x100] sm:$0xf] %v359_v35  ;;  %378 = vst [vmem:[#allocation3 + $0x108] sm:$0xf] %v360_v36  ;;  %v2589_v51 = vunpack.i.h.bf16 %v2587_v46  ;;  %v2588_v52 = vunpack.i.l.bf16 %v2587_v46  ;;  %v2584_v53 = vunpack.i.h.bf16 %v2582_v47  ;;  %v2583_v54 = vunpack.i.l.bf16 %v2582_v47  ;;  %v485_v35 = vld [vmem:[#allocation3 + $0x30] sm:$0xff] }
  0xb8   :  { %2354 = vmatprep.subr.bf16.mxu1 %v2353_v49 }
  0xb9   :  { %v136_v63 = vsel %vm128_vm4, %v2529_v24, %v2588_v52  ;;  %v137_v0 = vsel %vm128_vm4, %v2588_v52, %v2589_v51  ;;  %v82_v1 = vsel %vm74_vm2, %v2524_v23, %v2583_v54  ;;  %v83_v2 = vsel %vm74_vm2, %v2583_v54, %v2584_v53  ;;  %2356 = vmatpush1.bf16.msra.mxu1 %v2355_v50  ;;  %v502_v38 = vld [vmem:[#allocation3 + $0xb8] sm:$0xff]  ;;  %v503_v54 = vld [vmem:[#allocation3 + $0xc0] sm:$0xff] }
  0xba   :  { %v515_v3 = vld [vmem:[#allocation3 + $0x120] sm:$0xf]  ;;  %154 = vst [vmem:[#allocation3 + $0x38] sm:$0xf0] %v136_v63  ;;  %156 = vst.msk [vmem:[#allocation3 + $0x40] sm:$0xf0] %vm155_vm10, %v137_v0  ;;  %v222_v31 = vpop.permute.xlu1 %221  ;;  %v2592_v5 = vpop.permute.xlu0 %2591  ;;  %v2359_v24 = vpack.c.bf16 %v492_v59, %v483_v4 }
  0xbb   :  { %100 = vst [vmem:[#allocation3 + $0x38] sm:$0xf] %v82_v1  ;;  %102 = vst.msk [vmem:[#allocation3 + $0x40] sm:$0xf] %vm101_vm0, %v83_v2  ;;  %2267 = vmatpush1.msk.msra.mxu0 %vm528_vm9, %v515_v3  ;;  %v233_v32 = vsel %vm225_vm3, %v2539_v40, %v222_v31  ;;  %v2594_v23 = vunpack.i.h.bf16 %v2592_v5  ;;  %v2593_v6 = vunpack.i.l.bf16 %v2592_v5  ;;  %v517_v26 = vld [vmem:[#allocation3 + $0x130] sm:$0xf] }
  0xbc   :  { %2358 = vmatprep.subr.bf16.mxu0 %v2357_v61  ;;  %2268 = vmatmul.mubr.msk.f32.vlgmr.msra.gmra.mrb[0].mxu0 %vm524_vm11, %v3111_v62  ;;  %251 = vst [vmem:[#allocation3 + $0x80] sm:$0xf0] %v233_v32  ;;  %v2806_v3 = vmov 0.0|0.0  }
  0xbd   :  { %2360 = vmatpush1.bf16.msra.mxu0 %v2359_v24  ;;  %762 = vmatprep.mubr.f32.mxu0 %v2805_v48  ;;  %v185_v8 = vsel %vm177_vm1, %v2534_v42, %v2593_v6  ;;  %v186_v9 = vsel %vm177_vm1, %v2593_v6, %v2594_v23  ;;  %v2363_v42 = vpack.c.bf16 %v510_v7, %v501_v11  ;;  %v914_v6 = vlaneseq }
  0xbe   :  { %v511_v56 = vld [vmem:[#allocation3 + $0x100] sm:$0xff]  ;;  %203 = vst [vmem:[#allocation3 + $0x80] sm:$0xf] %v185_v8  ;;  %204 = vst.msk [vmem:[#allocation3 + $0x88] sm:$0xf] %vm101_vm0, %v186_v9  ;;  %v302_v40 = vpop.permute.xlu1 %301  ;;  %v2597_v10 = vpop.permute.xlu0 %2596  ;;  %v512_v46 = vld [vmem:[#allocation3 + $0x108] sm:$0xff] }
  0xbf   :  { %v2361_v60 = vpack.c.bf16 %v511_v56, %v502_v38  ;;  %v311_v43 = vsel %vm303_vm6, %v2569_v18, %v302_v40  ;;  %329 = vst.msk [vmem:[#allocation3 + $0xd0] sm:$0xf0] %vm155_vm10, %v302_v40  ;;  %v2599_v39 = vunpack.i.h.bf16 %v2597_v10  ;;  %v2598_v45 = vunpack.i.l.bf16 %v2597_v10  ;;  %v30_v9 = vld [vmem:[%s3768_s7] sm:$0xff] }
  0xc0   :  { %328 = vst [vmem:[#allocation3 + $0xc8] sm:$0xf0] %v311_v43  ;;  %v2371_v61 = vpack.c.bf16 %v512_v46, %v503_v54  ;;  %v3183_v7 = vshrl.u32 %v914_v6, 7 }
  0xc1   :  { %2362 = vmatprep.subr.bf16.mxu0 %v2361_v60  ;;  %v454_v19 = vsel %vm450_vm8, %v2564_v20, %v2598_v45  ;;  %v455_v12 = vsel %vm450_vm8, %v2598_v45, %v2599_v39 }
  0xc2   :  { %2364 = vmatpush1.bf16.msra.mxu0 %v2363_v42  ;;  %472 = vst [vmem:[#allocation3 + $0x138] sm:$0xf] %v454_v19  ;;  %473 = vst [vmem:[#allocation3 + $0x140] sm:$0xf] %v455_v12  ;;  %v399_v55 = vpop.permute.xlu1 %398  ;;  %v2602_v15 = vpop.permute.xlu0 %2601  ;;  %v486_v13 = vld [vmem:[#allocation3 + $0x38] sm:$0xff]  ;;  %v487_v63 = vld [vmem:[#allocation3 + $0x40] sm:$0xff] }
  0xc3   :  { %v410_v18 = vsel %vm402_vm7, %v2579_v16, %v399_v55  ;;  %v2604_v58 = vunpack.i.h.bf16 %v2602_v15  ;;  %v2603_v21 = vunpack.i.l.bf16 %v2602_v15  ;;  %v494_v16 = vld [vmem:[#allocation3 + $0x78] sm:$0xff]  ;;  %v916_v8 = vsub.s32 0, %v3183_v7 }
  0xc4   :  { %428 = vst [vmem:[#allocation3 + $0x110] sm:$0xf0] %v410_v18  ;;  %v2367_v44 = vpack.c.bf16 %v494_v16, %v485_v35  ;;  %v920_v38 = vsub.s32 1, %v3183_v7  ;;  %v924_v42 = vsub.s32 2, %v3183_v7  ;;  %v928_v19 = vsub.s32 3, %v3183_v7 }
  0xc5   :  { %v361_v17 = vsel %vm353_vm5, %v2574_v28, %v2603_v21  ;;  %v362_v20 = vsel %vm353_vm5, %v2603_v21, %v2604_v58  ;;  %v495_v30 = vld [vmem:[#allocation3 + $0x80] sm:$0xff]  ;;  %v3190_v56 = vrot.slane %v30_v9, %v916_v8  ;;  %v932_v15 = vsub.s32 4, %v3183_v7 }
  0xc6   :  { %379 = vst [vmem:[#allocation3 + $0x110] sm:$0xf] %v361_v17  ;;  %380 = vst.msk [vmem:[#allocation3 + $0x118] sm:$0xf] %vm101_vm0, %v362_v20  ;;  %v224_v14 = vpop.permute.xlu1 %223  ;;  %v443_v27 = vpop.permute.xlu0 %442  ;;  %v2365_v34 = vpack.c.bf16 %v495_v30, %v486_v13  ;;  %v505_v4 = vld [vmem:[#allocation3 + $0xd0] sm:$0xff]  ;;  %v3192_v40 = vrot.slane %v30_v9, %v920_v38  ;;  %v3200_v12 = vrot.slane %v30_v9, %v924_v42  ;;  %v936_v58 = vsub.s32 5, %v3183_v7 }
  0xc7   :  { %v234_v29 = vsel %vm225_vm3, %v222_v31, %v224_v14  ;;  %v456_v25 = vsel %vm450_vm8, %v2599_v39, %v443_v27  ;;  %v504_v50 = vld [vmem:[#allocation3 + $0xc8] sm:$0xff]  ;;  %v940_v16 = vsub.s32 6, %v3183_v7 }
  0xc8   :  { %252 = vst.msk [vmem:[#allocation3 + $0x88] sm:$0xf0] %vm155_vm10, %v234_v29  ;;  %474 = vst [vmem:[#allocation3 + $0x148] sm:$0xf] %v456_v25  ;;  %v3212_v30 = vrot.slane %v30_v9, %v936_v58 }
  0xc9   :  { %v518_v22 = vld [vmem:[#allocation3 + $0x138] sm:$0xf]  ;;  %v519_v1 = vld [vmem:[#allocation3 + $0x140] sm:$0xf] }
  0xca   :  { %v2607_v33 = vpop.permute.xlu1 %2606  ;;  %v401_v28 = vpop.permute.xlu0 %400  ;;  %2269 = vmatprep.subr.msk.mxu1 %vm528_vm9, %v518_v22 }
  0xcb   :  { %v2609_v36 = vunpack.i.h.bf16 %v2607_v33  ;;  %v2608_v37 = vunpack.i.l.bf16 %v2607_v33  ;;  %v411_v41 = vsel %vm402_vm7, %v399_v55, %v401_v28  ;;  %2270 = vmatpush1.msk.msra.mxu1 %vm528_vm9, %v517_v26  ;;  %v3202_v55 = vrot.slane %v30_v9, %v928_v19 }
  0xcc   :  { %429 = vst.msk [vmem:[#allocation3 + $0x118] sm:$0xf0] %vm155_vm10, %v411_v41  ;;  %2271 = vmatmul.mubr.msk.f32.vlgmr.msra.gmra.mrb[0].mxu1 %vm524_vm11, %v3111_v62  ;;  %2366 = vmatprep.subr.bf16.mxu1 %v2365_v34  ;;  %v944_v33 = vsub.s32 7, %v3183_v7 }
  0xcd   :  { %v457_v47 = vsel %vm450_vm8, %v443_v27, %v2608_v37  ;;  %v458_v49 = vsel %vm450_vm8, %v2608_v37, %v2609_v36  ;;  %2368 = vmatpush1.bf16.msra.mxu1 %v2367_v44  ;;  %v513_v51 = vld [vmem:[#allocation3 + $0x110] sm:$0xff]  ;;  %833 = vmatprep.mubr.f32.mxu1 %v2805_v48  ;;  %v3209_v27 = vrot.slane %v30_v9, %v932_v15 }
  0xce   :  { %475 = vst [vmem:[#allocation3 + $0x150] sm:$0xf] %v457_v47  ;;  %476 = vst [vmem:[#allocation3 + $0x158] sm:$0xf] %v458_v49  ;;  %v449_v52 = vpop.permute.xlu0 %448  ;;  %v2369_v53 = vpack.c.bf16 %v513_v51, %v504_v50  ;;  %v3222_v44 = vrot.slane %v30_v9, %v944_v33 }
  0xcf   :  { %v459_v57 = vsel %vm450_vm8, %v2609_v36, %v449_v52  ;;  %v520_v59 = vld [vmem:[#allocation3 + $0x148] sm:$0xf]  ;;  %v3219_v36 = vrot.slane %v30_v9, %v940_v16  ;;  %v3229_v52 = vld [vmem:[%s3768_s7 + $0x8] ss:$0 sm:$0xff] }
  0xd0   :  { %v496_v0 = vld [vmem:[#allocation3 + $0x88] sm:$0xff]  ;;  %477 = vst.msk [vmem:[#allocation3 + $0x160] sm:$0xf] %vm101_vm0, %v459_v57  ;;  %2272 = vmatprep.subr.msk.mxu0 %vm528_vm9, %v520_v59  ;;  %2370 = vmatprep.subr.bf16.mxu1 %v2369_v53 }
  0xd1   :  { %v2374_v2 = vpack.c.bf16 %v496_v0, %v487_v63  ;;  %2273 = vmatpush1.msk.msra.mxu0 %vm528_vm9, %v519_v1  ;;  %2372 = vmatpush1.bf16.msra.mxu1 %v2371_v61 }
  0xd2   :  { %2274 = vmatmul.mubr.msk.f32.vlgmr.msra.gmra.mrb[2].mxu0 %vm524_vm11, %v3111_v62  ;;  %2373 = vmatprep.subr.bf16.mxu0 %v2806_v3 }
  0xd3   :  { %2375 = vmatpush3.bf16.msra.mxu0 %v2374_v2  ;;  %v514_v31 = vld [vmem:[#allocation3 + $0x118] sm:$0xff]  ;;  %2325 = vmatprep.mubr.msk.f32.mxu0 %vm3775_vm12, %v2805_v48  ;;  %vm1161_vm12 = vmor %vm1160_vm14, %vm1159_vm13 }
  0xd4   :  { %2376 = vmatprep.subr.bf16.mxu0 %v2806_v3  ;;  %v2377_v5 = vpack.c.bf16 %v514_v31, %v505_v4  ;;  %v2808_v4 = vmov 0   ;;  %v911_v31 = vld [vmem:[%s3770_s3] sm:$0xf] }
  0xd5   :  { %v522_v24 = vld [vmem:[#allocation3 + $0x158] sm:$0xf]  ;;  %v521_v32 = vld [vmem:[#allocation3 + $0x150] sm:$0xf]  ;;  %2610 = vset.pattern.permute.xlu0 %v2808_v4  ;;  %1092 = vst [vmem:[#allocation2] sm:$0x3] %v2808_v4  ;;  %2611 = vset.pattern.permute.xlu1 %v2808_v4 }
  0xd6   :  { %2275 = vmatprep.subr.msk.mxu1 %vm528_vm9, %v522_v24  ;;  %2193 = vst [vmem:[%s3769_s8] sm:$0x3] %v2808_v4 }
  0xd7   :  { %2276 = vmatpush1.msk.msra.mxu1 %vm528_vm9, %v521_v32  ;;  %2378 = vmatpush3.bf16.msra.mxu0 %v2377_v5  ;;  %v523_v23 = vld [vmem:[#allocation3 + $0x160] sm:$0xf] }
  0xd8   :  { %2277 = vmatmul.mubr.msk.f32.vlgmr.msra.gmra.mrb[2].mxu1 %vm524_vm11, %v3111_v62  ;;  %2323 = vmatprep.subr.mxu0 %v2805_v48 }
  0xd9   :  { %1739 = vmatprep.mubr.f32.mxu1 %v2805_v48 }
  0xdb   :  { %2324 = vmatpush3.msk.msra.mxu0 %vm528_vm9, %v523_v23 }
  0xdc   :  { %2326 = vmatmul.mubr.msk.f32.vlgmr.msra.gmra.mrb[4].mxu0 %vm524_vm11, %v3111_v62 }
  0xdd   :  { %1810 = vmatprep.mubr.f32.mxu0 %v2805_v48 }
 0x18f   :  { %v622_v10 = vpop.f32.mrb[0].mxu0 }
 0x190   :  { %v959_v62 = vmul.f32 %v3190_v56, %v622_v10  ;;  %v624_v60 = vpop.f32.mrb[1].mxu0 }
 0x191   :  { %v960_v11 = vmul.f32 %v3192_v40, %v624_v60 }
 0x192   :  { %v968_v43 = vsel %vm528_vm9, %v959_v62, 0.0 }
 0x193   :  { %v969_v39 = vsel %vm528_vm9, %v960_v11, 0.0 }
 0x194   :  { %v970_v45 = vadd.f32 %v969_v39, %v968_v43 }
 0x19f   :  { %v693_v18 = vpop.f32.mrb[0].mxu1 }
 0x1a0   :  { %v961_v21 = vmul.f32 %v3200_v12, %v693_v18  ;;  %v695_v17 = vpop.f32.mrb[1].mxu1 }
 0x1a1   :  { %v962_v20 = vmul.f32 %v3202_v55, %v695_v17 }
 0x1a2   :  { %v971_v14 = vsel %vm528_vm9, %v961_v21, 0.0 }
 0x1a3   :  { %v972_v29 = vadd.f32 %v971_v14, %v970_v45  ;;  %v973_v25 = vsel %vm528_vm9, %v962_v20, 0.0 }
 0x1a5   :  { %v974_v22 = vadd.f32 %v973_v25, %v972_v29  ;;  %v764_v13 = vpop.f32.mrb[2].mxu0 }
 0x1a6   :  { %v963_v28 = vmul.f32 %v3209_v27, %v764_v13  ;;  %v766_v26 = vpop.f32.mrb[3].mxu0 }
 0x1a7   :  { %v964_v34 = vmul.f32 %v3212_v30, %v766_v26 }
 0x1a8   :  { %v975_v35 = vsel %vm528_vm9, %v963_v28, 0.0 }
 0x1a9   :  { %v976_v37 = vadd.f32 %v975_v35, %v974_v22  ;;  %v977_v41 = vsel %vm528_vm9, %v964_v34, 0.0 }
 0x1ab   :  { %v978_v46 = vadd.f32 %v977_v41, %v976_v37  ;;  %v835_v47 = vpop.f32.mrb[2].mxu1 }
 0x1ac   :  { %v965_v49 = vmul.f32 %v3219_v36, %v835_v47  ;;  %v837_v50 = vpop.f32.mrb[3].mxu1 }
 0x1ad   :  { %v966_v51 = vmul.f32 %v3222_v44, %v837_v50 }
 0x1ae   :  { %v979_v53 = vsel %vm528_vm9, %v965_v49, 0.0 }
 0x1af   :  { %v980_v54 = vadd.f32 %v979_v53, %v978_v46  ;;  %v981_v57 = vsel %vm528_vm9, %v966_v51, 0.0  ;;  %v906_v59 = vpop.f32.mrb[4].mxu0 }
 0x1b0   :  { %v967_v61 = vmul.f32 %v3229_v52, %v906_v59  ;;  %v2327_v63 = vpop.f32.mrb[5].mxu0 }
 0x1b1   :  { %v982_v0 = vadd.f32 %v981_v57, %v980_v54  ;;  %v910_v63 = vld [vmem:[%s3771_s2] sm:$0xf] }
 0x1b2   :  { %v983_v1 = vsel %vm101_vm0, %v967_v61, 0.0 }
 0x1b3   :  { %v984_v2 = vadd.f32 %v983_v1, %v982_v0 }
 0x1b5   :  { %985 = vadd.xlane.f32.xlu1 %v984_v2 }
 0x1c6   :  { %1062 = vperm.xlu1 %2611, %v911_v31   ;;  %v2809_v31 = vmov 1983009808  }
 0x242   :  { %v986_v5 = vpop.xlane.xlu1 %985 }
 0x243   :  { %v987_v24 = vmul.f32 0.0009765625, %v986_v5  ;;  %v1114_v5 = vunpack.c.l.s4 %v2809_v31 }
 0x245   :  { %v988_v32 = vsub.f32 %v622_v10, %v987_v24  ;;  %v989_v23 = vsub.f32 %v624_v60, %v987_v24  ;;  %v990_v6 = vsub.f32 %v693_v18, %v987_v24  ;;  %v991_v8 = vsub.f32 %v695_v17, %v987_v24 }
 0x246   :  { %v992_v9 = vsub.f32 %v764_v13, %v987_v24  ;;  %v993_v43 = vsub.f32 %v766_v26, %v987_v24  ;;  %v994_v19 = vsub.f32 %v835_v47, %v987_v24  ;;  %v995_v10 = vsub.f32 %v837_v50, %v987_v24 }
 0x247   :  { %v997_v38 = vmul.f32 %v988_v32, %v988_v32  ;;  %v998_v62 = vmul.f32 %v989_v23, %v989_v23  ;;  %v999_v11 = vmul.f32 %v990_v6, %v990_v6  ;;  %v1000_v39 = vmul.f32 %v991_v8, %v991_v8 }
 0x248   :  { %v1001_v15 = vmul.f32 %v992_v9, %v992_v9  ;;  %v1002_v60 = vmul.f32 %v993_v43, %v993_v43  ;;  %v996_v14 = vsub.f32 %v906_v59, %v987_v24  ;;  %v1003_v29 = vmul.f32 %v994_v19, %v994_v19 }
 0x249   :  { %v1006_v45 = vmul.f32 %v997_v38, %v3190_v56  ;;  %v1007_v42 = vmul.f32 %v998_v62, %v3192_v40  ;;  %v1008_v58 = vmul.f32 %v999_v11, %v3200_v12  ;;  %v1009_v18 = vmul.f32 %v1000_v39, %v3202_v55 }
 0x24a   :  { %v1010_v25 = vmul.f32 %v1001_v15, %v3209_v27  ;;  %v1004_v13 = vmul.f32 %v995_v10, %v995_v10  ;;  %v1011_v33 = vmul.f32 %v1002_v60, %v3212_v30  ;;  %v1005_v34 = vmul.f32 %v996_v14, %v996_v14 }
 0x24b   :  { %v1015_v21 = vsel %vm528_vm9, %v1006_v45, 0.0  ;;  %v1016_v17 = vsel %vm528_vm9, %v1007_v42, 0.0  ;;  %v1018_v16 = vsel %vm528_vm9, %v1008_v58, 0.0  ;;  %v1020_v28 = vsel %vm528_vm9, %v1009_v18, 0.0 }
 0x24c   :  { %v1017_v20 = vadd.f32 %v1016_v17, %v1015_v21  ;;  %v1012_v35 = vmul.f32 %v1003_v29, %v3219_v36  ;;  %v1022_v37 = vsel %vm528_vm9, %v1010_v25, 0.0  ;;  %v1013_v46 = vmul.f32 %v1004_v13, %v3222_v44  ;;  %v1063_v17 = vpop.permute.xlu1 %1062 }
 0x24d   :  { %v1024_v47 = vsel %vm528_vm9, %v1011_v33, 0.0  ;;  %v1014_v50 = vmul.f32 %v3229_v52, %v1005_v34  ;;  %v1115_v24 = vunpack.c.0.s8 %v1114_v5 }
 0x24e   :  { %v1019_v22 = vadd.f32 %v1018_v16, %v1017_v20  ;;  %v1026_v51 = vsel %vm528_vm9, %v1012_v35, 0.0  ;;  %v1028_v54 = vsel %vm528_vm9, %v1013_v46, 0.0 }
 0x24f   :  { %v1030_v59 = vsel %vm101_vm0, %v1014_v50, 0.0  ;;  %v3267_v11 = vsub.s32 %v1115_v24, %v3183_v7 }
 0x250   :  { %v1021_v26 = vadd.f32 %v1020_v28, %v1019_v22 }
 0x252   :  { %v1023_v41 = vadd.f32 %v1022_v37, %v1021_v26 }
 0x254   :  { %v1025_v49 = vadd.f32 %v1024_v47, %v1023_v41 }
 0x256   :  { %v1027_v53 = vadd.f32 %v1026_v51, %v1025_v49 }
 0x258   :  { %v1029_v57 = vadd.f32 %v1028_v54, %v1027_v53 }
 0x25a   :  { %v1031_v61 = vadd.f32 %v1030_v59, %v1029_v57 }
 0x25c   :  { %1032 = vadd.xlane.f32.xlu0 %v1031_v61 }
 0x272   :  { %1048 = vperm.xlu0 %2610, %v910_v63  }
 0x2e9   :  { %v1033_v0 = vpop.xlane.xlu0 %1032 }
 0x2ea   :  { %v1034_v1 = vmul.f32 0.0009765625, %v1033_v0 }
 0x2ec   :  { %v1035_v2 = vadd.f32 1e-05, %v1034_v1 }
 0x2ee   :  { %2792 = vrsqrt.f32 %v1035_v2 }
 0x2f1   :  { %v1049_v62 = vpop.permute.xlu0 %1048 }
 0x2f8   :  { %v2793_v38 = vpop.eup %2792 }
 0x2f9   :  { %v1037_v39 = vmul.f32 %v2793_v38, %v988_v32  ;;  %v1038_v45 = vmul.f32 %v2793_v38, %v989_v23  ;;  %v1039_v42 = vmul.f32 %v2793_v38, %v990_v6  ;;  %v1040_v15 = vmul.f32 %v2793_v38, %v991_v8 }
 0x2fa   :  { %v1041_v58 = vmul.f32 %v2793_v38, %v992_v9  ;;  %v1042_v21 = vmul.f32 %v2793_v38, %v993_v43  ;;  %v1043_v60 = vmul.f32 %v2793_v38, %v994_v19  ;;  %v1044_v18 = vmul.f32 %v2793_v38, %v995_v10 }
 0x2fb   :  { %v1045_v20 = vmul.f32 %v2793_v38, %v996_v14  ;;  %v1051_v29 = vmul.f32 %v1049_v62, %v1037_v39  ;;  %v1052_v25 = vmul.f32 %v1049_v62, %v1038_v45  ;;  %v1053_v16 = vmul.f32 %v1049_v62, %v1039_v42 }
 0x2fc   :  { %v1054_v22 = vmul.f32 %v1049_v62, %v1040_v15  ;;  %v1055_v13 = vmul.f32 %v1049_v62, %v1041_v58  ;;  %v1056_v33 = vmul.f32 %v1049_v62, %v1042_v21  ;;  %v1057_v28 = vmul.f32 %v1049_v62, %v1043_v60 }
 0x2fd   :  { %v1058_v26 = vmul.f32 %v1049_v62, %v1044_v18  ;;  %v1059_v7 = vmul.f32 %v1049_v62, %v1045_v20  ;;  %v1065_v34 = vadd.f32 %v1063_v17, %v1051_v29  ;;  %v1066_v32 = vadd.f32 %v1063_v17, %v1052_v25 }
 0x2fe   :  { %v1067_v23 = vadd.f32 %v1063_v17, %v1053_v16  ;;  %v1068_v6 = vadd.f32 %v1063_v17, %v1054_v22  ;;  %v1069_v8 = vadd.f32 %v1063_v17, %v1055_v13  ;;  %v1070_v9 = vadd.f32 %v1063_v17, %v1056_v33 }
 0x2ff   :  { %v1071_v43 = vadd.f32 %v1063_v17, %v1057_v28  ;;  %v1072_v19 = vadd.f32 %v1063_v17, %v1058_v26  ;;  %v1073_v10 = vadd.f32 %v1063_v17, %v1059_v7  ;;  %v1074_v35 = vmax.f32 %v1065_v34, 0.0 }
 0x300   :  { %v1075_v14 = vmax.f32 %v1066_v32, 0.0  ;;  %v1076_v37 = vmax.f32 %v1067_v23, 0.0  ;;  %v1077_v41 = vmax.f32 %v1068_v6, 0.0  ;;  %v1078_v46 = vmax.f32 %v1069_v8, 0.0 }
 0x301   :  { %v1079_v47 = vmax.f32 %v1070_v9, 0.0  ;;  %v1080_v49 = vmax.f32 %v1071_v43, 0.0  ;;  %v1081_v50 = vmax.f32 %v1072_v19, 0.0  ;;  %v1082_v51 = vmax.f32 %v1073_v10, 0.0 }
 0x302   :  { %v1083_v53 = vmul.f32 %v1074_v35, %v3190_v56  ;;  %v1084_v54 = vmul.f32 %v1075_v14, %v3192_v40  ;;  %v1085_v57 = vmul.f32 %v1076_v37, %v3200_v12  ;;  %v1086_v59 = vmul.f32 %v1077_v41, %v3202_v55 }
 0x303   :  { %v1087_v61 = vmul.f32 %v1078_v46, %v3209_v27  ;;  %v1088_v63 = vmul.f32 %v1079_v47, %v3212_v30  ;;  %v1089_v0 = vmul.f32 %v1080_v49, %v3219_v36  ;;  %v1090_v1 = vmul.f32 %v1081_v50, %v3222_v44 }
 0x304   :  { %v1091_v2 = vmul.f32 %v3229_v52, %v1082_v51  ;;  %v2281_v31 = vpack.c.bf16 %v1084_v54, %v1083_v53  ;;  %v2282_v5 = vpack.c.bf16 %v1086_v59, %v1085_v57 }
 0x305   :  { %v2283_v24 = vpack.c.bf16 %v1088_v63, %v1087_v61  ;;  %v2284_v38 = vpack.c.bf16 %v1090_v1, %v1089_v0 }
 0x306   :  { %v1101_v62 = vpack.c.bf16 %v1091_v2, %v1091_v2  ;;  %v1119_v39 = vrot.slane %v2281_v31, %v3267_v11  ;;  %v1126_v45 = vrot.slane %v2282_v5, %v3267_v11 }
 0x307   :  { %v1136_v42 = vrot.slane %v2283_v24, %v3267_v11  ;;  %v1143_v15 = vrot.slane %v2284_v38, %v3267_v11 }
 0x308   :  { %v1127_v58 = vcombine.low %v1119_v39, %v1126_v45  ;;  %v1151_v52 = vrot.slane %v1101_v62, %v3267_v11 }
 0x309   :  { %v1144_v21 = vcombine.low %v1136_v42, %v1143_v15 }
 0x30a   :  { %1155 = vst [vmem:[#allocation2 + $0x2] sm:$0xff] %v1127_v58  ;;  %1158 = vst.msk [vmem:[#allocation2 + $0x12] sm:$0x3] %vm1157_vm15, %v1151_v52  ;;  %v3285_v60 = vunpack.c.l.bf16 %v1127_v58  ;;  %v3287_v18 = vunpack.c.h.bf16 %v1127_v58 }
 0x30b   :  { %1156 = vst [vmem:[#allocation2 + $0xa] sm:$0xff] %v1144_v21  ;;  %1162 = vst.msk [vmem:[#allocation2 + $0x12] sm:$0xf] %vm1161_vm12, %v2808_v4  ;;  %v3290_v17 = vunpack.c.l.bf16 %v1144_v21  ;;  %v3292_v20 = vunpack.c.h.bf16 %v1144_v21 }
 0x30c   :  { %v1388_v29 = vcombine.high %v3285_v60, %v3285_v60  ;;  %1396 = vst [vmem:[#allocation4 + $0x90] sm:$0xf] %v3285_v60  ;;  %1398 = vst [vmem:[#allocation4 + $0xa0] sm:$0xf] %v3287_v18  ;;  %v3300_v25 = vcombine.high %v3287_v18, %v3287_v18  ;;  %v1405_v37 = vcombine.low %v3285_v60, %v3285_v60 }
 0x30d   :  { %v1390_v16 = vcombine.high %v3290_v17, %v3290_v17  ;;  %1400 = vst [vmem:[#allocation4 + $0xb0] sm:$0xf] %v3290_v17  ;;  %1402 = vst [vmem:[#allocation4 + $0xc0] sm:$0xf] %v3292_v20  ;;  %v3308_v22 = vcombine.high %v3292_v20, %v3292_v20  ;;  %v1406_v63 = vcombine.low %v3287_v18, %v3287_v18 }
 0x30e   :  { %1397 = vst [vmem:[#allocation4 + $0x98] sm:$0xf] %v1388_v29  ;;  %1399 = vst [vmem:[#allocation4 + $0xa8] sm:$0xf] %v3300_v25  ;;  %v2662_v14 = vpack.i.bf16 %v3287_v18, %v1388_v29  ;;  %v2672_v47 = vpack.i.bf16 %v3287_v18, %v1405_v37  ;;  %v1408_v2 = vcombine.low %v3292_v20, %v3292_v20 }
 0x30f   :  { %1401 = vst [vmem:[#allocation4 + $0xb8] sm:$0xf] %v1390_v16  ;;  %1403 = vst [vmem:[#allocation4 + $0xc8] sm:$0xf] %v3308_v22  ;;  %v2657_v0 = vpack.i.bf16 %v1406_v63, %v3285_v60  ;;  %v2732_v1 = vpack.i.bf16 %v1390_v16, %v3290_v17  ;;  %v2677_v5 = vpack.i.bf16 %v3300_v25, %v3285_v60 }
 0x310   :  { %v2752_v38 = vpack.i.bf16 %v3292_v20, %v1408_v2  ;;  %v1407_v21 = vcombine.low %v3290_v17, %v3290_v17  ;;  %v2757_v29 = vpack.i.bf16 %v3308_v22, %v3292_v20 }
 0x311   :  { %v1163_v13 = vld [vmem:[#allocation2] sm:$0xff] }
 0x312   :  { %v1168_v33 = vld [vmem:[#allocation2 + $0x12] sm:$0x3]  ;;  %v1170_v26 = vunpack.c.l.bf16 %v1163_v13  ;;  %v1171_v8 = vunpack.c.h.bf16 %v1163_v13  ;;  %v1164_v41 = vld [vmem:[#allocation2 + $0x8] sm:$0xff]  ;;  %v2727_v60 = vpack.i.bf16 %v3290_v17, %v1407_v21 }
 0x313   :  { %v1169_v28 = vld [vmem:[#allocation2 + $0x12] sm:$0xf]  ;;  %v1382_v7 = vunpack.c.l.bf16 %v1168_v33  ;;  %v1172_v49 = vunpack.c.l.bf16 %v1164_v41  ;;  %v1173_v54 = vunpack.c.h.bf16 %v1164_v41 }
 0x314   :  { %v3312_v34 = vunpack.c.l.bf16 %v1169_v28  ;;  %v1232_v32 = vcombine.low %v1170_v26, %v1170_v26  ;;  %v1180_v19 = vcombine.high %v1170_v26, %v1170_v26  ;;  %v1233_v35 = vcombine.low %v1171_v8, %v1171_v8  ;;  %v1165_v31 = vld [vmem:[#allocation2 + $0x10] sm:$0xf] }
 0x315   :  { %v1409_v23 = vcombine.low %v1382_v7, %v1382_v7  ;;  %1404 = vst.msk [vmem:[#allocation4 + $0xd0] sm:$0xf] %vm101_vm0, %v1382_v7  ;;  %v1234_v50 = vcombine.low %v1172_v49, %v1172_v49  ;;  %v1181_v51 = vcombine.high %v1171_v8, %v1171_v8  ;;  %v1235_v59 = vcombine.low %v1173_v54, %v1173_v54 }
 0x316   :  { %v3317_v6 = vcombine.high %v3312_v34, %v3312_v34  ;;  %v2652_v43 = vpack.i.bf16 %v1171_v8, %v1232_v32  ;;  %v2617_v10 = vpack.i.bf16 %v1171_v8, %v1180_v19  ;;  %v2622_v46 = vpack.i.bf16 %v1233_v35, %v1170_v26 }
 0x317   :  { %1426 = vrot.lane.b32.xlu0 %v1409_v23, %s2802_s20  ;;  %v2692_v53 = vpack.i.bf16 %v1172_v49, %v1234_v50  ;;  %v2637_v57 = vpack.i.bf16 %v1181_v51, %v1170_v26  ;;  %v2712_v61 = vpack.i.bf16 %v1173_v54, %v1235_v59  ;;  %v1182_v24 = vcombine.high %v1172_v49, %v1172_v49 }
 0x318   :  { %v2612_v9 = vpack.i.bf16 %v3317_v6, %v3312_v34  ;;  %v1174_v62 = vunpack.c.l.bf16 %v1165_v31  ;;  %v1183_v42 = vcombine.high %v1173_v54, %v1173_v54  ;;  %v1504_v52 = vcombine.low %v3312_v34, %v3312_v34 }
 0x319   :  { %v2687_v39 = vpack.i.bf16 %v1182_v24, %v1172_v49  ;;  %v2787_v18 = vpack.i.bf16 %v3312_v34, %v3308_v22 }
 0x31a   :  { %2613 = vrot.lane.b32.xlu1 %v2612_v9, %s2801_s19  ;;  %v1236_v45 = vcombine.low %v1174_v62, %v1174_v62  ;;  %v2707_v58 = vpack.i.bf16 %v1183_v42, %v1173_v54  ;;  %v1184_v25 = vcombine.high %v1174_v62, %v1174_v62 }
 0x31b   :  { %2653 = vrot.lane.b32.xlu0 %v2652_v43, %s2799_s15 }
 0x31c   :  { %v2772_v15 = vpack.i.bf16 %v1174_v62, %v1236_v45  ;;  %v2767_v17 = vpack.i.bf16 %v1184_v25, %v1174_v62 }
 0x31e   :  { %2618 = vrot.lane.b32.xlu1 %v2617_v10, %s2798_s12 }
 0x31f   :  { %2663 = vrot.lane.b32.xlu0 %v2662_v14, %s2801_s19 }
 0x322   :  { %2623 = vrot.lane.b32.xlu1 %v2622_v46, %s2800_s16 }
 0x323   :  { %2673 = vrot.lane.b32.xlu0 %v2672_v47, %s2802_s20 }
 0x326   :  { %2628 = vrot.lane.b32.xlu1 %v2617_v10, %s2797_s11 }
 0x327   :  { %2683 = vrot.lane.b32.xlu0 %v2672_v47, %s2803_s21 }
 0x32a   :  { %2633 = vrot.lane.b32.xlu1 %v2622_v46, %s2799_s15 }
 0x32b   :  { %2693 = vrot.lane.b32.xlu0 %v2692_v53, %s2800_s16 }
 0x32e   :  { %2638 = vrot.lane.b32.xlu1 %v2637_v57, %s2798_s12 }
 0x32f   :  { %2703 = vrot.lane.b32.xlu0 %v2692_v53, %s2799_s15 }
 0x332   :  { %2643 = vrot.lane.b32.xlu1 %v2652_v43, %s2800_s16 }
 0x333   :  { %2713 = vrot.lane.b32.xlu0 %v2712_v61, %s2800_s16 }
 0x336   :  { %2648 = vrot.lane.b32.xlu1 %v2637_v57, %s2797_s11 }
 0x337   :  { %2723 = vrot.lane.b32.xlu0 %v2712_v61, %s2799_s15 }
 0x33a   :  { %2658 = vrot.lane.b32.xlu1 %v2657_v0, %s2802_s20 }
 0x33b   :  { %2733 = vrot.lane.b32.xlu0 %v2732_v1, %s2801_s19 }
 0x33e   :  { %2668 = vrot.lane.b32.xlu1 %v2657_v0, %s2803_s21 }
 0x33f   :  { %2743 = vrot.lane.b32.xlu0 %v2662_v14, %s2804_s24 }
 0x342   :  { %2678 = vrot.lane.b32.xlu1 %v2677_v5, %s2801_s19 }
 0x343   :  { %2753 = vrot.lane.b32.xlu0 %v2752_v38, %s2802_s20 }
 0x346   :  { %2688 = vrot.lane.b32.xlu1 %v2687_v39, %s2798_s12 }
 0x347   :  { %2763 = vrot.lane.b32.xlu0 %v2752_v38, %s2803_s21 }
 0x34a   :  { %2698 = vrot.lane.b32.xlu1 %v2687_v39, %s2797_s11 }
 0x34b   :  { %2773 = vrot.lane.b32.xlu0 %v2772_v15, %s2800_s16 }
 0x34e   :  { %2708 = vrot.lane.b32.xlu1 %v2707_v58, %s2798_s12 }
 0x34f   :  { %1347 = vrot.lane.b32.xlu0 %v1236_v45, %s2799_s15 }
 0x352   :  { %2718 = vrot.lane.b32.xlu1 %v2707_v58, %s2797_s11 }
 0x353   :  { %1521 = vrot.lane.b32.xlu0 %v1504_v52, %s2803_s21 }
 0x356   :  { %2728 = vrot.lane.b32.xlu1 %v2727_v60, %s2802_s20 }
 0x357   :  { %1349 = vrot.lane.b32.xlu0 %v1174_v62, %s2799_s15 }
 0x35a   :  { %2738 = vrot.lane.b32.xlu1 %v2727_v60, %s2803_s21 }
 0x35b   :  { %2788 = vrot.lane.b32.xlu0 %v2787_v18, %s2804_s24 }
 0x35e   :  { %2748 = vrot.lane.b32.xlu1 %v2677_v5, %s2804_s24 }
 0x362   :  { %2758 = vrot.lane.b32.xlu1 %v2757_v29, %s2801_s19 }
 0x366   :  { %2768 = vrot.lane.b32.xlu1 %v2767_v17, %s2798_s12 }
 0x36a   :  { %2778 = vrot.lane.b32.xlu1 %v2767_v17, %s2797_s11 }
 0x36e   :  { %2783 = vrot.lane.b32.xlu1 %v2732_v1, %s2804_s24 }
 0x372   :  { %1564 = vrot.lane.b32.xlu1 %v3292_v20, %s2804_s24 }
 0x376   :  { %1523 = vrot.lane.b32.xlu1 %v3312_v34, %s2803_s21 }
 0x37a   :  { %1570 = vrot.lane.b32.xlu1 %v3317_v6, %s2804_s24 }
 0x389   :  { %v3389_v16 = vpop.permute.xlu0 %1426 }
 0x38a   :  { %1453 = vst.msk [vmem:[#allocation4 + $0xd0] sm:$0xf0] %vm155_vm10, %v3389_v16 }
 0x38c   :  { %v3393_v22 = vpop.permute.xlu1 %2613 }
 0x38d   :  { %v2616_v13 = vunpack.i.h.bf16 %v3393_v22  ;;  %v2615_v33 = vunpack.i.l.bf16 %v3393_v22  ;;  %v2654_v28 = vpop.permute.xlu0 %2653 }
 0x38e   :  { %v2656_v51 = vunpack.i.h.bf16 %v2654_v28  ;;  %v2655_v53 = vunpack.i.l.bf16 %v2654_v28 }
 0x38f   :  { %v1485_v20 = vsel %vm353_vm5, %v2615_v33, %v2616_v13 }
 0x390   :  { %1503 = vst.msk [vmem:[#allocation4 + $0x118] sm:$0xf] %vm101_vm0, %v1485_v20  ;;  %v2619_v26 = vpop.permute.xlu1 %2618 }
 0x391   :  { %v2621_v7 = vunpack.i.h.bf16 %v2619_v26  ;;  %v2620_v34 = vunpack.i.l.bf16 %v2619_v26  ;;  %v3401_v32 = vpop.permute.xlu0 %2663 }
 0x392   :  { %v2666_v6 = vunpack.i.h.bf16 %v3401_v32  ;;  %v2665_v8 = vunpack.i.l.bf16 %v3401_v32 }
 0x393   :  { %v1206_v23 = vsel %vm74_vm2, %v2620_v34, %v2621_v7 }
 0x394   :  { %1224 = vst [vmem:[#allocation4 + $0x8] sm:$0xf] %v1206_v23  ;;  %v2624_v9 = vpop.permute.xlu1 %2623  ;;  %v1478_v43 = vsel %vm353_vm5, %v2665_v8, %v2666_v6 }
 0x395   :  { %v2626_v19 = vunpack.i.h.bf16 %v2624_v9  ;;  %v2625_v10 = vunpack.i.l.bf16 %v2624_v9  ;;  %1496 = vst [vmem:[#allocation4 + $0xe0] sm:$0xf] %v1478_v43  ;;  %v3411_v35 = vpop.permute.xlu0 %2673 }
 0x397   :  { %v1258_v14 = vsel %vm128_vm4, %v2625_v10, %v2626_v19 }
 0x398   :  { %1276 = vst [vmem:[#allocation4 + $0x8] sm:$0xf0] %v1258_v14  ;;  %v3414_v37 = vpop.permute.xlu1 %2628 }
 0x399   :  { %v2631_v41 = vunpack.i.h.bf16 %v3414_v37  ;;  %v2630_v46 = vunpack.i.l.bf16 %v3414_v37  ;;  %v3418_v47 = vpop.permute.xlu0 %2683 }
 0x39b   :  { %v1305_v49 = vsel %vm177_vm1, %v2630_v46, %v2631_v41 }
 0x39c   :  { %1323 = vst [vmem:[#allocation4 + $0x50] sm:$0xf] %v1305_v49  ;;  %v2634_v50 = vpop.permute.xlu1 %2633 }
 0x39d   :  { %v2636_v54 = vunpack.i.h.bf16 %v2634_v50  ;;  %v2635_v57 = vunpack.i.l.bf16 %v2634_v50  ;;  %v2694_v59 = vpop.permute.xlu0 %2693 }
 0x39e   :  { %v2696_v1 = vunpack.i.h.bf16 %v2694_v59  ;;  %v2695_v2 = vunpack.i.l.bf16 %v2694_v59 }
 0x39f   :  { %v1353_v61 = vsel %vm225_vm3, %v2636_v54, %v2656_v51  ;;  %v1351_v63 = vsel %vm225_vm3, %v2655_v53, %v2635_v57  ;;  %v1352_v0 = vsel %vm225_vm3, %v2635_v57, %v2636_v54  ;;  %v1601_v20 = vld [vmem:[#allocation4 + $0x8] sm:$0xff]  ;;  %v2676_v53 = vunpack.i.h.bf16 %v3411_v35 }
 0x3a0   :  { %1371 = vst [vmem:[#allocation4 + $0x58] sm:$0xf0] %v1353_v61  ;;  %1369 = vst [vmem:[#allocation4 + $0x48] sm:$0xf0] %v1351_v63  ;;  %v3424_v31 = vpop.permute.xlu1 %2638  ;;  %v1261_v38 = vsel %vm128_vm4, %v2695_v2, %v2696_v1  ;;  %v2675_v54 = vunpack.i.l.bf16 %v3411_v35 }
 0x3a1   :  { %1370 = vst [vmem:[#allocation4 + $0x50] sm:$0xf0] %v1352_v0  ;;  %v2641_v5 = vunpack.i.h.bf16 %v3424_v31  ;;  %v2640_v24 = vunpack.i.l.bf16 %v3424_v31  ;;  %v2704_v62 = vpop.permute.xlu0 %2703  ;;  %1279 = vst [vmem:[#allocation4 + $0x20] sm:$0xf0] %v1261_v38 }
 0x3a2   :  { %v2706_v42 = vunpack.i.h.bf16 %v2704_v62  ;;  %v2705_v15 = vunpack.i.l.bf16 %v2704_v62 }
 0x3a3   :  { %v1205_v39 = vsel %vm74_vm2, %v2640_v24, %v2620_v34  ;;  %v1207_v45 = vsel %vm74_vm2, %v2621_v7, %v2641_v5 }
 0x3a4   :  { %1223 = vst [vmem:[#allocation4] sm:$0xf] %v1205_v39  ;;  %1225 = vst [vmem:[#allocation4 + $0x10] sm:$0xf] %v1207_v45  ;;  %v2644_v58 = vpop.permute.xlu1 %2643  ;;  %v1354_v52 = vsel %vm225_vm3, %v2656_v51, %v2705_v15  ;;  %v1355_v21 = vsel %vm225_vm3, %v2705_v15, %v2706_v42  ;;  %v2686_v39 = vunpack.i.h.bf16 %v3418_v47  ;;  %v2685_v45 = vunpack.i.l.bf16 %v3418_v47 }
 0x3a5   :  { %v2646_v60 = vunpack.i.h.bf16 %v2644_v58  ;;  %v2645_v18 = vunpack.i.l.bf16 %v2644_v58  ;;  %1372 = vst [vmem:[#allocation4 + $0x60] sm:$0xf0] %v1354_v52  ;;  %1373 = vst [vmem:[#allocation4 + $0x68] sm:$0xf0] %v1355_v21  ;;  %v3435_v29 = vpop.permute.xlu0 %2713 }
 0x3a6   :  { %v2716_v28 = vunpack.i.h.bf16 %v3435_v29  ;;  %v2715_v7 = vunpack.i.l.bf16 %v3435_v29 }
 0x3a7   :  { %v1260_v25 = vsel %vm128_vm4, %v2646_v60, %v2695_v2  ;;  %v1257_v17 = vsel %vm128_vm4, %v2645_v18, %v2625_v10  ;;  %v1259_v13 = vsel %vm128_vm4, %v2626_v19, %v2646_v60 }
 0x3a8   :  { %v1610_v26 = vld [vmem:[#allocation4 + $0x50] sm:$0xff]  ;;  %1278 = vst [vmem:[#allocation4 + $0x18] sm:$0xf0] %v1260_v25  ;;  %1275 = vst [vmem:[#allocation4] sm:$0xf0] %v1257_v17  ;;  %v3442_v34 = vpop.permute.xlu1 %2648  ;;  %v1262_v10 = vsel %vm128_vm4, %v2696_v1, %v2715_v7  ;;  %v1263_v19 = vsel %vm128_vm4, %v2715_v7, %v2716_v28 }
 0x3a9   :  { %1277 = vst [vmem:[#allocation4 + $0x10] sm:$0xf0] %v1259_v13  ;;  %v2379_v23 = vpack.c.bf16 %v1610_v26, %v1601_v20  ;;  %v2651_v9 = vunpack.i.h.bf16 %v3442_v34  ;;  %v2650_v43 = vunpack.i.l.bf16 %v3442_v34  ;;  %v3450_v14 = vpop.permute.xlu0 %2723  ;;  %1280 = vst [vmem:[#allocation4 + $0x28] sm:$0xf0] %v1262_v10 }
 0x3aa   :  { %1281 = vst [vmem:[#allocation4 + $0x30] sm:$0xf0] %v1263_v19  ;;  %v2726_v50 = vunpack.i.h.bf16 %v3450_v14  ;;  %v2725_v51 = vunpack.i.l.bf16 %v3450_v14 }
 0x3ab   :  { %2380 = vmatprep.subr.bf16.mxu1 %v2379_v23  ;;  %v1304_v37 = vsel %vm177_vm1, %v2650_v43, %v2630_v46  ;;  %v1306_v49 = vsel %vm177_vm1, %v2631_v41, %v2651_v9 }
 0x3ac   :  { %1322 = vst [vmem:[#allocation4 + $0x48] sm:$0xf] %v1304_v37  ;;  %1324 = vst [vmem:[#allocation4 + $0x58] sm:$0xf] %v1306_v49  ;;  %v2659_v57 = vpop.permute.xlu1 %2658  ;;  %v1356_v59 = vsel %vm225_vm3, %v2706_v42, %v2725_v51  ;;  %v1357_v46 = vsel %vm225_vm3, %v2725_v51, %v2726_v50 }
 0x3ad   :  { %v2661_v61 = vunpack.i.h.bf16 %v2659_v57  ;;  %v2660_v63 = vunpack.i.l.bf16 %v2659_v57  ;;  %1374 = vst [vmem:[#allocation4 + $0x70] sm:$0xf0] %v1356_v59  ;;  %1375 = vst [vmem:[#allocation4 + $0x78] sm:$0xf0] %v1357_v46  ;;  %v3464_v41 = vpop.permute.xlu0 %2733 }
 0x3ae   :  { %v2736_v24 = vunpack.i.h.bf16 %v3464_v41  ;;  %v2735_v38 = vunpack.i.l.bf16 %v3464_v41  ;;  %v3599_v41 = vld [vmem:[%s3772_s4] sm:$0xf] }
 0x3af   :  { %v1430_v0 = vsel %vm303_vm6, %v2661_v61, %v2676_v53  ;;  %v1428_v1 = vsel %vm303_vm6, %v2675_v54, %v2660_v63  ;;  %v1429_v2 = vsel %vm303_vm6, %v2660_v63, %v2661_v61  ;;  %v1600_v17 = vld [vmem:[#allocation4] sm:$0xff] }
 0x3b0   :  { %1447 = vst [vmem:[#allocation4 + $0xa0] sm:$0xf0] %v1430_v0  ;;  %1445 = vst [vmem:[#allocation4 + $0x90] sm:$0xf0] %v1428_v1  ;;  %v2669_v62 = vpop.permute.xlu1 %2668  ;;  %v1481_v58 = vsel %vm353_vm5, %v2735_v38, %v2736_v24 }
 0x3b1   :  { %1446 = vst [vmem:[#allocation4 + $0x98] sm:$0xf0] %v1429_v2  ;;  %v2671_v42 = vunpack.i.h.bf16 %v2669_v62  ;;  %v2670_v15 = vunpack.i.l.bf16 %v2669_v62  ;;  %v3478_v52 = vpop.permute.xlu0 %2743  ;;  %1499 = vst [vmem:[#allocation4 + $0xf8] sm:$0xf] %v1481_v58 }
 0x3b2   :  { %v2746_v25 = vunpack.i.h.bf16 %v3478_v52  ;;  %v2745_v20 = vunpack.i.l.bf16 %v3478_v52 }
 0x3b3   :  { %v1527_v21 = vsel %vm402_vm7, %v2671_v42, %v2686_v39  ;;  %v1525_v60 = vsel %vm402_vm7, %v2685_v45, %v2670_v15  ;;  %v1526_v18 = vsel %vm402_vm7, %v2670_v15, %v2671_v42  ;;  %v1609_v13 = vld [vmem:[#allocation4 + $0x48] sm:$0xff] }
 0x3b4   :  { %1545 = vst [vmem:[#allocation4 + $0xe8] sm:$0xf0] %v1527_v21  ;;  %1543 = vst [vmem:[#allocation4 + $0xd8] sm:$0xf0] %v1525_v60  ;;  %v2679_v26 = vpop.permute.xlu1 %2678  ;;  %v2381_v7 = vpack.c.bf16 %v1609_v13, %v1600_v17  ;;  %v1573_v10 = vsel %vm450_vm8, %v2745_v20, %v2746_v25 }
 0x3b5   :  { %1544 = vst [vmem:[#allocation4 + $0xe0] sm:$0xf0] %v1526_v18  ;;  %v2681_v23 = vunpack.i.h.bf16 %v2679_v26  ;;  %v2680_v43 = vunpack.i.l.bf16 %v2679_v26  ;;  %v3492_v19 = vpop.permute.xlu0 %2753  ;;  %1591 = vst [vmem:[#allocation4 + $0x128] sm:$0xf] %v1573_v10 }
 0x3b6   :  { %2382 = vmatpush1.bf16.msra.mxu1 %v2381_v7  ;;  %v2756_v54 = vunpack.i.h.bf16 %v3492_v19  ;;  %v2755_v57 = vunpack.i.l.bf16 %v3492_v19 }
 0x3b7   :  { %v1479_v37 = vsel %vm353_vm5, %v2666_v6, %v2681_v23  ;;  %v1480_v49 = vsel %vm353_vm5, %v2681_v23, %v2735_v38  ;;  %v1477_v51 = vsel %vm353_vm5, %v2680_v43, %v2665_v8  ;;  %v1618_v17 = vld [vmem:[#allocation4 + $0x90] sm:$0xff] }
 0x3b8   :  { %1497 = vst [vmem:[#allocation4 + $0xe8] sm:$0xf] %v1479_v37  ;;  %1498 = vst [vmem:[#allocation4 + $0xf0] sm:$0xf] %v1480_v49  ;;  %v2689_v59 = vpop.permute.xlu1 %2688  ;;  %v1435_v46 = vsel %vm303_vm6, %v2756_v54, %v3389_v16  ;;  %v1434_v32 = vsel %vm303_vm6, %v2755_v57, %v2756_v54  ;;  %v1619_v2 = vld [vmem:[#allocation4 + $0x98] sm:$0xff] }
 0x3b9   :  { %1495 = vst [vmem:[#allocation4 + $0xd8] sm:$0xf] %v1477_v51  ;;  %v2691_v61 = vunpack.i.h.bf16 %v2689_v59  ;;  %v2690_v63 = vunpack.i.l.bf16 %v2689_v59  ;;  %1452 = vst [vmem:[#allocation4 + $0xc8] sm:$0xf0] %v1435_v46  ;;  %v3508_v6 = vpop.permute.xlu0 %2763 }
 0x3ba   :  { %1451 = vst [vmem:[#allocation4 + $0xc0] sm:$0xf0] %v1434_v32  ;;  %v2766_v1 = vunpack.i.h.bf16 %v3508_v6  ;;  %v2765_v16 = vunpack.i.l.bf16 %v3508_v6 }
 0x3bb   :  { %v1208_v8 = vsel %vm74_vm2, %v2641_v5, %v2690_v63  ;;  %v1209_v0 = vsel %vm74_vm2, %v2690_v63, %v2691_v61 }
 0x3bc   :  { %v1628_v38 = vld [vmem:[#allocation4 + $0xe0] sm:$0xff]  ;;  %1226 = vst [vmem:[#allocation4 + $0x18] sm:$0xf] %v1208_v8  ;;  %1227 = vst [vmem:[#allocation4 + $0x20] sm:$0xf] %v1209_v0  ;;  %v2699_v62 = vpop.permute.xlu1 %2698  ;;  %v1531_v42 = vsel %vm402_vm7, %v2765_v16, %v2766_v1 }
 0x3bd   :  { %v2383_v45 = vpack.c.bf16 %v1628_v38, %v1619_v2  ;;  %v2701_v15 = vunpack.i.h.bf16 %v2699_v62  ;;  %v2700_v31 = vunpack.i.l.bf16 %v2699_v62  ;;  %1549 = vst [vmem:[#allocation4 + $0x108] sm:$0xf0] %v1531_v42  ;;  %v2774_v5 = vpop.permute.xlu0 %2773  ;;  %v1637_v37 = vld [vmem:[#allocation4 + $0x128] sm:$0xf]  ;;  %v1602_v38 = vld [vmem:[#allocation4 + $0x10] sm:$0xff] }
 0x3be   :  { %v2776_v60 = vunpack.i.h.bf16 %v2774_v5  ;;  %v2775_v18 = vunpack.i.l.bf16 %v2774_v5 }
 0x3bf   :  { %2384 = vmatprep.subr.bf16.mxu1 %v2383_v45  ;;  %v1307_v58 = vsel %vm177_vm1, %v2651_v9, %v2700_v31  ;;  %v1308_v21 = vsel %vm177_vm1, %v2700_v31, %v2701_v15 }
 0x3c0   :  { %v1627_v13 = vld [vmem:[#allocation4 + $0xd8] sm:$0xff]  ;;  %1325 = vst [vmem:[#allocation4 + $0x60] sm:$0xf] %v1307_v58  ;;  %1326 = vst [vmem:[#allocation4 + $0x68] sm:$0xf] %v1308_v21  ;;  %v3523_v26 = vpop.permute.xlu1 %2708  ;;  %v1264_v23 = vsel %vm128_vm4, %v2716_v28, %v2775_v18  ;;  %v1265_v43 = vsel %vm128_vm4, %v2775_v18, %v2776_v60 }
 0x3c1   :  { %v2385_v7 = vpack.c.bf16 %v1627_v13, %v1618_v17  ;;  %v2711_v34 = vunpack.i.h.bf16 %v3523_v26  ;;  %v2710_v9 = vunpack.i.l.bf16 %v3523_v26  ;;  %1282 = vst [vmem:[#allocation4 + $0x38] sm:$0xf0] %v1264_v23  ;;  %1283 = vst.msk [vmem:[#allocation4 + $0x40] sm:$0xf0] %vm155_vm10, %v1265_v43  ;;  %v1348_v10 = vpop.permute.xlu0 %1347 }
 0x3c2   :  { %v1358_v28 = vsel %vm225_vm3, %v2726_v50, %v1348_v10 }
 0x3c3   :  { %2386 = vmatpush1.bf16.msra.mxu1 %v2385_v7  ;;  %v1210_v49 = vsel %vm74_vm2, %v2691_v61, %v2710_v9  ;;  %v1211_v29 = vsel %vm74_vm2, %v2710_v9, %v2711_v34  ;;  %1376 = vst [vmem:[#allocation4 + $0x80] sm:$0xf0] %v1358_v28  ;;  %v1611_v61 = vld [vmem:[#allocation4 + $0x58] sm:$0xff] }
 0x3c4   :  { %2285 = vmatprep.subr.msk.mxu1 %vm528_vm9, %v1637_v37  ;;  %1228 = vst [vmem:[#allocation4 + $0x28] sm:$0xf] %v1210_v49  ;;  %1229 = vst [vmem:[#allocation4 + $0x30] sm:$0xf] %v1211_v29  ;;  %v3540_v51 = vpop.permute.xlu1 %2718  ;;  %v1603_v32 = vld [vmem:[#allocation4 + $0x18] sm:$0xff]  ;;  %v2389_v42 = vpack.c.bf16 %v1611_v61, %v1602_v38  ;;  %v1629_v37 = vld [vmem:[#allocation4 + $0xe8] sm:$0xff] }
 0x3c5   :  { %v2721_v54 = vunpack.i.h.bf16 %v3540_v51  ;;  %v2720_v59 = vunpack.i.l.bf16 %v3540_v51  ;;  %v3544_v46 = vpop.permute.xlu0 %1521  ;;  %v1620_v61 = vld [vmem:[#allocation4 + $0xa0] sm:$0xff] }
 0x3c6   :  { %v1532_v50 = vsel %vm402_vm7, %v2766_v1, %v3544_v46  ;;  %v2393_v22 = vpack.c.bf16 %v1629_v37, %v1620_v61  ;;  %v1604_v38 = vld [vmem:[#allocation4 + $0x20] sm:$0xff] }
 0x3c7   :  { %v1309_v63 = vsel %vm177_vm1, %v2701_v15, %v2720_v59  ;;  %v1310_v14 = vsel %vm177_vm1, %v2720_v59, %v2721_v54  ;;  %v1612_v8 = vld [vmem:[#allocation4 + $0x60] sm:$0xff]  ;;  %1550 = vst [vmem:[#allocation4 + $0x110] sm:$0xf0] %v1532_v50 }
 0x3c8   :  { %1327 = vst [vmem:[#allocation4 + $0x70] sm:$0xf] %v1309_v63  ;;  %1328 = vst [vmem:[#allocation4 + $0x78] sm:$0xf] %v1310_v14  ;;  %v2729_v0 = vpop.permute.xlu1 %2728  ;;  %v2387_v2 = vpack.c.bf16 %v1612_v8, %v1603_v32  ;;  %v1613_v32 = vld [vmem:[#allocation4 + $0x68] sm:$0xff] }
 0x3c9   :  { %v2731_v62 = vunpack.i.h.bf16 %v2729_v0  ;;  %v2730_v45 = vunpack.i.l.bf16 %v2729_v0  ;;  %v1350_v31 = vpop.permute.xlu0 %1349 }
 0x3ca   :  { %2388 = vmatprep.subr.bf16.mxu0 %v2387_v2  ;;  %v1359_v58 = vsel %vm225_vm3, %v1348_v10, %v1350_v31 }
 0x3cb   :  { %v1433_v15 = vsel %vm303_vm6, %v2731_v62, %v2755_v57  ;;  %v1431_v1 = vsel %vm303_vm6, %v2676_v53, %v2730_v45  ;;  %v1432_v5 = vsel %vm303_vm6, %v2730_v45, %v2731_v62  ;;  %2390 = vmatpush1.bf16.msra.mxu0 %v2389_v42  ;;  %1377 = vst.msk [vmem:[#allocation4 + $0x88] sm:$0xf0] %vm155_vm10, %v1359_v58 }
 0x3cc   :  { %1450 = vst [vmem:[#allocation4 + $0xb8] sm:$0xf0] %v1433_v15  ;;  %1448 = vst [vmem:[#allocation4 + $0xa8] sm:$0xf0] %v1431_v1  ;;  %v2739_v21 = vpop.permute.xlu1 %2738  ;;  %v2397_v45 = vpack.c.bf16 %v1613_v32, %v1604_v38 }
 0x3cd   :  { %1449 = vst [vmem:[#allocation4 + $0xb0] sm:$0xf0] %v1432_v5  ;;  %v2741_v60 = vunpack.i.h.bf16 %v2739_v21  ;;  %v2740_v18 = vunpack.i.l.bf16 %v2739_v21  ;;  %v3561_v19 = vpop.permute.xlu0 %2788 }
 0x3ce   :  { %v2791_v17 = vunpack.i.h.bf16 %v3561_v19  ;;  %v2790_v13 = vunpack.i.l.bf16 %v3561_v19 }
 0x3cf   :  { %v1530_v35 = vsel %vm402_vm7, %v2741_v60, %v2765_v16  ;;  %v1528_v53 = vsel %vm402_vm7, %v2686_v39, %v2740_v18  ;;  %v1529_v57 = vsel %vm402_vm7, %v2740_v18, %v2741_v60  ;;  %v1614_v63 = vld [vmem:[#allocation4 + $0x70] sm:$0xff] }
 0x3d0   :  { %1548 = vst [vmem:[#allocation4 + $0x100] sm:$0xf0] %v1530_v35  ;;  %1546 = vst [vmem:[#allocation4 + $0xf0] sm:$0xf0] %v1528_v53  ;;  %v3572_v7 = vpop.permute.xlu1 %2748  ;;  %v1579_v47 = vsel %vm450_vm8, %v2790_v13, %v2791_v17 }
 0x3d1   :  { %1547 = vst [vmem:[#allocation4 + $0xf8] sm:$0xf0] %v1529_v57  ;;  %v2751_v23 = vunpack.i.h.bf16 %v3572_v7  ;;  %v2750_v6 = vunpack.i.l.bf16 %v3572_v7  ;;  %1597 = vst [vmem:[#allocation4 + $0x158] sm:$0xf] %v1579_v47 }
 0x3d3   :  { %v1574_v39 = vsel %vm450_vm8, %v2746_v25, %v2751_v23  ;;  %v1572_v16 = vsel %vm450_vm8, %v2750_v6, %v2745_v20  ;;  %v1621_v28 = vld [vmem:[#allocation4 + $0xa8] sm:$0xff]  ;;  %v1623_v1 = vld [vmem:[#allocation4 + $0xb8] sm:$0xff] }
 0x3d4   :  { %1592 = vst [vmem:[#allocation4 + $0x130] sm:$0xf] %v1574_v39  ;;  %1590 = vst [vmem:[#allocation4 + $0x120] sm:$0xf] %v1572_v16  ;;  %v2759_v43 = vpop.permute.xlu1 %2758  ;;  %v1622_v60 = vld [vmem:[#allocation4 + $0xb0] sm:$0xff] }
 0x3d5   :  { %v2761_v9 = vunpack.i.h.bf16 %v2759_v43  ;;  %v2760_v10 = vunpack.i.l.bf16 %v2759_v43  ;;  %v1615_v43 = vld [vmem:[#allocation4 + $0x78] sm:$0xff] }
 0x3d7   :  { %v1484_v49 = vsel %vm353_vm5, %v2761_v9, %v2615_v33  ;;  %v1482_v29 = vsel %vm353_vm5, %v2736_v24, %v2760_v10  ;;  %v1483_v25 = vsel %vm353_vm5, %v2760_v10, %v2761_v9  ;;  %v1630_v52 = vld [vmem:[#allocation4 + $0xf0] sm:$0xff]  ;;  %v1605_v33 = vld [vmem:[#allocation4 + $0x28] sm:$0xff] }
 0x3d8   :  { %1502 = vst [vmem:[#allocation4 + $0x110] sm:$0xf] %v1484_v49  ;;  %1500 = vst [vmem:[#allocation4 + $0x100] sm:$0xf] %v1482_v29  ;;  %v2769_v20 = vpop.permute.xlu1 %2768  ;;  %v2391_v59 = vpack.c.bf16 %v1630_v52, %v1621_v28  ;;  %v2395_v2 = vpack.c.bf16 %v1614_v63, %v1605_v33  ;;  %v1631_v26 = vld [vmem:[#allocation4 + $0xf8] sm:$0xff] }
 0x3d9   :  { %1501 = vst [vmem:[#allocation4 + $0x108] sm:$0xf] %v1483_v25  ;;  %v2771_v14 = vunpack.i.h.bf16 %v2769_v20  ;;  %v2770_v50 = vunpack.i.l.bf16 %v2769_v20  ;;  %v2401_v53 = vpack.c.bf16 %v1631_v26, %v1622_v60 }
 0x3da   :  { %2392 = vmatprep.subr.bf16.mxu0 %v2391_v59  ;;  %v1625_v59 = vld [vmem:[#allocation4 + $0xc8] sm:$0xff] }
 0x3db   :  { %v1212_v24 = vsel %vm74_vm2, %v2711_v34, %v2770_v50  ;;  %v1213_v8 = vsel %vm74_vm2, %v2770_v50, %v2771_v14  ;;  %2394 = vmatpush1.bf16.msra.mxu0 %v2393_v22  ;;  %v1636_v0 = vld [vmem:[#allocation4 + $0x120] sm:$0xf]  ;;  %v1638_v10 = vld [vmem:[#allocation4 + $0x130] sm:$0xf] }
 0x3dc   :  { %1230 = vst [vmem:[#allocation4 + $0x38] sm:$0xf] %v1212_v24  ;;  %1231 = vst.msk [vmem:[#allocation4 + $0x40] sm:$0xf] %vm101_vm0, %v1213_v8  ;;  %v2779_v62 = vpop.permute.xlu1 %2778  ;;  %2286 = vmatpush1.msk.msra.mxu1 %vm528_vm9, %v1636_v0  ;;  %v1624_v14 = vld [vmem:[#allocation4 + $0xc0] sm:$0xff]  ;;  %v1626_v50 = vld [vmem:[#allocation4 + $0xd0] sm:$0xff] }
 0x3dd   :  { %v2781_v42 = vunpack.i.h.bf16 %v2779_v62  ;;  %v2780_v31 = vunpack.i.l.bf16 %v2779_v62  ;;  %2396 = vmatprep.subr.bf16.mxu1 %v2395_v2  ;;  %2287 = vmatmul.mubr.msk.f32.vlgmr.msra.gmra.mrb[4].mxu1 %vm524_vm11, %v3599_v41  ;;  %v1643_v24 = vld [vmem:[#allocation4 + $0x158] sm:$0xf] }
 0x3de   :  { %2398 = vmatpush1.bf16.msra.mxu1 %v2397_v45  ;;  %1881 = vmatprep.mubr.f32.mxu1 %v2805_v48 }
 0x3df   :  { %v1311_v34 = vsel %vm177_vm1, %v2721_v54, %v2780_v31  ;;  %v1312_v15 = vsel %vm177_vm1, %v2780_v31, %v2781_v42  ;;  %v1632_v5 = vld [vmem:[#allocation4 + $0x100] sm:$0xff]  ;;  %v1634_v49 = vld [vmem:[#allocation4 + $0x110] sm:$0xff]  ;;  %vm3776_vm1 = vmmov 0  }
 0x3e0   :  { %1329 = vst [vmem:[#allocation4 + $0x80] sm:$0xf] %v1311_v34  ;;  %1330 = vst.msk [vmem:[#allocation4 + $0x88] sm:$0xf] %vm101_vm0, %v1312_v15  ;;  %v2784_v58 = vpop.permute.xlu1 %2783  ;;  %v2399_v21 = vpack.c.bf16 %v1632_v5, %v1623_v1  ;;  %v2407_v19 = vpack.c.bf16 %v1634_v49, %v1625_v59  ;;  %v1633_v61 = vld [vmem:[#allocation4 + $0x108] sm:$0xff] }
 0x3e1   :  { %v2786_v18 = vunpack.i.h.bf16 %v2784_v58  ;;  %v2785_v35 = vunpack.i.l.bf16 %v2784_v58  ;;  %v2409_v32 = vpack.c.bf16 %v1633_v61, %v1624_v14 }
 0x3e2   :  { %2400 = vmatprep.subr.bf16.mxu1 %v2399_v21 }
 0x3e3   :  { %v1575_v51 = vsel %vm450_vm8, %v2751_v23, %v2785_v35  ;;  %v1576_v54 = vsel %vm450_vm8, %v2785_v35, %v2786_v18  ;;  %2402 = vmatpush1.bf16.msra.mxu1 %v2401_v53  ;;  %v1607_v37 = vld [vmem:[#allocation4 + $0x38] sm:$0xff] }
 0x3e4   :  { %1593 = vst [vmem:[#allocation4 + $0x138] sm:$0xf] %v1575_v51  ;;  %1594 = vst [vmem:[#allocation4 + $0x140] sm:$0xf] %v1576_v54  ;;  %v1565_v57 = vpop.permute.xlu1 %1564 }
 0x3e5   :  { %v1577_v6 = vsel %vm450_vm8, %v2786_v18, %v1565_v57  ;;  %v1578_v47 = vsel %vm450_vm8, %v1565_v57, %v2790_v13 }
 0x3e6   :  { %1595 = vst [vmem:[#allocation4 + $0x148] sm:$0xf] %v1577_v6  ;;  %1596 = vst [vmem:[#allocation4 + $0x150] sm:$0xf] %v1578_v47 }
 0x3e7   :  { %v1616_v23 = vld [vmem:[#allocation4 + $0x80] sm:$0xff]  ;;  %v1617_v28 = vld [vmem:[#allocation4 + $0x88] sm:$0xff] }
 0x3e8   :  { %v1524_v39 = vpop.permute.xlu1 %1523  ;;  %v2403_v25 = vpack.c.bf16 %v1616_v23, %v1607_v37 }
 0x3e9   :  { %v1533_v7 = vsel %vm402_vm7, %v3544_v46, %v1524_v39  ;;  %v1606_v46 = vld [vmem:[#allocation4 + $0x30] sm:$0xff] }
 0x3ea   :  { %1551 = vst.msk [vmem:[#allocation4 + $0x118] sm:$0xf0] %vm155_vm10, %v1533_v7  ;;  %v2405_v20 = vpack.c.bf16 %v1615_v43, %v1606_v46  ;;  %v3669_v43 = vld [vmem:[%s3768_s7 + $0x8] ss:$0 sm:$0xff]  ;;  %v2029_v46 = vld [vmem:[%s3773_s5] sm:$0xf] }
 0x3eb   :  { %v1639_v16 = vld [vmem:[#allocation4 + $0x138] sm:$0xf]  ;;  %v1640_v52 = vld [vmem:[#allocation4 + $0x140] sm:$0xf] }
 0x3ec   :  { %v1571_v9 = vpop.permute.xlu1 %1570  ;;  %2288 = vmatprep.subr.msk.mxu0 %vm528_vm9, %v1639_v16 }
 0x3ed   :  { %v1580_v13 = vsel %vm450_vm8, %v2791_v17, %v1571_v9  ;;  %2289 = vmatpush1.msk.msra.mxu0 %vm528_vm9, %v1638_v10  ;;  %v1641_v29 = vld [vmem:[#allocation4 + $0x148] sm:$0xf]  ;;  %v1608_v17 = vld [vmem:[#allocation4 + $0x40] sm:$0xff]  ;;  %v1642_v8 = vld [vmem:[#allocation4 + $0x150] sm:$0xf] }
 0x3ee   :  { %1598 = vst.msk [vmem:[#allocation4 + $0x160] sm:$0xf] %vm101_vm0, %v1580_v13  ;;  %2290 = vmatmul.mubr.msk.f32.vlgmr.msra.gmra.mrb[6].mxu0 %vm524_vm11, %v3599_v41  ;;  %2291 = vmatprep.subr.msk.mxu1 %vm528_vm9, %v1641_v29  ;;  %v2412_v63 = vpack.c.bf16 %v1617_v28, %v1608_v17 }
 0x3ef   :  { %2404 = vmatprep.subr.bf16.mxu0 %v2403_v25  ;;  %2292 = vmatpush1.msk.msra.mxu1 %vm528_vm9, %v1640_v52 }
 0x3f0   :  { %2406 = vmatpush1.bf16.msra.mxu0 %v2405_v20  ;;  %2411 = vmatprep.subr.bf16.mxu1 %v2806_v3 }
 0x3f1   :  { %2408 = vmatprep.subr.bf16.mxu0 %v2407_v19  ;;  %2293 = vmatmul.mubr.msk.f32.vlgmr.msra.gmra.mrb[6].mxu1 %vm524_vm11, %v3599_v41  ;;  %v1635_v22 = vld [vmem:[#allocation4 + $0x118] sm:$0xff] }
 0x3f2   :  { %2413 = vmatpush3.bf16.msra.mxu1 %v2412_v63  ;;  %v2415_v33 = vpack.c.bf16 %v1635_v22, %v1626_v50  ;;  %1952 = vmatprep.mubr.f32.mxu0 %v2805_v48 }
 0x3f3   :  { %2414 = vmatprep.subr.bf16.mxu1 %v2806_v3  ;;  %2338 = vmatprep.mubr.msk.f32.mxu1 %vm3776_vm1, %v2805_v48 }
 0x3f4   :  { %2410 = vmatpush1.bf16.msra.mxu0 %v2409_v32 }
 0x3f5   :  { %2294 = vmatprep.subr.msk.mxu0 %vm528_vm9, %v1643_v24  ;;  %v1644_v0 = vld [vmem:[#allocation4 + $0x160] sm:$0xf] }
 0x3f6   :  { %2416 = vmatpush3.bf16.msra.mxu1 %v2415_v33 }
 0x3f7   :  { %2336 = vmatprep.subr.mxu1 %v2805_v48 }
 0x3f8   :  { %2295 = vmatpush1.msk.msra.mxu0 %vm528_vm9, %v1642_v8 }
 0x3f9   :  { %2296 = vmatmul.mubr.msk.f32.vlgmr.msra.gmra.mrb[8].mxu0 %vm524_vm11, %v3599_v41 }
 0x3fa   :  { %2337 = vmatpush3.msk.msra.mxu1 %vm528_vm9, %v1644_v0 }
 0x3fb   :  { %2339 = vmatmul.mubr.msk.f32.vlgmr.msra.gmra.mrb[8].mxu1 %vm524_vm11, %v3599_v41 }
 0x4b0   :  { %v1741_v3 = vpop.f32.mrb[4].mxu1 }
 0x4b1   :  { %v2031_v2 = vmul.f32 %v1741_v3, %v3190_v56  ;;  %v1743_v38 = vpop.f32.mrb[5].mxu1 }
 0x4b2   :  { %v2032_v62 = vmul.f32 %v1743_v38, %v3192_v40 }
 0x4b3   :  { %v2040_v45 = vsel %vm528_vm9, %v2031_v2, 0.0 }
 0x4b4   :  { %v2041_v48 = vsel %vm528_vm9, %v2032_v62, 0.0 }
 0x4b5   :  { %v2042_v42 = vadd.f32 %v2041_v48, %v2040_v45 }
 0x4c1   :  { %v1812_v31 = vpop.f32.mrb[6].mxu0 }
 0x4c2   :  { %v2033_v26 = vmul.f32 %v1812_v31, %v3200_v12  ;;  %v1814_v34 = vpop.f32.mrb[7].mxu0 }
 0x4c3   :  { %v2034_v15 = vmul.f32 %v1814_v34, %v3202_v55 }
 0x4c4   :  { %v2043_v1 = vsel %vm528_vm9, %v2033_v26, 0.0  ;;  %v1883_v41 = vpop.f32.mrb[6].mxu1 }
 0x4c5   :  { %v2044_v5 = vadd.f32 %v2043_v1, %v2042_v42  ;;  %v2045_v58 = vsel %vm528_vm9, %v2034_v15, 0.0  ;;  %v2035_v21 = vmul.f32 %v1883_v41, %v3209_v27  ;;  %v1885_v60 = vpop.f32.mrb[7].mxu1 }
 0x4c6   :  { %v2036_v18 = vmul.f32 %v1885_v60, %v3212_v30 }
 0x4c7   :  { %v2046_v35 = vadd.f32 %v2045_v58, %v2044_v5  ;;  %v2047_v53 = vsel %vm528_vm9, %v2035_v21, 0.0 }
 0x4c8   :  { %v2049_v51 = vsel %vm528_vm9, %v2036_v18, 0.0 }
 0x4c9   :  { %v2048_v54 = vadd.f32 %v2047_v53, %v2046_v35 }
 0x4cb   :  { %v2050_v57 = vadd.f32 %v2049_v51, %v2048_v54 }
 0x4cc   :  { %v1954_v6 = vpop.f32.mrb[8].mxu0 }
 0x4cd   :  { %v2037_v47 = vmul.f32 %v1954_v6, %v3219_v36  ;;  %v1956_v39 = vpop.f32.mrb[9].mxu0 }
 0x4ce   :  { %v2038_v7 = vmul.f32 %v1956_v39, %v3222_v44  ;;  %v2025_v23 = vpop.f32.mrb[8].mxu1 }
 0x4cf   :  { %v2051_v16 = vsel %vm528_vm9, %v2037_v47, 0.0  ;;  %v2039_v9 = vmul.f32 %v3669_v43, %v2025_v23  ;;  %v2340_v10 = vpop.f32.mrb[9].mxu1 }
 0x4d0   :  { %v2052_v37 = vadd.f32 %v2051_v16, %v2050_v57  ;;  %v2053_v49 = vsel %vm528_vm9, %v2038_v7, 0.0  ;;  %v2030_v10 = vld [vmem:[%s3774_s6] sm:$0xf] }
 0x4d1   :  { %v2055_v13 = vsel %vm101_vm0, %v2039_v9, 0.0 }
 0x4d2   :  { %v2054_v29 = vadd.f32 %v2053_v49, %v2052_v37 }
 0x4d4   :  { %v2056_v25 = vadd.f32 %v2055_v13, %v2054_v29  ;;  %v2146_v29 = vld [vmem:[%s3766_s0 + $0x2] sm:$0xff] }
 0x4d6   :  { %2057 = vadd.xlane.f32.xlu0 %v2056_v25  ;;  %v2147_v25 = vld [vmem:[%s3766_s0 + $0xa] sm:$0xff] }
 0x4ec   :  { %2120 = vperm.xlu0 %2610, %v2029_v46   ;;  %v2148_v46 = vld [vmem:[%s3766_s0 + $0x12] sm:$0x3] }
 0x563   :  { %v2058_v28 = vpop.xlane.xlu0 %2057 }
 0x564   :  { %v2059_v52 = vmul.f32 0.0009765625, %v2058_v28  ;;  %v2149_v28 = vunpack.c.l.bf16 %v2146_v29 }
 0x566   :  { %v3677_v20 = vsub.f32 %v1741_v3, %v2059_v52  ;;  %v3679_v59 = vsub.f32 %v1743_v38, %v2059_v52  ;;  %v3681_v19 = vsub.f32 %v1812_v31, %v2059_v52  ;;  %v3683_v17 = vsub.f32 %v1814_v34, %v2059_v52 }
 0x567   :  { %v3685_v61 = vsub.f32 %v1883_v41, %v2059_v52  ;;  %v3693_v22 = vsub.f32 %v1885_v60, %v2059_v52  ;;  %v2066_v8 = vsub.f32 %v1954_v6, %v2059_v52  ;;  %v2067_v38 = vsub.f32 %v1956_v39, %v2059_v52 }
 0x568   :  { %v2069_v63 = vmul.f32 %v3677_v20, %v3677_v20  ;;  %v2070_v14 = vmul.f32 %v3679_v59, %v3679_v59  ;;  %v2071_v50 = vmul.f32 %v3681_v19, %v3681_v19  ;;  %v2072_v32 = vmul.f32 %v3683_v17, %v3683_v17 }
 0x569   :  { %v2073_v0 = vmul.f32 %v3685_v61, %v3685_v61  ;;  %v2074_v62 = vmul.f32 %v3693_v22, %v3693_v22  ;;  %v2068_v31 = vsub.f32 %v2025_v23, %v2059_v52  ;;  %v2075_v26 = vmul.f32 %v2066_v8, %v2066_v8 }
 0x56a   :  { %v2078_v33 = vmul.f32 %v2069_v63, %v3190_v56  ;;  %v2079_v24 = vmul.f32 %v2070_v14, %v3192_v40  ;;  %v2080_v3 = vmul.f32 %v2071_v50, %v3200_v12  ;;  %v2081_v45 = vmul.f32 %v2072_v32, %v3202_v55 }
 0x56b   :  { %v2082_v34 = vmul.f32 %v2073_v0, %v3209_v27  ;;  %v2076_v41 = vmul.f32 %v2067_v38, %v2067_v38  ;;  %v2083_v5 = vmul.f32 %v2074_v62, %v3212_v30  ;;  %v2077_v60 = vmul.f32 %v2068_v31, %v2068_v31 }
 0x56c   :  { %v2087_v2 = vsel %vm528_vm9, %v2078_v33, 0.0  ;;  %v2088_v48 = vsel %vm528_vm9, %v2079_v24, 0.0  ;;  %v2090_v15 = vsel %vm528_vm9, %v2080_v3, 0.0  ;;  %v2092_v58 = vsel %vm528_vm9, %v2081_v45, 0.0 }
 0x56d   :  { %v2089_v42 = vadd.f32 %v2088_v48, %v2087_v2  ;;  %v2084_v18 = vmul.f32 %v2075_v26, %v3219_v36  ;;  %v2094_v35 = vsel %vm528_vm9, %v2082_v34, 0.0  ;;  %v2085_v51 = vmul.f32 %v2076_v41, %v3222_v44 }
 0x56e   :  { %v2096_v54 = vsel %vm528_vm9, %v2083_v5, 0.0  ;;  %v2086_v6 = vmul.f32 %v3669_v43, %v2077_v60  ;;  %v2150_v52 = vunpack.c.h.bf16 %v2146_v29  ;;  %v2151_v63 = vunpack.c.l.bf16 %v2147_v25 }
 0x56f   :  { %v2091_v1 = vadd.f32 %v2090_v15, %v2089_v42  ;;  %v2098_v47 = vsel %vm528_vm9, %v2084_v18, 0.0  ;;  %v2100_v7 = vsel %vm528_vm9, %v2085_v51, 0.0  ;;  %v2152_v14 = vunpack.c.h.bf16 %v2147_v25  ;;  %v2121_v42 = vpop.permute.xlu0 %2120 }
 0x570   :  { %v2102_v16 = vsel %vm101_vm0, %v2086_v6, 0.0  ;;  %v2153_v50 = vunpack.c.l.bf16 %v2148_v46  ;;  %v2158_v33 = vcombine.high %v2149_v28, %v2149_v28  ;;  %v2159_v24 = vcombine.high %v2150_v52, %v2150_v52 }
 0x571   :  { %v2093_v21 = vadd.f32 %v2092_v58, %v2091_v1  ;;  %v2160_v0 = vcombine.high %v2151_v63, %v2151_v63  ;;  %v2161_v3 = vcombine.high %v2152_v14, %v2152_v14  ;;  %vm2259_vm0 = vcmask 797698  }
 0x572   :  { %vm2260_vm2 = vmor %vm2259_vm0, %vm1159_vm13 }
 0x573   :  { %v2095_v53 = vadd.f32 %v2094_v35, %v2093_v21 }
 0x575   :  { %v2097_v57 = vadd.f32 %v2096_v54, %v2095_v53 }
 0x577   :  { %v2099_v39 = vadd.f32 %v2098_v47, %v2097_v57 }
 0x579   :  { %v2101_v23 = vadd.f32 %v2100_v7, %v2099_v39 }
 0x57b   :  { %v2103_v9 = vadd.f32 %v2102_v16, %v2101_v23 }
 0x57d   :  { %2104 = vadd.xlane.f32.xlu1 %v2103_v9 }
 0x58e   :  { %2134 = vperm.xlu1 %2611, %v2030_v10  }
 0x60a   :  { %v2105_v37 = vpop.xlane.xlu1 %2104 }
 0x60b   :  { %v2106_v49 = vmul.f32 0.0009765625, %v2105_v37 }
 0x60d   :  { %v2107_v13 = vadd.f32 1e-05, %v2106_v49 }
 0x60e   :  { %v2135_v60 = vpop.permute.xlu1 %2134 }
 0x60f   :  { %2794 = vrsqrt.f32 %v2107_v13 }
 0x619   :  { %v2795_v32 = vpop.eup %2794 }
 0x61a   :  { %v2109_v2 = vmul.f32 %v2795_v32, %v3677_v20  ;;  %v2110_v62 = vmul.f32 %v2795_v32, %v3679_v59  ;;  %v2111_v45 = vmul.f32 %v2795_v32, %v3681_v19  ;;  %v2112_v48 = vmul.f32 %v2795_v32, %v3683_v17 }
 0x61b   :  { %v2113_v26 = vmul.f32 %v2795_v32, %v3685_v61  ;;  %v2114_v34 = vmul.f32 %v2795_v32, %v3693_v22  ;;  %v2115_v15 = vmul.f32 %v2795_v32, %v2066_v8  ;;  %v2116_v1 = vmul.f32 %v2795_v32, %v2067_v38 }
 0x61c   :  { %v2117_v41 = vmul.f32 %v2795_v32, %v2068_v31  ;;  %v2123_v5 = vmul.f32 %v2121_v42, %v2109_v2  ;;  %v2124_v58 = vmul.f32 %v2121_v42, %v2110_v62  ;;  %v2125_v21 = vmul.f32 %v2121_v42, %v2111_v45 }
 0x61d   :  { %v2126_v18 = vmul.f32 %v2121_v42, %v2112_v48  ;;  %v2127_v20 = vmul.f32 %v2121_v42, %v2113_v26  ;;  %v2128_v35 = vmul.f32 %v2121_v42, %v2114_v34  ;;  %v2129_v59 = vmul.f32 %v2121_v42, %v2115_v15 }
 0x61e   :  { %v2130_v53 = vmul.f32 %v2121_v42, %v2116_v1  ;;  %v2131_v19 = vmul.f32 %v2121_v42, %v2117_v41  ;;  %v2137_v51 = vadd.f32 %v2135_v60, %v2123_v5  ;;  %v2138_v17 = vadd.f32 %v2135_v60, %v2124_v58 }
 0x61f   :  { %v2139_v54 = vadd.f32 %v2135_v60, %v2125_v21  ;;  %v2140_v57 = vadd.f32 %v2135_v60, %v2126_v18  ;;  %v2141_v61 = vadd.f32 %v2135_v60, %v2127_v20  ;;  %v2142_v6 = vadd.f32 %v2135_v60, %v2128_v35 }
 0x620   :  { %v2143_v22 = vadd.f32 %v2135_v60, %v2129_v59  ;;  %v2144_v8 = vadd.f32 %v2135_v60, %v2130_v53  ;;  %v2145_v38 = vadd.f32 %v2135_v60, %v2131_v19  ;;  %v2166_v31 = vadd.f32 %v2149_v28, %v2137_v51 }
 0x621   :  { %v2167_v47 = vadd.f32 %v2158_v33, %v2138_v17  ;;  %v2168_v39 = vadd.f32 %v2150_v52, %v2139_v54  ;;  %v2169_v7 = vadd.f32 %v2159_v24, %v2140_v57  ;;  %v2170_v23 = vadd.f32 %v2151_v63, %v2141_v61 }
 0x622   :  { %v2171_v16 = vadd.f32 %v2160_v0, %v2142_v6  ;;  %v2172_v9 = vadd.f32 %v2152_v14, %v2143_v22  ;;  %v2173_v10 = vadd.f32 %v2161_v3, %v2144_v8  ;;  %v2174_v37 = vadd.f32 %v2153_v50, %v2145_v38 }
 0x623   :  { %v2175_v49 = vmax.f32 %v2166_v31, 0.0  ;;  %v2176_v13 = vmax.f32 %v2167_v47, 0.0  ;;  %v2177_v29 = vmax.f32 %v2168_v39, 0.0  ;;  %v2178_v25 = vmax.f32 %v2169_v7, 0.0 }
 0x624   :  { %v2179_v46 = vmax.f32 %v2170_v23, 0.0  ;;  %v2180_v32 = vmax.f32 %v2171_v16, 0.0  ;;  %v2181_v2 = vmax.f32 %v2172_v9, 0.0  ;;  %v2182_v62 = vmax.f32 %v2173_v10, 0.0 }
 0x625   :  { %v2183_v45 = vmax.f32 %v2174_v37, 0.0  ;;  %v2184_v48 = vmul.f32 %v2175_v49, %v3190_v56  ;;  %v2185_v28 = vmul.f32 %v2176_v13, %v3192_v40  ;;  %v2186_v52 = vmul.f32 %v2177_v29, %v3200_v12 }
 0x626   :  { %v2187_v63 = vmul.f32 %v2178_v25, %v3202_v55  ;;  %v2188_v14 = vmul.f32 %v2179_v46, %v3209_v27  ;;  %v2189_v50 = vmul.f32 %v2180_v32, %v3212_v30  ;;  %v2190_v33 = vmul.f32 %v2181_v2, %v3219_v36 }
 0x627   :  { %v2191_v24 = vmul.f32 %v2182_v62, %v3222_v44  ;;  %v2192_v0 = vmul.f32 %v3669_v43, %v2183_v45  ;;  %v2299_v3 = vpack.c.bf16 %v2185_v28, %v2184_v48 }
 0x628   :  { %v2300_v42 = vpack.c.bf16 %v2187_v63, %v2186_v52  ;;  %v2301_v56 = vpack.c.bf16 %v2189_v50, %v2188_v14 }
 0x629   :  { %v2202_v26 = vpack.c.bf16 %v2192_v0, %v2192_v0  ;;  %v2220_v40 = vrot.slane %v2299_v3, %v3267_v11  ;;  %v2302_v12 = vpack.c.bf16 %v2191_v24, %v2190_v33 }
 0x62a   :  { %v2227_v55 = vrot.slane %v2300_v42, %v3267_v11  ;;  %v2237_v27 = vrot.slane %v2301_v56, %v3267_v11 }
 0x62b   :  { %v2244_v30 = vrot.slane %v2302_v12, %v3267_v11  ;;  %v2252_v36 = vrot.slane %v2202_v26, %v3267_v11 }
 0x62c   :  { %v2228_v44 = vcombine.low %v2220_v40, %v2227_v55 }
 0x62d   :  { %v2245_v43 = vcombine.low %v2237_v27, %v2244_v30  ;;  %2258 = vst.msk [vmem:[%s3769_s8 + $0x12] sm:$0x3] %vm1157_vm15, %v2252_v36 }
 0x62e   :  { %2256 = vst [vmem:[%s3769_s8 + $0x2] sm:$0xff] %v2228_v44  ;;  %2261 = vst.msk [vmem:[%s3769_s8 + $0x12] sm:$0xf] %vm2260_vm2, %v2808_v4 }
 0x62f   :  { %2257 = vst [vmem:[%s3769_s8 + $0xa] sm:$0xff] %v2245_v43 }

// kernel: _lambda_.7
= control target key start
LH: loop header
LB: loop body
LE: loop exit
PB: predicated region body
PF: predicated region fallthrough
CT: control target
= control target key end

     0   :  { %vm55_vm0 = vcmask 404480   ;;  %s1265_s25 = smov 127   ;;  %vm67_vm1 = vcmask 408580   ;;  %v1266_v21 = vmov 0.0|0.0   ;;  %s1267_s26 = smov 111   ;;  %v1269_v24 = vmov 0.0   ;;  %s1544_s0 = inlined_call_operand.vmem [shape: bf16[4,4,324], index: 0, kind: input, shape index: {}]   ;;  %s1545_s1 = inlined_call_operand.vmem [shape: f32[8,36], index: 1, kind: input, shape index: {}]   ;;  %s1546_s7 = inlined_call_operand.vmem [shape: f32[1,306], index: 7, kind: input, shape index: {}]   ;;  %s1547_s2 = inlined_call_operand.vmem [shape: f32[8,1], index: 2, kind: input, shape index: {}, may-alias: {2,5,9}]   ;;  %s1548_s3 = inlined_call_operand.vmem [shape: f32[8,1], index: 3, kind: input, shape index: {}, may-alias: {3,6,10}]   ;;  %s1549_s4 = inlined_call_operand.vmem [shape: f32[8,72], index: 4, kind: input, shape index: {}]   ;;  %s1550_s8 = inlined_call_operand.vmem [shape: f32[8,4], index: 8, kind: input, shape index: {}]   ;;  %s1551_s5 = inlined_call_operand.vmem [shape: f32[8,1], index: 5, kind: input, shape index: {}, may-alias: {2,5,9}]   ;;  %s1552_s6 = inlined_call_operand.vmem [shape: f32[8,1], index: 6, kind: input, shape index: {}, may-alias: {3,6,10}]   ;;  %s1553_s10 = inlined_call_operand.vmem [shape: f32[8,1], index: 10, kind: input, shape index: {}, may-alias: {3,6,10}]   ;;  %s1554_s9 = inlined_call_operand.vmem [shape: f32[8,1], index: 9, kind: input, shape index: {}, may-alias: {2,5,9}]   ;;  %s1555_s11 = inlined_call_operand.vmem [shape: bf16[8,562], index: 11, kind: output, shape index: {}]  }
   0x1   :  { %v40_v0 = vld [vmem:[%s1544_s0] sm:$0x3f]  ;;  %v1028_v1 = vld [vmem:[%s1544_s0 + $0xc] sm:$0x3f]  ;;  %v1029_v2 = vld [vmem:[%s1544_s0 + $0x12] sm:$0x3f]  ;;  %1116 = vmatprep.subr.bf16.mxu1 %v1266_v21  ;;  %255 = vmatprep.mubr.f32.mxu0 %v1269_v24 }
   0x2   :  { %v47_v3 = vunpack.c.l.bf16 %v40_v0  ;;  %v84_v4 = vunpack.c.l.bf16 %v1028_v1  ;;  %v95_v5 = vunpack.c.l.bf16 %v1029_v2  ;;  %v96_v6 = vunpack.c.h.bf16 %v1029_v2  ;;  %v1027_v7 = vld [vmem:[%s1544_s0 + $0x6] sm:$0x3f]  ;;  %s1268_s27 = smov 110   ;;  %s1273_s14 = smov 18  }
   0x3   :  { %v85_v8 = vunpack.c.h.bf16 %v1028_v1  ;;  %v48_v9 = vunpack.c.h.bf16 %v40_v0  ;;  %v57_v10 = vunpack.c.l.bf16 %v1027_v7  ;;  %v58_v11 = vunpack.c.h.bf16 %v1027_v7  ;;  %s1274_s15 = smov 17   ;;  %s1275_s16 = smov 112  }
   0x4   :  { %93 = vst [vmem:[#allocation3 + $0x20] sm:$0xf0] %v84_v4  ;;  %v98_v12 = vcombine.high %v95_v5, %v95_v5  ;;  %100 = vst [vmem:[#allocation3 + $0x30] sm:$0xf] %v95_v5  ;;  %v1162_v13 = vpack.i.bf16 %v84_v4, %v47_v3  ;;  %v88_v14 = vcombine.low %v84_v4, %v84_v4  ;;  %vm1270_vm2 = vmmov 0   ;;  %s1276_s17 = smov 1  }
   0x5   :  { %53 = vst [vmem:[#allocation3] sm:$0xf] %v47_v3  ;;  %v51_v15 = vcombine.high %v47_v3, %v47_v3  ;;  %102 = vst.msk [vmem:[#allocation3 + $0x40] sm:$0xf] %vm55_vm0, %v96_v6  ;;  %v89_v16 = vcombine.low %v85_v8, %v85_v8  ;;  %v62_v17 = vcombine.low %v58_v11, %v58_v11  ;;  %1079 = vmatprep.mubr.msk.f32.mxu1 %vm1270_vm2, %v1269_v24  ;;  %vm75_vm3 = vcmask 1039360  }
   0x6   :  { %66 = vst [vmem:[#allocation3 + $0x8] sm:$0xf0] %v57_v10  ;;  %v61_v18 = vcombine.low %v57_v10, %v57_v10  ;;  %56 = vst.msk [vmem:[#allocation3 + $0x10] sm:$0xf] %vm55_vm0, %v48_v9  ;;  %1163 = vrot.lane.b32.xlu0 %v1162_v13, %s1265_s25  ;;  %vm123_vm4 = vcmask 908288   ;;  %vm152_vm5 = vcmask 900096  }
   0x7   :  { %101 = vst [vmem:[#allocation3 + $0x38] sm:$0xf] %v98_v12  ;;  %92 = vst [vmem:[#allocation3 + $0x18] sm:$0xf0] %v88_v14  ;;  %v1167_v19 = vpack.i.bf16 %v48_v9, %v51_v15  ;;  %v1172_v20 = vpack.i.bf16 %v88_v14, %v89_v16  ;;  %v1182_v22 = vpack.i.bf16 %v62_v17, %v57_v10  ;;  %vm181_vm6 = vcmask 1043456   ;;  %v161_v13 = vld [vmem:[%s1545_s1] sm:$0xff] }
   0x8   :  { %54 = vst [vmem:[#allocation3 + $0x8] sm:$0xf] %v51_v15  ;;  %94 = vst.msk [vmem:[#allocation3 + $0x28] sm:$0xf0] %vm67_vm1, %v89_v16  ;;  %v1187_v23 = vpack.i.bf16 %v61_v18, %v47_v3  ;;  %vm177_vm7 = vcmask 293888   ;;  %v335_v15 = vlaneseq  ;;  %vm354_vm8 = vcmask 408576  }
   0x9   :  { %68 = vst.msk [vmem:[#allocation3 + $0x10] sm:$0xf0] %vm67_vm1, %v62_v17  ;;  %65 = vst [vmem:[#allocation3] sm:$0xf0] %v61_v18  ;;  %1173 = vrot.lane.b32.xlu1 %v1172_v20, %s1265_s25  ;;  %vm418_vm9 = vcmask 552336   ;;  %vm440_vm10 = vcmask 146432  }
   0xa   :  { %1168 = vrot.lane.b32.xlu0 %v1167_v19, %s1265_s25  ;;  %v336_v16 = vshrl.u32 %v335_v15, 7  ;;  %vm458_vm11 = vcmask 138240   ;;  %vm533_vm12 = vcmask 916480   ;;  %vm476_vm13 = vcmask 130048  }
   0xb   :  { %vm494_vm14 = vcmask 7168   ;;  %vm598_vm15 = vcmask 588800  }
   0xc   :  { %v345_v17 = vsub.s32 2, %v336_v16  ;;  %v337_v18 = vsub.s32 0, %v336_v16  ;;  %v341_v20 = vsub.s32 1, %v336_v16 }
   0xd   :  { %1178 = vrot.lane.b32.xlu1 %v1167_v19, %s1267_s26 }
   0xe   :  { %1183 = vrot.lane.b32.xlu0 %v1182_v22, %s1267_s26 }
   0xf   :  { %v163_v53 = vld [vmem:[#allocation3 + $0x8] sm:$0xff] }
  0x10   :  { %v164_v50 = vld [vmem:[#allocation3 + $0x10] sm:$0xff]  ;;  %v162_v54 = vld [vmem:[#allocation3] sm:$0xff] }
  0x11   :  { %1188 = vrot.lane.b32.xlu1 %v1187_v23, %s1267_s26 }
  0x12   :  { %1193 = vrot.lane.b32.xlu0 %v1167_v19, %s1268_s27  ;;  %v39_v19 = vld [vmem:[%s1546_s7] sm:$0x7] }
  0x13   :  { %v1395_v22 = vrot.slane %v39_v19, %v345_v17 }
  0x15   :  { %146 = vrot.lane.b32.xlu1 %v47_v3, %s1268_s27 }
  0x78   :  { %v1164_v25 = vpop.permute.xlu0 %1163 }
  0x79   :  { %v1166_v26 = vunpack.i.h.bf16 %v1164_v25  ;;  %v1165_v31 = vunpack.i.l.bf16 %v1164_v25  ;;  %v1397_v25 = vrot.slane %v39_v19, %v337_v18 }
  0x7b   :  { %v1174_v27 = vpop.permute.xlu1 %1173 }
  0x7c   :  { %v1176_v28 = vunpack.i.h.bf16 %v1174_v27  ;;  %v1175_v29 = vunpack.i.l.bf16 %v1174_v27  ;;  %v1169_v30 = vpop.permute.xlu0 %1168  ;;  %v1399_v27 = vrot.slane %v39_v19, %v341_v20 }
  0x7d   :  { %v1171_v32 = vunpack.i.h.bf16 %v1169_v30  ;;  %v1170_v33 = vunpack.i.l.bf16 %v1169_v30 }
  0x7e   :  { %v109_v34 = vsel %vm75_vm3, %v1176_v28, %v1166_v26  ;;  %v110_v35 = vsel %vm75_vm3, %v1166_v26, %v1175_v29  ;;  %116 = vst.msk [vmem:[#allocation3 + $0x40] sm:$0xf0] %vm67_vm1, %v1175_v29 }
  0x7f   :  { %114 = vst [vmem:[#allocation3 + $0x30] sm:$0xf0] %v109_v34  ;;  %115 = vst [vmem:[#allocation3 + $0x38] sm:$0xf0] %v110_v35  ;;  %v76_v36 = vsel %vm75_vm3, %v1165_v31, %v1170_v33  ;;  %v77_v37 = vsel %vm75_vm3, %v1170_v33, %v1171_v32  ;;  %v1179_v38 = vpop.permute.xlu1 %1178 }
  0x80   :  { %83 = vst.msk [vmem:[#allocation3 + $0x28] sm:$0xf] %vm55_vm0, %v1171_v32  ;;  %81 = vst [vmem:[#allocation3 + $0x18] sm:$0xf] %v76_v36  ;;  %v1181_v39 = vunpack.i.h.bf16 %v1179_v38  ;;  %v1180_v40 = vunpack.i.l.bf16 %v1179_v38  ;;  %v1184_v41 = vpop.permute.xlu0 %1183  ;;  %v1271_v36 = vmov 0  }
  0x81   :  { %82 = vst [vmem:[#allocation3 + $0x20] sm:$0xf] %v77_v37  ;;  %v1186_v42 = vunpack.i.h.bf16 %v1184_v41  ;;  %v1185_v43 = vunpack.i.l.bf16 %v1184_v41  ;;  %1197 = vset.pattern.permute.xlu0 %v1271_v36  ;;  %402 = vst [vmem:[#allocation2] sm:$0xf] %v1271_v36  ;;  %v332_v37 = vld [vmem:[%s1547_s2] sm:$0xff]  ;;  %1198 = vset.pattern.permute.xlu1 %v1271_v36 }
  0x82   :  { %131 = vst.msk [vmem:[#allocation3 + $0x58] sm:$0xf] %vm55_vm0, %v1181_v39  ;;  %v125_v44 = vsel %vm123_vm4, %v1180_v40, %v1181_v39  ;;  %1004 = vst [vmem:[%s1555_s11] sm:$0xf] %v1271_v36 }
  0x83   :  { %130 = vst [vmem:[#allocation3 + $0x50] sm:$0xf] %v125_v44  ;;  %145 = vst.msk [vmem:[#allocation3 + $0x58] sm:$0xf0] %vm67_vm1, %v1186_v42  ;;  %v139_v45 = vsel %vm123_vm4, %v1185_v43, %v1186_v42  ;;  %v1189_v46 = vpop.permute.xlu1 %1188 }
  0x84   :  { %144 = vst [vmem:[#allocation3 + $0x50] sm:$0xf0] %v139_v45  ;;  %v1191_v47 = vunpack.i.h.bf16 %v1189_v46  ;;  %v1190_v48 = vunpack.i.l.bf16 %v1189_v46  ;;  %v1194_v49 = vpop.permute.xlu0 %1193 }
  0x85   :  { %v1196_v51 = vunpack.i.h.bf16 %v1194_v49  ;;  %v1195_v52 = vunpack.i.l.bf16 %v1194_v49  ;;  %v170_v2 = vld [vmem:[#allocation3 + $0x40] sm:$0xff] }
  0x86   :  { %v124_v55 = vsel %vm123_vm4, %v1190_v48, %v1180_v40  ;;  %v138_v56 = vsel %vm123_vm4, %v1191_v47, %v1185_v43  ;;  %v169_v5 = vld [vmem:[#allocation3 + $0x38] sm:$0xff]  ;;  %v168_v8 = vld [vmem:[#allocation3 + $0x30] sm:$0xff] }
  0x87   :  { %v167_v57 = vld [vmem:[#allocation3 + $0x28] sm:$0xff]  ;;  %129 = vst [vmem:[#allocation3 + $0x48] sm:$0xf] %v124_v55  ;;  %143 = vst [vmem:[#allocation3 + $0x48] sm:$0xf0] %v138_v56  ;;  %v147_v58 = vpop.permute.xlu1 %146  ;;  %v154_v59 = vsel %vm152_vm5, %v1195_v52, %v1196_v51  ;;  %v165_v62 = vld [vmem:[#allocation3 + $0x18] sm:$0xff] }
  0x88   :  { %160 = vst.msk [vmem:[#allocation3 + $0x70] sm:$0xf] %vm55_vm0, %v1196_v51  ;;  %v1117_v60 = vpack.c.bf16 %v167_v57, %v164_v50  ;;  %v166_v61 = vld [vmem:[#allocation3 + $0x20] sm:$0xff]  ;;  %v153_v63 = vsel %vm152_vm5, %v147_v58, %v1195_v52  ;;  %159 = vst [vmem:[#allocation3 + $0x68] sm:$0xf] %v154_v59  ;;  %v1110_v1 = vpack.c.bf16 %v165_v62, %v162_v54  ;;  %v333_v52 = vld [vmem:[%s1548_s3] sm:$0xff] }
  0x89   :  { %v1108_v0 = vpack.c.bf16 %v166_v61, %v163_v53  ;;  %158 = vst [vmem:[#allocation3 + $0x60] sm:$0xf] %v153_v63  ;;  %s1272_s3 = smov 16  }
  0x8a   :  { %1118 = vmatpush3.bf16.msra.mxu1 %v1117_v60  ;;  %v173_v3 = vld [vmem:[#allocation3 + $0x58] sm:$0xff] }
  0x8b   :  { %1109 = vmatprep.subr.bf16.mxu0 %v1108_v0  ;;  %1119 = vmatprep.subr.bf16.mxu1 %v1266_v21  ;;  %v1120_v4 = vpack.c.bf16 %v173_v3, %v170_v2  ;;  %v172_v6 = vld [vmem:[#allocation3 + $0x50] sm:$0xff] }
  0x8c   :  { %1111 = vmatpush1.bf16.msra.mxu0 %v1110_v1  ;;  %v1112_v7 = vpack.c.bf16 %v172_v6, %v169_v5 }
  0x8e   :  { %1121 = vmatpush3.bf16.msra.mxu1 %v1120_v4  ;;  %1113 = vmatprep.subr.bf16.mxu0 %v1112_v7  ;;  %v171_v9 = vld [vmem:[#allocation3 + $0x48] sm:$0xff] }
  0x8f   :  { %1077 = vmatprep.subr.mxu1 %v1269_v24  ;;  %v176_v10 = vld [vmem:[#allocation3 + $0x70] sm:$0xf]  ;;  %v1114_v11 = vpack.c.bf16 %v171_v9, %v168_v8  ;;  %v175_v12 = vld [vmem:[#allocation3 + $0x68] sm:$0xf] }
  0x90   :  { %v174_v14 = vld [vmem:[#allocation3 + $0x60] sm:$0xf] }
  0x91   :  { %1115 = vmatpush1.bf16.msra.mxu0 %v1114_v11 }
  0x92   :  { %1078 = vmatpush3.msk.msra.mxu1 %vm181_vm6, %v176_v10  ;;  %1030 = vmatprep.subr.msk.mxu0 %vm181_vm6, %v175_v12 }
  0x93   :  { %1080 = vmatmul.mubr.msk.f32.vlgmr.msra.gmra.mrb[0].mxu1 %vm177_vm7, %v161_v13  ;;  %1138 = vmatprep.subr.bf16.mxu1 %v1266_v21 }
  0x94   :  { %1100 = vmatprep.mubr.msk.f32.mxu1 %vm1270_vm2, %v1269_v24 }
  0x95   :  { %1031 = vmatpush1.msk.msra.mxu0 %vm181_vm6, %v174_v14 }
  0x96   :  { %1032 = vmatmul.mubr.msk.f32.vlgmr.msra.gmra.mrb[0].mxu0 %vm177_vm7, %v161_v13 }
  0x97   :  { %666 = vmatprep.mubr.f32.mxu0 %v1269_v24 }
 0x166   :  { %v328_v23 = vpop.f32.mrb[0].mxu1 }
 0x167   :  { %v1081_v26 = vpop.f32.mrb[1].mxu1  ;;  %v352_v28 = vmul.f32 %v1395_v22, %v328_v23 }
 0x169   :  { %v257_v29 = vpop.f32.mrb[0].mxu0  ;;  %v355_v33 = vsel %vm354_vm8, %v352_v28, 0.0 }
 0x16a   :  { %v350_v30 = vmul.f32 %v1397_v25, %v257_v29  ;;  %v259_v31 = vpop.f32.mrb[1].mxu0 }
 0x16b   :  { %v351_v32 = vmul.f32 %v1399_v27, %v259_v31 }
 0x16d   :  { %v353_v34 = vadd.f32 %v351_v32, %v350_v30 }
 0x16f   :  { %v356_v35 = vadd.f32 %v355_v33, %v353_v34 }
 0x171   :  { %357 = vadd.xlane.f32.xlu0 %v356_v35 }
 0x187   :  { %382 = vperm.xlu0 %1197, %v332_v37  }
 0x1fe   :  { %v358_v38 = vpop.xlane.xlu0 %357 }
 0x1ff   :  { %v359_v39 = vmul.f32 0.00390625, %v358_v38 }
 0x201   :  { %v360_v40 = vsub.f32 %v257_v29, %v359_v39  ;;  %v361_v41 = vsub.f32 %v259_v31, %v359_v39  ;;  %v362_v42 = vsub.f32 %v328_v23, %v359_v39 }
 0x203   :  { %v363_v43 = vmul.f32 %v360_v40, %v360_v40  ;;  %v364_v44 = vmul.f32 %v361_v41, %v361_v41  ;;  %v365_v45 = vmul.f32 %v362_v42, %v362_v42 }
 0x205   :  { %v366_v46 = vmul.f32 %v363_v43, %v1397_v25  ;;  %v367_v47 = vmul.f32 %v364_v44, %v1399_v27  ;;  %v368_v48 = vmul.f32 %v365_v45, %v1395_v22 }
 0x206   :  { %v383_v57 = vpop.permute.xlu0 %382 }
 0x207   :  { %v369_v49 = vadd.f32 %v367_v47, %v366_v46  ;;  %v370_v50 = vsel %vm354_vm8, %v368_v48, 0.0 }
 0x209   :  { %v371_v51 = vadd.f32 %v370_v50, %v369_v49 }
 0x20b   :  { %372 = vadd.xlane.f32.xlu1 %v371_v51 }
 0x21c   :  { %390 = vperm.xlu1 %1198, %v333_v52  }
 0x298   :  { %v373_v53 = vpop.xlane.xlu1 %372 }
 0x299   :  { %v374_v54 = vmul.f32 0.00390625, %v373_v53 }
 0x29b   :  { %v375_v55 = vadd.f32 1e-05, %v374_v54 }
 0x29c   :  { %v391_v61 = vpop.permute.xlu1 %390 }
 0x29d   :  { %1259 = vrsqrt.f32 %v375_v55 }
 0x2a7   :  { %v1260_v56 = vpop.eup %1259 }
 0x2a8   :  { %v377_v58 = vmul.f32 %v1260_v56, %v360_v40  ;;  %v378_v59 = vmul.f32 %v1260_v56, %v361_v41  ;;  %v379_v60 = vmul.f32 %v1260_v56, %v362_v42 }
 0x2aa   :  { %v385_v62 = vmul.f32 %v383_v57, %v377_v58  ;;  %v386_v63 = vmul.f32 %v383_v57, %v378_v59  ;;  %v387_v0 = vmul.f32 %v383_v57, %v379_v60 }
 0x2ac   :  { %v393_v1 = vadd.f32 %v391_v61, %v385_v62  ;;  %v394_v2 = vadd.f32 %v391_v61, %v386_v63  ;;  %v395_v3 = vadd.f32 %v391_v61, %v387_v0 }
 0x2ae   :  { %v396_v4 = vmax.f32 %v393_v1, 0.0  ;;  %v397_v5 = vmax.f32 %v394_v2, 0.0  ;;  %v398_v6 = vmax.f32 %v395_v3, 0.0 }
 0x2b0   :  { %v399_v7 = vmul.f32 %v396_v4, %v1397_v25  ;;  %v400_v8 = vmul.f32 %v397_v5, %v1399_v27  ;;  %v401_v9 = vmul.f32 %v398_v6, %v1395_v22 }
 0x2b2   :  { %v1421_v10 = vpack.c.bf16 %v400_v8, %v399_v7  ;;  %v1048_v11 = vpack.c.bf16 %v401_v9, %v401_v9 }
 0x2b4   :  { %416 = vst [vmem:[#allocation2 + $0x4] sm:$0xff] %v1421_v10  ;;  %417 = vst.msk [vmem:[#allocation2 + $0xc] sm:$0xf] %vm55_vm0, %v1048_v11  ;;  %v1426_v12 = vunpack.c.l.bf16 %v1421_v10  ;;  %v505_v13 = vunpack.c.h.bf16 %v1421_v10 }
 0x2b5   :  { %419 = vst.msk [vmem:[#allocation2 + $0xc] sm:$0xf] %vm418_vm9, %v1271_v36 }
 0x2b6   :  { %513 = vrot.lane.b32.xlu1 %v1426_v12, %s1265_s25 }
 0x2bb   :  { %v420_v14 = vld [vmem:[#allocation2] sm:$0xff] }
 0x2bc   :  { %v421_v15 = vld [vmem:[#allocation2 + $0x8] sm:$0xff]  ;;  %v424_v16 = vunpack.c.l.bf16 %v420_v14  ;;  %v425_v17 = vunpack.c.h.bf16 %v420_v14 }
 0x2bd   :  { %v423_v18 = vld [vmem:[#allocation2 + $0xc] sm:$0xf]  ;;  %v427_v19 = vunpack.c.h.bf16 %v421_v15  ;;  %v426_v20 = vunpack.c.l.bf16 %v421_v15 }
 0x2be   :  { %v506_v23 = vunpack.c.l.bf16 %v423_v18 }
 0x2bf   :  { %v1229_v26 = vpack.i.bf16 %v427_v19, %v424_v16  ;;  %v1199_v28 = vpack.i.bf16 %v426_v20, %v425_v17 }
 0x2c0   :  { %509 = vst.msk [vmem:[#allocation4 + $0x70] sm:$0xff] %vm354_vm8, %v506_v23  ;;  %v1239_v29 = vpack.i.bf16 %v506_v23, %v505_v13 }
 0x2c1   :  { %1230 = vrot.lane.b32.xlu0 %v1229_v26, %s1272_s3  ;;  %1200 = vrot.lane.b32.xlu1 %v1199_v28, %s1273_s14 }
 0x2c5   :  { %1240 = vrot.lane.b32.xlu0 %v1239_v29, %s1265_s25  ;;  %1205 = vrot.lane.b32.xlu1 %v1199_v28, %s1274_s15 }
 0x2c9   :  { %1245 = vrot.lane.b32.xlu0 %v1239_v29, %s1275_s16  ;;  %1210 = vrot.lane.b32.xlu1 %v1229_v26, %s1273_s14 }
 0x2cd   :  { %527 = vrot.lane.b32.xlu0 %v1426_v12, %s1275_s16  ;;  %1215 = vrot.lane.b32.xlu1 %v1229_v26, %s1274_s15 }
 0x2d1   :  { %1255 = vrot.lane.b32.xlu0 %v1239_v29, %s1268_s27  ;;  %1220 = vrot.lane.b32.xlu1 %v1199_v28, %s1272_s3 }
 0x2d5   :  { %1225 = vrot.lane.b32.xlu1 %v1199_v28, %s1276_s17 }
 0x2d9   :  { %1235 = vrot.lane.b32.xlu1 %v1229_v26, %s1276_s17 }
 0x2dd   :  { %1250 = vrot.lane.b32.xlu1 %v1239_v29, %s1267_s26 }
 0x2e1   :  { %542 = vrot.lane.b32.xlu1 %v1426_v12, %s1267_s26 }
 0x2e5   :  { %556 = vrot.lane.b32.xlu1 %v1426_v12, %s1268_s27 }
 0x328   :  { %v514_v30 = vpop.permute.xlu1 %513 }
 0x333   :  { %v1231_v31 = vpop.permute.xlu0 %1230  ;;  %v1201_v32 = vpop.permute.xlu1 %1200 }
 0x334   :  { %v1203_v33 = vunpack.i.h.bf16 %v1201_v32  ;;  %v1202_v34 = vunpack.i.l.bf16 %v1201_v32  ;;  %v1233_v63 = vunpack.i.h.bf16 %v1231_v31  ;;  %v1232_v0 = vunpack.i.l.bf16 %v1231_v31 }
 0x336   :  { %v442_v35 = vsel %vm440_vm10, %v1202_v34, %v1203_v33 }
 0x337   :  { %v1241_v37 = vpop.permute.xlu0 %1240  ;;  %v1206_v38 = vpop.permute.xlu1 %1205 }
 0x338   :  { %v1243_v39 = vunpack.i.h.bf16 %v1241_v37  ;;  %v1242_v40 = vunpack.i.l.bf16 %v1241_v37  ;;  %v1208_v41 = vunpack.i.h.bf16 %v1206_v38  ;;  %v1207_v42 = vunpack.i.l.bf16 %v1206_v38 }
 0x33a   :  { %526 = vst.msk [vmem:[#allocation4 + $0x88] sm:$0xff] %vm354_vm8, %v1243_v39  ;;  %v1446_v43 = vsel %vm75_vm3, %v514_v30, %v1242_v40  ;;  %v1449_v44 = vsel %vm75_vm3, %v1242_v40, %v1243_v39  ;;  %v460_v45 = vsel %vm458_vm11, %v1207_v42, %v1208_v41  ;;  %vm797_vm3 = vcmask 31744  }
 0x33b   :  { %v1246_v46 = vpop.permute.xlu0 %1245  ;;  %v1211_v47 = vpop.permute.xlu1 %1210  ;;  %v1122_v48 = vpack.c.bf16 %v460_v45, %v442_v35  ;;  %v1130_v38 = vpack.c.bf16 %v1449_v44, %v505_v13 }
 0x33c   :  { %v1248_v49 = vunpack.i.h.bf16 %v1246_v46  ;;  %v1247_v50 = vunpack.i.l.bf16 %v1246_v46  ;;  %v1213_v51 = vunpack.i.h.bf16 %v1211_v47  ;;  %v1212_v52 = vunpack.i.l.bf16 %v1211_v47  ;;  %v1039_v46 = vld [vmem:[%s1544_s0 + $0x12] sm:$0x3f] }
 0x33d   :  { %1123 = vmatprep.subr.bf16.mxu0 %v1122_v48 }
 0x33e   :  { %541 = vst.msk [vmem:[#allocation4 + $0xa0] sm:$0xff] %vm354_vm8, %v1248_v49  ;;  %v443_v53 = vsel %vm440_vm10, %v1203_v33, %v1213_v51  ;;  %v441_v54 = vsel %vm440_vm10, %v1212_v52, %v1202_v34  ;;  %v535_v55 = vsel %vm533_vm12, %v1247_v50, %v1248_v49  ;;  %v791_v49 = vunpack.c.l.bf16 %v1039_v46  ;;  %v585_v51 = vld [vmem:[#allocation4 + $0x70] sm:$0xff]  ;;  %v570_v52 = vld [vmem:[%s1549_s4] sm:$0xff] }
 0x33f   :  { %449 = vst.msk [vmem:[#allocation4 + $0x10] sm:$0xff] %vm354_vm8, %v443_v53  ;;  %v528_v56 = vpop.permute.xlu0 %527  ;;  %v1216_v57 = vpop.permute.xlu1 %1215 }
 0x340   :  { %v1456_v58 = vsel %vm533_vm12, %v528_v56, %v1247_v50  ;;  %v1218_v59 = vunpack.i.h.bf16 %v1216_v57  ;;  %v1217_v60 = vunpack.i.l.bf16 %v1216_v57  ;;  %v796_v53 = vcombine.high %v791_v49, %v791_v49  ;;  %v793_v57 = vld [vmem:[%s1550_s8] sm:$0xff] }
 0x342   :  { %v461_v61 = vsel %vm458_vm11, %v1208_v41, %v1218_v59  ;;  %v459_v62 = vsel %vm458_vm11, %v1217_v60, %v1207_v42  ;;  %v1132_v41 = vpack.c.bf16 %v1446_v43, %v1426_v12  ;;  %v588_v12 = vld [vmem:[#allocation4 + $0x88] sm:$0xff] }
 0x343   :  { %467 = vst.msk [vmem:[#allocation4 + $0x28] sm:$0xff] %vm354_vm8, %v461_v61  ;;  %v1256_v1 = vpop.permute.xlu0 %1255  ;;  %v1221_v2 = vpop.permute.xlu1 %1220  ;;  %v1124_v3 = vpack.c.bf16 %v459_v62, %v441_v54  ;;  %v1145_v43 = vpack.c.bf16 %v588_v12, %v585_v51 }
 0x344   :  { %v1258_v4 = vunpack.i.h.bf16 %v1256_v1  ;;  %v1257_v5 = vunpack.i.l.bf16 %v1256_v1  ;;  %v1223_v6 = vunpack.i.h.bf16 %v1221_v2  ;;  %v1222_v7 = vunpack.i.l.bf16 %v1221_v2 }
 0x345   :  { %1125 = vmatpush1.bf16.msra.mxu0 %v1124_v3 }
 0x346   :  { %569 = vst.msk [vmem:[#allocation4 + $0xd0] sm:$0xff] %vm354_vm8, %v1258_v4  ;;  %v563_v8 = vsel %vm152_vm5, %v1257_v5, %v1258_v4  ;;  %v479_v9 = vsel %vm476_vm13, %v1223_v6, %v1233_v63  ;;  %v477_v11 = vsel %vm476_vm13, %v1232_v0, %v1222_v7  ;;  %v478_v14 = vsel %vm476_vm13, %v1222_v7, %v1223_v6  ;;  %v573_v19 = vld [vmem:[#allocation4 + $0x10] sm:$0xff] }
 0x347   :  { %485 = vst.msk [vmem:[#allocation4 + $0x40] sm:$0xff] %vm354_vm8, %v479_v9  ;;  %v1226_v15 = vpop.permute.xlu1 %1225 }
 0x348   :  { %v1228_v16 = vunpack.i.h.bf16 %v1226_v15  ;;  %v1227_v17 = vunpack.i.l.bf16 %v1226_v15 }
 0x34a   :  { %v496_v18 = vsel %vm494_vm14, %v1227_v17, %v1228_v16  ;;  %v576_v20 = vld [vmem:[#allocation4 + $0x28] sm:$0xff] }
 0x34b   :  { %v1236_v23 = vpop.permute.xlu1 %1235  ;;  %v1139_v26 = vpack.c.bf16 %v576_v20, %v573_v19  ;;  %v1126_v28 = vpack.c.bf16 %v496_v18, %v478_v14  ;;  %v744_v18 = vld [vmem:[%s1552_s6] sm:$0xff] }
 0x34c   :  { %v1238_v29 = vunpack.i.h.bf16 %v1236_v23  ;;  %v1237_v30 = vunpack.i.l.bf16 %v1236_v23  ;;  %v949_v19 = vld [vmem:[%s1553_s10] sm:$0xff] }
 0x34d   :  { %1140 = vmatpush3.bf16.msra.mxu1 %v1139_v26  ;;  %1127 = vmatprep.subr.bf16.mxu0 %v1126_v28 }
 0x34e   :  { %v495_v31 = vsel %vm494_vm14, %v1237_v30, %v1227_v17  ;;  %v497_v32 = vsel %vm494_vm14, %v1228_v16, %v1238_v29  ;;  %1141 = vmatprep.subr.bf16.mxu1 %v1266_v21  ;;  %v579_v10 = vld [vmem:[#allocation4 + $0x40] sm:$0xff]  ;;  %v743_v17 = vld [vmem:[%s1551_s5] sm:$0xff] }
 0x34f   :  { %503 = vst.msk [vmem:[#allocation4 + $0x58] sm:$0xff] %vm354_vm8, %v497_v32  ;;  %v1251_v33 = vpop.permute.xlu1 %1250  ;;  %v1128_v34 = vpack.c.bf16 %v495_v31, %v477_v11 }
 0x350   :  { %v1253_v35 = vunpack.i.h.bf16 %v1251_v33  ;;  %v1252_v37 = vunpack.i.l.bf16 %v1251_v33 }
 0x351   :  { %1129 = vmatpush1.bf16.msra.mxu0 %v1128_v34 }
 0x352   :  { %555 = vst.msk [vmem:[#allocation4 + $0xb8] sm:$0xff] %vm354_vm8, %v1253_v35  ;;  %v549_v39 = vsel %vm123_vm4, %v1252_v37, %v1253_v35  ;;  %1131 = vmatprep.subr.bf16.mxu0 %v1130_v38 }
 0x353   :  { %v543_v40 = vpop.permute.xlu1 %542  ;;  %v1134_v42 = vpack.c.bf16 %v549_v39, %v535_v55  ;;  %v591_v55 = vld [vmem:[#allocation4 + $0xa0] sm:$0xff] }
 0x354   :  { %v548_v45 = vsel %vm123_vm4, %v543_v40, %v1252_v37 }
 0x355   :  { %1133 = vmatpush1.bf16.msra.mxu0 %v1132_v41  ;;  %v1136_v48 = vpack.c.bf16 %v548_v45, %v1456_v58  ;;  %v597_v58 = vld [vmem:[#allocation4 + $0xd0] sm:$0xff] }
 0x356   :  { %v582_v13 = vld [vmem:[#allocation4 + $0x58] sm:$0xff]  ;;  %1135 = vmatprep.subr.bf16.mxu0 %v1134_v42 }
 0x357   :  { %v557_v44 = vpop.permute.xlu1 %556  ;;  %v1142_v47 = vpack.c.bf16 %v582_v13, %v579_v10 }
 0x358   :  { %v562_v50 = vsel %vm152_vm5, %v557_v44, %v1257_v5 }
 0x359   :  { %1143 = vmatpush3.bf16.msra.mxu1 %v1142_v47  ;;  %1137 = vmatpush1.bf16.msra.mxu0 %v1136_v48  ;;  %v594_v54 = vld [vmem:[#allocation4 + $0xb8] sm:$0xff] }
 0x35a   :  { %1144 = vmatprep.subr.bf16.mxu1 %v1266_v21  ;;  %618 = vmatprep.subr.mxu0 %v563_v8  ;;  %v1148_v56 = vpack.c.bf16 %v594_v54, %v591_v55 }
 0x35d   :  { %1146 = vmatpush3.bf16.msra.mxu1 %v1145_v43  ;;  %619 = vmatpush1.msra.mxu0 %v562_v50  ;;  %v948_v43 = vld [vmem:[%s1554_s9] sm:$0xff] }
 0x35e   :  { %1147 = vmatprep.subr.bf16.mxu1 %v1266_v21  ;;  %1037 = vmatmul.mubr.msk.f32.vlgmr.msra.gmra.mrb[2].mxu0 %vm598_vm15, %v570_v52  ;;  %v792_v21 = vunpack.c.h.bf16 %v1039_v46 }
 0x35f   :  { %1040 = vmatprep.subr.msk.mxu0 %vm181_vm6, %v796_v53  ;;  %871 = vmatprep.mubr.f32.mxu0 %v1269_v24 }
 0x360   :  { %1041 = vmatpush1.msk.msra.mxu0 %vm181_vm6, %v791_v49 }
 0x361   :  { %1149 = vmatpush3.bf16.msra.mxu1 %v1148_v56 }
 0x362   :  { %1098 = vmatprep.subr.mxu1 %v1269_v24  ;;  %1042 = vmatmul.mubr.msk.f32.vlgmr.msra.gmra.mrb[4].mxu0 %vm797_vm3, %v793_v57 }
 0x365   :  { %1099 = vmatpush3.msra.mxu1 %v597_v58 }
 0x366   :  { %1101 = vmatmul.mubr.msk.f32.vlgmr.msra.gmra.mrb[2].mxu1 %vm598_vm15, %v570_v52  ;;  %1103 = vmatprep.subr.mxu1 %v1269_v24 }
 0x367   :  { %1104 = vmatpush3.msk.msra.mxu1 %vm181_vm6, %v792_v21  ;;  %1105 = vmatprep.mubr.msk.f32.mxu1 %vm1270_vm2, %v1269_v24  ;;  %vm1020_vm2 = vcmask 1043856  }
 0x368   :  { %vm1021_vm4 = vmor %vm67_vm1, %vm1020_vm2 }
 0x36a   :  { %1106 = vmatmul.mubr.msk.f32.vlgmr.msra.gmra.mrb[4].mxu1 %vm797_vm3, %v793_v57 }
 0x431   :  { %v668_v59 = vpop.f32.mrb[2].mxu0 }
 0x432   :  { %v745_v60 = vmul.f32 %v668_v59, %v1397_v25  ;;  %v670_v61 = vpop.f32.mrb[3].mxu0 }
 0x433   :  { %v746_v62 = vmul.f32 %v670_v61, %v1399_v27 }
 0x435   :  { %v873_v63 = vpop.f32.mrb[4].mxu0  ;;  %v748_v0 = vadd.f32 %v746_v62, %v745_v60 }
 0x436   :  { %v950_v1 = vmul.f32 %v873_v63, %v1397_v25  ;;  %v875_v2 = vpop.f32.mrb[5].mxu0 }
 0x437   :  { %v951_v3 = vmul.f32 %v875_v2, %v1399_v27 }
 0x439   :  { %v739_v4 = vpop.f32.mrb[2].mxu1  ;;  %v953_v5 = vadd.f32 %v951_v3, %v950_v1 }
 0x43a   :  { %v747_v6 = vmul.f32 %v739_v4, %v1395_v22  ;;  %v1102_v7 = vpop.f32.mrb[3].mxu1 }
 0x43c   :  { %v749_v24 = vsel %vm354_vm8, %v747_v6, 0.0 }
 0x43d   :  { %v944_v8 = vpop.f32.mrb[4].mxu1  ;;  %v750_v9 = vadd.f32 %v749_v24, %v748_v0 }
 0x43e   :  { %v952_v11 = vmul.f32 %v944_v8, %v1395_v22  ;;  %v1107_v14 = vpop.f32.mrb[5].mxu1 }
 0x43f   :  { %751 = vadd.xlane.f32.xlu0 %v750_v9 }
 0x440   :  { %v954_v15 = vsel %vm354_vm8, %v952_v11, 0.0 }
 0x441   :  { %v955_v16 = vadd.f32 %v954_v15, %v953_v5 }
 0x443   :  { %956 = vadd.xlane.f32.xlu1 %v955_v16 }
 0x454   :  { %776 = vperm.xlu1 %1198, %v743_v17  }
 0x458   :  { %784 = vperm.xlu1 %1198, %v744_v18  }
 0x45c   :  { %989 = vperm.xlu1 %1198, %v949_v19  }
 0x4cc   :  { %v752_v20 = vpop.xlane.xlu0 %751 }
 0x4cd   :  { %v753_v23 = vmul.f32 0.00390625, %v752_v20 }
 0x4cf   :  { %v754_v26 = vsub.f32 %v668_v59, %v753_v23  ;;  %v755_v28 = vsub.f32 %v670_v61, %v753_v23  ;;  %v756_v29 = vsub.f32 %v739_v4, %v753_v23 }
 0x4d0   :  { %v957_v30 = vpop.xlane.xlu1 %956 }
 0x4d1   :  { %v757_v31 = vmul.f32 %v754_v26, %v754_v26  ;;  %v758_v32 = vmul.f32 %v755_v28, %v755_v28  ;;  %v958_v33 = vmul.f32 0.00390625, %v957_v30  ;;  %v759_v34 = vmul.f32 %v756_v29, %v756_v29 }
 0x4d3   :  { %v959_v35 = vsub.f32 %v873_v63, %v958_v33  ;;  %v960_v37 = vsub.f32 %v875_v2, %v958_v33  ;;  %v961_v38 = vsub.f32 %v944_v8, %v958_v33  ;;  %v760_v39 = vmul.f32 %v757_v31, %v1397_v25 }
 0x4d4   :  { %v761_v40 = vmul.f32 %v758_v32, %v1399_v27  ;;  %v762_v41 = vmul.f32 %v759_v34, %v1395_v22  ;;  %v777_v21 = vpop.permute.xlu1 %776 }
 0x4d5   :  { %v962_v42 = vmul.f32 %v959_v35, %v959_v35  ;;  %v963_v45 = vmul.f32 %v960_v37, %v960_v37  ;;  %v964_v46 = vmul.f32 %v961_v38, %v961_v38 }
 0x4d6   :  { %v763_v10 = vadd.f32 %v761_v40, %v760_v39  ;;  %v764_v13 = vsel %vm354_vm8, %v762_v41, 0.0 }
 0x4d7   :  { %v965_v44 = vmul.f32 %v962_v42, %v1397_v25  ;;  %v966_v47 = vmul.f32 %v963_v45, %v1399_v27  ;;  %v967_v48 = vmul.f32 %v964_v46, %v1395_v22 }
 0x4d8   :  { %v765_v49 = vadd.f32 %v764_v13, %v763_v10  ;;  %v785_v60 = vpop.permute.xlu1 %784 }
 0x4d9   :  { %v968_v50 = vadd.f32 %v966_v47, %v965_v44  ;;  %v969_v51 = vsel %vm354_vm8, %v967_v48, 0.0 }
 0x4da   :  { %766 = vadd.xlane.f32.xlu0 %v765_v49 }
 0x4db   :  { %v970_v12 = vadd.f32 %v969_v51, %v968_v50 }
 0x4dc   :  { %v990_v24 = vpop.permute.xlu1 %989 }
 0x4de   :  { %971 = vadd.xlane.f32.xlu0 %v970_v12 }
 0x4f4   :  { %981 = vperm.xlu0 %1197, %v948_v43  }
 0x567   :  { %v767_v52 = vpop.xlane.xlu0 %766 }
 0x568   :  { %v768_v53 = vmul.f32 0.00390625, %v767_v52 }
 0x56a   :  { %v769_v54 = vadd.f32 1e-05, %v768_v53 }
 0x56b   :  { %v972_v55 = vpop.xlane.xlu0 %971 }
 0x56c   :  { %1261 = vrsqrt.f32 %v769_v54  ;;  %v973_v56 = vmul.f32 0.00390625, %v972_v55 }
 0x56e   :  { %v974_v57 = vadd.f32 1e-05, %v973_v56 }
 0x570   :  { %1263 = vrsqrt.f32 %v974_v57 }
 0x573   :  { %v982_v6 = vpop.permute.xlu0 %981 }
 0x576   :  { %v1262_v58 = vpop.eup %1261 }
 0x577   :  { %v771_v59 = vmul.f32 %v1262_v58, %v754_v26  ;;  %v772_v61 = vmul.f32 %v1262_v58, %v755_v28  ;;  %v773_v62 = vmul.f32 %v1262_v58, %v756_v29 }
 0x579   :  { %v779_v0 = vmul.f32 %v777_v21, %v771_v59  ;;  %v780_v2 = vmul.f32 %v777_v21, %v772_v61  ;;  %v781_v3 = vmul.f32 %v777_v21, %v773_v62 }
 0x57a   :  { %v1264_v63 = vpop.eup %1263 }
 0x57b   :  { %v976_v1 = vmul.f32 %v1264_v63, %v959_v35  ;;  %v977_v4 = vmul.f32 %v1264_v63, %v960_v37  ;;  %v978_v5 = vmul.f32 %v1264_v63, %v961_v38  ;;  %v787_v11 = vadd.f32 %v785_v60, %v779_v0 }
 0x57c   :  { %v788_v15 = vadd.f32 %v785_v60, %v780_v2  ;;  %v789_v16 = vadd.f32 %v785_v60, %v781_v3 }
 0x57d   :  { %v984_v7 = vmul.f32 %v982_v6, %v976_v1  ;;  %v985_v8 = vmul.f32 %v982_v6, %v977_v4  ;;  %v986_v9 = vmul.f32 %v982_v6, %v978_v5 }
 0x57f   :  { %v992_v14 = vadd.f32 %v990_v24, %v984_v7  ;;  %v993_v17 = vadd.f32 %v990_v24, %v985_v8  ;;  %v994_v18 = vadd.f32 %v990_v24, %v986_v9 }
 0x581   :  { %v995_v19 = vadd.f32 %v992_v14, %v787_v11  ;;  %v996_v20 = vadd.f32 %v993_v17, %v788_v15  ;;  %v997_v23 = vadd.f32 %v994_v18, %v789_v16 }
 0x583   :  { %v998_v26 = vmax.f32 %v995_v19, 0.0  ;;  %v999_v28 = vmax.f32 %v996_v20, 0.0  ;;  %v1000_v29 = vmax.f32 %v997_v23, 0.0 }
 0x585   :  { %v1001_v30 = vmul.f32 %v998_v26, %v1397_v25  ;;  %v1002_v31 = vmul.f32 %v999_v28, %v1399_v27  ;;  %v1003_v32 = vmul.f32 %v1000_v29, %v1395_v22 }
 0x587   :  { %v1049_v33 = vpack.c.bf16 %v1002_v31, %v1001_v30  ;;  %v1050_v34 = vpack.c.bf16 %v1003_v32, %v1003_v32 }
 0x589   :  { %1018 = vst [vmem:[%s1555_s11 + $0x4] sm:$0xff] %v1049_v33  ;;  %1019 = vst.msk [vmem:[%s1555_s11 + $0xc] sm:$0xf] %vm55_vm0, %v1050_v34 }
 0x58a   :  { %1022 = vst.msk [vmem:[%s1555_s11 + $0xc] sm:$0xff] %vm1021_vm4, %v1271_v36 }

// kernel: _lambda_.8
= control target key start
LH: loop header
LB: loop body
LE: loop exit
PB: predicated region body
PF: predicated region fallthrough
CT: control target
= control target key end

     0   :  { %vm48_vm0 = vcmask 736256   ;;  %s878_s21 = smov 127   ;;  %s879_s22 = smov 119   ;;  %vm90_vm1 = vcmask 588800   ;;  %v881_v35 = vmov 0   ;;  %vm243_vm2 = vcmask 818896   ;;  %s1148_s0 = inlined_call_operand.vmem [shape: bf16[4,8,100], index: 0, kind: input, shape index: {}]   ;;  %s1149_s1 = inlined_call_operand.vmem [shape: f32[16,72], index: 1, kind: input, shape index: {}]   ;;  %s1150_s7 = inlined_call_operand.vmem [shape: f32[1,90], index: 7, kind: input, shape index: {}]   ;;  %s1151_s2 = inlined_call_operand.vmem [shape: f32[16,1], index: 2, kind: input, shape index: {}, may-alias: {2,5,9}]   ;;  %s1152_s3 = inlined_call_operand.vmem [shape: f32[16,1], index: 3, kind: input, shape index: {}, may-alias: {3,6,10}]   ;;  %s1153_s4 = inlined_call_operand.vmem [shape: f32[16,144], index: 4, kind: input, shape index: {}]   ;;  %s1154_s8 = inlined_call_operand.vmem [shape: f32[16,8], index: 8, kind: input, shape index: {}]   ;;  %s1155_s5 = inlined_call_operand.vmem [shape: f32[16,1], index: 5, kind: input, shape index: {}, may-alias: {2,5,9}]   ;;  %s1156_s9 = inlined_call_operand.vmem [shape: f32[16,1], index: 9, kind: input, shape index: {}, may-alias: {2,5,9}]   ;;  %s1157_s6 = inlined_call_operand.vmem [shape: f32[16,1], index: 6, kind: input, shape index: {}, may-alias: {3,6,10}]   ;;  %s1158_s10 = inlined_call_operand.vmem [shape: f32[16,1], index: 10, kind: input, shape index: {}, may-alias: {3,6,10}]   ;;  %s1159_s11 = inlined_call_operand.vmem [shape: bf16[16,346], index: 11, kind: output, shape index: {}]  }
   0x1   :  { %v698_v0 = vld [vmem:[%s1148_s0] sm:$0xff]   ;;  %v705_v1 = vld [vmem:[%s1148_s0 + $0x8] sm:$0xff]   ;;  %s880_s23 = smov 118   ;;  %804 = vset.pattern.permute.xlu1 %v881_v35  ;;  %805 = vset.pattern.permute.xlu0 %v881_v35  ;;  %s883_s16 = smov 1   ;;  %vm371_vm3 = vcmask 130048   ;;  %vm293_vm4 = vcmask 64512  }
   0x2   :  { %v699_v2 = vunpack.c.l.bf16 %v698_v0  ;;  %v703_v3 = vunpack.c.l.bf16 %v705_v1  ;;  %v704_v4 = vunpack.c.h.bf16 %v705_v1  ;;  %v700_v5 = vunpack.c.h.bf16 %v698_v0  ;;  %v79_v10 = vld [vmem:[%s1149_s1] sm:$0xff]  ;;  %v80_v27 = vld [vmem:[%s1149_s1 + $0x8] sm:$0xff]  ;;  %s885_s17 = smov 9   ;;  %s886_s18 = smov 8   ;;  %660 = vst [vmem:[%s1159_s11] sm:$0xf] %v881_v35 }
   0x3   :  { %738 = vmatprep.mubr.msk.f32.mxu0 %vm90_vm1, %v79_v10  ;;  %v978_v28 = vld [vmem:[%s1150_s7] ss:$0 sm:$0xff]  ;;  %v175_v38 = vld [vmem:[%s1152_s3 + $0x8] sm:$0xff]  ;;  %s887_s19 = smov 120   ;;  %vm263_vm5 = vcmask 80896   ;;  %vm308_vm6 = vcmask 7168  }
   0x4   :  { %53 = vrot.lane.b32.xlu0 %v699_v2, %s878_s21  ;;  %49 = vst.msk [vmem:[#allocation3] sm:$0xff] %vm48_vm0, %v699_v2  ;;  %58 = vst.msk [vmem:[#allocation3 + $0x18] sm:$0xff] %vm48_vm0, %v703_v3  ;;  %v799_v6 = vpack.i.bf16 %v700_v5, %v699_v2  ;;  %v172_v36 = vld [vmem:[%s1151_s2] sm:$0xff]  ;;  %v173_v51 = vld [vmem:[%s1151_s2 + $0x8] sm:$0xff]  ;;  %s882_s2 = smov 10   ;;  %vm278_vm7 = vcmask 72704  }
   0x5   :  { %60 = vst.msk [vmem:[#allocation3 + $0x20] sm:$0xff] %vm48_vm0, %v704_v4  ;;  %51 = vst.msk [vmem:[#allocation3 + $0x8] sm:$0xff] %vm48_vm0, %v700_v5  ;;  %v174_v37 = vld [vmem:[%s1152_s3] sm:$0xff]  ;;  %vm673_vm8 = vcmask 1044176   ;;  %vm674_vm9 = vcmask 736260   ;;  %vm670_vm10 = vcmask 732160  }
   0x6   :  { %800 = vrot.lane.b32.xlu1 %v799_v6, %s879_s22  ;;  %661 = vst [vmem:[%s1159_s11 + $0xc] sm:$0xf] %v881_v35  ;;  %vm675_vm11 = vmor %vm674_vm9, %vm673_vm8 }
   0x8   :  { %62 = vrot.lane.b32.xlu0 %v703_v3, %s878_s21 }
   0xa   :  { %75 = vrot.lane.b32.xlu1 %v699_v2, %s880_s23 }
   0xb   :  { %v81_v7 = vld [vmem:[#allocation3] sm:$0xff]  ;;  %v84_v16 = vld [vmem:[#allocation3 + $0x18] sm:$0xff] }
   0xc   :  { %v82_v8 = vld [vmem:[#allocation3 + $0x8] sm:$0xff]  ;;  %v85_v20 = vld [vmem:[#allocation3 + $0x20] sm:$0xff] }
   0xd   :  { %v746_v9 = vpack.c.bf16 %v82_v8, %v81_v7 }
   0xf   :  { %747 = vmatprep.subr.bf16.mxu0 %v746_v9 }
  0x10   :  { %749 = vmatpush3.bf16.msra.mxu0 %v746_v9 }
  0x76   :  { %v54_v11 = vpop.permute.xlu0 %53 }
  0x77   :  { %56 = vst.msk [vmem:[#allocation3 + $0x10] sm:$0xff] %vm48_vm0, %v54_v11  ;;  %v247_v11 = vunpack.c.l.bf16 %v881_v35 }
  0x78   :  { %v801_v12 = vpop.permute.xlu1 %800 }
  0x79   :  { %v803_v13 = vunpack.i.h.bf16 %v801_v12  ;;  %v802_v14 = vunpack.i.l.bf16 %v801_v12 }
  0x7a   :  { %v63_v15 = vpop.permute.xlu0 %62 }
  0x7b   :  { %65 = vst.msk [vmem:[#allocation3 + $0x28] sm:$0xff] %vm48_vm0, %v63_v15  ;;  %74 = vst.msk [vmem:[#allocation3 + $0x38] sm:$0xff] %vm48_vm0, %v803_v13  ;;  %v249_v15 = vunpack.c.h.bf16 %v881_v35 }
  0x7c   :  { %69 = vst.msk [vmem:[#allocation3 + $0x30] sm:$0xff] %vm48_vm0, %v802_v14  ;;  %v76_v17 = vpop.permute.xlu1 %75 }
  0x7d   :  { %78 = vst.msk [vmem:[#allocation3 + $0x40] sm:$0xff] %vm48_vm0, %v76_v17 }
  0x7e   :  { %v83_v18 = vld [vmem:[#allocation3 + $0x10] sm:$0xff] }
  0x7f   :  { %v750_v19 = vpack.c.bf16 %v84_v16, %v83_v18 }
  0x81   :  { %751 = vmatprep.subr.bf16.mxu0 %v750_v19 }
  0x82   :  { %753 = vmatpush3.bf16.msra.mxu0 %v750_v19  ;;  %v86_v21 = vld [vmem:[#allocation3 + $0x28] sm:$0xff]  ;;  %v88_v23 = vld [vmem:[#allocation3 + $0x38] sm:$0xff]  ;;  %v884_v19 = vmov 0.0|0.0  }
  0x83   :  { %v87_v22 = vld [vmem:[#allocation3 + $0x30] sm:$0xff]  ;;  %v754_v24 = vpack.c.bf16 %v86_v21, %v85_v20  ;;  %762 = vmatprep.subr.bf16.mxu1 %v884_v19  ;;  %v690_v20 = vld [vmem:[%s1148_s0 + $0xc] sm:$0xf] }
  0x84   :  { %v758_v25 = vpack.c.bf16 %v88_v23, %v87_v22  ;;  %v89_v26 = vld [vmem:[#allocation3 + $0x40] sm:$0xff]  ;;  %v512_v21 = vunpack.c.l.bf16 %v690_v20  ;;  %v350_v22 = vld [vmem:[%s1153_s4 + $0x8] sm:$0xff]  ;;  %v513_v23 = vld [vmem:[%s1154_s8] sm:$0xff] }
  0x85   :  { %755 = vmatprep.subr.bf16.mxu0 %v754_v24  ;;  %688 = vmatprep.mubr.msk.f32.mxu1 %vm371_vm3, %v350_v22 }
  0x86   :  { %757 = vmatpush3.bf16.msra.mxu0 %v754_v24  ;;  %v514_v24 = vld [vmem:[%s1154_s8 + $0x8] sm:$0xff] }
  0x87   :  { %759 = vmatprep.subr.bf16.mxu0 %v758_v25 }
  0x8a   :  { %761 = vmatpush3.bf16.msra.mxu0 %v758_v25 }
  0x8b   :  { %736 = vmatprep.subr.mxu0 %v89_v26 }
  0x8e   :  { %737 = vmatpush3.msra.mxu0 %v89_v26 }
  0x8f   :  { %739 = vmatmul.mubr.msk.f32.vlgmr.msra.gmra.mrb[0].mxu0 %vm90_vm1, %v80_v27  ;;  %741 = vmatprep.subr.mxu0 %v512_v21 }
  0x90   :  { %742 = vmatpush3.msra.mxu0 %v512_v21  ;;  %743 = vmatprep.mubr.msk.f32.mxu0 %vm293_vm4, %v513_v23 }
  0x93   :  { %744 = vmatmul.mubr.msk.f32.vlgmr.msra.gmra.mrb[2].mxu0 %vm293_vm4, %v514_v24 }
 0x162   :  { %v740_v29 = vpop.f32.mrb[0].mxu0 }
 0x163   :  { %v183_v30 = vmul.f32 %v740_v29, %v978_v28  ;;  %v163_v31 = vpop.f32.mrb[1].mxu0 }
 0x164   :  { %v182_v32 = vmul.f32 %v978_v28, %v163_v31 }
 0x165   :  { %v187_v33 = vsel %vm48_vm0, %v183_v30, 0.0 }
 0x166   :  { %188 = vadd.xlane.f32.xlu1 %v187_v33  ;;  %v184_v34 = vsel %vm48_vm0, %v182_v32, 0.0 }
 0x167   :  { %185 = vadd.xlane.f32.xlu0 %v184_v34 }
 0x177   :  { %214 = vperm.xlu1 %804, %v172_v36  }
 0x17b   :  { %226 = vperm.xlu1 %804, %v174_v37  }
 0x17f   :  { %231 = vperm.xlu1 %804, %v175_v38  }
 0x1f3   :  { %v189_v39 = vpop.xlane.xlu1 %188 }
 0x1f4   :  { %v191_v40 = vmul.f32 0.015625, %v189_v39  ;;  %v186_v41 = vpop.xlane.xlu0 %185 }
 0x1f5   :  { %v190_v42 = vmul.f32 0.015625, %v186_v41 }
 0x1f6   :  { %v193_v43 = vsub.f32 %v740_v29, %v191_v40 }
 0x1f7   :  { %v192_v44 = vsub.f32 %v163_v31, %v190_v42  ;;  %v215_v58 = vpop.permute.xlu1 %214 }
 0x1f8   :  { %v195_v45 = vmul.f32 %v193_v43, %v193_v43 }
 0x1f9   :  { %v194_v46 = vmul.f32 %v192_v44, %v192_v44 }
 0x1fa   :  { %v197_v47 = vmul.f32 %v978_v28, %v195_v45 }
 0x1fb   :  { %v196_v49 = vmul.f32 %v978_v28, %v194_v46  ;;  %v227_v59 = vpop.permute.xlu1 %226 }
 0x1fc   :  { %v201_v48 = vsel %vm48_vm0, %v197_v47, 0.0 }
 0x1fd   :  { %202 = vadd.xlane.f32.xlu0 %v201_v48  ;;  %v198_v50 = vsel %vm48_vm0, %v196_v49, 0.0 }
 0x1ff   :  { %v232_v1 = vpop.permute.xlu1 %231 }
 0x201   :  { %199 = vadd.xlane.f32.xlu0 %v198_v50 }
 0x217   :  { %219 = vperm.xlu0 %805, %v173_v51  }
 0x28a   :  { %v203_v52 = vpop.xlane.xlu0 %202 }
 0x28b   :  { %v205_v53 = vmul.f32 0.015625, %v203_v52 }
 0x28d   :  { %v207_v54 = vadd.f32 1e-05, %v205_v53 }
 0x28e   :  { %v200_v55 = vpop.xlane.xlu0 %199 }
 0x28f   :  { %866 = vrsqrt.f32 %v207_v54  ;;  %v204_v56 = vmul.f32 0.015625, %v200_v55 }
 0x291   :  { %v206_v57 = vadd.f32 1e-05, %v204_v56 }
 0x293   :  { %868 = vrsqrt.f32 %v206_v57 }
 0x296   :  { %v220_v61 = vpop.permute.xlu0 %219 }
 0x299   :  { %v867_v60 = vpop.eup %866 }
 0x29a   :  { %v211_v62 = vmul.f32 %v867_v60, %v193_v43 }
 0x29c   :  { %v223_v63 = vmul.f32 %v220_v61, %v211_v62 }
 0x29d   :  { %v869_v0 = vpop.eup %868 }
 0x29e   :  { %v210_v2 = vmul.f32 %v869_v0, %v192_v44  ;;  %v235_v3 = vadd.f32 %v232_v1, %v223_v63 }
 0x2a0   :  { %v222_v4 = vmul.f32 %v215_v58, %v210_v2  ;;  %v237_v6 = vmax.f32 %v235_v3, 0.0 }
 0x2a2   :  { %v234_v5 = vadd.f32 %v227_v59, %v222_v4  ;;  %v239_v9 = vmul.f32 %v978_v28, %v237_v6 }
 0x2a4   :  { %v236_v7 = vmax.f32 %v234_v5, 0.0 }
 0x2a6   :  { %v238_v8 = vmul.f32 %v978_v28, %v236_v7 }
 0x2a8   :  { %v241_v10 = vpack.c.bf16 %v239_v9, %v238_v8 }
 0x2aa   :  { %242 = vst.msk [vmem:[#allocation2 + $0x8] sm:$0xff] %vm48_vm0, %v241_v10 }
 0x2ab   :  { %244 = vst.msk [vmem:[#allocation2 + $0x8] sm:$0xff] %vm243_vm2, %v881_v35 }
 0x2b2   :  { %v246_v12 = vld [vmem:[#allocation2 + $0x8] sm:$0xff] }
 0x2b3   :  { %v248_v13 = vunpack.c.l.bf16 %v246_v12  ;;  %v250_v14 = vunpack.c.h.bf16 %v246_v12 }
 0x2b5   :  { %315 = vst.msk [vmem:[#allocation4 + $0x40] sm:$0xff] %vm48_vm0, %v248_v13  ;;  %316 = vst.msk [vmem:[#allocation4 + $0x48] sm:$0xff] %vm48_vm0, %v250_v14  ;;  %v806_v16 = vpack.i.bf16 %v248_v13, %v247_v11  ;;  %v811_v17 = vpack.i.bf16 %v250_v14, %v249_v15  ;;  %v846_v18 = vpack.i.bf16 %v250_v14, %v248_v13 }
 0x2b7   :  { %807 = vrot.lane.b32.xlu1 %v806_v16, %s882_s2  ;;  %837 = vrot.lane.b32.xlu0 %v806_v16, %s883_s16 }
 0x2bb   :  { %812 = vrot.lane.b32.xlu1 %v811_v17, %s882_s2  ;;  %847 = vrot.lane.b32.xlu0 %v846_v18, %s878_s21 }
 0x2bc   :  { %v362_v20 = vld [vmem:[#allocation4 + $0x48] sm:$0xff] }
 0x2bf   :  { %817 = vrot.lane.b32.xlu1 %v806_v16, %s885_s17  ;;  %857 = vrot.lane.b32.xlu0 %v846_v18, %s879_s22 }
 0x2c3   :  { %822 = vrot.lane.b32.xlu1 %v811_v17, %s885_s17 }
 0x2c7   :  { %827 = vrot.lane.b32.xlu1 %v806_v16, %s886_s18 }
 0x2cb   :  { %832 = vrot.lane.b32.xlu1 %v811_v17, %s886_s18 }
 0x2cf   :  { %842 = vrot.lane.b32.xlu1 %v811_v17, %s883_s16 }
 0x2d3   :  { %852 = vrot.lane.b32.xlu1 %v846_v18, %s887_s19 }
 0x2d7   :  { %862 = vrot.lane.b32.xlu1 %v846_v18, %s880_s23  ;;  %v361_v18 = vld [vmem:[#allocation4 + $0x40] sm:$0xff] }
 0x2d8   :  { %v775_v22 = vpack.c.bf16 %v362_v20, %v361_v18  ;;  %v599_v20 = vld [vmem:[%s1158_s10 + $0x8] sm:$0xff] }
 0x329   :  { %v808_v25 = vpop.permute.xlu1 %807  ;;  %v838_v26 = vpop.permute.xlu0 %837 }
 0x32a   :  { %v810_v27 = vunpack.i.h.bf16 %v808_v25  ;;  %v809_v29 = vunpack.i.l.bf16 %v808_v25  ;;  %v840_v30 = vunpack.i.h.bf16 %v838_v26  ;;  %v839_v31 = vunpack.i.l.bf16 %v838_v26 }
 0x32c   :  { %v264_v32 = vsel %vm263_vm5, %v809_v29, %v810_v27  ;;  %v309_v33 = vsel %vm308_vm6, %v839_v31, %v840_v30 }
 0x32d   :  { %268 = vst.msk [vmem:[#allocation4] sm:$0xff] %vm48_vm0, %v264_v32  ;;  %v813_v34 = vpop.permute.xlu1 %812  ;;  %313 = vst.msk [vmem:[#allocation4 + $0x30] sm:$0xff] %vm48_vm0, %v309_v33  ;;  %v848_v36 = vpop.permute.xlu0 %847 }
 0x32e   :  { %v815_v37 = vunpack.i.h.bf16 %v813_v34  ;;  %v814_v38 = vunpack.i.l.bf16 %v813_v34  ;;  %v850_v39 = vunpack.i.h.bf16 %v848_v36  ;;  %v849_v40 = vunpack.i.l.bf16 %v848_v36 }
 0x330   :  { %v265_v41 = vsel %vm263_vm5, %v814_v38, %v815_v37  ;;  %324 = vst.msk [vmem:[#allocation4 + $0x58] sm:$0xff] %vm48_vm0, %v850_v39  ;;  %323 = vst.msk [vmem:[#allocation4 + $0x50] sm:$0xff] %vm48_vm0, %v849_v40  ;;  %v349_v37 = vld [vmem:[%s1153_s4] sm:$0xff]  ;;  %v352_v38 = vld [vmem:[%s1153_s4 + $0x18] sm:$0xff]  ;;  %v745_v40 = vpop.f32.mrb[2].mxu0 }
 0x331   :  { %269 = vst.msk [vmem:[#allocation4 + $0x8] sm:$0xff] %vm48_vm0, %v265_v41  ;;  %v818_v42 = vpop.permute.xlu1 %817  ;;  %v858_v43 = vpop.permute.xlu0 %857  ;;  %v351_v39 = vld [vmem:[%s1153_s4 + $0x10] sm:$0xff] }
 0x332   :  { %v820_v44 = vunpack.i.h.bf16 %v818_v42  ;;  %v819_v45 = vunpack.i.l.bf16 %v818_v42  ;;  %v860_v46 = vunpack.i.h.bf16 %v858_v43  ;;  %v859_v47 = vunpack.i.l.bf16 %v858_v43  ;;  %v587_v41 = vpop.f32.mrb[3].mxu0 }
 0x334   :  { %v279_v48 = vsel %vm278_vm7, %v819_v45, %v820_v44  ;;  %340 = vst.msk [vmem:[#allocation4 + $0x78] sm:$0xff] %vm48_vm0, %v860_v46  ;;  %339 = vst.msk [vmem:[#allocation4 + $0x70] sm:$0xff] %vm48_vm0, %v859_v47  ;;  %v353_v53 = vld [vmem:[#allocation4] sm:$0xff]  ;;  %v359_v14 = vld [vmem:[#allocation4 + $0x30] sm:$0xff]  ;;  %v600_v44 = vmul.f32 %v978_v28, %v587_v41 }
 0x335   :  { %283 = vst.msk [vmem:[#allocation4 + $0x10] sm:$0xff] %vm48_vm0, %v279_v48  ;;  %v823_v49 = vpop.permute.xlu1 %822 }
 0x336   :  { %v825_v50 = vunpack.i.h.bf16 %v823_v49  ;;  %v824_v51 = vunpack.i.l.bf16 %v823_v49  ;;  %v602_v48 = vsel %vm48_vm0, %v600_v44, 0.0 }
 0x337   :  { %v363_v23 = vld [vmem:[#allocation4 + $0x50] sm:$0xff]  ;;  %v364_v24 = vld [vmem:[#allocation4 + $0x58] sm:$0xff] }
 0x338   :  { %v280_v52 = vsel %vm278_vm7, %v824_v51, %v825_v50  ;;  %v354_v54 = vld [vmem:[#allocation4 + $0x8] sm:$0xff]  ;;  %v778_v25 = vpack.c.bf16 %v364_v24, %v363_v23  ;;  %v601_v50 = vmul.f32 %v745_v40, %v978_v28 }
 0x339   :  { %284 = vst.msk [vmem:[#allocation4 + $0x18] sm:$0xff] %vm48_vm0, %v280_v52  ;;  %v828_v55 = vpop.permute.xlu1 %827  ;;  %v763_v56 = vpack.c.bf16 %v354_v54, %v353_v53 }
 0x33a   :  { %v830_v57 = vunpack.i.h.bf16 %v828_v55  ;;  %v829_v58 = vunpack.i.l.bf16 %v828_v55  ;;  %v605_v52 = vsel %vm48_vm0, %v601_v50, 0.0 }
 0x33b   :  { %764 = vmatpush1.bf16.msra.mxu1 %v763_v56  ;;  %v367_v30 = vld [vmem:[#allocation4 + $0x70] sm:$0xff]  ;;  %v368_v31 = vld [vmem:[#allocation4 + $0x78] sm:$0xff] }
 0x33c   :  { %v294_v59 = vsel %vm293_vm4, %v829_v58, %v830_v57  ;;  %765 = vmatprep.subr.bf16.mxu1 %v884_v19  ;;  %v355_v0 = vld [vmem:[#allocation4 + $0x10] sm:$0xff]  ;;  %v784_v32 = vpack.c.bf16 %v368_v31, %v367_v30 }
 0x33d   :  { %298 = vst.msk [vmem:[#allocation4 + $0x20] sm:$0xff] %vm48_vm0, %v294_v59  ;;  %v833_v60 = vpop.permute.xlu1 %832 }
 0x33e   :  { %v835_v61 = vunpack.i.h.bf16 %v833_v60  ;;  %v834_v62 = vunpack.i.l.bf16 %v833_v60 }
 0x340   :  { %v295_v63 = vsel %vm293_vm4, %v834_v62, %v835_v61  ;;  %v356_v1 = vld [vmem:[#allocation4 + $0x18] sm:$0xff] }
 0x341   :  { %299 = vst.msk [vmem:[#allocation4 + $0x28] sm:$0xff] %vm48_vm0, %v295_v63  ;;  %v843_v2 = vpop.permute.xlu1 %842  ;;  %v766_v3 = vpack.c.bf16 %v356_v1, %v355_v0 }
 0x342   :  { %v845_v4 = vunpack.i.h.bf16 %v843_v2  ;;  %v844_v5 = vunpack.i.l.bf16 %v843_v2 }
 0x343   :  { %767 = vmatpush1.bf16.msra.mxu1 %v766_v3 }
 0x344   :  { %v310_v6 = vsel %vm308_vm6, %v844_v5, %v845_v4  ;;  %768 = vmatprep.subr.bf16.mxu1 %v884_v19  ;;  %v357_v10 = vld [vmem:[#allocation4 + $0x20] sm:$0xff]  ;;  %v453_v4 = vld [vmem:[%s1155_s5] sm:$0xff] }
 0x345   :  { %314 = vst.msk [vmem:[#allocation4 + $0x38] sm:$0xff] %vm48_vm0, %v310_v6  ;;  %v853_v7 = vpop.permute.xlu1 %852  ;;  %v596_v5 = vld [vmem:[%s1156_s9] sm:$0xff]  ;;  %v597_v6 = vld [vmem:[%s1156_s9 + $0x8] sm:$0xff] }
 0x346   :  { %v855_v8 = vunpack.i.h.bf16 %v853_v7  ;;  %v854_v9 = vunpack.i.l.bf16 %v853_v7  ;;  %v454_v7 = vld [vmem:[%s1155_s5 + $0x8] sm:$0xff] }
 0x348   :  { %v358_v11 = vld [vmem:[#allocation4 + $0x28] sm:$0xff]  ;;  %332 = vst.msk [vmem:[#allocation4 + $0x68] sm:$0xff] %vm48_vm0, %v855_v8  ;;  %331 = vst.msk [vmem:[#allocation4 + $0x60] sm:$0xff] %vm48_vm0, %v854_v9  ;;  %v456_v8 = vld [vmem:[%s1157_s6 + $0x8] sm:$0xff] }
 0x349   :  { %v769_v12 = vpack.c.bf16 %v358_v11, %v357_v10  ;;  %v863_v13 = vpop.permute.xlu1 %862  ;;  %v455_v9 = vld [vmem:[%s1157_s6] sm:$0xff] }
 0x34a   :  { %v865_v15 = vunpack.i.h.bf16 %v863_v13  ;;  %v864_v16 = vunpack.i.l.bf16 %v863_v13 }
 0x34b   :  { %770 = vmatpush1.bf16.msra.mxu1 %v769_v12 }
 0x34c   :  { %771 = vmatprep.subr.bf16.mxu1 %v884_v19  ;;  %v360_v17 = vld [vmem:[#allocation4 + $0x38] sm:$0xff]  ;;  %348 = vst.msk [vmem:[#allocation4 + $0x88] sm:$0xff] %vm48_vm0, %v865_v15  ;;  %347 = vst.msk [vmem:[#allocation4 + $0x80] sm:$0xff] %vm48_vm0, %v864_v16 }
 0x34d   :  { %v772_v21 = vpack.c.bf16 %v360_v17, %v359_v14 }
 0x34f   :  { %773 = vmatpush1.bf16.msra.mxu1 %v772_v21  ;;  %v365_v26 = vld [vmem:[#allocation4 + $0x60] sm:$0xff]  ;;  %v366_v27 = vld [vmem:[#allocation4 + $0x68] sm:$0xff] }
 0x350   :  { %774 = vmatprep.subr.bf16.mxu1 %v884_v19  ;;  %v781_v29 = vpack.c.bf16 %v366_v27, %v365_v26  ;;  %v598_v21 = vld [vmem:[%s1158_s10] sm:$0xff] }
 0x353   :  { %776 = vmatpush1.bf16.msra.mxu1 %v775_v22  ;;  %v369_v33 = vld [vmem:[#allocation4 + $0x80] sm:$0xff]  ;;  %v370_v34 = vld [vmem:[#allocation4 + $0x88] sm:$0xff] }
 0x354   :  { %777 = vmatprep.subr.bf16.mxu1 %v884_v19  ;;  %v787_v36 = vpack.c.bf16 %v370_v34, %v369_v33 }
 0x357   :  { %779 = vmatpush1.bf16.msra.mxu1 %v778_v25 }
 0x358   :  { %780 = vmatprep.subr.bf16.mxu1 %v884_v19 }
 0x35b   :  { %782 = vmatpush1.bf16.msra.mxu1 %v781_v29 }
 0x35c   :  { %783 = vmatprep.subr.bf16.mxu1 %v884_v19 }
 0x35f   :  { %785 = vmatpush1.bf16.msra.mxu1 %v784_v32 }
 0x360   :  { %786 = vmatprep.subr.bf16.mxu1 %v884_v19 }
 0x363   :  { %788 = vmatpush1.bf16.msra.mxu1 %v787_v36 }
 0x366   :  { %443 = vmatmul.mubr.f32.vlgmr.msra.gmra.mrb[0].mxu1 %v349_v37 }
 0x367   :  { %689 = vmatprep.mubr.msk.f32.mxu1 %vm371_vm3, %v352_v38 }
 0x36a   :  { %448 = vmatmul.mubr.f32.gmra.mrb[2].mxu1 %v351_v39 }
 0x439   :  { %v444_v19 = vpop.f32.mrb[0].mxu1 }
 0x43a   :  { %v457_v42 = vmul.f32 %v978_v28, %v444_v19  ;;  %v446_v43 = vpop.f32.mrb[1].mxu1 }
 0x43c   :  { %v459_v45 = vsel %vm48_vm0, %v457_v42, 0.0 }
 0x43d   :  { %460 = vadd.xlane.f32.xlu0 %v459_v45  ;;  %v449_v46 = vpop.f32.mrb[2].mxu1 }
 0x43e   :  { %v458_v47 = vmul.f32 %v978_v28, %v449_v46  ;;  %v451_v49 = vpop.f32.mrb[3].mxu1 }
 0x440   :  { %v462_v51 = vsel %vm48_vm0, %v458_v47, 0.0 }
 0x441   :  { %603 = vadd.xlane.f32.xlu0 %v602_v48  ;;  %463 = vadd.xlane.f32.xlu1 %v462_v51 }
 0x445   :  { %606 = vadd.xlane.f32.xlu0 %v605_v52 }
 0x4ca   :  { %v461_v53 = vpop.xlane.xlu0 %460 }
 0x4cb   :  { %v465_v54 = vmul.f32 0.015625, %v461_v53 }
 0x4cd   :  { %v1077_v55 = vsub.f32 %v444_v19, %v465_v54 }
 0x4ce   :  { %v604_v56 = vpop.xlane.xlu0 %603  ;;  %v464_v10 = vpop.xlane.xlu1 %463 }
 0x4cf   :  { %v608_v57 = vmul.f32 0.015625, %v604_v56  ;;  %v466_v11 = vmul.f32 0.015625, %v464_v10  ;;  %v469_v15 = vmul.f32 %v1077_v55, %v1077_v55 }
 0x4d1   :  { %v1079_v58 = vsub.f32 %v587_v41, %v608_v57  ;;  %v468_v12 = vsub.f32 %v449_v46, %v466_v11  ;;  %v471_v17 = vmul.f32 %v978_v28, %v469_v15 }
 0x4d2   :  { %v607_v59 = vpop.xlane.xlu0 %606 }
 0x4d3   :  { %v609_v60 = vmul.f32 0.015625, %v607_v59  ;;  %v612_v61 = vmul.f32 %v1079_v58, %v1079_v58  ;;  %v470_v13 = vmul.f32 %v468_v12, %v468_v12  ;;  %v473_v18 = vsel %vm48_vm0, %v471_v17, 0.0 }
 0x4d5   :  { %v1083_v62 = vsub.f32 %v745_v40, %v609_v60  ;;  %v614_v63 = vmul.f32 %v978_v28, %v612_v61  ;;  %v472_v14 = vmul.f32 %v978_v28, %v470_v13 }
 0x4d7   :  { %v616_v0 = vsel %vm48_vm0, %v614_v63, 0.0  ;;  %v613_v1 = vmul.f32 %v1083_v62, %v1083_v62  ;;  %v476_v16 = vsel %vm48_vm0, %v472_v14, 0.0 }
 0x4d8   :  { %617 = vadd.xlane.f32.xlu1 %v616_v0 }
 0x4d9   :  { %v615_v2 = vmul.f32 %v978_v28, %v613_v1 }
 0x4db   :  { %v619_v3 = vsel %vm48_vm0, %v615_v2, 0.0 }
 0x4dc   :  { %620 = vadd.xlane.f32.xlu0 %v619_v3 }
 0x4e9   :  { %489 = vperm.xlu1 %804, %v453_v4  }
 0x4ed   :  { %632 = vperm.xlu1 %804, %v596_v5  }
 0x4f1   :  { %637 = vperm.xlu1 %804, %v597_v6  }
 0x4f2   :  { %494 = vperm.xlu0 %805, %v454_v7  }
 0x4f5   :  { %506 = vperm.xlu1 %804, %v456_v8  }
 0x4f6   :  { %501 = vperm.xlu0 %805, %v455_v9  }
 0x515   :  { %477 = vadd.xlane.f32.xlu0 %v476_v16 }
 0x519   :  { %474 = vadd.xlane.f32.xlu1 %v473_v18 }
 0x52a   :  { %649 = vperm.xlu1 %804, %v599_v20  }
 0x52b   :  { %644 = vperm.xlu0 %805, %v598_v21  }
 0x565   :  { %v618_v22 = vpop.xlane.xlu1 %617 }
 0x566   :  { %v622_v30 = vmul.f32 0.015625, %v618_v22 }
 0x568   :  { %v624_v33 = vadd.f32 1e-05, %v622_v30 }
 0x569   :  { %v490_v23 = vpop.permute.xlu1 %489  ;;  %v621_v24 = vpop.xlane.xlu0 %620 }
 0x56a   :  { %v623_v27 = vmul.f32 0.015625, %v621_v24 }
 0x56c   :  { %v625_v32 = vadd.f32 1e-05, %v623_v27 }
 0x56d   :  { %v633_v25 = vpop.permute.xlu1 %632 }
 0x56e   :  { %870 = vrsqrt.f32 %v625_v32 }
 0x56f   :  { %872 = vrsqrt.f32 %v624_v33 }
 0x571   :  { %v495_v26 = vpop.permute.xlu0 %494  ;;  %v638_v29 = vpop.permute.xlu1 %637 }
 0x575   :  { %v502_v31 = vpop.permute.xlu0 %501  ;;  %v507_v34 = vpop.permute.xlu1 %506 }
 0x578   :  { %v871_v19 = vpop.eup %870 }
 0x579   :  { %v873_v42 = vpop.eup %872  ;;  %v629_v43 = vmul.f32 %v871_v19, %v1083_v62 }
 0x57a   :  { %v628_v47 = vmul.f32 %v873_v42, %v1079_v58 }
 0x57b   :  { %v641_v48 = vmul.f32 %v638_v29, %v629_v43 }
 0x57c   :  { %v640_v56 = vmul.f32 %v633_v25, %v628_v47 }
 0x5a2   :  { %v478_v36 = vpop.xlane.xlu0 %477 }
 0x5a3   :  { %v480_v37 = vmul.f32 0.015625, %v478_v36 }
 0x5a5   :  { %v482_v38 = vadd.f32 1e-05, %v480_v37 }
 0x5a6   :  { %v475_v39 = vpop.xlane.xlu1 %474 }
 0x5a7   :  { %874 = vrsqrt.f32 %v482_v38  ;;  %v479_v40 = vmul.f32 0.015625, %v475_v39 }
 0x5a9   :  { %v481_v41 = vadd.f32 1e-05, %v479_v40 }
 0x5aa   :  { %v650_v46 = vpop.permute.xlu1 %649  ;;  %v645_v54 = vpop.permute.xlu0 %644 }
 0x5ab   :  { %876 = vrsqrt.f32 %v481_v41  ;;  %v653_v53 = vadd.f32 %v650_v46, %v641_v48  ;;  %v652_v61 = vadd.f32 %v645_v54, %v640_v56 }
 0x5b1   :  { %v875_v44 = vpop.eup %874 }
 0x5b2   :  { %v486_v45 = vmul.f32 %v875_v44, %v468_v12 }
 0x5b4   :  { %v498_v49 = vmul.f32 %v495_v26, %v486_v45 }
 0x5b5   :  { %v877_v50 = vpop.eup %876 }
 0x5b6   :  { %v485_v51 = vmul.f32 %v877_v50, %v1077_v55  ;;  %v510_v52 = vadd.f32 %v507_v34, %v498_v49 }
 0x5b8   :  { %v497_v57 = vmul.f32 %v490_v23, %v485_v51  ;;  %v655_v59 = vadd.f32 %v653_v53, %v510_v52 }
 0x5ba   :  { %v509_v60 = vadd.f32 %v502_v31, %v497_v57  ;;  %v657_v63 = vmax.f32 %v655_v59, 0.0 }
 0x5bc   :  { %v654_v62 = vadd.f32 %v652_v61, %v509_v60  ;;  %v659_v0 = vmul.f32 %v978_v28, %v657_v63 }
 0x5be   :  { %v656_v58 = vmax.f32 %v654_v62, 0.0  ;;  %v696_v1 = vpack.c.bf16 %v659_v0, %v659_v0 }
 0x5c0   :  { %v658_v55 = vmul.f32 %v978_v28, %v656_v58  ;;  %672 = vst.msk [vmem:[%s1159_s11 + $0x10] sm:$0xf] %vm670_vm10, %v696_v1 }
 0x5c1   :  { %677 = vst.msk [vmem:[%s1159_s11 + $0x10] sm:$0xff] %vm675_vm11, %v881_v35 }
 0x5c2   :  { %v695_v2 = vpack.c.bf16 %v658_v55, %v658_v55 }
 0x5c4   :  { %671 = vst.msk [vmem:[%s1159_s11 + $0x4] sm:$0xf] %vm670_vm10, %v695_v2 }
 0x5c5   :  { %676 = vst.msk [vmem:[%s1159_s11 + $0x4] sm:$0xff] %vm675_vm11, %v881_v35 }

// kernel: _lambda_.9
= control target key start
LH: loop header
LB: loop body
LE: loop exit
PB: predicated region body
PF: predicated region fallthrough
CT: control target
= control target key end

     0   :  { %vm56_vm0 = vcmask 244736   ;;  %v2168_v3 = vmov 0.0|0.0   ;;  %s2170_s29 = smov 123   ;;  %s2171_s30 = smov 122   ;;  %vm143_vm1 = vcmask 130048   ;;  %vm377_vm2 = vcmask 294128   ;;  %s3235_s0 = inlined_call_operand.vmem [shape: bf16[4,16,36], index: 0, kind: input, shape index: {}]   ;;  %s3236_s1 = inlined_call_operand.vmem [shape: f32[32,144], index: 1, kind: input, shape index: {}]   ;;  %s3237_s7 = inlined_call_operand.vmem [shape: f32[1,30], index: 7, kind: input, shape index: {}]   ;;  %s3238_s8 = inlined_call_operand.vmem [shape: f32[32,16], index: 8, kind: input, shape index: {}]   ;;  %s3239_s2 = inlined_call_operand.vmem [shape: f32[32,1], index: 2, kind: input, shape index: {}, may-alias: {2,5,9}]   ;;  %s3240_s3 = inlined_call_operand.vmem [shape: f32[32,1], index: 3, kind: input, shape index: {}, may-alias: {3,6,10}]   ;;  %s3241_s4 = inlined_call_operand.vmem [shape: f32[32,288], index: 4, kind: input, shape index: {}]   ;;  %s3242_s5 = inlined_call_operand.vmem [shape: f32[32,1], index: 5, kind: input, shape index: {}, may-alias: {2,5,9}]   ;;  %s3243_s9 = inlined_call_operand.vmem [shape: f32[32,1], index: 9, kind: input, shape index: {}, may-alias: {2,5,9}]   ;;  %s3244_s6 = inlined_call_operand.vmem [shape: f32[32,1], index: 6, kind: input, shape index: {}, may-alias: {3,6,10}]   ;;  %s3245_s10 = inlined_call_operand.vmem [shape: f32[32,1], index: 10, kind: input, shape index: {}, may-alias: {3,6,10}]   ;;  %s3246_s11 = inlined_call_operand.vmem [shape: f32[6,30], index: 11, kind: input, shape index: {}]   ;;  %s3247_s12 = inlined_call_operand.vmem [shape: f32[32,12], index: 12, kind: output, shape index: {}]  }
   0x1   :  { %v1762_v0 = vld [vmem:[%s3235_s0] sm:$0xff]   ;;  %v2249_v1 = vld [vmem:[%s3235_s0 + $0x18] sm:$0xff]   ;;  %v1782_v2 = vld [vmem:[%s3235_s0 + $0x10] sm:$0xff]   ;;  %1867 = vmatprep.subr.bf16.mxu0 %v2168_v3  ;;  %s2174_s19 = smov 5   ;;  %s2175_s20 = smov 4   ;;  %vm416_vm3 = vcmask 48128  }
   0x2   :  { %v1763_v4 = vunpack.c.l.bf16 %v1762_v0  ;;  %v1764_v5 = vunpack.c.h.bf16 %v1762_v0  ;;  %v1775_v6 = vunpack.c.l.bf16 %v2249_v1  ;;  %v1776_v7 = vunpack.c.h.bf16 %v2249_v1  ;;  %v1781_v8 = vld [vmem:[%s3235_s0 + $0x8] sm:$0xff]   ;;  %s2169_s0 = smov 127   ;;  %v117_v59 = vld [vmem:[%s3236_s1] sm:$0xff]  ;;  %v120_v60 = vld [vmem:[%s3236_s1 + $0x18] sm:$0xff]  ;;  %s2176_s21 = smov 124  }
   0x3   :  { %v1771_v9 = vunpack.c.l.bf16 %v1782_v2  ;;  %v1772_v10 = vunpack.c.h.bf16 %v1782_v2  ;;  %v1767_v11 = vunpack.c.l.bf16 %v1781_v8  ;;  %v1768_v12 = vunpack.c.h.bf16 %v1781_v8  ;;  %v118_v22 = vld [vmem:[%s3236_s1 + $0x8] sm:$0xff]  ;;  %v119_v61 = vld [vmem:[%s3236_s1 + $0x10] sm:$0xff]  ;;  %v121_v63 = vld [vmem:[%s3236_s1 + $0x20] sm:$0xff] }
   0x4   :  { %58 = vst.msk [vmem:[#allocation3 + $0x8] sm:$0xff] %vm56_vm0, %v1764_v5  ;;  %79 = vst.msk [vmem:[#allocation3 + $0x40] sm:$0xff] %vm56_vm0, %v1775_v6  ;;  %v1948_v13 = vpack.i.bf16 %v1764_v5, %v1763_v4  ;;  %1740 = vmatprep.mubr.msk.f32.mxu0 %vm143_vm1, %v118_v22  ;;  %v122_v62 = vld [vmem:[%s3236_s1 + $0x28] sm:$0xff]  ;;  %v124_v0 = vld [vmem:[%s3236_s1 + $0x38] sm:$0xff]  ;;  %vm445_vm4 = vcmask 39936   ;;  %vm474_vm5 = vcmask 31744  }
   0x5   :  { %80 = vst.msk [vmem:[#allocation3 + $0x48] sm:$0xff] %vm56_vm0, %v1776_v7  ;;  %57 = vst.msk [vmem:[#allocation3] sm:$0xff] %vm56_vm0, %v1763_v4  ;;  %v1953_v14 = vpack.i.bf16 %v1772_v10, %v1771_v9  ;;  %v1963_v15 = vpack.i.bf16 %v1768_v12, %v1767_v11  ;;  %v2324_v2 = vld [vmem:[%s3237_s7] ss:$0 sm:$0xff]  ;;  %v937_v22 = vld [vmem:[%s3238_s8 + $0x10] sm:$0xff]  ;;  %vm503_vm6 = vcmask 7168  }
   0x6   :  { %76 = vst.msk [vmem:[#allocation3 + $0x38] sm:$0xff] %vm56_vm0, %v1772_v10  ;;  %75 = vst.msk [vmem:[#allocation3 + $0x30] sm:$0xff] %vm56_vm0, %v1771_v9  ;;  %1949 = vrot.lane.b32.xlu0 %v1948_v13, %s2169_s0  ;;  %1959 = vrot.lane.b32.xlu1 %v1948_v13, %s2170_s29  ;;  %vm632_vm7 = vcmask 261120   ;;  %vm1678_vm10 = vcmask 15360   ;;  %vm1683_vm11 = vcmask 23552  }
   0x7   :  { %62 = vst.msk [vmem:[#allocation3 + $0x18] sm:$0xff] %vm56_vm0, %v1768_v12  ;;  %61 = vst.msk [vmem:[#allocation3 + $0x10] sm:$0xff] %vm56_vm0, %v1767_v11 }
   0xa   :  { %1954 = vrot.lane.b32.xlu0 %v1953_v14, %s2169_s0  ;;  %1964 = vrot.lane.b32.xlu1 %v1963_v15, %s2170_s29 }
   0xb   :  { %v126_v17 = vld [vmem:[#allocation3 + $0x8] sm:$0xff]  ;;  %v133_v44 = vld [vmem:[#allocation3 + $0x40] sm:$0xff] }
   0xc   :  { %v125_v16 = vld [vmem:[#allocation3] sm:$0xff]  ;;  %v134_v45 = vld [vmem:[#allocation3 + $0x48] sm:$0xff] }
   0xd   :  { %v1868_v18 = vpack.c.bf16 %v126_v17, %v125_v16  ;;  %v131_v36 = vld [vmem:[#allocation3 + $0x30] sm:$0xff]  ;;  %v132_v41 = vld [vmem:[#allocation3 + $0x38] sm:$0xff]  ;;  %v1880_v46 = vpack.c.bf16 %v134_v45, %v133_v44  ;;  %v246_v44 = vld [vmem:[%s3240_s3 + $0x8] sm:$0xff] }
   0xe   :  { %v127_v19 = vld [vmem:[#allocation3 + $0x10] sm:$0xff]  ;;  %v128_v20 = vld [vmem:[#allocation3 + $0x18] sm:$0xff]  ;;  %1969 = vrot.lane.b32.xlu0 %v1948_v13, %s2171_s30  ;;  %v1877_v43 = vpack.c.bf16 %v132_v41, %v131_v36  ;;  %v241_v45 = vld [vmem:[%s3239_s2] sm:$0xff] }
   0xf   :  { %1869 = vmatpush1.bf16.msra.mxu0 %v1868_v18  ;;  %v1871_v21 = vpack.c.bf16 %v128_v20, %v127_v19  ;;  %v2172_v19 = vmov 0   ;;  %v935_v20 = vld [vmem:[%s3238_s8] sm:$0xff] }
  0x10   :  { %1870 = vmatprep.subr.bf16.mxu0 %v2168_v3  ;;  %1974 = vset.pattern.permute.xlu1 %v2172_v19 }
  0x11   :  { %1973 = vset.pattern.permute.xlu0 %v2172_v19 }
  0x13   :  { %1872 = vmatpush1.bf16.msra.mxu0 %v1871_v21  ;;  %v936_v21 = vld [vmem:[%s3238_s8 + $0x8] sm:$0xff] }
  0x14   :  { %1873 = vmatprep.subr.bf16.mxu0 %v2168_v3 }
  0x78   :  { %v1950_v23 = vpop.permute.xlu0 %1949  ;;  %v1960_v24 = vpop.permute.xlu1 %1959 }
  0x79   :  { %v1952_v25 = vunpack.i.h.bf16 %v1950_v23  ;;  %v1951_v26 = vunpack.i.l.bf16 %v1950_v23  ;;  %v1962_v27 = vunpack.i.h.bf16 %v1960_v24  ;;  %v1961_v28 = vunpack.i.l.bf16 %v1960_v24  ;;  %v938_v23 = vld [vmem:[%s3238_s8 + $0x18] sm:$0xff]  ;;  %s2177_s8 = smov 1  }
  0x7b   :  { %72 = vst.msk [vmem:[#allocation3 + $0x28] sm:$0xff] %vm56_vm0, %v1952_v25  ;;  %71 = vst.msk [vmem:[#allocation3 + $0x20] sm:$0xff] %vm56_vm0, %v1951_v26 }
  0x7c   :  { %98 = vst.msk [vmem:[#allocation3 + $0x68] sm:$0xff] %vm56_vm0, %v1962_v27  ;;  %97 = vst.msk [vmem:[#allocation3 + $0x60] sm:$0xff] %vm56_vm0, %v1961_v28  ;;  %v1955_v29 = vpop.permute.xlu0 %1954  ;;  %v1965_v30 = vpop.permute.xlu1 %1964 }
  0x7d   :  { %v1957_v31 = vunpack.i.h.bf16 %v1955_v29  ;;  %v1956_v32 = vunpack.i.l.bf16 %v1955_v29  ;;  %v1967_v33 = vunpack.i.h.bf16 %v1965_v30  ;;  %v1966_v34 = vunpack.i.l.bf16 %v1965_v30 }
  0x7f   :  { %90 = vst.msk [vmem:[#allocation3 + $0x58] sm:$0xff] %vm56_vm0, %v1957_v31  ;;  %89 = vst.msk [vmem:[#allocation3 + $0x50] sm:$0xff] %vm56_vm0, %v1956_v32 }
  0x80   :  { %108 = vst.msk [vmem:[#allocation3 + $0x78] sm:$0xff] %vm56_vm0, %v1967_v33  ;;  %107 = vst.msk [vmem:[#allocation3 + $0x70] sm:$0xff] %vm56_vm0, %v1966_v34  ;;  %v1970_v35 = vpop.permute.xlu0 %1969 }
  0x81   :  { %v1972_v37 = vunpack.i.h.bf16 %v1970_v35  ;;  %v1971_v38 = vunpack.i.l.bf16 %v1970_v35 }
  0x82   :  { %v129_v39 = vld [vmem:[#allocation3 + $0x20] sm:$0xff]  ;;  %v130_v40 = vld [vmem:[#allocation3 + $0x28] sm:$0xff] }
  0x83   :  { %v1874_v42 = vpack.c.bf16 %v130_v40, %v129_v39  ;;  %116 = vst.msk [vmem:[#allocation3 + $0x88] sm:$0xff] %vm56_vm0, %v1972_v37  ;;  %115 = vst.msk [vmem:[#allocation3 + $0x80] sm:$0xff] %vm56_vm0, %v1971_v38  ;;  %v137_v50 = vld [vmem:[#allocation3 + $0x60] sm:$0xff]  ;;  %v138_v51 = vld [vmem:[#allocation3 + $0x68] sm:$0xff] }
  0x84   :  { %v1886_v52 = vpack.c.bf16 %v138_v51, %v137_v50 }
  0x85   :  { %1875 = vmatpush1.bf16.msra.mxu0 %v1874_v42  ;;  %v242_v42 = vld [vmem:[%s3239_s2 + $0x8] sm:$0xff] }
  0x86   :  { %1876 = vmatprep.subr.bf16.mxu0 %v2168_v3  ;;  %v135_v47 = vld [vmem:[#allocation3 + $0x50] sm:$0xff]  ;;  %v136_v48 = vld [vmem:[#allocation3 + $0x58] sm:$0xff] }
  0x87   :  { %v1883_v49 = vpack.c.bf16 %v136_v48, %v135_v47  ;;  %v139_v53 = vld [vmem:[#allocation3 + $0x70] sm:$0xff]  ;;  %v140_v54 = vld [vmem:[#allocation3 + $0x78] sm:$0xff] }
  0x88   :  { %v1889_v55 = vpack.c.bf16 %v140_v54, %v139_v53  ;;  %v244_v47 = vld [vmem:[%s3239_s2 + $0x18] sm:$0xff]  ;;  %v247_v48 = vld [vmem:[%s3240_s3 + $0x10] sm:$0xff] }
  0x89   :  { %1878 = vmatpush1.bf16.msra.mxu0 %v1877_v43  ;;  %v245_v43 = vld [vmem:[%s3240_s3] sm:$0xff] }
  0x8a   :  { %1879 = vmatprep.subr.bf16.mxu0 %v2168_v3  ;;  %v141_v56 = vld [vmem:[#allocation3 + $0x80] sm:$0xff]  ;;  %v142_v57 = vld [vmem:[#allocation3 + $0x88] sm:$0xff] }
  0x8b   :  { %v1892_v58 = vpack.c.bf16 %v142_v57, %v141_v56 }
  0x8d   :  { %1881 = vmatpush1.bf16.msra.mxu0 %v1880_v46  ;;  %v243_v46 = vld [vmem:[%s3239_s2 + $0x10] sm:$0xff] }
  0x8e   :  { %1882 = vmatprep.subr.bf16.mxu0 %v2168_v3 }
  0x91   :  { %1884 = vmatpush1.bf16.msra.mxu0 %v1883_v49 }
  0x92   :  { %1885 = vmatprep.subr.bf16.mxu0 %v2168_v3 }
  0x95   :  { %1887 = vmatpush1.bf16.msra.mxu0 %v1886_v52 }
  0x96   :  { %1888 = vmatprep.subr.bf16.mxu0 %v2168_v3 }
  0x99   :  { %1890 = vmatpush1.bf16.msra.mxu0 %v1889_v55  ;;  %v248_v55 = vld [vmem:[%s3240_s3 + $0x18] sm:$0xff]  ;;  %s2173_s3 = smov 6  }
  0x9a   :  { %1891 = vmatprep.subr.bf16.mxu0 %v2168_v3 }
  0x9d   :  { %1893 = vmatpush1.bf16.msra.mxu0 %v1892_v58 }
  0x9e   :  { %1935 = vmatprep.subr.bf16.mxu0 %v2249_v1 }
  0xa0   :  { %221 = vmatmul.mubr.f32.vlgmr.msra.gmra.mrb[0].mxu0 %v117_v59 }
  0xa1   :  { %1741 = vmatprep.mubr.msk.f32.mxu0 %vm143_vm1, %v120_v60  ;;  %1937 = vmatpush3.bf16.msra.mxu0 %v2249_v1  ;;  %v123_v1 = vld [vmem:[%s3236_s1 + $0x30] sm:$0xff] }
  0xa4   :  { %226 = vmatmul.mubr.f32.gmra.mrb[2].mxu0 %v119_v61 }
  0xa5   :  { %1742 = vmatprep.mubr.msk.f32.mxu0 %vm143_vm1, %v122_v62 }
  0xa8   :  { %231 = vmatmul.mubr.f32.gmra.mrb[4].mxu0 %v121_v63 }
  0xa9   :  { %1743 = vmatprep.mubr.msk.f32.mxu0 %vm143_vm1, %v124_v0 }
  0xac   :  { %236 = vmatmul.mubr.f32.gmra.mrb[6].mxu0 %v123_v1 }
  0xad   :  { %1861 = vmatprep.mubr.msk.f32.mxu0 %vm143_vm1, %v935_v20 }
  0xb0   :  { %1862 = vmatmul.mubr.msk.f32.vlgmr.msra.gmra.mrb[8].mxu0 %vm143_vm1, %v936_v21 }
  0xb1   :  { %1864 = vmatprep.mubr.msk.f32.mxu0 %vm143_vm1, %v937_v22 }
  0xb4   :  { %1865 = vmatmul.mubr.msk.f32.gmra.mrb[10].mxu0 %vm143_vm1, %v938_v23 }
 0x173   :  { %v222_v3 = vpop.f32.mrb[0].mxu0 }
 0x174   :  { %v255_v4 = vmul.f32 %v2324_v2, %v222_v3  ;;  %v224_v5 = vpop.f32.mrb[1].mxu0 }
 0x176   :  { %v259_v6 = vsel %vm56_vm0, %v255_v4, 0.0 }
 0x177   :  { %260 = vadd.xlane.f32.xlu1 %v259_v6  ;;  %v227_v7 = vpop.f32.mrb[2].mxu0 }
 0x178   :  { %v256_v8 = vmul.f32 %v2324_v2, %v227_v7  ;;  %v229_v9 = vpop.f32.mrb[3].mxu0 }
 0x17a   :  { %v262_v10 = vsel %vm56_vm0, %v256_v8, 0.0 }
 0x17b   :  { %263 = vadd.xlane.f32.xlu0 %v262_v10  ;;  %v232_v11 = vpop.f32.mrb[4].mxu0 }
 0x17c   :  { %v257_v12 = vmul.f32 %v2324_v2, %v232_v11  ;;  %v234_v13 = vpop.f32.mrb[5].mxu0 }
 0x17e   :  { %v265_v14 = vsel %vm56_vm0, %v257_v12, 0.0 }
 0x17f   :  { %266 = vadd.xlane.f32.xlu0 %v265_v14  ;;  %v237_v15 = vpop.f32.mrb[6].mxu0 }
 0x180   :  { %v258_v16 = vmul.f32 %v2324_v2, %v237_v15  ;;  %v239_v17 = vpop.f32.mrb[7].mxu0 }
 0x181   :  { %v384_v17 = vunpack.c.l.bf16 %v2172_v19 }
 0x182   :  { %v268_v18 = vsel %vm56_vm0, %v258_v16, 0.0 }
 0x183   :  { %269 = vadd.xlane.f32.xlu1 %v268_v18  ;;  %v386_v18 = vunpack.c.h.bf16 %v2172_v19  ;;  %v2399_v20 = vpop.f32.mrb[8].mxu0 }
 0x184   :  { %v2401_v22 = vpop.f32.mrb[9].mxu0 }
 0x204   :  { %v261_v24 = vpop.xlane.xlu1 %260 }
 0x205   :  { %v271_v25 = vmul.f32 0.0625, %v261_v24 }
 0x207   :  { %v275_v26 = vsub.f32 %v222_v3, %v271_v25 }
 0x208   :  { %v264_v27 = vpop.xlane.xlu0 %263 }
 0x209   :  { %v272_v28 = vmul.f32 0.0625, %v264_v27  ;;  %v279_v29 = vmul.f32 %v275_v26, %v275_v26 }
 0x20b   :  { %v276_v30 = vsub.f32 %v227_v7, %v272_v28  ;;  %v283_v31 = vmul.f32 %v2324_v2, %v279_v29  ;;  %v2409_v28 = vpop.f32.mrb[10].mxu0 }
 0x20c   :  { %v267_v32 = vpop.xlane.xlu0 %266  ;;  %v2420_v29 = vpop.f32.mrb[11].mxu0 }
 0x20d   :  { %v273_v33 = vmul.f32 0.0625, %v267_v32  ;;  %v287_v34 = vsel %vm56_vm0, %v283_v31, 0.0  ;;  %v280_v35 = vmul.f32 %v276_v30, %v276_v30 }
 0x20e   :  { %288 = vadd.xlane.f32.xlu0 %v287_v34 }
 0x20f   :  { %v2354_v36 = vsub.f32 %v232_v11, %v273_v33  ;;  %v284_v37 = vmul.f32 %v2324_v2, %v280_v35 }
 0x210   :  { %v270_v49 = vpop.xlane.xlu1 %269 }
 0x211   :  { %v290_v38 = vsel %vm56_vm0, %v284_v37, 0.0  ;;  %v281_v39 = vmul.f32 %v2354_v36, %v2354_v36  ;;  %v274_v50 = vmul.f32 0.0625, %v270_v49 }
 0x212   :  { %291 = vadd.xlane.f32.xlu1 %v290_v38 }
 0x213   :  { %v285_v40 = vmul.f32 %v2324_v2, %v281_v39  ;;  %v2383_v51 = vsub.f32 %v237_v15, %v274_v50 }
 0x215   :  { %v293_v41 = vsel %vm56_vm0, %v285_v40, 0.0  ;;  %v282_v52 = vmul.f32 %v2383_v51, %v2383_v51 }
 0x216   :  { %294 = vadd.xlane.f32.xlu0 %v293_v41 }
 0x217   :  { %v286_v53 = vmul.f32 %v2324_v2, %v282_v52 }
 0x219   :  { %v296_v54 = vsel %vm56_vm0, %v286_v53, 0.0 }
 0x223   :  { %322 = vperm.xlu1 %1974, %v242_v42  }
 0x227   :  { %341 = vperm.xlu1 %1974, %v245_v43  }
 0x22b   :  { %346 = vperm.xlu1 %1974, %v246_v44  }
 0x22c   :  { %317 = vperm.xlu0 %1973, %v241_v45  }
 0x22f   :  { %327 = vperm.xlu1 %1974, %v243_v46  }
 0x233   :  { %332 = vperm.xlu1 %1974, %v244_v47  }
 0x237   :  { %351 = vperm.xlu1 %1974, %v247_v48  }
 0x25b   :  { %297 = vadd.xlane.f32.xlu1 %v296_v54 }
 0x26c   :  { %356 = vperm.xlu1 %1974, %v248_v55  }
 0x29b   :  { %v289_v56 = vpop.xlane.xlu0 %288 }
 0x29c   :  { %v299_v57 = vmul.f32 0.0625, %v289_v56 }
 0x29e   :  { %v303_v58 = vadd.f32 1e-05, %v299_v57 }
 0x29f   :  { %v292_v59 = vpop.xlane.xlu1 %291 }
 0x2a0   :  { %2095 = vrsqrt.f32 %v303_v58  ;;  %v300_v60 = vmul.f32 0.0625, %v292_v59 }
 0x2a2   :  { %v304_v61 = vadd.f32 1e-05, %v300_v60  ;;  %v585_v60 = vld [vmem:[%s3241_s4 + $0x8] sm:$0xff] }
 0x2a3   :  { %v323_v62 = vpop.permute.xlu1 %322  ;;  %v295_v63 = vpop.xlane.xlu0 %294  ;;  %709 = vmatprep.mubr.f32.mxu1 %v585_v60 }
 0x2a4   :  { %2097 = vrsqrt.f32 %v304_v61  ;;  %v301_v31 = vmul.f32 0.0625, %v295_v63 }
 0x2a6   :  { %v305_v33 = vadd.f32 1e-05, %v301_v31 }
 0x2a7   :  { %v342_v4 = vpop.permute.xlu1 %341 }
 0x2a8   :  { %2099 = vrsqrt.f32 %v305_v33 }
 0x2aa   :  { %v2096_v0 = vpop.eup %2095 }
 0x2ab   :  { %v311_v1 = vmul.f32 %v2096_v0, %v275_v26  ;;  %v318_v3 = vpop.permute.xlu0 %317  ;;  %v347_v10 = vpop.permute.xlu1 %346 }
 0x2ad   :  { %v335_v5 = vmul.f32 %v318_v3, %v311_v1 }
 0x2ae   :  { %v2098_v6 = vpop.eup %2097 }
 0x2af   :  { %v312_v7 = vmul.f32 %v2098_v6, %v276_v30  ;;  %v359_v8 = vadd.f32 %v342_v4, %v335_v5  ;;  %v328_v30 = vpop.permute.xlu1 %327 }
 0x2b1   :  { %v336_v9 = vmul.f32 %v323_v62, %v312_v7  ;;  %v363_v12 = vmax.f32 %v359_v8, 0.0 }
 0x2b2   :  { %v2100_v39 = vpop.eup %2099 }
 0x2b3   :  { %v360_v11 = vadd.f32 %v347_v10, %v336_v9  ;;  %v367_v15 = vmul.f32 %v2324_v2, %v363_v12  ;;  %v333_v32 = vpop.permute.xlu1 %332  ;;  %v313_v40 = vmul.f32 %v2100_v39, %v2354_v36 }
 0x2b5   :  { %v364_v13 = vmax.f32 %v360_v11, 0.0  ;;  %v337_v41 = vmul.f32 %v328_v30, %v313_v40  ;;  %v1046_v40 = vmul.f32 %v2324_v2, %v2420_v29 }
 0x2b7   :  { %v368_v14 = vmul.f32 %v2324_v2, %v364_v13  ;;  %v352_v34 = vpop.permute.xlu1 %351 }
 0x2b8   :  { %v361_v43 = vadd.f32 %v352_v34, %v337_v41  ;;  %v1047_v41 = vmul.f32 %v2409_v28, %v2324_v2 }
 0x2b9   :  { %v373_v16 = vpack.c.bf16 %v368_v14, %v367_v15 }
 0x2ba   :  { %v365_v47 = vmax.f32 %v361_v43, 0.0  ;;  %v1054_v43 = vsel %vm56_vm0, %v1046_v40, 0.0 }
 0x2bb   :  { %375 = vst.msk [vmem:[#allocation2 + $0x8] sm:$0xff] %vm56_vm0, %v373_v16 }
 0x2bc   :  { %378 = vst.msk [vmem:[#allocation2 + $0x8] sm:$0xff] %vm377_vm2, %v2172_v19  ;;  %v369_v50 = vmul.f32 %v2324_v2, %v365_v47 }
 0x2c3   :  { %v381_v21 = vld [vmem:[#allocation2 + $0x8] sm:$0xff] }
 0x2c4   :  { %v385_v23 = vunpack.c.l.bf16 %v381_v21  ;;  %v387_v24 = vunpack.c.h.bf16 %v381_v21 }
 0x2c6   :  { %v2403_v25 = vpack.i.bf16 %v385_v23, %v384_v17  ;;  %516 = vst.msk [vmem:[#allocation4 + $0x80] sm:$0xff] %vm56_vm0, %v385_v23  ;;  %v1980_v26 = vpack.i.bf16 %v387_v24, %v386_v18  ;;  %517 = vst.msk [vmem:[#allocation4 + $0x88] sm:$0xff] %vm56_vm0, %v387_v24  ;;  %v2407_v27 = vpack.i.bf16 %v387_v24, %v385_v23 }
 0x2c8   :  { %1976 = vrot.lane.b32.xlu1 %v2403_v25, %s2173_s3  ;;  %1981 = vrot.lane.b32.xlu0 %v1980_v26, %s2173_s3 }
 0x2cc   :  { %1986 = vrot.lane.b32.xlu1 %v2403_v25, %s2174_s19  ;;  %1991 = vrot.lane.b32.xlu0 %v1980_v26, %s2174_s19 }
 0x2cd   :  { %v612_v53 = vld [vmem:[#allocation4 + $0x80] sm:$0xff]  ;;  %v613_v54 = vld [vmem:[#allocation4 + $0x88] sm:$0xff] }
 0x2ce   :  { %v1894_v56 = vpack.c.bf16 %v613_v54, %v612_v53 }
 0x2d0   :  { %1996 = vrot.lane.b32.xlu1 %v2407_v27, %s2169_s0  ;;  %2006 = vrot.lane.b32.xlu0 %v1980_v26, %s2175_s20 }
 0x2d1   :  { %1895 = vmatprep.subr.bf16.mxu1 %v1894_v56 }
 0x2d4   :  { %2001 = vrot.lane.b32.xlu1 %v2403_v25, %s2175_s20 }
 0x2e8   :  { %v298_v35 = vpop.xlane.xlu1 %297 }
 0x2e9   :  { %v302_v37 = vmul.f32 0.0625, %v298_v35  ;;  %v1044_v35 = vmul.f32 %v2324_v2, %v2401_v22 }
 0x2eb   :  { %v306_v38 = vadd.f32 1e-05, %v302_v37  ;;  %v1048_v39 = vsel %vm56_vm0, %v1044_v35, 0.0 }
 0x2ec   :  { %v357_v46 = vpop.permute.xlu1 %356 }
 0x2ed   :  { %2101 = vrsqrt.f32 %v306_v38  ;;  %v1045_v38 = vmul.f32 %v2399_v20, %v2324_v2 }
 0x2f7   :  { %v2102_v42 = vpop.eup %2101 }
 0x2f8   :  { %v314_v44 = vmul.f32 %v2102_v42, %v2383_v51  ;;  %v1051_v42 = vsel %vm56_vm0, %v1045_v38, 0.0 }
 0x2fa   :  { %v338_v45 = vmul.f32 %v333_v32, %v314_v44  ;;  %v1057_v44 = vsel %vm56_vm0, %v1047_v41, 0.0 }
 0x2fc   :  { %v362_v48 = vadd.f32 %v357_v46, %v338_v45 }
 0x2fe   :  { %v366_v49 = vmax.f32 %v362_v48, 0.0 }
 0x300   :  { %v370_v52 = vmul.f32 %v2324_v2, %v366_v49 }
 0x302   :  { %v374_v55 = vpack.c.bf16 %v370_v52, %v369_v50 }
 0x304   :  { %376 = vst.msk [vmem:[#allocation2 + $0x18] sm:$0xff] %vm56_vm0, %v374_v55 }
 0x305   :  { %379 = vst.msk [vmem:[#allocation2 + $0x18] sm:$0xff] %vm377_vm2, %v2172_v19 }
 0x30c   :  { %v383_v36 = vld [vmem:[#allocation2 + $0x18] sm:$0xff] }
 0x30d   :  { %v389_v51 = vunpack.c.l.bf16 %v383_v36  ;;  %v391_v57 = vunpack.c.h.bf16 %v383_v36 }
 0x30f   :  { %518 = vst.msk [vmem:[#allocation4 + $0x90] sm:$0xff] %vm56_vm0, %v389_v51  ;;  %519 = vst.msk [vmem:[#allocation4 + $0x98] sm:$0xff] %vm56_vm0, %v391_v57  ;;  %v2020_v58 = vpack.i.bf16 %v391_v57, %v386_v18  ;;  %v2010_v59 = vpack.i.bf16 %v389_v51, %v384_v17  ;;  %v2045_v19 = vpack.i.bf16 %v391_v57, %v389_v51 }
 0x311   :  { %2021 = vrot.lane.b32.xlu0 %v2020_v58, %s2173_s3  ;;  %2011 = vrot.lane.b32.xlu1 %v2010_v59, %s2173_s3 }
 0x315   :  { %2026 = vrot.lane.b32.xlu0 %v2010_v59, %s2174_s19  ;;  %2016 = vrot.lane.b32.xlu1 %v2407_v27, %s2176_s21 }
 0x316   :  { %v614_v16 = vld [vmem:[#allocation4 + $0x90] sm:$0xff]  ;;  %v615_v17 = vld [vmem:[#allocation4 + $0x98] sm:$0xff] }
 0x317   :  { %v1898_v30 = vpack.c.bf16 %v615_v17, %v614_v16 }
 0x319   :  { %2041 = vrot.lane.b32.xlu0 %v1980_v26, %s2177_s8  ;;  %2031 = vrot.lane.b32.xlu1 %v2020_v58, %s2174_s19 }
 0x31d   :  { %2046 = vrot.lane.b32.xlu0 %v2045_v19, %s2169_s0  ;;  %2036 = vrot.lane.b32.xlu1 %v2403_v25, %s2177_s8 }
 0x321   :  { %2051 = vrot.lane.b32.xlu0 %v2010_v59, %s2175_s20  ;;  %2056 = vrot.lane.b32.xlu1 %v2020_v58, %s2175_s20 }
 0x325   :  { %2066 = vrot.lane.b32.xlu0 %v2045_v19, %s2176_s21  ;;  %2061 = vrot.lane.b32.xlu1 %v2407_v27, %s2170_s29 }
 0x329   :  { %2071 = vrot.lane.b32.xlu0 %v2010_v59, %s2177_s8  ;;  %2076 = vrot.lane.b32.xlu1 %v2020_v58, %s2177_s8 }
 0x32d   :  { %2081 = vrot.lane.b32.xlu0 %v2045_v19, %s2170_s29  ;;  %2086 = vrot.lane.b32.xlu1 %v2407_v27, %s2171_s30 }
 0x331   :  { %2091 = vrot.lane.b32.xlu0 %v2045_v19, %s2171_s30 }
 0x33a   :  { %v1977_v61 = vpop.permute.xlu1 %1976  ;;  %v1982_v62 = vpop.permute.xlu0 %1981 }
 0x33b   :  { %v1979_v63 = vunpack.i.h.bf16 %v1977_v61  ;;  %v1978_v0 = vunpack.i.l.bf16 %v1977_v61  ;;  %v1984_v1 = vunpack.i.h.bf16 %v1982_v62  ;;  %v1983_v3 = vunpack.i.l.bf16 %v1982_v62 }
 0x33d   :  { %v417_v4 = vsel %vm416_vm3, %v1978_v0, %v1979_v63  ;;  %v418_v5 = vsel %vm416_vm3, %v1983_v3, %v1984_v1 }
 0x33e   :  { %425 = vst.msk [vmem:[#allocation4] sm:$0xff] %vm56_vm0, %v417_v4  ;;  %426 = vst.msk [vmem:[#allocation4 + $0x8] sm:$0xff] %vm56_vm0, %v418_v5  ;;  %v1987_v6 = vpop.permute.xlu1 %1986  ;;  %v1992_v7 = vpop.permute.xlu0 %1991 }
 0x33f   :  { %v1989_v8 = vunpack.i.h.bf16 %v1987_v6  ;;  %v1988_v9 = vunpack.i.l.bf16 %v1987_v6  ;;  %v1994_v10 = vunpack.i.h.bf16 %v1992_v7  ;;  %v1993_v11 = vunpack.i.l.bf16 %v1992_v7 }
 0x341   :  { %v446_v12 = vsel %vm445_vm4, %v1988_v9, %v1989_v8  ;;  %v447_v13 = vsel %vm445_vm4, %v1993_v11, %v1994_v10 }
 0x342   :  { %454 = vst.msk [vmem:[#allocation4 + $0x20] sm:$0xff] %vm56_vm0, %v446_v12  ;;  %455 = vst.msk [vmem:[#allocation4 + $0x28] sm:$0xff] %vm56_vm0, %v447_v13  ;;  %v1997_v14 = vpop.permute.xlu1 %1996  ;;  %v2007_v15 = vpop.permute.xlu0 %2006 }
 0x343   :  { %v1999_v18 = vunpack.i.h.bf16 %v1997_v14  ;;  %v1998_v21 = vunpack.i.l.bf16 %v1997_v14  ;;  %v2009_v23 = vunpack.i.h.bf16 %v2007_v15  ;;  %v2008_v24 = vunpack.i.l.bf16 %v2007_v15 }
 0x345   :  { %533 = vst.msk [vmem:[#allocation4 + $0xa8] sm:$0xff] %vm56_vm0, %v1999_v18  ;;  %532 = vst.msk [vmem:[#allocation4 + $0xa0] sm:$0xff] %vm56_vm0, %v1998_v21  ;;  %v476_v25 = vsel %vm474_vm5, %v2008_v24, %v2009_v23  ;;  %v596_v26 = vld [vmem:[#allocation4] sm:$0xff]  ;;  %v597_v27 = vld [vmem:[#allocation4 + $0x8] sm:$0xff] }
 0x346   :  { %484 = vst.msk [vmem:[#allocation4 + $0x48] sm:$0xff] %vm56_vm0, %v476_v25  ;;  %v2002_v31 = vpop.permute.xlu1 %2001  ;;  %v1896_v32 = vpack.c.bf16 %v597_v27, %v596_v26 }
 0x347   :  { %v2004_v33 = vunpack.i.h.bf16 %v2002_v31  ;;  %v2003_v34 = vunpack.i.l.bf16 %v2002_v31 }
 0x348   :  { %1897 = vmatpush3.bf16.msra.mxu1 %v1896_v32 }
 0x349   :  { %v475_v37 = vsel %vm474_vm5, %v2003_v34, %v2004_v33  ;;  %1899 = vmatprep.subr.bf16.mxu1 %v1898_v30  ;;  %v600_v15 = vld [vmem:[#allocation4 + $0x20] sm:$0xff]  ;;  %v601_v16 = vld [vmem:[#allocation4 + $0x28] sm:$0xff] }
 0x34a   :  { %483 = vst.msk [vmem:[#allocation4 + $0x40] sm:$0xff] %vm56_vm0, %v475_v37  ;;  %v1904_v23 = vpack.c.bf16 %v601_v16, %v600_v15 }
 0x34c   :  { %v616_v0 = vld [vmem:[#allocation4 + $0xa0] sm:$0xff]  ;;  %v617_v1 = vld [vmem:[#allocation4 + $0xa8] sm:$0xff] }
 0x34d   :  { %v1902_v10 = vpack.c.bf16 %v617_v1, %v616_v0 }
 0x350   :  { %1049 = vadd.xlane.f32.xlu0 %v1048_v39 }
 0x351   :  { %1052 = vadd.xlane.f32.xlu1 %v1051_v42 }
 0x354   :  { %1055 = vadd.xlane.f32.xlu0 %v1054_v43 }
 0x355   :  { %1058 = vadd.xlane.f32.xlu1 %v1057_v44 }
 0x383   :  { %v2022_v45 = vpop.permute.xlu0 %2021  ;;  %v2012_v46 = vpop.permute.xlu1 %2011 }
 0x384   :  { %v2024_v47 = vunpack.i.h.bf16 %v2022_v45  ;;  %v2023_v48 = vunpack.i.l.bf16 %v2022_v45  ;;  %v2014_v49 = vunpack.i.h.bf16 %v2012_v46  ;;  %v2013_v50 = vunpack.i.l.bf16 %v2012_v46 }
 0x386   :  { %v420_v52 = vsel %vm416_vm3, %v2023_v48, %v2024_v47  ;;  %v419_v53 = vsel %vm416_vm3, %v2013_v50, %v2014_v49 }
 0x387   :  { %428 = vst.msk [vmem:[#allocation4 + $0x18] sm:$0xff] %vm56_vm0, %v420_v52  ;;  %427 = vst.msk [vmem:[#allocation4 + $0x10] sm:$0xff] %vm56_vm0, %v419_v53  ;;  %v2027_v54 = vpop.permute.xlu0 %2026  ;;  %v2017_v55 = vpop.permute.xlu1 %2016 }
 0x388   :  { %v2029_v56 = vunpack.i.h.bf16 %v2027_v54  ;;  %v2028_v36 = vunpack.i.l.bf16 %v2027_v54  ;;  %v2019_v51 = vunpack.i.h.bf16 %v2017_v55  ;;  %v2018_v57 = vunpack.i.l.bf16 %v2017_v55  ;;  %v604_v55 = vld [vmem:[#allocation4 + $0x40] sm:$0xff] }
 0x38a   :  { %v448_v58 = vsel %vm445_vm4, %v2028_v36, %v2029_v56  ;;  %549 = vst.msk [vmem:[#allocation4 + $0xc8] sm:$0xff] %vm56_vm0, %v2019_v51  ;;  %548 = vst.msk [vmem:[#allocation4 + $0xc0] sm:$0xff] %vm56_vm0, %v2018_v57  ;;  %v605_v56 = vld [vmem:[#allocation4 + $0x48] sm:$0xff] }
 0x38b   :  { %456 = vst.msk [vmem:[#allocation4 + $0x30] sm:$0xff] %vm56_vm0, %v448_v58  ;;  %v2042_v59 = vpop.permute.xlu0 %2041  ;;  %v2032_v19 = vpop.permute.xlu1 %2031  ;;  %v1912_v58 = vpack.c.bf16 %v605_v56, %v604_v55 }
 0x38c   :  { %v2044_v60 = vunpack.i.h.bf16 %v2042_v59  ;;  %v2043_v61 = vunpack.i.l.bf16 %v2042_v59  ;;  %v2034_v62 = vunpack.i.h.bf16 %v2032_v19  ;;  %v2033_v63 = vunpack.i.l.bf16 %v2032_v19 }
 0x38e   :  { %v505_v3 = vsel %vm503_vm6, %v2043_v61, %v2044_v60  ;;  %v449_v4 = vsel %vm445_vm4, %v2033_v63, %v2034_v62  ;;  %v598_v5 = vld [vmem:[#allocation4 + $0x10] sm:$0xff]  ;;  %v599_v6 = vld [vmem:[#allocation4 + $0x18] sm:$0xff] }
 0x38f   :  { %513 = vst.msk [vmem:[#allocation4 + $0x68] sm:$0xff] %vm56_vm0, %v505_v3  ;;  %457 = vst.msk [vmem:[#allocation4 + $0x38] sm:$0xff] %vm56_vm0, %v449_v4  ;;  %v2047_v7 = vpop.permute.xlu0 %2046  ;;  %v2037_v8 = vpop.permute.xlu1 %2036  ;;  %v1900_v9 = vpack.c.bf16 %v599_v6, %v598_v5 }
 0x390   :  { %v2049_v11 = vunpack.i.h.bf16 %v2047_v7  ;;  %v2048_v12 = vunpack.i.l.bf16 %v2047_v7  ;;  %v2039_v13 = vunpack.i.h.bf16 %v2037_v8  ;;  %v2038_v14 = vunpack.i.l.bf16 %v2037_v8 }
 0x391   :  { %1901 = vmatpush3.bf16.msra.mxu1 %v1900_v9  ;;  %v620_v40 = vld [vmem:[#allocation4 + $0xc0] sm:$0xff]  ;;  %v621_v41 = vld [vmem:[#allocation4 + $0xc8] sm:$0xff] }
 0x392   :  { %535 = vst.msk [vmem:[#allocation4 + $0xb8] sm:$0xff] %vm56_vm0, %v2049_v11  ;;  %534 = vst.msk [vmem:[#allocation4 + $0xb0] sm:$0xff] %vm56_vm0, %v2048_v12  ;;  %v504_v17 = vsel %vm503_vm6, %v2038_v14, %v2039_v13  ;;  %1903 = vmatprep.subr.bf16.mxu1 %v1902_v10  ;;  %v602_v45 = vld [vmem:[#allocation4 + $0x30] sm:$0xff]  ;;  %v1910_v49 = vpack.c.bf16 %v621_v41, %v620_v40  ;;  %v586_v40 = vld [vmem:[%s3241_s4 + $0x10] sm:$0xff] }
 0x393   :  { %512 = vst.msk [vmem:[#allocation4 + $0x60] sm:$0xff] %vm56_vm0, %v504_v17  ;;  %v2052_v18 = vpop.permute.xlu0 %2051  ;;  %v2057_v21 = vpop.permute.xlu1 %2056  ;;  %v589_v41 = vld [vmem:[%s3241_s4 + $0x28] sm:$0xff] }
 0x394   :  { %v2054_v24 = vunpack.i.h.bf16 %v2052_v18  ;;  %v2053_v25 = vunpack.i.l.bf16 %v2052_v18  ;;  %v2059_v26 = vunpack.i.h.bf16 %v2057_v21  ;;  %v2058_v27 = vunpack.i.l.bf16 %v2057_v21 }
 0x395   :  { %1905 = vmatpush3.bf16.msra.mxu1 %v1904_v23 }
 0x396   :  { %v477_v30 = vsel %vm474_vm5, %v2053_v25, %v2054_v24  ;;  %v478_v31 = vsel %vm474_vm5, %v2058_v27, %v2059_v26  ;;  %v603_v39 = vld [vmem:[#allocation4 + $0x38] sm:$0xff]  ;;  %v609_v13 = vld [vmem:[#allocation4 + $0x68] sm:$0xff]  ;;  %v584_v27 = vld [vmem:[%s3241_s4] sm:$0xff] }
 0x397   :  { %485 = vst.msk [vmem:[#allocation4 + $0x50] sm:$0xff] %vm56_vm0, %v477_v30  ;;  %486 = vst.msk [vmem:[#allocation4 + $0x58] sm:$0xff] %vm56_vm0, %v478_v31  ;;  %v2067_v32 = vpop.permute.xlu0 %2066  ;;  %v2062_v33 = vpop.permute.xlu1 %2061  ;;  %v1908_v48 = vpack.c.bf16 %v603_v39, %v602_v45  ;;  %v593_v39 = vld [vmem:[%s3241_s4 + $0x48] sm:$0xff] }
 0x398   :  { %v2069_v34 = vunpack.i.h.bf16 %v2067_v32  ;;  %v2068_v35 = vunpack.i.l.bf16 %v2067_v32  ;;  %v2064_v37 = vunpack.i.h.bf16 %v2062_v33  ;;  %v2063_v38 = vunpack.i.l.bf16 %v2062_v33  ;;  %v588_v32 = vld [vmem:[%s3241_s4 + $0x20] sm:$0xff] }
 0x399   :  { %v618_v42 = vld [vmem:[#allocation4 + $0xb0] sm:$0xff]  ;;  %v619_v43 = vld [vmem:[#allocation4 + $0xb8] sm:$0xff] }
 0x39a   :  { %551 = vst.msk [vmem:[#allocation4 + $0xd8] sm:$0xff] %vm56_vm0, %v2069_v34  ;;  %550 = vst.msk [vmem:[#allocation4 + $0xd0] sm:$0xff] %vm56_vm0, %v2068_v35  ;;  %v1906_v44 = vpack.c.bf16 %v619_v43, %v618_v42  ;;  %v608_v10 = vld [vmem:[#allocation4 + $0x60] sm:$0xff]  ;;  %v587_v34 = vld [vmem:[%s3241_s4 + $0x18] sm:$0xff] }
 0x39b   :  { %565 = vst.msk [vmem:[#allocation4 + $0xe8] sm:$0xff] %vm56_vm0, %v2064_v37  ;;  %564 = vst.msk [vmem:[#allocation4 + $0xe0] sm:$0xff] %vm56_vm0, %v2063_v38  ;;  %v2072_v46 = vpop.permute.xlu0 %2071  ;;  %v2077_v47 = vpop.permute.xlu1 %2076  ;;  %v1920_v14 = vpack.c.bf16 %v609_v13, %v608_v10  ;;  %v591_v35 = vld [vmem:[%s3241_s4 + $0x38] sm:$0xff]  ;;  %v590_v37 = vld [vmem:[%s3241_s4 + $0x30] sm:$0xff] }
 0x39c   :  { %v2074_v50 = vunpack.i.h.bf16 %v2072_v46  ;;  %v2073_v52 = vunpack.i.l.bf16 %v2072_v46  ;;  %v2079_v53 = vunpack.i.h.bf16 %v2077_v47  ;;  %v2078_v54 = vunpack.i.l.bf16 %v2077_v47  ;;  %1907 = vmatprep.subr.bf16.mxu1 %v1906_v44  ;;  %v594_v38 = vld [vmem:[%s3241_s4 + $0x50] sm:$0xff]  ;;  %v592_v42 = vld [vmem:[%s3241_s4 + $0x40] sm:$0xff]  ;;  %v595_v43 = vld [vmem:[%s3241_s4 + $0x58] sm:$0xff] }
 0x39d   :  { %1909 = vmatpush3.bf16.msra.mxu1 %v1908_v48 }
 0x39e   :  { %v506_v36 = vsel %vm503_vm6, %v2073_v52, %v2074_v50  ;;  %v507_v51 = vsel %vm503_vm6, %v2078_v54, %v2079_v53  ;;  %1911 = vmatprep.subr.bf16.mxu1 %v1910_v49  ;;  %v606_v63 = vld [vmem:[#allocation4 + $0x50] sm:$0xff]  ;;  %v607_v0 = vld [vmem:[#allocation4 + $0x58] sm:$0xff] }
 0x39f   :  { %514 = vst.msk [vmem:[#allocation4 + $0x70] sm:$0xff] %vm56_vm0, %v506_v36  ;;  %515 = vst.msk [vmem:[#allocation4 + $0x78] sm:$0xff] %vm56_vm0, %v507_v51  ;;  %v2082_v57 = vpop.permute.xlu0 %2081  ;;  %v2087_v59 = vpop.permute.xlu1 %2086  ;;  %v1916_v7 = vpack.c.bf16 %v607_v0, %v606_v63  ;;  %v817_v63 = vld [vmem:[%s3242_s5 + $0x10] sm:$0xff]  ;;  %v815_v0 = vld [vmem:[%s3242_s5] sm:$0xff] }
 0x3a0   :  { %v2084_v19 = vunpack.i.h.bf16 %v2082_v57  ;;  %v2083_v60 = vunpack.i.l.bf16 %v2082_v57  ;;  %v2089_v61 = vunpack.i.h.bf16 %v2087_v59  ;;  %v2088_v62 = vunpack.i.l.bf16 %v2087_v59 }
 0x3a1   :  { %1913 = vmatpush3.bf16.msra.mxu1 %v1912_v58  ;;  %v622_v1 = vld [vmem:[#allocation4 + $0xd0] sm:$0xff]  ;;  %v623_v3 = vld [vmem:[#allocation4 + $0xd8] sm:$0xff] }
 0x3a2   :  { %v624_v4 = vld [vmem:[#allocation4 + $0xe0] sm:$0xff]  ;;  %567 = vst.msk [vmem:[#allocation4 + $0xf8] sm:$0xff] %vm56_vm0, %v2084_v19  ;;  %566 = vst.msk [vmem:[#allocation4 + $0xf0] sm:$0xff] %vm56_vm0, %v2083_v60  ;;  %v1914_v5 = vpack.c.bf16 %v623_v3, %v622_v1  ;;  %v625_v6 = vld [vmem:[#allocation4 + $0xe8] sm:$0xff] }
 0x3a3   :  { %581 = vst.msk [vmem:[#allocation4 + $0x108] sm:$0xff] %vm56_vm0, %v2089_v61  ;;  %580 = vst.msk [vmem:[#allocation4 + $0x100] sm:$0xff] %vm56_vm0, %v2088_v62  ;;  %v1918_v8 = vpack.c.bf16 %v625_v6, %v624_v4  ;;  %v2092_v9 = vpop.permute.xlu0 %2091  ;;  %v816_v62 = vld [vmem:[%s3242_s5 + $0x8] sm:$0xff] }
 0x3a4   :  { %1915 = vmatprep.subr.bf16.mxu1 %v1914_v5  ;;  %v2094_v11 = vunpack.i.h.bf16 %v2092_v9  ;;  %v2093_v12 = vunpack.i.l.bf16 %v2092_v9 }
 0x3a5   :  { %1917 = vmatpush3.bf16.msra.mxu1 %v1916_v7 }
 0x3a6   :  { %1919 = vmatprep.subr.bf16.mxu1 %v1918_v8  ;;  %583 = vst.msk [vmem:[#allocation4 + $0x118] sm:$0xff] %vm56_vm0, %v2094_v11  ;;  %582 = vst.msk [vmem:[#allocation4 + $0x110] sm:$0xff] %vm56_vm0, %v2093_v12  ;;  %v610_v15 = vld [vmem:[#allocation4 + $0x70] sm:$0xff]  ;;  %v611_v16 = vld [vmem:[#allocation4 + $0x78] sm:$0xff] }
 0x3a7   :  { %v1924_v25 = vpack.c.bf16 %v611_v16, %v610_v15 }
 0x3a9   :  { %1921 = vmatpush3.bf16.msra.mxu1 %v1920_v14  ;;  %v626_v17 = vld [vmem:[#allocation4 + $0xf0] sm:$0xff]  ;;  %v627_v18 = vld [vmem:[#allocation4 + $0xf8] sm:$0xff] }
 0x3aa   :  { %v628_v21 = vld [vmem:[#allocation4 + $0x100] sm:$0xff]  ;;  %v1922_v23 = vpack.c.bf16 %v627_v18, %v626_v17  ;;  %v629_v24 = vld [vmem:[#allocation4 + $0x108] sm:$0xff] }
 0x3ab   :  { %v1926_v26 = vpack.c.bf16 %v629_v24, %v628_v21 }
 0x3ac   :  { %1923 = vmatprep.subr.bf16.mxu1 %v1922_v23 }
 0x3ad   :  { %1925 = vmatpush3.bf16.msra.mxu1 %v1924_v25  ;;  %v630_v30 = vld [vmem:[#allocation4 + $0x110] sm:$0xff]  ;;  %v631_v31 = vld [vmem:[#allocation4 + $0x118] sm:$0xff] }
 0x3ae   :  { %1927 = vmatprep.subr.bf16.mxu1 %v1926_v26  ;;  %v1930_v33 = vpack.c.bf16 %v631_v31, %v630_v30 }
 0x3b0   :  { %710 = vmatmul.mubr.f32.vlgmr.msra.gmra.mrb[0].mxu1 %v584_v27 }
 0x3b1   :  { %1929 = vmatpush3.bf16.msra.mxu1 %v1926_v26  ;;  %714 = vmatprep.mubr.f32.mxu1 %v588_v32 }
 0x3b2   :  { %1931 = vmatprep.subr.bf16.mxu1 %v1930_v33 }
 0x3b4   :  { %715 = vmatmul.mubr.f32.gmra.mrb[2].mxu1 %v587_v34 }
 0x3b5   :  { %719 = vmatprep.mubr.f32.mxu1 %v591_v35  ;;  %1933 = vmatpush3.bf16.msra.mxu1 %v1930_v33  ;;  %v1036_v35 = vld [vmem:[%s3243_s9] sm:$0xff] }
 0x3b8   :  { %720 = vmatmul.mubr.f32.gmra.mrb[4].mxu1 %v590_v37  ;;  %v1038_v37 = vld [vmem:[%s3243_s9 + $0x10] sm:$0xff] }
 0x3b9   :  { %724 = vmatprep.mubr.f32.mxu1 %v594_v38  ;;  %v818_v38 = vld [vmem:[%s3242_s5 + $0x18] sm:$0xff] }
 0x3bc   :  { %725 = vmatmul.mubr.f32.gmra.mrb[6].mxu1 %v593_v39  ;;  %v1037_v39 = vld [vmem:[%s3243_s9 + $0x8] sm:$0xff] }
 0x3bd   :  { %1851 = vmatprep.mubr.msk.f32.mxu1 %vm632_vm7, %v586_v40  ;;  %v821_v40 = vld [vmem:[%s3244_s6 + $0x10] sm:$0xff] }
 0x3c0   :  { %1852 = vmatmul.mubr.msk.f32.vlgmr.msra.gmra.mrb[8].mxu1 %vm632_vm7, %v589_v41  ;;  %v1039_v41 = vld [vmem:[%s3243_s9 + $0x18] sm:$0xff] }
 0x3c1   :  { %1854 = vmatprep.mubr.msk.f32.mxu1 %vm632_vm7, %v592_v42  ;;  %v1040_v42 = vld [vmem:[%s3245_s10] sm:$0xff] }
 0x3c4   :  { %1855 = vmatmul.mubr.msk.f32.gmra.mrb[10].mxu1 %vm632_vm7, %v595_v43  ;;  %v820_v43 = vld [vmem:[%s3244_s6 + $0x8] sm:$0xff]  ;;  %vm1705_vm7 = vcmask 64512  }
 0x3dd   :  { %v1050_v44 = vpop.xlane.xlu0 %1049 }
 0x3de   :  { %v1060_v45 = vmul.f32 0.0625, %v1050_v44  ;;  %v1053_v46 = vpop.xlane.xlu1 %1052  ;;  %v822_v44 = vld [vmem:[%s3244_s6 + $0x18] sm:$0xff] }
 0x3df   :  { %v1061_v47 = vmul.f32 0.0625, %v1053_v46 }
 0x3e0   :  { %v2545_v48 = vsub.f32 %v2401_v22, %v1060_v45  ;;  %v1041_v45 = vld [vmem:[%s3245_s10 + $0x8] sm:$0xff] }
 0x3e1   :  { %v2548_v49 = vsub.f32 %v2399_v20, %v1061_v47  ;;  %v1056_v50 = vpop.xlane.xlu0 %1055 }
 0x3e2   :  { %v1062_v52 = vmul.f32 0.0625, %v1056_v50  ;;  %v1059_v53 = vpop.xlane.xlu1 %1058  ;;  %v1068_v54 = vmul.f32 %v2545_v48, %v2545_v48 }
 0x3e3   :  { %v1063_v55 = vmul.f32 0.0625, %v1059_v53  ;;  %v1069_v56 = vmul.f32 %v2548_v49, %v2548_v49 }
 0x3e4   :  { %v2555_v36 = vsub.f32 %v2420_v29, %v1062_v52  ;;  %v1072_v51 = vmul.f32 %v2324_v2, %v1068_v54 }
 0x3e5   :  { %v2559_v22 = vsub.f32 %v2409_v28, %v1063_v55  ;;  %v1073_v20 = vmul.f32 %v2324_v2, %v1069_v56 }
 0x3e6   :  { %v1076_v57 = vsel %vm56_vm0, %v1072_v51, 0.0  ;;  %v1070_v58 = vmul.f32 %v2555_v36, %v2555_v36 }
 0x3e7   :  { %1077 = vadd.xlane.f32.xlu0 %v1076_v57  ;;  %v1079_v59 = vsel %vm56_vm0, %v1073_v20, 0.0  ;;  %v1071_v19 = vmul.f32 %v2559_v22, %v2559_v22 }
 0x3e8   :  { %1080 = vadd.xlane.f32.xlu1 %v1079_v59  ;;  %v1074_v29 = vmul.f32 %v2324_v2, %v1070_v58 }
 0x3e9   :  { %v1075_v60 = vmul.f32 %v2324_v2, %v1071_v19 }
 0x3ea   :  { %v1082_v28 = vsel %vm56_vm0, %v1074_v29, 0.0 }
 0x3eb   :  { %1083 = vadd.xlane.f32.xlu0 %v1082_v28  ;;  %v1085_v61 = vsel %vm56_vm0, %v1075_v60, 0.0 }
 0x3ec   :  { %1086 = vadd.xlane.f32.xlu1 %v1085_v61 }
 0x3fd   :  { %890 = vperm.xlu1 %1974, %v816_v62  }
 0x401   :  { %895 = vperm.xlu1 %1974, %v817_v63   ;;  %885 = vperm.xlu0 %1973, %v815_v0   ;;  %v2643_v63 = vld [vmem:[%s3237_s7] ss:$0 sm:$0xff] }
 0x474   :  { %v1078_v50 = vpop.xlane.xlu0 %1077 }
 0x475   :  { %v1081_v46 = vpop.xlane.xlu1 %1080 }
 0x478   :  { %v2626_v53 = vpop.xlane.xlu0 %1083 }
 0x479   :  { %v2622_v47 = vpop.xlane.xlu1 %1086 }
 0x47d   :  { %v2624_v52 = vpop.permute.xlu1 %890 }
 0x480   :  { %v2628_v54 = vpop.permute.xlu0 %885 }
 0x481   :  { %v2630_v55 = vpop.permute.xlu1 %895 }
 0x483   :  { %v1817_v1 = vpop.f32.mrb[0].mxu1 }
 0x484   :  { %v1818_v3 = vpop.f32.mrb[1].mxu1 }
 0x485   :  { %v1819_v4 = vadd.f32 %v1818_v3, %v1817_v1 }
 0x487   :  { %v1820_v5 = vpop.f32.mrb[2].mxu1 }
 0x488   :  { %v1821_v6 = vpop.f32.mrb[3].mxu1 }
 0x489   :  { %v1822_v7 = vadd.f32 %v1821_v6, %v1820_v5 }
 0x48b   :  { %v1823_v8 = vpop.f32.mrb[4].mxu1 }
 0x48c   :  { %v1824_v9 = vpop.f32.mrb[5].mxu1 }
 0x48d   :  { %v1825_v10 = vadd.f32 %v1824_v9, %v1823_v8 }
 0x48f   :  { %v1826_v11 = vpop.f32.mrb[6].mxu1 }
 0x490   :  { %v1827_v12 = vpop.f32.mrb[7].mxu1 }
 0x491   :  { %v1828_v13 = vadd.f32 %v1827_v12, %v1826_v11 }
 0x493   :  { %v1853_v14 = vpop.f32.mrb[8].mxu1 }
 0x494   :  { %v802_v15 = vadd.f32 %v1853_v14, %v1822_v7  ;;  %v796_v16 = vpop.f32.mrb[9].mxu1  ;;  %v1043_v14 = vld [vmem:[%s3245_s10 + $0x18] sm:$0xff] }
 0x495   :  { %v797_v17 = vadd.f32 %v1819_v4, %v796_v16 }
 0x496   :  { %v824_v18 = vmul.f32 %v2324_v2, %v802_v15 }
 0x497   :  { %v1856_v21 = vpop.f32.mrb[10].mxu1  ;;  %v823_v23 = vmul.f32 %v2324_v2, %v797_v17 }
 0x498   :  { %v812_v24 = vadd.f32 %v1856_v21, %v1828_v13  ;;  %v806_v25 = vpop.f32.mrb[11].mxu1  ;;  %v830_v26 = vsel %vm56_vm0, %v824_v18, 0.0  ;;  %v1042_v13 = vld [vmem:[%s3245_s10 + $0x10] sm:$0xff] }
 0x499   :  { %v807_v27 = vadd.f32 %v1825_v10, %v806_v25  ;;  %831 = vadd.xlane.f32.xlu0 %v830_v26  ;;  %v827_v30 = vsel %vm56_vm0, %v823_v23, 0.0 }
 0x49a   :  { %828 = vadd.xlane.f32.xlu1 %v827_v30  ;;  %v826_v31 = vmul.f32 %v2324_v2, %v812_v24  ;;  %v1088_v30 = vmul.f32 0.0625, %v1078_v50  ;;  %v1090_v50 = vmul.f32 0.0625, %v2626_v53 }
 0x49b   :  { %v825_v32 = vmul.f32 %v2324_v2, %v807_v27  ;;  %v819_v2 = vld [vmem:[%s3244_s6] sm:$0xff] }
 0x49c   :  { %v836_v33 = vsel %vm56_vm0, %v826_v31, 0.0 }
 0x49d   :  { %v833_v34 = vsel %vm56_vm0, %v825_v32, 0.0 }
 0x49e   :  { %837 = vadd.xlane.f32.xlu1 %v836_v33  ;;  %834 = vadd.xlane.f32.xlu0 %v833_v34  ;;  %v1092_v34 = vadd.f32 1e-05, %v1088_v30 }
 0x4af   :  { %1106 = vperm.xlu1 %1974, %v1036_v35  }
 0x4b3   :  { %1116 = vperm.xlu1 %1974, %v1038_v37  }
 0x4b4   :  { %900 = vperm.xlu0 %1973, %v818_v38  }
 0x4b7   :  { %909 = vperm.xlu1 %1974, %v819_v2  }
 0x4b8   :  { %1111 = vperm.xlu0 %1973, %v1037_v39  }
 0x4bb   :  { %919 = vperm.xlu1 %1974, %v821_v40  }
 0x4bc   :  { %1121 = vperm.xlu0 %1973, %v1039_v41  }
 0x4bf   :  { %1130 = vperm.xlu1 %1974, %v1040_v42  }
 0x4c0   :  { %914 = vperm.xlu0 %1973, %v820_v43  }
 0x4c4   :  { %924 = vperm.xlu0 %1973, %v822_v44  }
 0x4c8   :  { %1135 = vperm.xlu0 %1973, %v1041_v45  }
 0x526   :  { %v832_v56 = vpop.xlane.xlu0 %831 }
 0x527   :  { %v840_v51 = vmul.f32 0.0625, %v832_v56  ;;  %v829_v20 = vpop.xlane.xlu1 %828  ;;  %v1091_v56 = vmul.f32 0.0625, %v2622_v47 }
 0x528   :  { %v839_v57 = vmul.f32 0.0625, %v829_v20  ;;  %v1094_v20 = vadd.f32 1e-05, %v1090_v50 }
 0x529   :  { %v2632_v58 = vsub.f32 %v802_v15, %v840_v51 }
 0x52a   :  { %v2634_v59 = vsub.f32 %v797_v17, %v839_v57 }
 0x52b   :  { %v838_v19 = vpop.xlane.xlu1 %837  ;;  %v835_v29 = vpop.xlane.xlu0 %834  ;;  %v848_v60 = vmul.f32 %v2632_v58, %v2632_v58 }
 0x52c   :  { %v842_v28 = vmul.f32 0.0625, %v838_v19  ;;  %v841_v61 = vmul.f32 0.0625, %v835_v29  ;;  %v847_v62 = vmul.f32 %v2634_v59, %v2634_v59  ;;  %v1095_v19 = vadd.f32 1e-05, %v1091_v56 }
 0x52d   :  { %v852_v0 = vmul.f32 %v2643_v63, %v848_v60 }
 0x52e   :  { %v2646_v1 = vsub.f32 %v812_v24, %v842_v28  ;;  %v2648_v3 = vsub.f32 %v807_v27, %v841_v61  ;;  %v851_v4 = vmul.f32 %v2643_v63, %v847_v62  ;;  %v1089_v27 = vmul.f32 0.0625, %v1081_v46 }
 0x52f   :  { %v858_v5 = vsel %vm56_vm0, %v852_v0, 0.0  ;;  %v1107_v16 = vpop.permute.xlu1 %1106 }
 0x530   :  { %859 = vadd.xlane.f32.xlu1 %v858_v5  ;;  %v855_v6 = vsel %vm56_vm0, %v851_v4, 0.0  ;;  %v850_v7 = vmul.f32 %v2646_v1, %v2646_v1  ;;  %v849_v8 = vmul.f32 %v2648_v3, %v2648_v3  ;;  %v1093_v33 = vadd.f32 1e-05, %v1089_v27 }
 0x531   :  { %856 = vadd.xlane.f32.xlu0 %v855_v6 }
 0x532   :  { %v854_v9 = vmul.f32 %v2643_v63, %v850_v7  ;;  %v853_v10 = vmul.f32 %v2643_v63, %v849_v8  ;;  %2103 = vrsqrt.f32 %v1093_v33 }
 0x533   :  { %v2667_v15 = vpop.permute.xlu0 %900  ;;  %v2669_v18 = vpop.permute.xlu1 %1116  ;;  %2105 = vrsqrt.f32 %v1092_v34 }
 0x534   :  { %v864_v11 = vsel %vm56_vm0, %v854_v9, 0.0  ;;  %v861_v12 = vsel %vm56_vm0, %v853_v10, 0.0 }
 0x535   :  { %865 = vadd.xlane.f32.xlu1 %v864_v11  ;;  %862 = vadd.xlane.f32.xlu0 %v861_v12 }
 0x537   :  { %v1112_v17 = vpop.permute.xlu0 %1111  ;;  %v910_v23 = vpop.permute.xlu1 %909 }
 0x53b   :  { %v2671_v21 = vpop.permute.xlu0 %1121  ;;  %v2673_v25 = vpop.permute.xlu1 %919 }
 0x53c   :  { %v2104_v51 = vpop.eup %2103 }
 0x53d   :  { %v2106_v57 = vpop.eup %2105  ;;  %v1101_v28 = vmul.f32 %v2104_v51, %v2548_v49  ;;  %v2751_v51 = vld [vmem:[%s3246_s11 + $0x5] ss:$0 sm:$0xff] }
 0x53e   :  { %v1100_v62 = vmul.f32 %v2106_v57, %v2545_v48 }
 0x53f   :  { %v915_v24 = vpop.permute.xlu0 %914  ;;  %v1131_v31 = vpop.permute.xlu1 %1130  ;;  %v1125_v53 = vmul.f32 %v1112_v17, %v1101_v28 }
 0x540   :  { %v1124_v4 = vmul.f32 %v1107_v16, %v1100_v62 }
 0x542   :  { %v1148_v9 = vadd.f32 %v1131_v31, %v1124_v4 }
 0x543   :  { %v2675_v26 = vpop.permute.xlu0 %924 }
 0x546   :  { %1140 = vperm.xlu1 %1974, %v1042_v13  }
 0x547   :  { %v1136_v32 = vpop.permute.xlu0 %1135 }
 0x548   :  { %v1149_v6 = vadd.f32 %v1136_v32, %v1125_v53 }
 0x54b   :  { %1145 = vperm.xlu0 %1973, %v1043_v14  }
 0x5bd   :  { %v860_v35 = vpop.xlane.xlu1 %859 }
 0x5be   :  { %v868_v37 = vmul.f32 0.0625, %v860_v35  ;;  %v857_v38 = vpop.xlane.xlu0 %856 }
 0x5bf   :  { %v867_v2 = vmul.f32 0.0625, %v857_v38 }
 0x5c0   :  { %v872_v39 = vadd.f32 1e-05, %v868_v37 }
 0x5c1   :  { %v871_v40 = vadd.f32 1e-05, %v867_v2 }
 0x5c2   :  { %2107 = vrsqrt.f32 %v872_v39  ;;  %v866_v41 = vpop.xlane.xlu1 %865  ;;  %v863_v42 = vpop.xlane.xlu0 %862 }
 0x5c3   :  { %2109 = vrsqrt.f32 %v871_v40  ;;  %v870_v43 = vmul.f32 0.0625, %v866_v41  ;;  %v869_v44 = vmul.f32 0.0625, %v863_v42 }
 0x5c5   :  { %v874_v45 = vadd.f32 1e-05, %v870_v43  ;;  %v873_v46 = vadd.f32 1e-05, %v869_v44 }
 0x5c7   :  { %2111 = vrsqrt.f32 %v874_v45 }
 0x5c8   :  { %2113 = vrsqrt.f32 %v873_v46 }
 0x5c9   :  { %2115 = vrsqrt.f32 %v1094_v20 }
 0x5ca   :  { %2117 = vrsqrt.f32 %v1095_v19  ;;  %v1146_v38 = vpop.permute.xlu0 %1145 }
 0x5cc   :  { %v2108_v29 = vpop.eup %2107 }
 0x5cd   :  { %v2110_v60 = vpop.eup %2109  ;;  %v880_v61 = vmul.f32 %v2108_v29, %v2632_v58 }
 0x5ce   :  { %v879_v0 = vmul.f32 %v2110_v60, %v2634_v59 }
 0x5cf   :  { %v904_v47 = vmul.f32 %v2624_v52, %v880_v61  ;;  %v2690_v52 = vld [vmem:[%s3246_s11 + $0x1] ss:$0 sm:$0xff] }
 0x5d0   :  { %v903_v5 = vmul.f32 %v2628_v54, %v879_v0  ;;  %v2695_v54 = vld [vmem:[%s3246_s11] ss:$0 sm:$0xff] }
 0x5d1   :  { %v928_v7 = vadd.f32 %v915_v24, %v904_v47  ;;  %v2112_v8 = vpop.eup %2111 }
 0x5d2   :  { %v927_v10 = vadd.f32 %v910_v23, %v903_v5  ;;  %v2114_v49 = vpop.eup %2113  ;;  %v882_v59 = vmul.f32 %v2112_v8, %v2646_v1  ;;  %v2706_v1 = vld [vmem:[%s3246_s11 + $0x2] ss:$0 sm:$0xff] }
 0x5d3   :  { %v1153_v11 = vadd.f32 %v1149_v6, %v928_v7  ;;  %v881_v48 = vmul.f32 %v2114_v49, %v2648_v3  ;;  %v2116_v16 = vpop.eup %2115 }
 0x5d4   :  { %v1152_v58 = vadd.f32 %v1148_v9, %v927_v10  ;;  %v2118_v3 = vpop.eup %2117  ;;  %v906_v30 = vmul.f32 %v2667_v15, %v882_v59  ;;  %v1102_v35 = vmul.f32 %v2116_v16, %v2555_v36  ;;  %v1141_v15 = vpop.permute.xlu1 %1140 }
 0x5d5   :  { %v1157_v12 = vmax.f32 %v1153_v11, 0.0  ;;  %v905_v27 = vmul.f32 %v2630_v55, %v881_v48  ;;  %v1103_v37 = vmul.f32 %v2118_v3, %v2559_v22  ;;  %v2725_v55 = vld [vmem:[%s3246_s11 + $0x3] ss:$0 sm:$0xff] }
 0x5d6   :  { %v1156_v13 = vmax.f32 %v1152_v58, 0.0  ;;  %v1126_v2 = vmul.f32 %v2669_v18, %v1102_v35  ;;  %v930_v41 = vadd.f32 %v2675_v26, %v906_v30  ;;  %v2740_v18 = vld [vmem:[%s3246_s11 + $0x4] ss:$0 sm:$0xff] }
 0x5d7   :  { %v2698_v14 = vmul.f32 %v2643_v63, %v1157_v12  ;;  %v1127_v39 = vmul.f32 %v2671_v21, %v1103_v37  ;;  %v929_v40 = vadd.f32 %v2673_v25, %v905_v27 }
 0x5d8   :  { %v2701_v17 = vmul.f32 %v2643_v63, %v1156_v13  ;;  %v1150_v44 = vadd.f32 %v1141_v15, %v1126_v2 }
 0x5d9   :  { %v1255_v23 = vmul.f32 %v2690_v52, %v2698_v14  ;;  %v1170_v24 = vmul.f32 %v2695_v54, %v2698_v14  ;;  %v1340_v33 = vmul.f32 %v2706_v1, %v2698_v14  ;;  %v1425_v42 = vmul.f32 %v2725_v55, %v2698_v14 }
 0x5da   :  { %v1254_v34 = vmul.f32 %v2690_v52, %v2701_v17  ;;  %v1339_v43 = vmul.f32 %v2706_v1, %v2701_v17  ;;  %v1151_v45 = vadd.f32 %v1146_v38, %v1127_v39  ;;  %v1154_v21 = vadd.f32 %v1150_v44, %v929_v40 }
 0x5db   :  { %v1261_v31 = vsel %vm56_vm0, %v1255_v23, 0.0  ;;  %v1176_v32 = vsel %vm56_vm0, %v1170_v24, 0.0  ;;  %v1346_v36 = vsel %vm56_vm0, %v1340_v33, 0.0  ;;  %v1431_v26 = vsel %vm56_vm0, %v1425_v42, 0.0 }
 0x5dc   :  { %1262 = vadd.xlane.f32.xlu1 %v1261_v31  ;;  %1177 = vadd.xlane.f32.xlu0 %v1176_v32  ;;  %v1258_v22 = vsel %vm56_vm0, %v1254_v34, 0.0  ;;  %v1155_v25 = vadd.f32 %v1151_v45, %v930_v41  ;;  %v1343_v46 = vsel %vm56_vm0, %v1339_v43, 0.0  ;;  %v1510_v50 = vmul.f32 %v2740_v18, %v2698_v14 }
 0x5dd   :  { %v1424_v56 = vmul.f32 %v2725_v55, %v2701_v17  ;;  %v1158_v20 = vmax.f32 %v1154_v21, 0.0  ;;  %v1595_v60 = vmul.f32 %v2751_v51, %v2698_v14  ;;  %v1509_v28 = vmul.f32 %v2740_v18, %v2701_v17 }
 0x5de   :  { %v1159_v57 = vmax.f32 %v1155_v25, 0.0  ;;  %v1516_v19 = vsel %vm56_vm0, %v1510_v50, 0.0  ;;  %v1594_v47 = vmul.f32 %v2751_v51, %v2701_v17  ;;  %v1169_v4 = vmul.f32 %v2695_v54, %v2701_v17 }
 0x5df   :  { %v1428_v29 = vsel %vm56_vm0, %v1424_v56, 0.0  ;;  %v2760_v61 = vmul.f32 %v2643_v63, %v1158_v20  ;;  %v1601_v0 = vsel %vm56_vm0, %v1595_v60, 0.0  ;;  %v1513_v53 = vsel %vm56_vm0, %v1509_v28, 0.0 }
 0x5e0   :  { %1347 = vadd.xlane.f32.xlu1 %v1346_v36  ;;  %1259 = vadd.xlane.f32.xlu0 %v1258_v22  ;;  %v2763_v62 = vmul.f32 %v2643_v63, %v1159_v57  ;;  %v1598_v5 = vsel %vm56_vm0, %v1594_v47, 0.0  ;;  %v1173_v6 = vsel %vm56_vm0, %v1169_v4, 0.0 }
 0x5e1   :  { %v1171_v63 = vmul.f32 %v2695_v54, %v2760_v61  ;;  %v1256_v10 = vmul.f32 %v2690_v52, %v2760_v61  ;;  %v1341_v12 = vmul.f32 %v2706_v1, %v2760_v61  ;;  %v1426_v16 = vmul.f32 %v2725_v55, %v2760_v61 }
 0x5e2   :  { %v1172_v7 = vmul.f32 %v2695_v54, %v2763_v62  ;;  %v1257_v49 = vmul.f32 %v2690_v52, %v2763_v62  ;;  %v1342_v13 = vmul.f32 %v2706_v1, %v2763_v62  ;;  %v1427_v3 = vmul.f32 %v2725_v55, %v2763_v62 }
 0x5e3   :  { %v1179_v8 = vsel %vm56_vm0, %v1171_v63, 0.0  ;;  %v1264_v11 = vsel %vm56_vm0, %v1256_v10, 0.0  ;;  %v1349_v48 = vsel %vm56_vm0, %v1341_v12, 0.0  ;;  %v1434_v23 = vsel %vm56_vm0, %v1426_v16, 0.0 }
 0x5e4   :  { %1432 = vadd.xlane.f32.xlu1 %v1431_v26  ;;  %1344 = vadd.xlane.f32.xlu0 %v1343_v46  ;;  %v1182_v9 = vsel %vm56_vm0, %v1172_v7, 0.0  ;;  %v1267_v58 = vsel %vm56_vm0, %v1257_v49, 0.0  ;;  %v1352_v59 = vsel %vm56_vm0, %v1342_v13, 0.0  ;;  %v1437_v24 = vsel %vm56_vm0, %v1427_v3, 0.0 }
 0x5e5   :  { %v1511_v27 = vmul.f32 %v2740_v18, %v2760_v61  ;;  %v1512_v30 = vmul.f32 %v2740_v18, %v2763_v62  ;;  %v1596_v33 = vmul.f32 %v2751_v51, %v2760_v61  ;;  %v1597_v34 = vmul.f32 %v2751_v51, %v2763_v62 }
 0x5e7   :  { %v1519_v31 = vsel %vm56_vm0, %v1511_v27, 0.0  ;;  %v1522_v32 = vsel %vm56_vm0, %v1512_v30, 0.0  ;;  %v1604_v35 = vsel %vm56_vm0, %v1596_v33, 0.0  ;;  %v1607_v37 = vsel %vm56_vm0, %v1597_v34, 0.0 }
 0x5e8   :  { %1517 = vadd.xlane.f32.xlu1 %v1516_v19  ;;  %1429 = vadd.xlane.f32.xlu0 %v1428_v29 }
 0x5ec   :  { %1602 = vadd.xlane.f32.xlu1 %v1601_v0  ;;  %1514 = vadd.xlane.f32.xlu0 %v1513_v53 }
 0x5f0   :  { %1599 = vadd.xlane.f32.xlu0 %v1598_v5  ;;  %1174 = vadd.xlane.f32.xlu1 %v1173_v6 }
 0x5f4   :  { %1180 = vadd.xlane.f32.xlu0 %v1179_v8  ;;  %1183 = vadd.xlane.f32.xlu1 %v1182_v9 }
 0x5f8   :  { %1265 = vadd.xlane.f32.xlu0 %v1264_v11  ;;  %1268 = vadd.xlane.f32.xlu1 %v1267_v58 }
 0x5fc   :  { %1350 = vadd.xlane.f32.xlu0 %v1349_v48  ;;  %1353 = vadd.xlane.f32.xlu1 %v1352_v59 }
 0x600   :  { %1435 = vadd.xlane.f32.xlu0 %v1434_v23  ;;  %1438 = vadd.xlane.f32.xlu1 %v1437_v24 }
 0x604   :  { %1520 = vadd.xlane.f32.xlu0 %v1519_v31  ;;  %1523 = vadd.xlane.f32.xlu1 %v1522_v32 }
 0x608   :  { %1605 = vadd.xlane.f32.xlu0 %v1604_v35  ;;  %1608 = vadd.xlane.f32.xlu1 %v1607_v37 }
 0x669   :  { %v1263_v15 = vpop.xlane.xlu1 %1262  ;;  %v1178_v38 = vpop.xlane.xlu0 %1177 }
 0x66a   :  { %v2809_v2 = vmul.f32 0.25, %v1263_v15  ;;  %v2811_v39 = vmul.f32 0.25, %v1178_v38 }
 0x66c   :  { %v1275_v40 = vsub.f32 %v2698_v14, %v2809_v2  ;;  %v1190_v41 = vsub.f32 %v2698_v14, %v2811_v39 }
 0x66d   :  { %v1348_v36 = vpop.xlane.xlu1 %1347  ;;  %v1260_v22 = vpop.xlane.xlu0 %1259 }
 0x66e   :  { %v2817_v42 = vmul.f32 0.25, %v1348_v36  ;;  %v1194_v43 = vmul.f32 %v2695_v54, %v1190_v41  ;;  %v1279_v44 = vmul.f32 %v2690_v52, %v1275_v40  ;;  %v2835_v4 = vmul.f32 0.25, %v1260_v22 }
 0x670   :  { %v1360_v45 = vsub.f32 %v2698_v14, %v2817_v42  ;;  %v1198_v21 = vmul.f32 %v1194_v43, %v1194_v43  ;;  %v1283_v56 = vmul.f32 %v1279_v44, %v1279_v44  ;;  %v1274_v49 = vsub.f32 %v2701_v17, %v2835_v4 }
 0x671   :  { %v1433_v25 = vpop.xlane.xlu1 %1432  ;;  %v1345_v26 = vpop.xlane.xlu0 %1344 }
 0x672   :  { %v2823_v46 = vmul.f32 0.25, %v1433_v25  ;;  %v1204_v50 = vsel %vm56_vm0, %v1198_v21, 0.0  ;;  %v1364_v20 = vmul.f32 %v2706_v1, %v1360_v45  ;;  %v1289_v28 = vsel %vm56_vm0, %v1283_v56, 0.0 }
 0x673   :  { %1205 = vadd.xlane.f32.xlu1 %v1204_v50  ;;  %v2845_v11 = vmul.f32 0.25, %v1345_v26  ;;  %v1278_v30 = vmul.f32 %v2690_v52, %v1274_v49 }
 0x674   :  { %v1445_v57 = vsub.f32 %v2698_v14, %v2823_v46  ;;  %v1368_v0 = vmul.f32 %v1364_v20, %v1364_v20 }
 0x675   :  { %v1518_v19 = vpop.xlane.xlu1 %1517  ;;  %v1430_v29 = vpop.xlane.xlu0 %1429  ;;  %v1282_v41 = vmul.f32 %v1278_v30, %v1278_v30 }
 0x676   :  { %v2829_v60 = vmul.f32 0.25, %v1518_v19  ;;  %v1449_v53 = vmul.f32 %v2725_v55, %v1445_v57  ;;  %v1374_v7 = vsel %vm56_vm0, %v1368_v0, 0.0  ;;  %v2855_v23 = vmul.f32 0.25, %v1430_v29 }
 0x677   :  { %1290 = vadd.xlane.f32.xlu1 %v1289_v28  ;;  %v1286_v57 = vsel %vm56_vm0, %v1282_v41, 0.0 }
 0x678   :  { %v1530_v47 = vsub.f32 %v2698_v14, %v2829_v60  ;;  %v1453_v8 = vmul.f32 %v1449_v53, %v1449_v53  ;;  %v1444_v15 = vsub.f32 %v2701_v17, %v2855_v23 }
 0x679   :  { %v1603_v5 = vpop.xlane.xlu1 %1602  ;;  %v1515_v6 = vpop.xlane.xlu0 %1514 }
 0x67a   :  { %v2837_v63 = vmul.f32 0.25, %v1603_v5  ;;  %v1534_v9 = vmul.f32 %v2740_v18, %v1530_v47  ;;  %v1459_v48 = vsel %vm56_vm0, %v1453_v8, 0.0  ;;  %v2866_v38 = vmul.f32 0.25, %v1515_v6 }
 0x67b   :  { %1375 = vadd.xlane.f32.xlu1 %v1374_v7  ;;  %v1448_v53 = vmul.f32 %v2725_v55, %v1444_v15 }
 0x67c   :  { %v1615_v10 = vsub.f32 %v2698_v14, %v2837_v63  ;;  %v1538_v59 = vmul.f32 %v1534_v9, %v1534_v9  ;;  %v1359_v14 = vsub.f32 %v2701_v17, %v2845_v11  ;;  %v1529_v50 = vsub.f32 %v2701_v17, %v2866_v38 }
 0x67d   :  { %v1175_v58 = vpop.xlane.xlu1 %1174  ;;  %v1600_v12 = vpop.xlane.xlu0 %1599 }
 0x67e   :  { %v2847_v13 = vmul.f32 0.25, %v1175_v58  ;;  %v1619_v16 = vmul.f32 %v2751_v51, %v1615_v10  ;;  %v1544_v32 = vsel %vm56_vm0, %v1538_v59, 0.0  ;;  %v1363_v36 = vmul.f32 %v2706_v1, %v1359_v14 }
 0x67f   :  { %1460 = vadd.xlane.f32.xlu1 %v1459_v48  ;;  %v2878_v56 = vmul.f32 0.25, %v1600_v12  ;;  %v1533_v49 = vmul.f32 %v2740_v18, %v1529_v50  ;;  %v1452_v59 = vmul.f32 %v1448_v53, %v1448_v53 }
 0x680   :  { %v1189_v3 = vsub.f32 %v2701_v17, %v2847_v13  ;;  %v1623_v34 = vmul.f32 %v1619_v16, %v1619_v16  ;;  %v1367_v19 = vmul.f32 %v1363_v36, %v1363_v36 }
 0x681   :  { %v1184_v24 = vpop.xlane.xlu1 %1183  ;;  %v1181_v27 = vpop.xlane.xlu0 %1180  ;;  %v1614_v6 = vsub.f32 %v2701_v17, %v2878_v56 }
 0x682   :  { %v2858_v31 = vmul.f32 0.25, %v1184_v24  ;;  %v1193_v33 = vmul.f32 %v2695_v54, %v1189_v3  ;;  %v1629_v44 = vsel %vm56_vm0, %v1623_v34, 0.0  ;;  %v2890_v7 = vmul.f32 0.25, %v1181_v27 }
 0x683   :  { %1545 = vadd.xlane.f32.xlu1 %v1544_v32  ;;  %v1371_v10 = vsel %vm56_vm0, %v1367_v19, 0.0  ;;  %v1537_v27 = vmul.f32 %v1533_v49, %v1533_v49  ;;  %v1618_v30 = vmul.f32 %v2751_v51, %v1614_v6  ;;  %v1456_v34 = vsel %vm56_vm0, %v1452_v59, 0.0 }
 0x684   :  { %v1192_v35 = vsub.f32 %v2763_v62, %v2858_v31  ;;  %v1197_v37 = vmul.f32 %v1193_v33, %v1193_v33  ;;  %v1191_v3 = vsub.f32 %v2760_v61, %v2890_v7 }
 0x685   :  { %v1269_v40 = vpop.xlane.xlu1 %1268  ;;  %v1266_v21 = vpop.xlane.xlu0 %1265 }
 0x686   :  { %v2869_v22 = vmul.f32 0.25, %v1269_v40  ;;  %v1201_v43 = vsel %vm56_vm0, %v1197_v37, 0.0  ;;  %v1196_v45 = vmul.f32 %v2695_v54, %v1192_v35  ;;  %v2902_v14 = vmul.f32 0.25, %v1266_v21 }
 0x687   :  { %1202 = vadd.xlane.f32.xlu0 %v1201_v43  ;;  %1630 = vadd.xlane.f32.xlu1 %v1629_v44  ;;  %v1541_v43 = vsel %vm56_vm0, %v1537_v27, 0.0  ;;  %v1622_v44 = vmul.f32 %v1618_v30, %v1618_v30 }
 0x688   :  { %v1277_v25 = vsub.f32 %v2763_v62, %v2869_v22  ;;  %v1200_v26 = vmul.f32 %v1196_v45, %v1196_v45  ;;  %v1276_v41 = vsub.f32 %v2760_v61, %v2902_v14  ;;  %v1195_v45 = vmul.f32 %v2695_v54, %v1191_v3 }
 0x689   :  { %v1354_v20 = vpop.xlane.xlu1 %1353  ;;  %v1351_v8 = vpop.xlane.xlu0 %1350 }
 0x68a   :  { %v2881_v29 = vmul.f32 0.25, %v1354_v20  ;;  %v1210_v28 = vsel %vm56_vm0, %v1200_v26, 0.0  ;;  %v1281_v0 = vmul.f32 %v2690_v52, %v1277_v25  ;;  %v2916_v21 = vmul.f32 0.25, %v1351_v8 }
 0x68b   :  { %1211 = vadd.xlane.f32.xlu1 %v1210_v28  ;;  %1287 = vadd.xlane.f32.xlu0 %v1286_v57  ;;  %v1626_v28 = vsel %vm56_vm0, %v1622_v44, 0.0  ;;  %v1280_v54 = vmul.f32 %v2690_v52, %v1276_v41 }
 0x68c   :  { %v1362_v47 = vsub.f32 %v2763_v62, %v2881_v29  ;;  %v1285_v5 = vmul.f32 %v1281_v0, %v1281_v0  ;;  %v1199_v0 = vmul.f32 %v1195_v45, %v1195_v45  ;;  %v1361_v53 = vsub.f32 %v2760_v61, %v2916_v21 }
 0x68d   :  { %v1439_v9 = vpop.xlane.xlu1 %1438  ;;  %v1436_v37 = vpop.xlane.xlu0 %1435 }
 0x68e   :  { %v2894_v58 = vmul.f32 0.25, %v1439_v9  ;;  %v1295_v12 = vsel %vm56_vm0, %v1285_v5, 0.0  ;;  %v1366_v48 = vmul.f32 %v2706_v1, %v1362_v47  ;;  %v2928_v47 = vmul.f32 0.25, %v1436_v37 }
 0x68f   :  { %1296 = vadd.xlane.f32.xlu1 %v1295_v12  ;;  %1372 = vadd.xlane.f32.xlu0 %v1371_v10  ;;  %v1284_v9 = vmul.f32 %v1280_v54, %v1280_v54  ;;  %v1365_v12 = vmul.f32 %v2706_v1, %v1361_v53 }
 0x690   :  { %v1447_v17 = vsub.f32 %v2763_v62, %v2894_v58  ;;  %v1370_v16 = vmul.f32 %v1366_v48, %v1366_v48  ;;  %v1446_v10 = vsub.f32 %v2760_v61, %v2928_v47 }
 0x691   :  { %v1524_v24 = vpop.xlane.xlu1 %1523  ;;  %v1521_v19 = vpop.xlane.xlu0 %1520  ;;  %v1292_v59 = vsel %vm56_vm0, %v1284_v9, 0.0  ;;  %v1369_v3 = vmul.f32 %v1365_v12, %v1365_v12 }
 0x692   :  { %v2905_v32 = vmul.f32 0.25, %v1524_v24  ;;  %v1380_v33 = vsel %vm56_vm0, %v1370_v16, 0.0  ;;  %v1451_v35 = vmul.f32 %v2725_v55, %v1447_v17  ;;  %v2935_v49 = vmul.f32 0.25, %v1521_v19 }
 0x693   :  { %1381 = vadd.xlane.f32.xlu1 %v1380_v33  ;;  %1457 = vadd.xlane.f32.xlu0 %v1456_v34  ;;  %v1450_v24 = vmul.f32 %v2725_v55, %v1446_v10  ;;  %v1377_v30 = vsel %vm56_vm0, %v1369_v3, 0.0 }
 0x694   :  { %v1532_v15 = vsub.f32 %v2763_v62, %v2905_v32  ;;  %v1455_v40 = vmul.f32 %v1451_v35, %v1451_v35  ;;  %v1531_v17 = vsub.f32 %v2760_v61, %v2935_v49 }
 0x695   :  { %v1609_v36 = vpop.xlane.xlu1 %1608  ;;  %v1606_v48 = vpop.xlane.xlu0 %1605  ;;  %v1454_v1 = vmul.f32 %v1450_v24, %v1450_v24 }
 0x696   :  { %v2918_v25 = vmul.f32 0.25, %v1609_v36  ;;  %v1465_v26 = vsel %vm56_vm0, %v1455_v40, 0.0  ;;  %v1536_v50 = vmul.f32 %v2740_v18, %v1532_v15  ;;  %v2942_v16 = vmul.f32 0.25, %v1606_v48 }
 0x697   :  { %1466 = vadd.xlane.f32.xlu1 %v1465_v26  ;;  %1542 = vadd.xlane.f32.xlu0 %v1541_v43  ;;  %v1535_v33 = vmul.f32 %v2740_v18, %v1531_v17  ;;  %v1462_v34 = vsel %vm56_vm0, %v1454_v1, 0.0 }
 0x698   :  { %v1617_v20 = vsub.f32 %v2763_v62, %v2918_v25  ;;  %v1540_v57 = vmul.f32 %v1536_v50, %v1536_v50  ;;  %v1207_v62 = vsel %vm56_vm0, %v1199_v0, 0.0  ;;  %v1616_v27 = vsub.f32 %v2760_v61, %v2942_v16 }
 0x699   :  { %v1539_v35 = vmul.f32 %v1535_v33, %v1535_v33 }
 0x69a   :  { %v1550_v5 = vsel %vm56_vm0, %v1540_v57, 0.0  ;;  %v1621_v6 = vmul.f32 %v2751_v51, %v1617_v20  ;;  %v1620_v37 = vmul.f32 %v2751_v51, %v1616_v27 }
 0x69b   :  { %1551 = vadd.xlane.f32.xlu1 %v1550_v5  ;;  %1627 = vadd.xlane.f32.xlu0 %v1626_v28  ;;  %v1547_v15 = vsel %vm56_vm0, %v1539_v35, 0.0 }
 0x69c   :  { %v1625_v8 = vmul.f32 %v1621_v6, %v1621_v6  ;;  %v1624_v40 = vmul.f32 %v1620_v37, %v1620_v37 }
 0x69e   :  { %v1635_v52 = vsel %vm56_vm0, %v1625_v8, 0.0  ;;  %v1632_v55 = vsel %vm56_vm0, %v1624_v40, 0.0  ;;  %vm1700_vm0 = vcmask 56320  }
 0x69f   :  { %1636 = vadd.xlane.f32.xlu1 %v1635_v52  ;;  %1208 = vadd.xlane.f32.xlu0 %v1207_v62 }
 0x6a3   :  { %1293 = vadd.xlane.f32.xlu0 %v1292_v59 }
 0x6a7   :  { %1378 = vadd.xlane.f32.xlu0 %v1377_v30 }
 0x6ab   :  { %1463 = vadd.xlane.f32.xlu0 %v1462_v34 }
 0x6af   :  { %1548 = vadd.xlane.f32.xlu0 %v1547_v15 }
 0x6b3   :  { %1633 = vadd.xlane.f32.xlu0 %v1632_v55 }
 0x700   :  { %v1206_v61 = vpop.xlane.xlu1 %1205 }
 0x701   :  { %v1214_v41 = vmul.f32 0.25, %v1206_v61 }
 0x703   :  { %v1218_v36 = vmax.f32 %v1214_v41, 1e-10 }
 0x704   :  { %v1291_v43 = vpop.xlane.xlu1 %1290 }
 0x705   :  { %2119 = vrsqrt.f32 %v1218_v36  ;;  %v1299_v18 = vmul.f32 0.25, %v1291_v43  ;;  %vm1230_vm8 = vcmp.eq.f32.partialorder %v1218_v36, inf  ;;  %v1233_v54 = vand.u32 2147483648, %v1218_v36 }
 0x706   :  { %vm1232_vm9 = vcmp.eq.f32.partialorder %v1218_v36, 0.0 }
 0x707   :  { %v1303_v44 = vmax.f32 %v1299_v18, 1e-10 }
 0x708   :  { %v1376_v45 = vpop.xlane.xlu1 %1375 }
 0x709   :  { %v1384_v26 = vmul.f32 0.25, %v1376_v45  ;;  %2121 = vrsqrt.f32 %v1303_v44  ;;  %vm1315_vm12 = vcmp.eq.f32.partialorder %v1303_v44, inf  ;;  %v1318_v48 = vand.u32 2147483648, %v1303_v44 }
 0x70a   :  { %vm1317_vm13 = vcmp.eq.f32.partialorder %v1303_v44, 0.0 }
 0x70b   :  { %v1388_v50 = vmax.f32 %v1384_v26, 1e-10 }
 0x70c   :  { %v1461_v51 = vpop.xlane.xlu1 %1460 }
 0x70d   :  { %2123 = vrsqrt.f32 %v1388_v50  ;;  %v1469_v20 = vmul.f32 0.25, %v1461_v51  ;;  %vm1400_vm14 = vcmp.eq.f32.partialorder %v1388_v50, inf  ;;  %v1403_v15 = vand.u32 2147483648, %v1388_v50 }
 0x70e   :  { %vm1402_vm15 = vcmp.eq.f32.partialorder %v1388_v50, 0.0 }
 0x70f   :  { %v2120_v57 = vpop.eup %2119  ;;  %v2953_v28 = vmax.f32 %v1469_v20, 1e-10 }
 0x710   :  { %v1229_v19 = vmul.f32 %v2120_v57, %v1218_v36  ;;  %v1546_v0 = vpop.xlane.xlu1 %1545 }
 0x711   :  { %v1554_v53 = vmul.f32 0.25, %v1546_v0  ;;  %2125 = vrsqrt.f32 %v2953_v28  ;;  %vm1485_vm1 = vcmp.eq.f32.partialorder %v2953_v28, inf  ;;  %vm1487_vm2 = vcmp.eq.f32.partialorder %v2953_v28, 0.0 }
 0x712   :  { %v1231_v5 = vsel %vm1230_vm8, %v1218_v36, %v1229_v19  ;;  %vm3251_vm8 = vcmask 72704  }
 0x713   :  { %v1234_v6 = vsel %vm1232_vm9, %v1233_v54, %v1231_v5  ;;  %v2956_v8 = vmax.f32 %v1554_v53, 1e-10  ;;  %v2122_v62 = vpop.eup %2121 }
 0x714   :  { %v1675_v9 = vsel %vm503_vm6, %v2811_v39, %v1234_v6  ;;  %v1631_v10 = vpop.xlane.xlu1 %1630  ;;  %v1203_v52 = vpop.xlane.xlu0 %1202  ;;  %v1314_v12 = vmul.f32 %v2122_v62, %v1303_v44 }
 0x715   :  { %2127 = vrsqrt.f32 %v2956_v8  ;;  %v1639_v59 = vmul.f32 0.25, %v1631_v10  ;;  %v1213_v17 = vmul.f32 0.25, %v1203_v52  ;;  %v1680_v24 = vsel %vm1678_vm10, %v1675_v9, %v2809_v2 }
 0x716   :  { %v1316_v27 = vsel %vm1315_vm12, %v1303_v44, %v1314_v12  ;;  %vm1570_vm9 = vcmp.eq.f32.partialorder %v2956_v8, inf  ;;  %vm1572_vm12 = vcmp.eq.f32.partialorder %v2956_v8, 0.0 }
 0x717   :  { %v2124_v3 = vpop.eup %2123  ;;  %v1319_v30 = vsel %vm1317_vm13, %v1318_v48, %v1316_v27  ;;  %v2963_v1 = vmax.f32 %v1639_v59, 1e-10  ;;  %v2965_v33 = vmax.f32 %v1213_v17, 1e-10  ;;  %vm3250_vm13 = vcmask 80896  }
 0x718   :  { %v1399_v39 = vmul.f32 %v2124_v3, %v1388_v50  ;;  %v1212_v34 = vpop.xlane.xlu1 %1211  ;;  %v1288_v35 = vpop.xlane.xlu0 %1287  ;;  %v1685_v37 = vsel %vm1683_vm11, %v1680_v24, %v1319_v30 }
 0x719   :  { %v1216_v40 = vmul.f32 0.25, %v1212_v34  ;;  %v1298_v55 = vmul.f32 0.25, %v1288_v35  ;;  %2129 = vrsqrt.f32 %v2963_v1  ;;  %v1689_v36 = vsel %vm474_vm5, %v1685_v37, %v2817_v42 }
 0x71a   :  { %v1401_v61 = vsel %vm1400_vm14, %v1388_v50, %v1399_v39  ;;  %2131 = vrsqrt.f32 %v2965_v33  ;;  %v1488_v50 = vand.u32 2147483648, %v2953_v28  ;;  %vm3248_vm14 = vcmask 89088  }
 0x71b   :  { %v1404_v2 = vsel %vm1402_vm15, %v1403_v15, %v1401_v61  ;;  %v2126_v41 = vpop.eup %2125  ;;  %v2974_v26 = vmax.f32 %v1216_v40, 1e-10  ;;  %v2976_v51 = vmax.f32 %v1298_v55, 1e-10  ;;  %vm3249_vm15 = vcmask 97280  }
 0x71c   :  { %v1297_v43 = vpop.xlane.xlu1 %1296  ;;  %v1373_v18 = vpop.xlane.xlu0 %1372  ;;  %v1693_v44 = vsel %vm445_vm4, %v1689_v36, %v1404_v2  ;;  %v1484_v45 = vmul.f32 %v2126_v41, %v2953_v28  ;;  %v1658_v39 = vand.u32 2147483648, %v2963_v1 }
 0x71d   :  { %v1301_v20 = vmul.f32 0.25, %v1297_v43  ;;  %v1383_v57 = vmul.f32 0.25, %v1373_v18  ;;  %2133 = vrsqrt.f32 %v2974_v26  ;;  %v1697_v0 = vsel %vm416_vm3, %v1693_v44, %v2823_v46 }
 0x71e   :  { %v1486_v42 = vsel %vm1485_vm1, %v2953_v28, %v1484_v45  ;;  %2135 = vrsqrt.f32 %v2976_v51  ;;  %v1573_v28 = vand.u32 2147483648, %v2956_v8  ;;  %vm1655_vm1 = vcmp.eq.f32.partialorder %v2963_v1, inf }
 0x71f   :  { %v2128_v19 = vpop.eup %2127  ;;  %v1489_v54 = vsel %vm1487_vm2, %v1488_v50, %v1486_v42  ;;  %v2992_v10 = vmax.f32 %v1301_v20, 1e-10  ;;  %v2994_v46 = vmax.f32 %v1383_v57, 1e-10  ;;  %vm1657_vm2 = vcmp.eq.f32.partialorder %v2963_v1, 0.0 }
 0x720   :  { %v1569_v53 = vmul.f32 %v2128_v19, %v2956_v8  ;;  %v1382_v5 = vpop.xlane.xlu1 %1381  ;;  %v1458_v6 = vpop.xlane.xlu0 %1457  ;;  %v1702_v62 = vsel %vm1700_vm0, %v1697_v0, %v1489_v54  ;;  %v1226_v43 = vand.u32 2147483648, %v2965_v33  ;;  %v1247_v45 = vand.u32 2147483648, %v2974_v26 }
 0x721   :  { %v1386_v12 = vmul.f32 0.25, %v1382_v5  ;;  %v1468_v48 = vmul.f32 0.25, %v1458_v6  ;;  %v1707_v17 = vsel %vm1705_vm7, %v1702_v62, %v2829_v60  ;;  %2137 = vrsqrt.f32 %v2992_v10 }
 0x722   :  { %v1571_v9 = vsel %vm1570_vm9, %v2956_v8, %v1569_v53  ;;  %2139 = vrsqrt.f32 %v2994_v46  ;;  %vm1223_vm9 = vcmp.eq.f32.partialorder %v2965_v33, inf  ;;  %v1311_v20 = vand.u32 2147483648, %v2976_v51 }
 0x723   :  { %v1574_v52 = vsel %vm1572_vm12, %v1573_v28, %v1571_v9  ;;  %v2130_v59 = vpop.eup %2129  ;;  %v3007_v35 = vmax.f32 %v1386_v12, 1e-10  ;;  %v3009_v37 = vmax.f32 %v1468_v48, 1e-10  ;;  %vm1225_vm12 = vcmp.eq.f32.partialorder %v2965_v33, 0.0 }
 0x724   :  { %v1467_v3 = vpop.xlane.xlu1 %1466  ;;  %v1543_v24 = vpop.xlane.xlu0 %1542  ;;  %v1712_v30 = vsel %vm3251_vm8, %v1707_v17, %v1574_v52  ;;  %v1654_v8 = vmul.f32 %v2130_v59, %v2963_v1  ;;  %v1332_v5 = vand.u32 2147483648, %v2992_v10  ;;  %vm1395_vm8 = vcmp.eq.f32.partialorder %v2994_v46, 0.0 }
 0x725   :  { %v2132_v27 = vpop.eup %2131  ;;  %v1717_v15 = vsel %vm3250_vm13, %v1712_v30, %v2837_v63  ;;  %v1471_v55 = vmul.f32 0.25, %v1467_v3  ;;  %2141 = vrsqrt.f32 %v3007_v35  ;;  %vm1331_vm13 = vcmp.eq.f32.partialorder %v2992_v10, 0.0 }
 0x726   :  { %v1222_v60 = vmul.f32 %v2132_v27, %v2965_v33  ;;  %v1656_v34 = vsel %vm1655_vm1, %v2963_v1, %v1654_v8  ;;  %v1553_v1 = vmul.f32 0.25, %v1543_v24  ;;  %vm1244_vm1 = vcmp.eq.f32.partialorder %v2974_v26, inf }
 0x727   :  { %v1659_v40 = vsel %vm1657_vm2, %v1658_v39, %v1656_v34  ;;  %v2134_v2 = vpop.eup %2133  ;;  %vm1246_vm2 = vcmp.eq.f32.partialorder %v2974_v26, 0.0  ;;  %2143 = vrsqrt.f32 %v3009_v37  ;;  %v3032_v57 = vmax.f32 %v1471_v55, 1e-10 }
 0x728   :  { %v1628_v61 = vpop.xlane.xlu0 %1627  ;;  %v1722_v41 = vsel %vm3248_vm14, %v1717_v15, %v1659_v40  ;;  %v2136_v36 = vpop.eup %2135  ;;  %v1224_v63 = vsel %vm1223_vm9, %v2965_v33, %v1222_v60  ;;  %v1243_v18 = vmul.f32 %v2134_v2, %v2974_v26  ;;  %vm1308_vm14 = vcmp.eq.f32.partialorder %v2976_v51, inf }
 0x729   :  { %1727 = vst.msk [vmem:[%s3247_s12 + $0x8] sm:$0xff] %vm3249_vm15, %v1722_v41  ;;  %v1552_v44 = vpop.xlane.xlu1 %1551  ;;  %v1307_v50 = vmul.f32 %v2136_v36, %v2976_v51  ;;  %vm1310_vm15 = vcmp.eq.f32.partialorder %v2976_v51, 0.0  ;;  %v1227_v42 = vsel %vm1225_vm12, %v1226_v43, %v1224_v63  ;;  %vm1329_vm9 = vcmp.eq.f32.partialorder %v2992_v10, inf }
 0x72a   :  { %v3038_v0 = vmax.f32 %v1553_v1, 1e-10  ;;  %v1245_v53 = vsel %vm1244_vm1, %v2974_v26, %v1243_v18  ;;  %2145 = vrsqrt.f32 %v3032_v57  ;;  %v1556_v6 = vmul.f32 0.25, %v1552_v44 }
 0x72b   :  { %v2138_v54 = vpop.eup %2137  ;;  %v1309_v33 = vsel %vm1308_vm14, %v2976_v51, %v1307_v50  ;;  %vm1393_vm12 = vcmp.eq.f32.partialorder %v2994_v46, inf  ;;  %v1674_v9 = vsel %vm503_vm6, %v2847_v13, %v1227_v42  ;;  %v1396_v12 = vand.u32 2147483648, %v2994_v46 }
 0x72c   :  { %v1209_v19 = vpop.xlane.xlu0 %1208  ;;  %v2140_v62 = vpop.eup %2139  ;;  %v1328_v28 = vmul.f32 %v2138_v54, %v2992_v10  ;;  %2147 = vrsqrt.f32 %v3038_v0  ;;  %v1248_v17 = vsel %vm1246_vm2, %v1247_v45, %v1245_v53  ;;  %vm1414_vm14 = vcmp.eq.f32.partialorder %v3007_v35, inf }
 0x72d   :  { %v1392_v52 = vmul.f32 %v2140_v62, %v2994_v46  ;;  %v1637_v48 = vpop.xlane.xlu1 %1636  ;;  %vm1416_vm1 = vcmp.eq.f32.partialorder %v3007_v35, 0.0  ;;  %v1417_v3 = vand.u32 2147483648, %v3007_v35  ;;  %v1312_v13 = vsel %vm1310_vm15, %v1311_v20, %v1309_v33 }
 0x72e   :  { %v1330_v24 = vsel %vm1329_vm9, %v2992_v10, %v1328_v28  ;;  %v3064_v27 = vmax.f32 %v1556_v6, 1e-10  ;;  %v1638_v30 = vmul.f32 0.25, %v1628_v61  ;;  %v1679_v26 = vsel %vm1678_vm10, %v1674_v9, %v2835_v4 }
 0x72f   :  { %v2142_v8 = vpop.eup %2141  ;;  %v1394_v39 = vsel %vm1393_vm12, %v2994_v46, %v1392_v52  ;;  %vm1478_vm2 = vcmp.eq.f32.partialorder %v3009_v37, inf  ;;  %v1641_v60 = vmul.f32 0.25, %v1637_v48  ;;  %v1677_v51 = vsel %vm503_vm6, %v2858_v31, %v1248_v17 }
 0x730   :  { %v1294_v59 = vpop.xlane.xlu0 %1293  ;;  %v1413_v34 = vmul.f32 %v2142_v8, %v3007_v35  ;;  %2149 = vrsqrt.f32 %v3064_v27  ;;  %v1215_v15 = vmul.f32 0.25, %v1209_v19  ;;  %v1684_v61 = vsel %vm1683_vm11, %v1679_v26, %v1312_v13 }
 0x731   :  { %v2144_v55 = vpop.eup %2143  ;;  %v1333_v4 = vsel %vm1331_vm13, %v1332_v5, %v1330_v24  ;;  %vm1480_vm15 = vcmp.eq.f32.partialorder %v3009_v37, 0.0  ;;  %v1481_v2 = vand.u32 2147483648, %v3009_v37  ;;  %v1397_v41 = vsel %vm1395_vm8, %v1396_v12, %v1394_v39 }
 0x732   :  { %v1477_v31 = vmul.f32 %v2144_v55, %v3009_v37  ;;  %v3084_v1 = vmax.f32 %v1638_v30, 1e-10  ;;  %v3086_v36 = vmax.f32 %v1641_v60, 1e-10  ;;  %v1682_v63 = vsel %vm1678_vm10, %v1677_v51, %v2869_v22 }
 0x733   :  { %v1415_v10 = vsel %vm1414_vm14, %v3007_v35, %v1413_v34  ;;  %vm1499_vm13 = vcmp.eq.f32.partialorder %v3032_v57, inf  ;;  %vm1501_vm9 = vcmp.eq.f32.partialorder %v3032_v57, 0.0  ;;  %v1688_v46 = vsel %vm474_vm5, %v1684_v61, %v2845_v11 }
 0x734   :  { %v1379_v40 = vpop.xlane.xlu0 %1378  ;;  %v2146_v43 = vpop.eup %2145  ;;  %v1502_v18 = vand.u32 2147483648, %v3032_v57  ;;  %2151 = vrsqrt.f32 %v3084_v1  ;;  %v3099_v44 = vmax.f32 %v1215_v15, 1e-10  ;;  %v1687_v22 = vsel %vm1683_vm11, %v1682_v63, %v1333_v4 }
 0x735   :  { %v1692_v50 = vsel %vm445_vm4, %v1688_v46, %v1397_v41  ;;  %v1479_v20 = vsel %vm1478_vm2, %v3009_v37, %v1477_v31  ;;  %v1498_v19 = vmul.f32 %v2146_v43, %v3032_v57  ;;  %v1418_v11 = vsel %vm1416_vm1, %v1417_v3, %v1415_v10 }
 0x736   :  { %v2148_v42 = vpop.eup %2147  ;;  %2153 = vrsqrt.f32 %v3086_v36  ;;  %v1300_v54 = vmul.f32 0.25, %v1294_v59  ;;  %v1385_v53 = vmul.f32 0.25, %v1379_v40  ;;  %vm1563_vm8 = vcmp.eq.f32.partialorder %v3038_v0, inf }
 0x737   :  { %v1500_v5 = vsel %vm1499_vm13, %v3032_v57, %v1498_v19  ;;  %v1562_v6 = vmul.f32 %v2148_v42, %v3038_v0  ;;  %vm1565_vm12 = vcmp.eq.f32.partialorder %v3038_v0, 0.0  ;;  %v1691_v62 = vsel %vm474_vm5, %v1687_v22, %v2881_v29 }
 0x738   :  { %v1464_v45 = vpop.xlane.xlu0 %1463  ;;  %v1482_v35 = vsel %vm1480_vm15, %v1481_v2, %v1479_v20  ;;  %v1566_v33 = vand.u32 2147483648, %v3038_v0  ;;  %2155 = vrsqrt.f32 %v3099_v44  ;;  %v1695_v9 = vsel %vm445_vm4, %v1691_v62, %v1418_v11 }
 0x739   :  { %v1696_v52 = vsel %vm416_vm3, %v1692_v50, %v2855_v23  ;;  %v1564_v12 = vsel %vm1563_vm8, %v3038_v0, %v1562_v6  ;;  %vm1584_vm14 = vcmp.eq.f32.partialorder %v3064_v27, inf  ;;  %v1503_v29 = vsel %vm1501_vm9, %v1502_v18, %v1500_v5 }
 0x73a   :  { %v2150_v48 = vpop.eup %2149  ;;  %vm1586_vm1 = vcmp.eq.f32.partialorder %v3064_v27, 0.0  ;;  %v3130_v37 = vmax.f32 %v1300_v54, 1e-10  ;;  %v3132_v59 = vmax.f32 %v1385_v53, 1e-10  ;;  %v1701_v17 = vsel %vm1700_vm0, %v1696_v52, %v1482_v35 }
 0x73b   :  { %v1583_v3 = vmul.f32 %v2150_v48, %v3064_v27  ;;  %v1470_v13 = vmul.f32 0.25, %v1464_v45  ;;  %v1699_v24 = vsel %vm416_vm3, %v1695_v9, %v2894_v58  ;;  %v1567_v30 = vsel %vm1565_vm12, %v1566_v33, %v1564_v12 }
 0x73c   :  { %v1549_v28 = vpop.xlane.xlu0 %1548  ;;  %v1587_v57 = vand.u32 2147483648, %v3064_v27  ;;  %2157 = vrsqrt.f32 %v3130_v37  ;;  %v1704_v26 = vsel %vm1700_vm0, %v1699_v24, %v1503_v29  ;;  %vm1648_vm2 = vcmp.eq.f32.partialorder %v3084_v1, inf }
 0x73d   :  { %v1555_v23 = vmul.f32 0.25, %v1549_v28  ;;  %v1585_v39 = vsel %vm1584_vm14, %v3064_v27, %v1583_v3  ;;  %2159 = vrsqrt.f32 %v3132_v59  ;;  %v1706_v58 = vsel %vm1705_vm7, %v1701_v17, %v2866_v38 }
 0x73e   :  { %v2152_v60 = vpop.eup %2151  ;;  %v1588_v0 = vsel %vm1586_vm1, %v1587_v57, %v1585_v39  ;;  %vm1650_vm15 = vcmp.eq.f32.partialorder %v3084_v1, 0.0  ;;  %v3153_v51 = vmax.f32 %v1470_v13, 1e-10  ;;  %vm3252_vm13 = vcmask 72704  }
 0x73f   :  { %v1711_v34 = vsel %vm3252_vm13, %v1706_v58, %v1567_v30  ;;  %v1647_v15 = vmul.f32 %v2152_v60, %v3084_v1  ;;  %v3157_v40 = vmax.f32 %v1555_v23, 1e-10  ;;  %v1709_v4 = vsel %vm1705_vm7, %v1704_v26, %v2905_v32  ;;  %vm3253_vm8 = vmmov %vm3252_vm13 }
 0x740   :  { %v1634_v8 = vpop.xlane.xlu0 %1633  ;;  %v2154_v61 = vpop.eup %2153  ;;  %v1651_v38 = vand.u32 2147483648, %v3084_v1  ;;  %vm1669_vm9 = vcmp.eq.f32.partialorder %v3086_v36, inf  ;;  %2161 = vrsqrt.f32 %v3153_v51  ;;  %v1714_v27 = vsel %vm3253_vm8, %v1709_v4, %v1588_v0 }
 0x741   :  { %v1640_v55 = vmul.f32 0.25, %v1634_v8  ;;  %v1649_v2 = vsel %vm1648_vm2, %v3084_v1, %v1647_v15  ;;  %v1668_v41 = vmul.f32 %v2154_v61, %v3086_v36  ;;  %2163 = vrsqrt.f32 %v3157_v40 }
 0x742   :  { %v2156_v31 = vpop.eup %2155  ;;  %vm3254_vm12 = vcmask 80896   ;;  %v1652_v63 = vsel %vm1650_vm15, %v1651_v38, %v1649_v2  ;;  %vm1671_vm14 = vcmp.eq.f32.partialorder %v3086_v36, 0.0  ;;  %v1672_v10 = vand.u32 2147483648, %v3086_v36 }
 0x743   :  { %v1716_v32 = vsel %vm3254_vm12, %v1711_v34, %v2878_v56  ;;  %vm3255_vm1 = vcmask 89088   ;;  %v1670_v46 = vsel %vm1669_vm9, %v3086_v36, %v1668_v41  ;;  %v1236_v18 = vmul.f32 %v2156_v31, %v3099_v44  ;;  %vm3257_vm13 = vmmov %vm3254_vm12 }
 0x744   :  { %v1721_v43 = vsel %vm3255_vm1, %v1716_v32, %v1652_v63  ;;  %v1644_v45 = vmax.f32 %v1640_v55, 1e-10  ;;  %vm3256_vm2 = vcmask 97280   ;;  %v1719_v56 = vsel %vm3257_vm13, %v1714_v27, %v2918_v25  ;;  %vm3258_vm8 = vmmov %vm3255_vm1 }
 0x745   :  { %1726 = vst.msk [vmem:[%s3247_s12] sm:$0xff] %vm3256_vm2, %v1721_v43  ;;  %v1673_v1 = vsel %vm1671_vm14, %v1672_v10, %v1670_v46  ;;  %vm1237_vm15 = vcmp.eq.f32.partialorder %v3099_v44, inf  ;;  %v1240_v22 = vand.u32 2147483648, %v3099_v44  ;;  %vm1239_vm9 = vcmp.eq.f32.partialorder %v3099_v44, 0.0  ;;  %vm3259_vm12 = vmmov %vm3256_vm2 }
 0x746   :  { %v1724_v50 = vsel %vm3258_vm8, %v1719_v56, %v1673_v1  ;;  %v1238_v36 = vsel %vm1237_vm15, %v3099_v44, %v1236_v18  ;;  %2165 = vrsqrt.f32 %v1644_v45  ;;  %v2158_v20 = vpop.eup %2157  ;;  %vm1322_vm14 = vcmp.eq.f32.partialorder %v3130_v37, inf }
 0x747   :  { %1729 = vst.msk [vmem:[%s3247_s12 + $0x18] sm:$0xff] %vm3259_vm12, %v1724_v50  ;;  %v1241_v19 = vsel %vm1239_vm9, %v1240_v22, %v1238_v36  ;;  %v2160_v25 = vpop.eup %2159  ;;  %v1321_v11 = vmul.f32 %v2158_v20, %v3130_v37  ;;  %v1325_v54 = vand.u32 2147483648, %v3130_v37  ;;  %vm1324_vm1 = vcmp.eq.f32.partialorder %v3130_v37, 0.0 }
 0x748   :  { %v1676_v42 = vsel %vm503_vm6, %v2890_v7, %v1241_v19  ;;  %v1406_v44 = vmul.f32 %v2160_v25, %v3132_v59  ;;  %vm1407_vm2 = vcmp.eq.f32.partialorder %v3132_v59, inf  ;;  %v1410_v5 = vand.u32 2147483648, %v3132_v59 }
 0x749   :  { %v1323_v53 = vsel %vm1322_vm14, %v3130_v37, %v1321_v11  ;;  %v1681_v7 = vsel %vm1678_vm10, %v1676_v42, %v2902_v14  ;;  %vm1409_vm6 = vcmp.eq.f32.partialorder %v3132_v59, 0.0  ;;  %vm1492_vm13 = vcmp.eq.f32.partialorder %v3153_v51, inf }
 0x74a   :  { %v2162_v6 = vpop.eup %2161  ;;  %v1326_v62 = vsel %vm1324_vm1, %v1325_v54, %v1323_v53  ;;  %v1408_v35 = vsel %vm1407_vm2, %v3132_v59, %v1406_v44  ;;  %vm1494_vm15 = vcmp.eq.f32.partialorder %v3153_v51, 0.0  ;;  %v1495_v14 = vand.u32 2147483648, %v3153_v51 }
 0x74b   :  { %v2164_v33 = vpop.eup %2163  ;;  %v1686_v28 = vsel %vm1683_vm11, %v1681_v7, %v1326_v62  ;;  %v1411_v9 = vsel %vm1409_vm6, %v1410_v5, %v1408_v35  ;;  %v1491_v52 = vmul.f32 %v2162_v6, %v3153_v51  ;;  %vm1577_vm10 = vcmp.eq.f32.partialorder %v3157_v40, inf }
 0x74c   :  { %v1690_v12 = vsel %vm474_vm5, %v1686_v28, %v2916_v21  ;;  %v1576_v48 = vmul.f32 %v2164_v33, %v3157_v40  ;;  %v1580_v59 = vand.u32 2147483648, %v3157_v40  ;;  %vm1579_vm5 = vcmp.eq.f32.partialorder %v3157_v40, 0.0 }
 0x74d   :  { %v1694_v29 = vsel %vm445_vm4, %v1690_v12, %v1411_v9  ;;  %v1493_v37 = vsel %vm1492_vm13, %v3153_v51, %v1491_v52  ;;  %vm3260_vm4 = vcmask 72704   ;;  %vm1662_vm11 = vcmp.eq.f32.partialorder %v1644_v45, inf }
 0x74e   :  { %v1698_v17 = vsel %vm416_vm3, %v1694_v29, %v2928_v47  ;;  %v1496_v3 = vsel %vm1494_vm15, %v1495_v14, %v1493_v37  ;;  %v1578_v21 = vsel %vm1577_vm10, %v3157_v40, %v1576_v48  ;;  %v1665_v26 = vand.u32 2147483648, %v1644_v45 }
 0x74f   :  { %v1703_v23 = vsel %vm1700_vm0, %v1698_v17, %v1496_v3  ;;  %v1581_v24 = vsel %vm1579_vm5, %v1580_v59, %v1578_v21  ;;  %vm1664_vm8 = vcmp.eq.f32.partialorder %v1644_v45, 0.0  ;;  %vm3261_vm3 = vcmask 80896  }
 0x750   :  { %v2166_v13 = vpop.eup %2165  ;;  %v1708_v30 = vsel %vm1705_vm7, %v1703_v23, %v2935_v49  ;;  %vm3262_vm9 = vcmask 89088  }
 0x751   :  { %v1661_v57 = vmul.f32 %v2166_v13, %v1644_v45  ;;  %v1713_v8 = vsel %vm3260_vm4, %v1708_v30, %v1581_v24 }
 0x752   :  { %v1718_v47 = vsel %vm3261_vm3, %v1713_v8, %v2942_v16 }
 0x753   :  { %v1663_v39 = vsel %vm1662_vm11, %v1644_v45, %v1661_v57 }
 0x754   :  { %v1666_v60 = vsel %vm1664_vm8, %v1665_v26, %v1663_v39 }
 0x755   :  { %v1723_v58 = vsel %vm3262_vm9, %v1718_v47, %v1666_v60 }
 0x756   :  { %1728 = vst.msk [vmem:[%s3247_s12 + $0x10] sm:$0xff] %vm3259_vm12, %v1723_v58 }

</bundles_post_ra>
